<compile_context>
chip_gen: v7x
topology: tpu7x:2x2x1
jax: 0.10.0
libtpu: 0.0.40
codegen_flags: <defaults>
</compile_context>

<pallas_src>
import jax
import jax.numpy as jnp
from jax.experimental import pallas as pl
from jax.experimental.pallas import tpu as pltpu


def _round_up(x, m):
    return (x + m - 1) // m * m


# ---------------------------------------------------------------------------
# Kernel
# ---------------------------------------------------------------------------
def _da_ins_head_kernel(x_ref, w1_ref, b1_ref, w2_ref, b2_ref, w3_ref, b3_ref,
                        out_ref):
    """Fused DAInsHead MLP in transposed (feature-major) form.

    Per grid step (tm = tile of proposals, mapped to the lane axis):
      x_ref  : (C,  tm)  bf16   transposed input block
      w1_ref : (H1, C)   bf16   fc1 weight (PyTorch (out, in) layout)
      b1_ref : (H1, 1)   f32
      w2_ref : (H2, H1)  bf16   fc2 weight
      b2_ref : (H2, 1)   f32
      w3_ref : (1,  H2)  bf16   fc3 weight
      b3_ref : (1,)      f32    (SMEM scalar)
      out_ref: (1,  tm)  f32    lane-dense logits
    """
    # fc1 + relu (dropout is identity in eval)
    h1 = jnp.dot(w1_ref[...], x_ref[...],
                 preferred_element_type=jnp.float32) + b1_ref[...]
    h1 = jnp.maximum(h1, 0.0)
    # fc2 + relu
    h2 = jnp.dot(w2_ref[...], h1.astype(jnp.bfloat16),
                 preferred_element_type=jnp.float32) + b2_ref[...]
    h2 = jnp.maximum(h2, 0.0)
    # fc3 (1 output unit) -> naturally lane-dense (1, tm) result.
    # (Negligible MXU work; left on the MXU per review guidance.)
    y = jnp.dot(w3_ref[...], h2.astype(jnp.bfloat16),
                preferred_element_type=jnp.float32) + b3_ref[0]
    out_ref[...] = y


# ---------------------------------------------------------------------------
# Tiling / VMEM helpers
# ---------------------------------------------------------------------------
def _choose_tiling(R, block_r):
    """Pick (tm, r_pad): tm a multiple of 256 (packed 2x256^2 MXU pushes);
    for large R make the step count even so v7x megacore can split it."""
    tm = min(_round_up(block_r, 256), _round_up(R, 256))
    r_pad = _round_up(R, tm)
    if R >= 2048:
        n_steps = r_pad // tm
        if n_steps < 2 or n_steps % 2 != 0:
            r_pad = _round_up(R, 2 * tm)
    return tm, r_pad


def _vmem_limit_bytes(C, H1, H2, tm):
    """Footprint-derived scoped-VMEM limit (2x margin), clamped to keep
    headroom on v7x (64 MiB physical) while exceeding v5e's 16 MiB default."""
    bf16, f32 = 2, 4
    operands = (
        2 * C * tm * bf16                       # x tile (double-buffered)
        + H1 * C * bf16                         # w1 (single-buffered)
        + H2 * H1 * bf16                        # w2 (single-buffered)
        + H2 * bf16                             # w3
        + (H1 + H2 + 1) * 128 * f32             # biases, lane-padded layout
        + 2 * 8 * tm * f32                      # out tile (double-buffered, sublane-padded)
    )
    intermediates = (H1 + H2) * tm * (f32 + bf16)   # h1/h2 f32 + bf16 casts
    est = operands + intermediates
    return int(min(max(2 * est, 16 * 1024 * 1024), 48 * 1024 * 1024))


# ---------------------------------------------------------------------------
# Wrapper
# ---------------------------------------------------------------------------
def da_ins_head(x, params, *, block_r=1024):
    """DAInsHead forward.  x: (R, in_channels) -> logits (R, 1)."""
    R = x.shape[0]
    x2 = x.reshape(R, -1)
    C = x2.shape[1]

    w1, b1 = params["w1"], params["b1"]          # (H1, C), (H1,)
    w2, b2 = params["w2"], params["b2"]          # (H2, H1), (H2,)
    w3, b3 = params["w3"], params["b3"]          # (1, H2), (1,)
    H1 = w1.shape[0]
    H2 = w2.shape[0]

    if R == 0:  # empty proposal batch
        return jnp.zeros((0, 1), jnp.float32)

    tm, r_pad = _choose_tiling(R, block_r)

    # Lane-dense layout: proposals go to lanes.  Cast to bf16 BEFORE the
    # pad/transpose so the layout plumbing only moves half-width data.
    # TODO(synk): for very large R, benchmark keeping x row-major and
    # contracting on its lane axis with dot_general to drop this transpose.
    x_t = jnp.pad(x2.astype(jnp.bfloat16), ((0, r_pad - R), (0, 0))).T  # (C, r_pad)

    w1b = w1.astype(jnp.bfloat16)
    w2b = w2.astype(jnp.bfloat16)
    w3b = w3.reshape(1, H2).astype(jnp.bfloat16)
    b1c = b1.reshape(H1, 1).astype(jnp.float32)
    b2c = b2.reshape(H2, 1).astype(jnp.float32)
    b3s = b3.reshape(1).astype(jnp.float32)

    # Grid-invariant operands: constant index_map + single buffer (no re-DMA,
    # no wasted second VMEM buffer).
    resident = dict(pipeline_mode=pl.Buffered(1))

    grid = (r_pad // tm,)
    out = pl.pallas_call(
        _da_ins_head_kernel,
        out_shape=jax.ShapeDtypeStruct((1, r_pad), jnp.float32),
        grid=grid,
        in_specs=[
            pl.BlockSpec((C, tm), lambda i: (0, i)),                 # x^T tile
            pl.BlockSpec((H1, C), lambda i: (0, 0), **resident),     # fc1 weight
            pl.BlockSpec((H1, 1), lambda i: (0, 0), **resident),     # fc1 bias
            pl.BlockSpec((H2, H1), lambda i: (0, 0), **resident),    # fc2 weight
            pl.BlockSpec((H2, 1), lambda i: (0, 0), **resident),     # fc2 bias
            pl.BlockSpec((1, H2), lambda i: (0, 0), **resident),     # fc3 weight
            pl.BlockSpec(memory_space=pltpu.MemorySpace.SMEM),       # fc3 bias scalar
        ],
        out_specs=pl.BlockSpec((1, tm), lambda i: (0, i)),
        compiler_params=pltpu.CompilerParams(
            dimension_semantics=("parallel",),            # megacore on v7x
            vmem_limit_bytes=_vmem_limit_bytes(C, H1, H2, tm),
        ),
    )(x_t, w1b, b1c, w2b, b2c, w3b, b3s)

    return out[0, :R].reshape(R, 1)


# ---------------------------------------------------------------------------
# Parameter init (matches module: fc1/fc2 std=0.01, fc3 std=0.05, zero biases)
# ---------------------------------------------------------------------------
def make_params(key, in_channels, hidden=1024):
    k1, k2, k3 = jax.random.split(key, 3)
    return {
        "w1": 0.01 * jax.random.normal(k1, (hidden, in_channels), jnp.float32),
        "b1": jnp.zeros((hidden,), jnp.float32),
        "w2": 0.01 * jax.random.normal(k2, (hidden, hidden), jnp.float32),
        "b2": jnp.zeros((hidden,), jnp.float32),
        "w3": 0.05 * jax.random.normal(k3, (1, hidden), jnp.float32),
        "b3": jnp.zeros((1,), jnp.float32),
    }


# ---------------------------------------------------------------------------
# Pure-JAX reference (same bf16-input / f32-accumulate math, eval-mode)
# ---------------------------------------------------------------------------
def _reference(x, params):
    xb = x.reshape(x.shape[0], -1).astype(jnp.bfloat16)
    w1 = params["w1"].astype(jnp.bfloat16)
    w2 = params["w2"].astype(jnp.bfloat16)
    w3 = params["w3"].astype(jnp.bfloat16)
    h1 = jnp.dot(xb, w1.T, preferred_element_type=jnp.float32) + params["b1"]
    h1 = jnp.maximum(h1, 0.0)
    h2 = jnp.dot(h1.astype(jnp.bfloat16), w2.T,
                 preferred_element_type=jnp.float32) + params["b2"]
    h2 = jnp.maximum(h2, 0.0)
    y = jnp.dot(h2.astype(jnp.bfloat16), w3.T,
                preferred_element_type=jnp.float32) + params["b3"]
    return y  # (R, 1)


if __name__ == "__main__":
    key = jax.random.PRNGKey(0)
    kx, kp, kb1, kb2, kb3 = jax.random.split(key, 5)

    # Small, module-consistent shapes: 300 ROI-pooled proposal features of
    # 256 channels; hidden sizes are fixed at 1024 by the module.
    R, C = 300, 256
    x = jax.random.normal(kx, (R, C), jnp.float32)
    params = make_params(kp, C)
    # Use non-zero biases in the test so the bias path is actually exercised
    # (forward semantics don't depend on the init values).
    params["b1"] = 0.01 * jax.random.normal(kb1, params["b1"].shape, jnp.float32)
    params["b2"] = 0.01 * jax.random.normal(kb2, params["b2"].shape, jnp.float32)
    params["b3"] = 0.01 * jax.random.normal(kb3, params["b3"].shape, jnp.float32)

    # block_r=256 -> tm=256, 2-step parallel grid with a padded last tile
    # (R=300), exercising the multi-step path and single-buffered weights.
    logits = da_ins_head(x, params, block_r=256)
    jax.block_until_ready(logits)

    ref = _reference(x, params)
    assert logits.shape == (R, 1)
    err = float(jnp.max(jnp.abs(logits - ref)))
    assert jnp.allclose(logits, ref, atol=1e-3, rtol=1e-2), err

    # Also exercise the default (single-step, tm=512) tiling path.
    logits1 = da_ins_head(x, params)
    jax.block_until_ready(logits1)
    assert jnp.allclose(logits1, ref, atol=1e-3, rtol=1e-2)

    print("KERNEL_OK")
</pallas_src>

<mosaic_0001>
module attributes {stable_mosaic.version = 11 : i64} {
  func.func @_da_ins_head_kernel(%arg0: i32, %arg1: memref<256x256xbf16, #tpu.memory_space<vmem>>, %arg2: memref<1024x256xbf16, #tpu.memory_space<vmem>>, %arg3: memref<1024x1xf32, #tpu.memory_space<vmem>>, %arg4: memref<1024x1024xbf16, #tpu.memory_space<vmem>>, %arg5: memref<1024x1xf32, #tpu.memory_space<vmem>>, %arg6: memref<1x1024xbf16, #tpu.memory_space<vmem>>, %arg7: memref<1xf32, #tpu.memory_space<smem>>, %arg8: memref<1x256xf32, #tpu.memory_space<vmem>>) attributes {dimension_semantics = [#tpu.dimension_semantics<parallel>], iteration_bounds = array<i64: 2>, scalar_prefetch = 0 : i64, scratch_operands = 0 : i64, tpu.core_type = #tpu.core_type<tc>, window_params = [{transform_indices = @transform_0, window_bounds = array<i64: 256, 256>}, {pipeline_mode = #tpu.pipeline_mode<synchronous>, transform_indices = @transform_1, window_bounds = array<i64: 1024, 256>}, {pipeline_mode = #tpu.pipeline_mode<synchronous>, transform_indices = @transform_2, window_bounds = array<i64: 1024, 1>}, {pipeline_mode = #tpu.pipeline_mode<synchronous>, transform_indices = @transform_3, window_bounds = array<i64: 1024, 1024>}, {pipeline_mode = #tpu.pipeline_mode<synchronous>, transform_indices = @transform_4, window_bounds = array<i64: 1024, 1>}, {pipeline_mode = #tpu.pipeline_mode<synchronous>, transform_indices = @transform_5, window_bounds = array<i64: 1, 1024>}, {transform_indices = @transform_6, window_bounds = array<i64: 1>}, {transform_indices = @transform_7, window_bounds = array<i64: 1, 256>}]} {
    %c0 = arith.constant 0 : index
    %c0_0 = arith.constant 0 : index
    %0 = vector.load %arg2[%c0, %c0_0] : memref<1024x256xbf16, #tpu.memory_space<vmem>>, vector<1024x256xbf16>
    %c0_1 = arith.constant 0 : index
    %c0_2 = arith.constant 0 : index
    %1 = vector.load %arg1[%c0_1, %c0_2] : memref<256x256xbf16, #tpu.memory_space<vmem>>, vector<256x256xbf16>
    %cst = arith.constant dense<0.000000e+00> : vector<1024x256xf32>
    %2 = tpu.matmul %0, %1, %cst {dimension_numbers = #tpu.dot_dimension_numbers<[1], [0], [0], [1], [0, 0, 1, 1], [], []>} : vector<1024x256xbf16>, vector<256x256xbf16>, vector<1024x256xf32> -> vector<1024x256xf32>
    %c0_3 = arith.constant 0 : index
    %c0_4 = arith.constant 0 : index
    %3 = vector.load %arg3[%c0_3, %c0_4] : memref<1024x1xf32, #tpu.memory_space<vmem>>, vector<1024x1xf32>
    %4 = vector.broadcast %3 : vector<1024x1xf32> to vector<1024x256xf32>
    %5 = arith.addf %2, %4 : vector<1024x256xf32>
    %cst_5 = arith.constant 0.000000e+00 : f32
    %6 = vector.broadcast %cst_5 : f32 to vector<1024x256xf32>
    %7 = arith.maximumf %5, %6 : vector<1024x256xf32>
    %c0_6 = arith.constant 0 : index
    %c0_7 = arith.constant 0 : index
    %8 = vector.load %arg4[%c0_6, %c0_7] : memref<1024x1024xbf16, #tpu.memory_space<vmem>>, vector<1024x1024xbf16>
    %9 = arith.truncf %7 : vector<1024x256xf32> to vector<1024x256xbf16>
    %cst_8 = arith.constant dense<0.000000e+00> : vector<1024x256xf32>
    %10 = tpu.matmul %8, %9, %cst_8 {dimension_numbers = #tpu.dot_dimension_numbers<[1], [0], [0], [1], [0, 0, 1, 1], [], []>} : vector<1024x1024xbf16>, vector<1024x256xbf16>, vector<1024x256xf32> -> vector<1024x256xf32>
    %c0_9 = arith.constant 0 : index
    %c0_10 = arith.constant 0 : index
    %11 = vector.load %arg5[%c0_9, %c0_10] : memref<1024x1xf32, #tpu.memory_space<vmem>>, vector<1024x1xf32>
    %12 = vector.broadcast %11 : vector<1024x1xf32> to vector<1024x256xf32>
    %13 = arith.addf %10, %12 : vector<1024x256xf32>
    %cst_11 = arith.constant 0.000000e+00 : f32
    %14 = vector.broadcast %cst_11 : f32 to vector<1024x256xf32>
    %15 = arith.maximumf %13, %14 : vector<1024x256xf32>
    %c0_12 = arith.constant 0 : index
    %c0_13 = arith.constant 0 : index
    %16 = vector.load %arg6[%c0_12, %c0_13] : memref<1x1024xbf16, #tpu.memory_space<vmem>>, vector<1x1024xbf16>
    %17 = arith.truncf %15 : vector<1024x256xf32> to vector<1024x256xbf16>
    %cst_14 = arith.constant dense<0.000000e+00> : vector<1x256xf32>
    %18 = tpu.matmul %16, %17, %cst_14 {dimension_numbers = #tpu.dot_dimension_numbers<[1], [0], [0], [1], [0, 0, 1, 1], [], []>} : vector<1x1024xbf16>, vector<1024x256xbf16>, vector<1x256xf32> -> vector<1x256xf32>
    %c0_15 = arith.constant 0 : index
    %19 = memref.load %arg7[%c0_15] : memref<1xf32, #tpu.memory_space<smem>>
    %20 = vector.broadcast %19 : f32 to vector<1x256xf32>
    %21 = arith.addf %18, %20 : vector<1x256xf32>
    %c0_16 = arith.constant 0 : index
    %c0_17 = arith.constant 0 : index
    %22 = vector.load %arg8[%c0_16, %c0_17] : memref<1x256xf32, #tpu.memory_space<vmem>>, vector<1x256xf32>
    tpu.vector_store %arg8[%c0_16, %c0_17], %21 {strides = array<i32>} : memref<1x256xf32, #tpu.memory_space<vmem>>, vector<1x256xf32>,
    return
  }
  func.func @transform_0(%arg0: i32) -> (i32, i32) {
    %c0_i32 = arith.constant 0 : i32
    %c0_i32_0 = arith.constant 0 : i32
    return %c0_i32, %arg0 : i32, i32
  }
  func.func @transform_1(%arg0: i32) -> (i32, i32) {
    %c0_i32 = arith.constant 0 : i32
    %c0_i32_0 = arith.constant 0 : i32
    %c0_i32_1 = arith.constant 0 : i32
    return %c0_i32, %c0_i32_0 : i32, i32
  }
  func.func @transform_2(%arg0: i32) -> (i32, i32) {
    %c0_i32 = arith.constant 0 : i32
    %c0_i32_0 = arith.constant 0 : i32
    %c0_i32_1 = arith.constant 0 : i32
    return %c0_i32, %c0_i32_0 : i32, i32
  }
  func.func @transform_3(%arg0: i32) -> (i32, i32) {
    %c0_i32 = arith.constant 0 : i32
    %c0_i32_0 = arith.constant 0 : i32
    %c0_i32_1 = arith.constant 0 : i32
    return %c0_i32, %c0_i32_0 : i32, i32
  }
  func.func @transform_4(%arg0: i32) -> (i32, i32) {
    %c0_i32 = arith.constant 0 : i32
    %c0_i32_0 = arith.constant 0 : i32
    %c0_i32_1 = arith.constant 0 : i32
    return %c0_i32, %c0_i32_0 : i32, i32
  }
  func.func @transform_5(%arg0: i32) -> (i32, i32) {
    %c0_i32 = arith.constant 0 : i32
    %c0_i32_0 = arith.constant 0 : i32
    %c0_i32_1 = arith.constant 0 : i32
    return %c0_i32, %c0_i32_0 : i32, i32
  }
  func.func @transform_6(%arg0: i32) -> i32 {
    %c0_i32 = arith.constant 0 : i32
    %c0_i32_0 = arith.constant 0 : i32
    return %c0_i32 : i32
  }
  func.func @transform_7(%arg0: i32) -> (i32, i32) {
    %c0_i32 = arith.constant 0 : i32
    %c0_i32_0 = arith.constant 0 : i32
    return %c0_i32, %arg0 : i32, i32
  }
}

</mosaic_0001>

<bundles_post_ra>
// kernel: tpu_custom_call.1
= control target key start
LH: loop header
LB: loop body
LE: loop exit
PB: predicated region body
PF: predicated region fallthrough
CT: control target
= control target key end

     0   :  { %s15458_s0 = inlined_call_operand.hbm [shape: bf16[256,512], index: 0, kind: input, shape index: {}]   ;;  %s15459_s1 = inlined_call_operand.hbm [shape: bf16[1024,256], index: 1, kind: input, shape index: {}]   ;;  %s15460_s2 = inlined_call_operand.vmem [shape: f32[1024,1], index: 2, kind: input, shape index: {}]   ;;  %s15461_s3 = inlined_call_operand.hbm [shape: bf16[1024,1024], index: 3, kind: input, shape index: {}]   ;;  %s15462_s4 = inlined_call_operand.vmem [shape: f32[1024,1], index: 4, kind: input, shape index: {}]   ;;  %s15463_s5 = inlined_call_operand.hbm [shape: bf16[1,1024], index: 5, kind: input, shape index: {}]   ;;  %s15464_s6 = inlined_call_operand.<no memory space> [shape: f32[1], index: 6, kind: input, shape index: {}]   ;;  %s15465_s7 = inlined_call_operand.hbm [shape: f32[1,512], index: 7, kind: output, shape index: {}]  }
   0x1   :  { %15573 = sst [smem:[#allocation266_spill]] %s15459_s1 }
   0x2   :  { %12 = sst [smem:[#allocation2]] %s15464_s6 }
   0x3   :  { %13 = vsyncpa [#allocation4], 0 }
   0x4   :  { %15 = vsyncpa [#allocation4 + $0x1], 0 }
   0x5   :  { %16 = vsyncpa [#allocation7], 0 }
   0x6   :  { %17 = vsyncpa [#allocation10], 0 }
   0x7   :  { %18 = vsyncpa [#allocation5], 0 }
   0x8   :  { %20 = vsyncpa [#allocation5 + $0x1], 0  ;;  %s12743_s26 = smov 0   ;;  %s12745_s27 = smov 0  }
   0x9   :  { %s12747_s28 = smov 0   ;;  %s12749_s29 = smov 0  }
   0xa LB: > { %15574 = sst [smem:[#allocation16_spill]] %s12674_s26  ;;  %s12764_s6 = sadd.s32 4294967295, %s12686_s29   ;;  %s12686_s29 = sphi %s12749_s29, %s16228_s29   ;;  %s12682_s28 = sphi %s12747_s28, %s16232_s28   ;;  %s12678_s27 = sphi %s12745_s27, %s16231_s27   ;;  %s12674_s26 = sphi %s12743_s26, %s16230_s26  }
   0xb   : > { %s10405_s30 = sadd.s32 4294967294, %s12686_s29   ;;  %s12768_s8 = sadd.s32 1, %s12686_s29  }
   0xc   : > { %15575 = sst [smem:[#allocation17_spill]] %s12768_s8  ;;  %s33_s9 = sadd.s32 1, %s12682_s28 }
   0xd   : > { %s30_s10 = ssub.s32 %s12686_s29, %s12768_s8  ;;  %p40_p0 = scmp.ne.s32.totalorder %s12682_s28, %s12678_s27 }
   0xe   : > { %p31_p1 = scmp.eq.s32.totalorder %s30_s10, 0  ;;  %p41_p2 = scmp.eq.s32.totalorder %s12686_s29, 0 }
   0xf   : > { %p46_p3 = scmp.ne.s32.totalorder %s12678_s27, %s12674_s26  ;;  %p15466_p4 = scmp.eq.s32.totalorder %s12764_s6, 0 }
  0x10   : > { %s12780_s11 = scalar_select %p31_p1, %s12682_s28, %s33_s9  }
  0x11   : > { %p12782_p5 = por %p41_p2, %p40_p0  ;;  %p12788_p6 = por %p15466_p4, %p46_p3 }
  0x12   : > { %15576 = sst [smem:[#allocation18_spill]] %s12780_s11  ;;  %p196_p7 = scmp.eq.s32.totalorder %s12764_s6, 1 }
  0x13   : > { %s15577_s12 = scalar_select %p12782_p5, 1, 0 }
  0x14   : > { %s15578_s13 = scalar_select %p12788_p6, 1, 0 }
  0x15   : > { %p202_p8 = scmp.eq.s32.totalorder %s10405_s30, 1  ;;  %p10406_p9 = scmp.ge.s32.totalorder %s12686_s29, 1 }
  0x16   : > { %p209_p10 = scmp.lt.s32.totalorder %s12686_s29, 3  ;;  %p12795_p11 = por %p196_p7, %p40_p0 }
  0x17   : > { %p12799_p12 = por %p202_p8, %p46_p3  ;;  %s12688_s17 = smov [#allocation6]  }
  0x18   : > { %s15579_s14 = scalar_select %p12795_p11, 1, 0 }
  0x19   : > { %s15580_s15 = scalar_select %p12799_p12, 1, 0 }
  0x1a   : > { %p12803_p13 = pnand %p10406_p9, %p209_p10  ;;  %s221_s18 = sshll.u32 %s12688_s17, 4  ;;  %s222_s18 = int_to_ptr.vmem [resolvable:$true] %s221_s18 }
  0x1b   : > { %15581 = sst [smem:[#allocation19_spill]] %s15580_s15  ;;  %s12689_s20 = smov [#allocation8]  }
  0x1c   : > { %s15582_s16 = scalar_select %p12803_p13, 1, 0 }
  0x1d   : > { %p12185_p1 = pneg %p12803_p13  ;;  %s237_s21 = sshll.u32 %s12689_s20, 4  ;;  %s238_s21 = int_to_ptr.vmem [resolvable:$true] %s237_s21 }
  0x1e   : > { %s15584_s1 = sld [smem:[#allocation266_spill]] }
  0x1f   : > { %p12811_p2 = pnand %p12185_p1, %p15466_p4 }
  0x21   : > { %p12825_p8 = pneg %p12811_p2 }
  0x24   : > { %s12498_s24 = scalar_lea.hbm %s15584_s1, 16384 }
  0x25   : > { %p12499_p7 = scmp.ne.s32.totalorder %s15584_s1, %s12498_s24  ;;  %p12505_p1 = scmp.lt.u32.totalorder %s12498_s24, %s15584_s1 }
  0x27   : > { %p12501_p9 = pnand %p12825_p8, %p12499_p7 }
  0x29   : > { %p12502_p10 = pneg %p12501_p9 }
  0x2b   : > { %p12507_p0 = pnand %p12505_p1, %p12502_p10 }
  0x2d   : > { %12510 = shalt.err (!%p12507_p0)
}
  0x2e   : > { %s12511_s20 = scalar_lea.vmem %s222_s18, 16384  ;;  %p12519_p11 = scmp.lt.s32.totalorder %s222_s18, %s222_s18 }
  0x2f   : > { %p12512_p4 = scmp.ne.s32.totalorder %s222_s18, %s12511_s20  ;;  %p12520_p6 = scmp.lt.s32.totalorder %s12511_s20, %s12511_s20 }
  0x31   : > { %p12514_p3 = pnand %p12512_p4, %p12825_p8  ;;  %p12521_p13 = por %p12520_p6, %p12519_p11 }
  0x33   : > { %p12515_p12 = pneg %p12514_p3 }
  0x35   : > { %p12522_p5 = pnand %p12521_p13, %p12515_p12 }
  0x37   : > { %12525 = shalt.err (!%p12522_p5)
}
  0x38   : > { %s15473_s22 = smov 128   ;;  %s15474_s23 = smov 8  }
  0x39   : > { %12188 = dma.hbm_to_vmem [thread:$0]  (!%p12811_p2), %s15584_s1, 16384, %s222_s18, [#allocation7], %s15473_s22, %s15473_s22, %s15474_s23  }
  0x3a   : > { %p15586_p4 = scmp.ne.s32.totalorder %s15577_s12, 0  ;;  %p15587_p0 = scmp.lt.s32.totalorder %s12686_s29, 2 }
  0x3b   : > { %s12526_s20 = scalar_lea.hbm %s15461_s3, 65536 }
  0x3c   : > { %p12848_p3 = pnand %p15587_p0, %p15586_p4  ;;  %p12527_p5 = scmp.ne.s32.totalorder %s15461_s3, %s12526_s20 }
  0x3d   : > { %p12533_p12 = scmp.lt.u32.totalorder %s12526_s20, %s15461_s3 }
  0x3e   : > { %s15588_s30 = scalar_select %p12848_p3, 1, 0 }
  0x3f   : > { %p12529_p6 = pnand %p12527_p5, %p12825_p8 }
  0x41   : > { %p12530_p11 = pneg %p12529_p6 }
  0x43   : > { %p12535_p13 = pnand %p12533_p12, %p12530_p11 }
  0x45   : > { %12538 = shalt.err (!%p12535_p13)
}
  0x46   : > { %s12539_s12 = scalar_lea.vmem %s238_s21, 65536  ;;  %p12547_p1 = scmp.lt.s32.totalorder %s238_s21, %s238_s21 }
  0x47   : > { %p12540_p7 = scmp.ne.s32.totalorder %s238_s21, %s12539_s12  ;;  %p12548_p4 = scmp.lt.s32.totalorder %s12539_s12, %s12539_s12 }
  0x49   : > { %p12542_p9 = pnand %p12540_p7, %p12825_p8  ;;  %p12549_p0 = por %p12548_p4, %p12547_p1 }
  0x4b   : > { %p12543_p10 = pneg %p12542_p9 }
  0x4d   : > { %p12550_p3 = pnand %p12549_p0, %p12543_p10 }
  0x4f   : > { %12553 = shalt.err (!%p12550_p3)
}
  0x50   : > { %s12692_s8 = smov 512   ;;  %s12693_s11 = smov 32  }
  0x51   : > { %12191 = dma.hbm_to_vmem [thread:$0]  (!%p12811_p2), %s15461_s3, 65536, %s238_s21, [#allocation7], %s12692_s8, %s12692_s8, %s12693_s11  }
  0x52   : > { %s12694_s17 = smov [#allocation9]   ;;  %s268_s24 = sand.u32 1, %s12682_s28  }
  0x53   : > { %s254_s20 = sshll.u32 %s12694_s17, 4  ;;  %s12554_s12 = scalar_lea.hbm %s15463_s5, 128  ;;  %s255_s20 = int_to_ptr.vmem [resolvable:$true] %s254_s20 }
  0x54   : > { %p12555_p3 = scmp.ne.s32.totalorder %s15463_s5, %s12554_s12  ;;  %p12561_p11 = scmp.lt.u32.totalorder %s12554_s12, %s15463_s5 }
  0x56   : > { %p12557_p5 = pnand %p12555_p3, %p12825_p8 }
  0x58   : > { %p12558_p6 = pneg %p12557_p5 }
  0x5a   : > { %p12563_p12 = pnand %p12561_p11, %p12558_p6 }
  0x5c   : > { %12566 = shalt.err (!%p12563_p12)
}
  0x5d   : > { %s12567_s21 = scalar_lea.vmem %s255_s20, 128  ;;  %p12575_p10 = scmp.lt.s32.totalorder %s255_s20, %s255_s20 }
  0x5e   : > { %p12568_p13 = scmp.ne.s32.totalorder %s255_s20, %s12567_s21  ;;  %p12576_p1 = scmp.lt.s32.totalorder %s12567_s21, %s12567_s21 }
  0x60   : > { %p12570_p7 = pnand %p12568_p13, %p12825_p8  ;;  %p12577_p4 = por %p12576_p1, %p12575_p10 }
  0x62   : > { %p12571_p9 = pneg %p12570_p7 }
  0x64   : > { %p12578_p0 = pnand %p12577_p4, %p12571_p9 }
  0x66   : > { %12581 = shalt.err (!%p12578_p0)
}
  0x67   : > { %12194 = dma.hbm_to_vmem [thread:$0]  (!%p12811_p2), %s15463_s5, 128, %s255_s20, [#allocation10]  }
  0x68   : > { %s10411_s26 = sshll.u32 %s268_s24, 8  ;;  %s11097_s15 = sshll.u32 %s12686_s29, 7 }
  0x69   : > { %s12893_s8 = scalar_lea.hbm %s15458_s0, %s11097_s15  ;;  %s272_s11 = scalar_lea.vmem [#allocation3], %s10411_s26 }
  0x6a   : > { %s279_s19 = sshll.u32 %s272_s11, 4  ;;  %s12897_s25 = scalar_lea.sflag [#allocation4], %s268_s24  ;;  %s12895_s19 = int_to_ptr.vmem [resolvable:$true] %s279_s19 }
  0x6b   : > { %s12582_s10 = scalar_lea.hbm %s12893_s8, 4096  ;;  %p15589_p2 = scmp.ne.s32.totalorder %s15588_s30, 0 }
  0x6c   : > { %p12583_p8 = scmp.ne.s32.totalorder %s12893_s8, %s12582_s10  ;;  %s12587_s18 = scalar_lea.hbm %s15458_s0, 8192 }
  0x6d   : > { %p12584_p3 = pneg %p15589_p2  ;;  %p12588_p11 = scmp.lt.u32.totalorder %s12893_s8, %s15458_s0 }
  0x6e   : > { %p12589_p12 = scmp.lt.u32.totalorder %s12587_s18, %s12582_s10  ;;  %p12591_p7 = scmp.lt.u32.totalorder %s12582_s10, %s12893_s8 }
  0x6f   : > { %p12585_p5 = pnand %p12584_p3, %p12583_p8 }
  0x70   : > { %p12590_p13 = por %p12589_p12, %p12588_p11 }
  0x71   : > { %p12586_p6 = pneg %p12585_p5 }
  0x72   : > { %p12592_p9 = por %p12591_p7, %p12590_p13 }
  0x74   : > { %p12593_p10 = pnand %p12592_p9, %p12586_p6 }
  0x76   : > { %12596 = shalt.err (!%p12593_p10)
}
  0x77   : > { %s12597_s24 = scalar_lea.vmem %s12895_s19, 4096  ;;  %s12695_s1 = smov [#allocation3]  }
  0x78   : > { %p12598_p1 = scmp.ne.s32.totalorder %s12895_s19, %s12597_s24  ;;  %s12602_s22 = sshll.u32 %s12695_s1, 4  ;;  %s12603_s22 = int_to_ptr.vmem [resolvable:$false] %s12602_s22 }
  0x79   : > { %s12604_s26 = scalar_lea.vmem %s12603_s22, 8192  ;;  %p12605_p8 = scmp.lt.s32.totalorder %s12895_s19, %s12603_s22 }
  0x7a   : > { %p12600_p4 = pnand %p12598_p1, %p12584_p3  ;;  %p12606_p5 = scmp.lt.s32.totalorder %s12604_s26, %s12597_s24 }
  0x7c   : > { %p12601_p0 = pneg %p12600_p4  ;;  %p12607_p11 = por %p12606_p5, %p12605_p8 }
  0x7e   : > { %p12608_p12 = pnand %p12607_p11, %p12601_p0 }
  0x80   : > { %12611 = shalt.err (!%p12608_p12)
}
  0x81   : > { %s12696_s15 = smov 256   ;;  %s15590_s23 = smov 8  }
  0x82   : > { %s15591_s9 = smov 128   ;;  %p15592_p3 = scmp.ne.s32.totalorder %s15582_s16, 0 }
  0x83   : > { %12198 = dma.hbm_to_vmem [thread:$0]  (!%p15589_p2), %s12893_s8, 4096, %s12895_s19, %s12897_s25, %s12696_s15, %s15591_s9, %s15590_s23  }
  0x84   : > { %291 = sbr.rel (%p15592_p3) target bundleno = 2526 (0x9de), region = 48 }
  0x8b   : > { %s12930_s11 = sand.u32 1, %s12678_s27   ;;  %p15593_p6 = scmp.ne.s32.totalorder %s15578_s13, 0 }
  0x8c   : > { %s10415_s10 = sshll.u32 %s12930_s11, 8  ;;  %s294_s17 = scalar_lea.sflag [#allocation4], %s12930_s11 }
  0x8d   : > { %s12934_s20 = scalar_lea.vmem [#allocation3], %s10415_s10 }
  0x8e   : > { %12657 = dma.done.wait (%p15593_p6), %s294_s17, 4096  }
  0x8f   : > { %12659 = vsyncadd (%p15593_p6), %s294_s17, 4294963200  ;;  %p15594_p2 = scmp.eq.s32.totalorder %s12764_s6, 0 }
  0x91   : > { %12661 = dma.done.wait (%p15594_p2), [#allocation7], 81920   ;;  %p15595_p13 = pmov %p15594_p2 }
  0x92   : > { %p15596_p7 = pmov %p15594_p2 }
  0x93   : > { %12663 = vsyncadd (%p15595_p13), [#allocation7], 4294885376 }
  0x94   : > { %12665 = dma.done.wait (%p15596_p7), [#allocation10], 128   ;;  %p15597_p9 = pmov %p15594_p2 }
  0x95   : > { %v12697_v0 = vmov 0   ;;  %v536_v1 = vld [vmem:[%s15460_s2 + $0x110] sm:$0xff]  ;;  %v534_v2 = vld [vmem:[%s15460_s2 + $0x100] sm:$0xff]  ;;  %v537_v5 = vld [vmem:[%s15460_s2 + $0x118] sm:$0xff]  ;;  %s10044_s30 = sld [smem:[#allocation2]]  ;;  %s10419_s8 = sshll.u32 %s12930_s11, 1 }
  0x96   : > { %12667 = vsyncadd (%p15597_p9), [#allocation10], 4294967168  ;;  %12254 = vset.pattern.permute.xlu1 %v12697_v0  ;;  %12253 = vset.pattern.permute.xlu0 %v12697_v0  ;;  %v12255_v3 = vld [vmem:[%s12934_s20 + $0x4] ss:$8 sps:$4 sm:$0xff]   ;;  %v12257_v4 = vld [vmem:[%s12934_s20] ss:$8 sps:$4 sm:$0xff]  }
  0x97   : > { %802 = vperm.xlu1 %12254, %v536_v1   ;;  %792 = vperm.xlu0 %12253, %v534_v2   ;;  %v535_v6 = vld [vmem:[%s15460_s2 + $0x108] sm:$0xff]  ;;  %v12258_v7 = vld [vmem:[%s12934_s20 + $0x14] ss:$8 sps:$4 sm:$0xff]   ;;  %v12260_v8 = vld [vmem:[%s12934_s20 + $0x10] ss:$8 sps:$4 sm:$0xff]   ;;  %s11098_s19 = sshll.u32 %s12764_s6, 5 }
  0x98   : > { %2070 = vmatprep.subr.bf16.mxu0 %v12255_v3  ;;  %v539_v9 = vld [vmem:[%s15460_s2 + $0x128] sm:$0xff]  ;;  %v538_v10 = vld [vmem:[%s15460_s2 + $0x120] sm:$0xff]  ;;  %v541_v13 = vld [vmem:[%s15460_s2 + $0x138] sm:$0xff]  ;;  %s339_s25 = scalar_lea.vmem [#allocation11], %s10419_s8  ;;  %s15414_s24 = scalar_lea.hbm %s15465_s7, %s11098_s19 }
  0x99   : > { %2071 = vmatpush1.bf16.msra.mxu0 %v12257_v4  ;;  %v12261_v11 = vld [vmem:[%s12934_s20 + $0x24] ss:$8 sps:$4 sm:$0xff]   ;;  %v12263_v12 = vld [vmem:[%s12934_s20 + $0x20] ss:$8 sps:$4 sm:$0xff]   ;;  %v540_v14 = vld [vmem:[%s15460_s2 + $0x130] sm:$0xff]  ;;  %s10306_s18 = sshll.u32 %s339_s25, 4  ;;  %s15416_s18 = int_to_ptr.vmem [resolvable:$true] %s10306_s18 }
  0x9a   : > { %2072 = vmatprep.subr.bf16.mxu0 %v12258_v7  ;;  %v12264_v15 = vld [vmem:[%s12934_s20 + $0x34] ss:$8 sps:$4 sm:$0xff]   ;;  %v12266_v16 = vld [vmem:[%s12934_s20 + $0x30] ss:$8 sps:$4 sm:$0xff]   ;;  %v543_v17 = vld [vmem:[%s15460_s2 + $0x148] sm:$0xff]  ;;  %s10292_s6 = scalar_lea.sflag [#allocation5], %s12930_s11 }
  0x9b   : > { %807 = vperm.xlu1 %12254, %v537_v5   ;;  %797 = vperm.xlu0 %12253, %v535_v6   ;;  %v542_v18 = vld [vmem:[%s15460_s2 + $0x140] sm:$0xff]  ;;  %v545_v21 = vld [vmem:[%s15460_s2 + $0x158] sm:$0xff]  ;;  %v544_v22 = vld [vmem:[%s15460_s2 + $0x150] sm:$0xff]  ;;  %s12612_s1 = scalar_lea.vmem %s15416_s18, 32  ;;  %p16223_p1 = scmp.ne.s32.totalorder %s15579_s14, 0 }
  0x9c   : > { %v12267_v19 = vld [vmem:[%s12934_s20 + $0x44] ss:$8 sps:$4 sm:$0xff]   ;;  %v12269_v20 = vld [vmem:[%s12934_s20 + $0x40] ss:$8 sps:$4 sm:$0xff]   ;;  %v12270_v23 = vld [vmem:[%s12934_s20 + $0x54] ss:$8 sps:$4 sm:$0xff]   ;;  %p12613_p10 = scmp.ne.s32.totalorder %s15416_s18, %s12612_s1 }
  0x9d   : > { %2073 = vmatpush1.bf16.msra.mxu0 %v12260_v8  ;;  %v12272_v24 = vld [vmem:[%s12934_s20 + $0x50] ss:$8 sps:$4 sm:$0xff]   ;;  %v547_v25 = vld [vmem:[%s15460_s2 + $0x168] sm:$0xff]  ;;  %v546_v26 = vld [vmem:[%s15460_s2 + $0x160] sm:$0xff]  ;;  %s12699_s22 = smov [#allocation11]  }
  0x9e   : > { %2074 = vmatprep.subr.bf16.mxu0 %v12261_v11  ;;  %v12273_v27 = vld [vmem:[%s12934_s20 + $0x64] ss:$8 sps:$4 sm:$0xff]   ;;  %v12275_v28 = vld [vmem:[%s12934_s20 + $0x60] ss:$8 sps:$4 sm:$0xff]   ;;  %v549_v29 = vld [vmem:[%s15460_s2 + $0x178] sm:$0xff]  ;;  %p12614_p4 = pnand %p12613_p10, %p16223_p1  ;;  %s12616_s26 = sshll.u32 %s12699_s22, 4  ;;  %s12617_s26 = int_to_ptr.vmem [resolvable:$false] %s12616_s26 }
  0x9f   : > { %817 = vperm.xlu1 %12254, %v539_v9   ;;  %812 = vperm.xlu0 %12253, %v538_v10   ;;  %v548_v30 = vld [vmem:[%s15460_s2 + $0x170] sm:$0xff]  ;;  %v551_v33 = vld [vmem:[%s15460_s2 + $0x188] sm:$0xff]  ;;  %v550_v34 = vld [vmem:[%s15460_s2 + $0x180] sm:$0xff]  ;;  %s12618_s15 = scalar_lea.vmem %s12617_s26, 64  ;;  %p12619_p8 = scmp.lt.s32.totalorder %s15416_s18, %s12617_s26 }
  0xa0   : > { %v12276_v31 = vld [vmem:[%s12934_s20 + $0x74] ss:$8 sps:$4 sm:$0xff]   ;;  %v12278_v32 = vld [vmem:[%s12934_s20 + $0x70] ss:$8 sps:$4 sm:$0xff]   ;;  %v12279_v35 = vld [vmem:[%s12934_s20 + $0x84] ss:$8 sps:$4 sm:$0xff]   ;;  %p12615_p0 = pneg %p12614_p4  ;;  %p12620_p5 = scmp.lt.s32.totalorder %s12618_s15, %s12612_s1 }
  0xa1   : > { %2075 = vmatpush1.bf16.msra.mxu0 %v12263_v12  ;;  %v12281_v36 = vld [vmem:[%s12934_s20 + $0x80] ss:$8 sps:$4 sm:$0xff]   ;;  %v12305_v37 = vld [vmem:[#allocation6 + $0x4] ss:$8 sps:$4 sm:$0xff]   ;;  %v553_v38 = vld [vmem:[%s15460_s2 + $0x198] sm:$0xff] }
  0xa2   : > { %2076 = vmatprep.subr.bf16.mxu0 %v12264_v15  ;;  %v552_v39 = vld [vmem:[%s15460_s2 + $0x190] sm:$0xff]  ;;  %2102 = vmatprep.mubr.bf16.mxu0 %v12305_v37  ;;  %v555_v42 = vld [vmem:[%s15460_s2 + $0x1a8] sm:$0xff]  ;;  %v554_v43 = vld [vmem:[%s15460_s2 + $0x1a0] sm:$0xff]  ;;  %p12621_p11 = por %p12620_p5, %p12619_p8 }
  0xa3   : > { %827 = vperm.xlu1 %12254, %v541_v13   ;;  %822 = vperm.xlu0 %12253, %v540_v14   ;;  %v12282_v40 = vld [vmem:[%s12934_s20 + $0x94] ss:$8 sps:$4 sm:$0xff]   ;;  %v12284_v41 = vld [vmem:[%s12934_s20 + $0x90] ss:$8 sps:$4 sm:$0xff]   ;;  %v12285_v44 = vld [vmem:[%s12934_s20 + $0xa4] ss:$8 sps:$4 sm:$0xff]  }
  0xa4   : > { %v12287_v45 = vld [vmem:[%s12934_s20 + $0xa0] ss:$8 sps:$4 sm:$0xff]   ;;  %v557_v46 = vld [vmem:[%s15460_s2 + $0x1b8] sm:$0xff]  ;;  %v556_v47 = vld [vmem:[%s15460_s2 + $0x1b0] sm:$0xff]  ;;  %p12622_p12 = pnand %p12621_p11, %p12615_p0 }
  0xa5   : > { %2077 = vmatpush1.bf16.msra.mxu0 %v12266_v16  ;;  %v12288_v48 = vld [vmem:[%s12934_s20 + $0xb4] ss:$8 sps:$4 sm:$0xff]   ;;  %v12290_v49 = vld [vmem:[%s12934_s20 + $0xb0] ss:$8 sps:$4 sm:$0xff]   ;;  %v559_v50 = vld [vmem:[%s15460_s2 + $0x1c8] sm:$0xff] }
  0xa6   : > { %2078 = vmatprep.subr.bf16.mxu0 %v12267_v19  ;;  %v558_v51 = vld [vmem:[%s15460_s2 + $0x1c0] sm:$0xff]  ;;  %v561_v54 = vld [vmem:[%s15460_s2 + $0x1d8] sm:$0xff]  ;;  %v560_v55 = vld [vmem:[%s15460_s2 + $0x1d0] sm:$0xff] }
  0xa7   : > { %837 = vperm.xlu1 %12254, %v543_v17   ;;  %832 = vperm.xlu0 %12253, %v542_v18   ;;  %v12291_v52 = vld [vmem:[%s12934_s20 + $0xc4] ss:$8 sps:$4 sm:$0xff]   ;;  %v12293_v53 = vld [vmem:[%s12934_s20 + $0xc0] ss:$8 sps:$4 sm:$0xff]   ;;  %v12294_v56 = vld [vmem:[%s12934_s20 + $0xd4] ss:$8 sps:$4 sm:$0xff]  }
  0xa8   : > { %v12296_v57 = vld [vmem:[%s12934_s20 + $0xd0] ss:$8 sps:$4 sm:$0xff]   ;;  %v563_v58 = vld [vmem:[%s15460_s2 + $0x1e8] sm:$0xff]  ;;  %v562_v59 = vld [vmem:[%s15460_s2 + $0x1e0] sm:$0xff] }
  0xa9   : > { %2079 = vmatpush1.bf16.msra.mxu0 %v12269_v20  ;;  %v12297_v60 = vld [vmem:[%s12934_s20 + $0xe4] ss:$8 sps:$4 sm:$0xff]   ;;  %v12299_v61 = vld [vmem:[%s12934_s20 + $0xe0] ss:$8 sps:$4 sm:$0xff]   ;;  %v565_v62 = vld [vmem:[%s15460_s2 + $0x1f8] sm:$0xff] }
  0xaa   : > { %2080 = vmatprep.subr.bf16.mxu0 %v12270_v23  ;;  %v564_v63 = vld [vmem:[%s15460_s2 + $0x1f0] sm:$0xff]  ;;  %v567_v2 = vld [vmem:[%s15460_s2 + $0x208] sm:$0xff]  ;;  %v566_v3 = vld [vmem:[%s15460_s2 + $0x200] sm:$0xff] }
  0xab   : > { %847 = vperm.xlu1 %12254, %v545_v21   ;;  %842 = vperm.xlu0 %12253, %v544_v22   ;;  %v12300_v0 = vld [vmem:[%s12934_s20 + $0xf4] ss:$8 sps:$4 sm:$0xff]   ;;  %v12302_v1 = vld [vmem:[%s12934_s20 + $0xf0] ss:$8 sps:$4 sm:$0xff]   ;;  %v12303_v4 = vld [vmem:[#allocation6] ss:$8 sps:$4 sm:$0xff]  }
  0xac   : > { %v12306_v5 = vld [vmem:[#allocation6 + $0x14] ss:$8 sps:$4 sm:$0xff]   ;;  %v571_v8 = vld [vmem:[%s15460_s2 + $0x228] sm:$0xff]  ;;  %v570_v9 = vld [vmem:[%s15460_s2 + $0x220] sm:$0xff] }
  0xad   : > { %2081 = vmatpush1.bf16.msra.mxu0 %v12272_v24  ;;  %v569_v6 = vld [vmem:[%s15460_s2 + $0x218] sm:$0xff]  ;;  %v568_v7 = vld [vmem:[%s15460_s2 + $0x210] sm:$0xff]  ;;  %v12309_v11 = vld [vmem:[#allocation6 + $0x24] ss:$8 sps:$4 sm:$0xff]  }
  0xae   : > { %2082 = vmatprep.subr.bf16.mxu0 %v12273_v27  ;;  %v12308_v10 = vld [vmem:[#allocation6 + $0x10] ss:$8 sps:$4 sm:$0xff]   ;;  %v575_v14 = vld [vmem:[%s15460_s2 + $0x248] sm:$0xff]  ;;  %v574_v15 = vld [vmem:[%s15460_s2 + $0x240] sm:$0xff] }
  0xaf   : > { %857 = vperm.xlu1 %12254, %v547_v25   ;;  %852 = vperm.xlu0 %12253, %v546_v26   ;;  %v573_v12 = vld [vmem:[%s15460_s2 + $0x238] sm:$0xff]  ;;  %v572_v13 = vld [vmem:[%s15460_s2 + $0x230] sm:$0xff]  ;;  %v12311_v16 = vld [vmem:[#allocation6 + $0x20] ss:$8 sps:$4 sm:$0xff]  }
  0xb0   : > { %v12312_v17 = vld [vmem:[#allocation6 + $0x34] ss:$8 sps:$4 sm:$0xff]   ;;  %v579_v20 = vld [vmem:[%s15460_s2 + $0x268] sm:$0xff]  ;;  %v578_v21 = vld [vmem:[%s15460_s2 + $0x260] sm:$0xff] }
  0xb1   : > { %2083 = vmatpush1.bf16.msra.mxu0 %v12275_v28  ;;  %v577_v18 = vld [vmem:[%s15460_s2 + $0x258] sm:$0xff]  ;;  %v576_v19 = vld [vmem:[%s15460_s2 + $0x250] sm:$0xff]  ;;  %v12315_v23 = vld [vmem:[#allocation6 + $0x44] ss:$8 sps:$4 sm:$0xff]  }
  0xb2   : > { %2084 = vmatprep.subr.bf16.mxu0 %v12276_v31  ;;  %v12314_v22 = vld [vmem:[#allocation6 + $0x30] ss:$8 sps:$4 sm:$0xff]   ;;  %v583_v26 = vld [vmem:[%s15460_s2 + $0x288] sm:$0xff]  ;;  %v582_v27 = vld [vmem:[%s15460_s2 + $0x280] sm:$0xff] }
  0xb3   : > { %867 = vperm.xlu1 %12254, %v549_v29   ;;  %862 = vperm.xlu0 %12253, %v548_v30   ;;  %v581_v24 = vld [vmem:[%s15460_s2 + $0x278] sm:$0xff]  ;;  %v580_v25 = vld [vmem:[%s15460_s2 + $0x270] sm:$0xff]  ;;  %v12317_v28 = vld [vmem:[#allocation6 + $0x40] ss:$8 sps:$4 sm:$0xff]  }
  0xb4   : > { %v12318_v29 = vld [vmem:[#allocation6 + $0x54] ss:$8 sps:$4 sm:$0xff]  }
  0xb5   : > { %2085 = vmatpush1.bf16.msra.mxu0 %v12278_v32  ;;  %v585_v30 = vld [vmem:[%s15460_s2 + $0x298] sm:$0xff]  ;;  %v584_v31 = vld [vmem:[%s15460_s2 + $0x290] sm:$0xff]  ;;  %v587_v32 = vld [vmem:[%s15460_s2 + $0x2a8] sm:$0xff] }
  0xb6   : > { %2086 = vmatprep.subr.bf16.mxu0 %v12279_v35  ;;  %v12321_v35 = vld [vmem:[#allocation6 + $0x64] ss:$8 sps:$4 sm:$0xff]   ;;  %v588_v37 = vld [vmem:[%s15460_s2 + $0x2b0] sm:$0xff] }
  0xb7   : > { %877 = vperm.xlu1 %12254, %v551_v33   ;;  %872 = vperm.xlu0 %12253, %v550_v34   ;;  %v586_v33 = vld [vmem:[%s15460_s2 + $0x2a0] sm:$0xff]  ;;  %v12320_v34 = vld [vmem:[#allocation6 + $0x50] ss:$8 sps:$4 sm:$0xff]  }
  0xb9   : > { %2087 = vmatpush1.bf16.msra.mxu0 %v12281_v36  ;;  %v589_v36 = vld [vmem:[%s15460_s2 + $0x2b8] sm:$0xff] }
  0xba   : > { %2088 = vmatprep.subr.bf16.mxu0 %v12282_v40  ;;  %v12323_v40 = vld [vmem:[#allocation6 + $0x60] ss:$8 sps:$4 sm:$0xff]  }
  0xbb   : > { %887 = vperm.xlu1 %12254, %v553_v38   ;;  %882 = vperm.xlu0 %12253, %v552_v39   ;;  %v591_v38 = vld [vmem:[%s15460_s2 + $0x2c8] sm:$0xff]  ;;  %v590_v39 = vld [vmem:[%s15460_s2 + $0x2c0] sm:$0xff] }
  0xbd   : > { %2089 = vmatpush1.bf16.msra.mxu0 %v12284_v41  ;;  %v12324_v41 = vld [vmem:[#allocation6 + $0x74] ss:$8 sps:$4 sm:$0xff]  }
  0xbe   : > { %2090 = vmatprep.subr.bf16.mxu0 %v12285_v44  ;;  %v595_v44 = vld [vmem:[%s15460_s2 + $0x2e8] sm:$0xff] }
  0xbf   : > { %897 = vperm.xlu1 %12254, %v555_v42   ;;  %892 = vperm.xlu0 %12253, %v554_v43   ;;  %v593_v42 = vld [vmem:[%s15460_s2 + $0x2d8] sm:$0xff]  ;;  %v592_v43 = vld [vmem:[%s15460_s2 + $0x2d0] sm:$0xff] }
  0xc1   : > { %2091 = vmatpush1.bf16.msra.mxu0 %v12287_v45  ;;  %v594_v45 = vld [vmem:[%s15460_s2 + $0x2e0] sm:$0xff] }
  0xc2   : > { %2092 = vmatprep.subr.bf16.mxu0 %v12288_v48  ;;  %v597_v48 = vld [vmem:[%s15460_s2 + $0x2f8] sm:$0xff] }
  0xc3   : > { %907 = vperm.xlu1 %12254, %v557_v46   ;;  %902 = vperm.xlu0 %12253, %v556_v47   ;;  %v12326_v46 = vld [vmem:[#allocation6 + $0x70] ss:$8 sps:$4 sm:$0xff]   ;;  %v12327_v47 = vld [vmem:[#allocation6 + $0x84] ss:$8 sps:$4 sm:$0xff]  }
  0xc5   : > { %2093 = vmatpush1.bf16.msra.mxu0 %v12290_v49  ;;  %v596_v49 = vld [vmem:[%s15460_s2 + $0x2f0] sm:$0xff] }
  0xc6   : > { %2094 = vmatprep.subr.bf16.mxu0 %v12291_v52  ;;  %v12329_v52 = vld [vmem:[#allocation6 + $0x80] ss:$8 sps:$4 sm:$0xff]  }
  0xc7   : > { %917 = vperm.xlu1 %12254, %v559_v50   ;;  %912 = vperm.xlu0 %12253, %v558_v51   ;;  %v503_v50 = vld [vmem:[%s15460_s2 + $0x8] sm:$0xff]  ;;  %v502_v51 = vld [vmem:[%s15460_s2] sm:$0xff] }
  0xc9   : > { %2095 = vmatpush1.bf16.msra.mxu0 %v12293_v53 }
  0xca   : > { %2096 = vmatprep.subr.bf16.mxu0 %v12294_v56  ;;  %v505_v56 = vld [vmem:[%s15460_s2 + $0x18] sm:$0xff] }
  0xcb   : > { %927 = vperm.xlu1 %12254, %v561_v54   ;;  %922 = vperm.xlu0 %12253, %v560_v55   ;;  %v12330_v55 = vld [vmem:[#allocation6 + $0x94] ss:$8 sps:$4 sm:$0xff]  }
  0xcd   : > { %2097 = vmatpush1.bf16.msra.mxu0 %v12296_v57  ;;  %v504_v57 = vld [vmem:[%s15460_s2 + $0x10] sm:$0xff] }
  0xce   : > { %2098 = vmatprep.subr.bf16.mxu0 %v12297_v60  ;;  %v507_v60 = vld [vmem:[%s15460_s2 + $0x28] sm:$0xff] }
  0xcf   : > { %937 = vperm.xlu1 %12254, %v563_v58   ;;  %932 = vperm.xlu0 %12253, %v562_v59  }
  0xd1   : > { %2099 = vmatpush1.bf16.msra.mxu0 %v12299_v61  ;;  %v506_v61 = vld [vmem:[%s15460_s2 + $0x20] sm:$0xff] }
  0xd2   : > { %2100 = vmatprep.subr.bf16.mxu0 %v12300_v0 }
  0xd3   : > { %947 = vperm.xlu1 %12254, %v565_v62   ;;  %942 = vperm.xlu0 %12253, %v564_v63   ;;  %v12332_v62 = vld [vmem:[#allocation6 + $0x90] ss:$8 sps:$4 sm:$0xff]  }
  0xd5   : > { %2101 = vmatpush1.bf16.msra.mxu0 %v12302_v1  ;;  %v12333_v1 = vld [vmem:[#allocation6 + $0xa4] ss:$8 sps:$4 sm:$0xff]  }
  0xd7   : > { %957 = vperm.xlu1 %12254, %v567_v2   ;;  %952 = vperm.xlu0 %12253, %v566_v3   ;;  %v509_v2 = vld [vmem:[%s15460_s2 + $0x38] sm:$0xff]  ;;  %v508_v3 = vld [vmem:[%s15460_s2 + $0x30] sm:$0xff] }
  0xd8   : > { %2103 = vmatmul.mubr.bf16.vlgmr.msra.gmra.mrb[0].mxu0 %v12303_v4 }
  0xd9   : > { %2112 = vmatprep.mubr.bf16.mxu0 %v12306_v5 }
  0xdb   : > { %967 = vperm.xlu1 %12254, %v569_v6   ;;  %962 = vperm.xlu0 %12253, %v568_v7   ;;  %v511_v6 = vld [vmem:[%s15460_s2 + $0x48] sm:$0xff]  ;;  %v510_v7 = vld [vmem:[%s15460_s2 + $0x40] sm:$0xff] }
  0xdf   : > { %977 = vperm.xlu1 %12254, %v571_v8   ;;  %972 = vperm.xlu0 %12253, %v570_v9   ;;  %v12335_v8 = vld [vmem:[#allocation6 + $0xa0] ss:$8 sps:$4 sm:$0xff]  }
  0xe0   : > { %2113 = vmatmul.mubr.bf16.gmra.mrb[4].mxu0 %v12308_v10 }
  0xe1   : > { %2122 = vmatprep.mubr.bf16.mxu0 %v12309_v11  ;;  %v12336_v11 = vld [vmem:[#allocation6 + $0xb4] ss:$8 sps:$4 sm:$0xff]  }
  0xe3   : > { %987 = vperm.xlu1 %12254, %v573_v12   ;;  %982 = vperm.xlu0 %12253, %v572_v13   ;;  %v513_v12 = vld [vmem:[%s15460_s2 + $0x58] sm:$0xff]  ;;  %v512_v13 = vld [vmem:[%s15460_s2 + $0x50] sm:$0xff] }
  0xe7   : > { %997 = vperm.xlu1 %12254, %v575_v14   ;;  %992 = vperm.xlu0 %12253, %v574_v15  }
  0xe8   : > { %2123 = vmatmul.mubr.bf16.gmra.mrb[8].mxu0 %v12311_v16  ;;  %v515_v16 = vld [vmem:[%s15460_s2 + $0x68] sm:$0xff] }
  0xe9   : > { %2132 = vmatprep.mubr.bf16.mxu0 %v12312_v17  ;;  %v514_v17 = vld [vmem:[%s15460_s2 + $0x60] sm:$0xff] }
  0xeb   : > { %1007 = vperm.xlu1 %12254, %v577_v18   ;;  %1002 = vperm.xlu0 %12253, %v576_v19   ;;  %v12338_v18 = vld [vmem:[#allocation6 + $0xb0] ss:$8 sps:$4 sm:$0xff]  }
  0xef   : > { %1017 = vperm.xlu1 %12254, %v579_v20   ;;  %1012 = vperm.xlu0 %12253, %v578_v21   ;;  %v12339_v21 = vld [vmem:[#allocation6 + $0xc4] ss:$8 sps:$4 sm:$0xff]  }
  0xf0   : > { %2133 = vmatmul.mubr.bf16.gmra.mrb[12].mxu0 %v12314_v22  ;;  %v517_v22 = vld [vmem:[%s15460_s2 + $0x78] sm:$0xff] }
  0xf1   : > { %2142 = vmatprep.mubr.bf16.mxu0 %v12315_v23  ;;  %v516_v23 = vld [vmem:[%s15460_s2 + $0x70] sm:$0xff] }
  0xf3   : > { %1027 = vperm.xlu1 %12254, %v581_v24   ;;  %1022 = vperm.xlu0 %12253, %v580_v25  }
  0xf7   : > { %1037 = vperm.xlu1 %12254, %v583_v26   ;;  %1032 = vperm.xlu0 %12253, %v582_v27   ;;  %v519_v26 = vld [vmem:[%s15460_s2 + $0x88] sm:$0xff]  ;;  %v518_v27 = vld [vmem:[%s15460_s2 + $0x80] sm:$0xff] }
  0xf8   : > { %2143 = vmatmul.mubr.bf16.gmra.mrb[16].mxu0 %v12317_v28  ;;  %v12341_v28 = vld [vmem:[#allocation6 + $0xc0] ss:$8 sps:$4 sm:$0xff]  }
  0xf9   : > { %2152 = vmatprep.mubr.bf16.mxu0 %v12318_v29 }
  0xfb   : > { %1047 = vperm.xlu1 %12254, %v585_v30   ;;  %1042 = vperm.xlu0 %12253, %v584_v31   ;;  %v12342_v31 = vld [vmem:[#allocation6 + $0xd4] ss:$8 sps:$4 sm:$0xff]  }
  0xff   : > { %1057 = vperm.xlu1 %12254, %v587_v32   ;;  %1052 = vperm.xlu0 %12253, %v586_v33   ;;  %v521_v32 = vld [vmem:[%s15460_s2 + $0x98] sm:$0xff]  ;;  %v520_v33 = vld [vmem:[%s15460_s2 + $0x90] sm:$0xff] }
 0x100   : > { %2153 = vmatmul.mubr.bf16.gmra.mrb[20].mxu0 %v12320_v34 }
 0x101   : > { %2162 = vmatprep.mubr.bf16.mxu0 %v12321_v35 }
 0x103   : > { %1067 = vperm.xlu1 %12254, %v589_v36   ;;  %1062 = vperm.xlu0 %12253, %v588_v37   ;;  %v523_v36 = vld [vmem:[%s15460_s2 + $0xa8] sm:$0xff]  ;;  %v522_v37 = vld [vmem:[%s15460_s2 + $0xa0] sm:$0xff] }
 0x107   : > { %1077 = vperm.xlu1 %12254, %v591_v38   ;;  %1072 = vperm.xlu0 %12253, %v590_v39   ;;  %v12344_v38 = vld [vmem:[#allocation6 + $0xd0] ss:$8 sps:$4 sm:$0xff]  }
 0x108   : > { %2163 = vmatmul.mubr.bf16.gmra.mrb[24].mxu0 %v12323_v40 }
 0x109   : > { %2172 = vmatprep.mubr.bf16.mxu0 %v12324_v41  ;;  %v12345_v41 = vld [vmem:[#allocation6 + $0xe4] ss:$8 sps:$4 sm:$0xff]  }
 0x10b   : > { %1087 = vperm.xlu1 %12254, %v593_v42   ;;  %1082 = vperm.xlu0 %12253, %v592_v43   ;;  %v525_v42 = vld [vmem:[%s15460_s2 + $0xb8] sm:$0xff]  ;;  %v524_v43 = vld [vmem:[%s15460_s2 + $0xb0] sm:$0xff] }
 0x10f   : > { %1097 = vperm.xlu1 %12254, %v595_v44   ;;  %1092 = vperm.xlu0 %12253, %v594_v45  }
 0x110   : > { %2173 = vmatmul.mubr.bf16.gmra.mrb[28].mxu0 %v12326_v46  ;;  %v527_v46 = vld [vmem:[%s15460_s2 + $0xc8] sm:$0xff] }
 0x111   : > { %2182 = vmatprep.mubr.bf16.mxu0 %v12327_v47  ;;  %v526_v47 = vld [vmem:[%s15460_s2 + $0xc0] sm:$0xff] }
 0x113   : > { %1107 = vperm.xlu1 %12254, %v597_v48   ;;  %1102 = vperm.xlu0 %12253, %v596_v49   ;;  %v12347_v48 = vld [vmem:[#allocation6 + $0xe0] ss:$8 sps:$4 sm:$0xff]  }
 0x116   : > { %v13178_v53 = vpop.permute.xlu1 %802  ;;  %v13180_v54 = vpop.permute.xlu0 %792 }
 0x117   : > { %637 = vperm.xlu1 %12254, %v503_v50   ;;  %632 = vperm.xlu0 %12253, %v502_v51   ;;  %v12348_v51 = vld [vmem:[#allocation6 + $0xf4] ss:$8 sps:$4 sm:$0xff]  }
 0x118   : > { %2183 = vmatmul.mubr.bf16.gmra.mrb[32].mxu0 %v12329_v52  ;;  %v529_v52 = vld [vmem:[%s15460_s2 + $0xd8] sm:$0xff] }
 0x119   : > { %2192 = vmatprep.mubr.bf16.mxu0 %v12330_v55  ;;  %v528_v55 = vld [vmem:[%s15460_s2 + $0xd0] sm:$0xff] }
 0x11a   : > { %v13188_v58 = vpop.permute.xlu1 %807  ;;  %v13190_v59 = vpop.permute.xlu0 %797 }
 0x11b   : > { %647 = vperm.xlu1 %12254, %v505_v56   ;;  %642 = vperm.xlu0 %12253, %v504_v57  }
 0x11e   : > { %v13198_v63 = vpop.permute.xlu1 %817  ;;  %v13200_v0 = vpop.permute.xlu0 %812 }
 0x11f   : > { %657 = vperm.xlu1 %12254, %v507_v60   ;;  %652 = vperm.xlu0 %12253, %v506_v61   ;;  %v531_v60 = vld [vmem:[%s15460_s2 + $0xe8] sm:$0xff]  ;;  %v530_v61 = vld [vmem:[%s15460_s2 + $0xe0] sm:$0xff] }
 0x120   : > { %2193 = vmatmul.mubr.bf16.gmra.mrb[36].mxu0 %v12332_v62  ;;  %v12350_v62 = vld [vmem:[#allocation6 + $0xf0] ss:$8 sps:$4 sm:$0xff]  }
 0x121   : > { %2202 = vmatprep.mubr.bf16.mxu0 %v12333_v1 }
 0x122   : > { %v13208_v4 = vpop.permute.xlu1 %827  ;;  %v13210_v5 = vpop.permute.xlu0 %822 }
 0x123   : > { %667 = vperm.xlu1 %12254, %v509_v2   ;;  %662 = vperm.xlu0 %12253, %v508_v3   ;;  %v12351_v3 = vld [vmem:[#allocation6 + $0x104] ss:$8 sps:$4 sm:$0xff]  }
 0x126   : > { %v13218_v9 = vpop.permute.xlu1 %837  ;;  %v13220_v10 = vpop.permute.xlu0 %832 }
 0x127   : > { %677 = vperm.xlu1 %12254, %v511_v6   ;;  %672 = vperm.xlu0 %12253, %v510_v7   ;;  %v533_v6 = vld [vmem:[%s15460_s2 + $0xf8] sm:$0xff]  ;;  %v532_v7 = vld [vmem:[%s15460_s2 + $0xf0] sm:$0xff] }
 0x128   : > { %2203 = vmatmul.mubr.bf16.gmra.mrb[40].mxu0 %v12335_v8 }
 0x129   : > { %2212 = vmatprep.mubr.bf16.mxu0 %v12336_v11 }
 0x12a   : > { %v13228_v14 = vpop.permute.xlu1 %847  ;;  %v13230_v15 = vpop.permute.xlu0 %842 }
 0x12b   : > { %687 = vperm.xlu1 %12254, %v513_v12   ;;  %682 = vperm.xlu0 %12253, %v512_v13   ;;  %v599_v12 = vld [vmem:[%s15460_s2 + $0x308] sm:$0xff]  ;;  %v598_v13 = vld [vmem:[%s15460_s2 + $0x300] sm:$0xff] }
 0x12e   : > { %v13238_v19 = vpop.permute.xlu1 %857  ;;  %v13240_v20 = vpop.permute.xlu0 %852 }
 0x12f   : > { %697 = vperm.xlu1 %12254, %v515_v16   ;;  %692 = vperm.xlu0 %12253, %v514_v17   ;;  %v12353_v16 = vld [vmem:[#allocation6 + $0x100] ss:$8 sps:$4 sm:$0xff]  }
 0x130   : > { %2213 = vmatmul.mubr.bf16.gmra.mrb[44].mxu0 %v12338_v18 }
 0x131   : > { %2222 = vmatprep.mubr.bf16.mxu0 %v12339_v21  ;;  %v12354_v21 = vld [vmem:[#allocation6 + $0x114] ss:$8 sps:$4 sm:$0xff]  }
 0x132   : > { %v13248_v24 = vpop.permute.xlu1 %867  ;;  %v13250_v25 = vpop.permute.xlu0 %862 }
 0x133   : > { %707 = vperm.xlu1 %12254, %v517_v22   ;;  %702 = vperm.xlu0 %12253, %v516_v23   ;;  %v601_v22 = vld [vmem:[%s15460_s2 + $0x318] sm:$0xff]  ;;  %v600_v23 = vld [vmem:[%s15460_s2 + $0x310] sm:$0xff] }
 0x136   : > { %v13258_v29 = vpop.permute.xlu1 %877  ;;  %v13260_v30 = vpop.permute.xlu0 %872 }
 0x137   : > { %717 = vperm.xlu1 %12254, %v519_v26   ;;  %712 = vperm.xlu0 %12253, %v518_v27  }
 0x138   : > { %2223 = vmatmul.mubr.bf16.gmra.mrb[48].mxu0 %v12341_v28  ;;  %v603_v28 = vld [vmem:[%s15460_s2 + $0x328] sm:$0xff] }
 0x139   : > { %2232 = vmatprep.mubr.bf16.mxu0 %v12342_v31  ;;  %v602_v31 = vld [vmem:[%s15460_s2 + $0x320] sm:$0xff] }
 0x13a   : > { %v13268_v34 = vpop.permute.xlu1 %887  ;;  %v13270_v35 = vpop.permute.xlu0 %882 }
 0x13b   : > { %727 = vperm.xlu1 %12254, %v521_v32   ;;  %722 = vperm.xlu0 %12253, %v520_v33   ;;  %v12356_v32 = vld [vmem:[#allocation6 + $0x110] ss:$8 sps:$4 sm:$0xff]  }
 0x13e   : > { %v13278_v39 = vpop.permute.xlu1 %897  ;;  %v13280_v40 = vpop.permute.xlu0 %892 }
 0x13f   : > { %737 = vperm.xlu1 %12254, %v523_v36   ;;  %732 = vperm.xlu0 %12253, %v522_v37   ;;  %v12357_v37 = vld [vmem:[#allocation6 + $0x124] ss:$8 sps:$4 sm:$0xff]  }
 0x140   : > { %2233 = vmatmul.mubr.bf16.gmra.mrb[52].mxu0 %v12344_v38  ;;  %v605_v38 = vld [vmem:[%s15460_s2 + $0x338] sm:$0xff] }
 0x141   : > { %2242 = vmatprep.mubr.bf16.mxu0 %v12345_v41  ;;  %v604_v41 = vld [vmem:[%s15460_s2 + $0x330] sm:$0xff] }
 0x142   : > { %v13288_v44 = vpop.permute.xlu1 %907  ;;  %v13290_v45 = vpop.permute.xlu0 %902 }
 0x143   : > { %747 = vperm.xlu1 %12254, %v525_v42   ;;  %742 = vperm.xlu0 %12253, %v524_v43  }
 0x146   : > { %v13298_v49 = vpop.permute.xlu1 %917  ;;  %v13300_v50 = vpop.permute.xlu0 %912 }
 0x147   : > { %757 = vperm.xlu1 %12254, %v527_v46   ;;  %752 = vperm.xlu0 %12253, %v526_v47   ;;  %v607_v46 = vld [vmem:[%s15460_s2 + $0x348] sm:$0xff]  ;;  %v606_v47 = vld [vmem:[%s15460_s2 + $0x340] sm:$0xff] }
 0x148   : > { %2243 = vmatmul.mubr.bf16.gmra.mrb[56].mxu0 %v12347_v48  ;;  %v12359_v48 = vld [vmem:[#allocation6 + $0x120] ss:$8 sps:$4 sm:$0xff]  }
 0x149   : > { %2252 = vmatprep.mubr.bf16.mxu0 %v12348_v51 }
 0x14a   : > { %v13308_v56 = vpop.permute.xlu1 %927  ;;  %v13310_v57 = vpop.permute.xlu0 %922 }
 0x14b   : > { %15598 = vst [vmem:[#allocation20_spill] sm:$0xff] %v13308_v56  ;;  %15599 = vst [vmem:[#allocation21_spill] sm:$0xff] %v13310_v57  ;;  %767 = vperm.xlu1 %12254, %v529_v52   ;;  %762 = vperm.xlu0 %12253, %v528_v55   ;;  %v12360_v55 = vld [vmem:[#allocation6 + $0x134] ss:$8 sps:$4 sm:$0xff]   ;;  %v12404_v57 = vld [vmem:[#allocation6 + $0x210] ss:$8 sps:$4 sm:$0xff]  }
 0x14e   : > { %v13318_v1 = vpop.permute.xlu1 %937  ;;  %v13320_v2 = vpop.permute.xlu0 %932 }
 0x14f   : > { %15600 = vst [vmem:[#allocation22_spill] sm:$0xff] %v13318_v1  ;;  %15601 = vst [vmem:[#allocation23_spill] sm:$0xff] %v13320_v2  ;;  %777 = vperm.xlu1 %12254, %v531_v60   ;;  %772 = vperm.xlu0 %12253, %v530_v61   ;;  %v609_v60 = vld [vmem:[%s15460_s2 + $0x358] sm:$0xff]  ;;  %v608_v61 = vld [vmem:[%s15460_s2 + $0x350] sm:$0xff] }
 0x150   : > { %2253 = vmatmul.mubr.bf16.gmra.mrb[60].mxu0 %v12350_v62 }
 0x151   : > { %2262 = vmatprep.mubr.bf16.mxu0 %v12351_v3 }
 0x152   : > { %v13328_v8 = vpop.permute.xlu1 %947  ;;  %v13330_v11 = vpop.permute.xlu0 %942 }
 0x153   : > { %15602 = vst [vmem:[#allocation24_spill] sm:$0xff] %v13328_v8  ;;  %15603 = vst [vmem:[#allocation25_spill] sm:$0xff] %v13330_v11  ;;  %787 = vperm.xlu1 %12254, %v533_v6   ;;  %782 = vperm.xlu0 %12253, %v532_v7   ;;  %v611_v6 = vld [vmem:[%s15460_s2 + $0x368] sm:$0xff]  ;;  %v610_v7 = vld [vmem:[%s15460_s2 + $0x360] sm:$0xff] }
 0x156   : > { %v13338_v17 = vpop.permute.xlu1 %957  ;;  %v13340_v18 = vpop.permute.xlu0 %952 }
 0x157   : > { %15604 = vst [vmem:[#allocation26_spill] sm:$0xff] %v13338_v17  ;;  %15605 = vst [vmem:[#allocation27_spill] sm:$0xff] %v13340_v18  ;;  %1117 = vperm.xlu1 %12254, %v599_v12   ;;  %1112 = vperm.xlu0 %12253, %v598_v13   ;;  %v12362_v12 = vld [vmem:[#allocation6 + $0x130] ss:$8 sps:$4 sm:$0xff]  }
 0x158   : > { %2263 = vmatmul.mubr.bf16.gmra.mrb[64].mxu0 %v12353_v16 }
 0x159   : > { %2272 = vmatprep.mubr.bf16.mxu0 %v12354_v21  ;;  %v12363_v21 = vld [vmem:[#allocation6 + $0x144] ss:$8 sps:$4 sm:$0xff]  }
 0x15a   : > { %v13348_v26 = vpop.permute.xlu1 %967  ;;  %v13350_v27 = vpop.permute.xlu0 %962 }
 0x15b   : > { %15606 = vst [vmem:[#allocation28_spill] sm:$0xff] %v13348_v26  ;;  %15607 = vst [vmem:[#allocation29_spill] sm:$0xff] %v13350_v27  ;;  %1127 = vperm.xlu1 %12254, %v601_v22   ;;  %1122 = vperm.xlu0 %12253, %v600_v23   ;;  %v613_v22 = vld [vmem:[%s15460_s2 + $0x378] sm:$0xff]  ;;  %v612_v23 = vld [vmem:[%s15460_s2 + $0x370] sm:$0xff] }
 0x15e   : > { %v13358_v33 = vpop.permute.xlu1 %977  ;;  %v13360_v36 = vpop.permute.xlu0 %972 }
 0x15f   : > { %15608 = vst [vmem:[#allocation30_spill] sm:$0xff] %v13358_v33  ;;  %15609 = vst [vmem:[#allocation31_spill] sm:$0xff] %v13360_v36  ;;  %1137 = vperm.xlu1 %12254, %v603_v28   ;;  %1132 = vperm.xlu0 %12253, %v602_v31   ;;  %v3653_v33 = vld [vmem:[%s15462_s4 + $0x70] sm:$0xff] }
 0x160   : > { %2273 = vmatmul.mubr.bf16.gmra.mrb[68].mxu0 %v12356_v32  ;;  %v615_v32 = vld [vmem:[%s15460_s2 + $0x388] sm:$0xff] }
 0x161   : > { %2282 = vmatprep.mubr.bf16.mxu0 %v12357_v37  ;;  %v614_v37 = vld [vmem:[%s15460_s2 + $0x380] sm:$0xff] }
 0x162   : > { %v13368_v42 = vpop.permute.xlu1 %987  ;;  %v13370_v43 = vpop.permute.xlu0 %982 }
 0x163   : > { %15610 = vst [vmem:[#allocation32_spill] sm:$0xff] %v13368_v42  ;;  %15611 = vst [vmem:[#allocation33_spill] sm:$0xff] %v13370_v43  ;;  %1147 = vperm.xlu1 %12254, %v605_v38   ;;  %1142 = vperm.xlu0 %12253, %v604_v41   ;;  %v12365_v38 = vld [vmem:[#allocation6 + $0x140] ss:$8 sps:$4 sm:$0xff]   ;;  %v3654_v43 = vld [vmem:[%s15462_s4 + $0x78] sm:$0xff] }
 0x166   : > { %v13378_v51 = vpop.permute.xlu1 %997  ;;  %v13380_v52 = vpop.permute.xlu0 %992 }
 0x167   : > { %15612 = vst [vmem:[#allocation34_spill] sm:$0xff] %v13378_v51  ;;  %15613 = vst [vmem:[#allocation35_spill] sm:$0xff] %v13380_v52  ;;  %1157 = vperm.xlu1 %12254, %v607_v46   ;;  %1152 = vperm.xlu0 %12253, %v606_v47   ;;  %v12366_v47 = vld [vmem:[#allocation6 + $0x154] ss:$8 sps:$4 sm:$0xff]   ;;  %v12387_v52 = vld [vmem:[#allocation6 + $0x1c4] ss:$8 sps:$4 sm:$0xff]  }
 0x168   : > { %2283 = vmatmul.mubr.bf16.gmra.mrb[72].mxu0 %v12359_v48  ;;  %v617_v48 = vld [vmem:[%s15460_s2 + $0x398] sm:$0xff] }
 0x169   : > { %2292 = vmatprep.mubr.bf16.mxu0 %v12360_v55  ;;  %v616_v55 = vld [vmem:[%s15460_s2 + $0x390] sm:$0xff] }
 0x16a   : > { %v13388_v62 = vpop.permute.xlu1 %1007  ;;  %v13390_v3 = vpop.permute.xlu0 %1002 }
 0x16b   : > { %15614 = vst [vmem:[#allocation36_spill] sm:$0xff] %v13388_v62  ;;  %15615 = vst [vmem:[#allocation37_spill] sm:$0xff] %v13390_v3  ;;  %1167 = vperm.xlu1 %12254, %v609_v60   ;;  %1162 = vperm.xlu0 %12253, %v608_v61   ;;  %v12386_v62 = vld [vmem:[#allocation6 + $0x1b0] ss:$8 sps:$4 sm:$0xff]  }
 0x16e   : > { %v13398_v13 = vpop.permute.xlu1 %1017  ;;  %v13400_v16 = vpop.permute.xlu0 %1012 }
 0x16f   : > { %15616 = vst [vmem:[#allocation38_spill] sm:$0xff] %v13398_v13  ;;  %15617 = vst [vmem:[#allocation39_spill] sm:$0xff] %v13400_v16  ;;  %1177 = vperm.xlu1 %12254, %v611_v6   ;;  %1172 = vperm.xlu0 %12253, %v610_v7   ;;  %v619_v6 = vld [vmem:[%s15460_s2 + $0x3a8] sm:$0xff]  ;;  %v618_v7 = vld [vmem:[%s15460_s2 + $0x3a0] sm:$0xff] }
 0x170   : > { %2293 = vmatmul.mubr.bf16.gmra.mrb[76].mxu0 %v12362_v12  ;;  %v12368_v12 = vld [vmem:[#allocation6 + $0x150] ss:$8 sps:$4 sm:$0xff]  }
 0x171   : > { %2302 = vmatprep.mubr.bf16.mxu0 %v12363_v21 }
 0x172   : > { %v13408_v28 = vpop.permute.xlu1 %1027  ;;  %v13410_v31 = vpop.permute.xlu0 %1022 }
 0x173   : > { %15618 = vst [vmem:[#allocation40_spill] sm:$0xff] %v13408_v28  ;;  %15619 = vst [vmem:[#allocation41_spill] sm:$0xff] %v13410_v31  ;;  %1187 = vperm.xlu1 %12254, %v613_v22   ;;  %1182 = vperm.xlu0 %12253, %v612_v23   ;;  %v12369_v23 = vld [vmem:[#allocation6 + $0x164] ss:$8 sps:$4 sm:$0xff]  }
 0x176   : > { %v13418_v41 = vpop.permute.xlu1 %1037  ;;  %v13420_v46 = vpop.permute.xlu0 %1032 }
 0x177   : > { %15620 = vst [vmem:[#allocation42_spill] sm:$0xff] %v13418_v41  ;;  %15621 = vst [vmem:[#allocation43_spill] sm:$0xff] %v13420_v46  ;;  %1197 = vperm.xlu1 %12254, %v615_v32   ;;  %1192 = vperm.xlu0 %12253, %v614_v37   ;;  %v621_v32 = vld [vmem:[%s15460_s2 + $0x3b8] sm:$0xff]  ;;  %v620_v37 = vld [vmem:[%s15460_s2 + $0x3b0] sm:$0xff] }
 0x178   : > { %2303 = vmatmul.mubr.bf16.gmra.mrb[80].mxu0 %v12365_v38  ;;  %v12383_v41 = vld [vmem:[#allocation6 + $0x1a0] ss:$8 sps:$4 sm:$0xff]  }
 0x179   : > { %2312 = vmatprep.mubr.bf16.mxu0 %v12366_v47 }
 0x17a   : > { %v13428_v60 = vpop.permute.xlu1 %1047  ;;  %v13430_v61 = vpop.permute.xlu0 %1042 }
 0x17b   : > { %15622 = vst [vmem:[#allocation44_spill] sm:$0xff] %v13428_v60  ;;  %15623 = vst [vmem:[#allocation45_spill] sm:$0xff] %v13430_v61  ;;  %1207 = vperm.xlu1 %12254, %v617_v48   ;;  %1202 = vperm.xlu0 %12253, %v616_v55   ;;  %v623_v48 = vld [vmem:[%s15460_s2 + $0x3c8] sm:$0xff]  ;;  %v622_v55 = vld [vmem:[%s15460_s2 + $0x3c0] sm:$0xff] }
 0x17e   : > { %v13438_v21 = vpop.permute.xlu1 %1057  ;;  %v13440_v22 = vpop.permute.xlu0 %1052 }
 0x17f   : > { %15624 = vst [vmem:[#allocation46_spill] sm:$0xff] %v13438_v21  ;;  %15625 = vst [vmem:[#allocation47_spill] sm:$0xff] %v13440_v22  ;;  %1217 = vperm.xlu1 %12254, %v619_v6   ;;  %1212 = vperm.xlu0 %12253, %v618_v7   ;;  %v12371_v6 = vld [vmem:[#allocation6 + $0x160] ss:$8 sps:$4 sm:$0xff]   ;;  %v12378_v22 = vld [vmem:[#allocation6 + $0x194] ss:$8 sps:$4 sm:$0xff]  }
 0x180   : > { %2313 = vmatmul.mubr.bf16.gmra.mrb[84].mxu0 %v12368_v12  ;;  %v12372_v12 = vld [vmem:[#allocation6 + $0x174] ss:$8 sps:$4 sm:$0xff]  }
 0x181   : > { %2322 = vmatprep.mubr.bf16.mxu0 %v12369_v23  ;;  %v625_v23 = vld [vmem:[%s15460_s2 + $0x3d8] sm:$0xff] }
 0x182   : > { %v13448_v38 = vpop.permute.xlu1 %1067  ;;  %v13450_v47 = vpop.permute.xlu0 %1062 }
 0x183   : > { %15626 = vst [vmem:[#allocation48_spill] sm:$0xff] %v13448_v38  ;;  %15627 = vst [vmem:[#allocation49_spill] sm:$0xff] %v13450_v47  ;;  %1227 = vperm.xlu1 %12254, %v621_v32   ;;  %1222 = vperm.xlu0 %12253, %v620_v37   ;;  %v624_v32 = vld [vmem:[%s15460_s2 + $0x3d0] sm:$0xff] }
 0x186   : > { %v13458_v7 = vpop.permute.xlu1 %1077  ;;  %v13460_v21 = vpop.permute.xlu0 %1072 }
 0x187   : > { %15628 = vst [vmem:[#allocation50_spill] sm:$0xff] %v13458_v7  ;;  %15629 = vst [vmem:[#allocation51_spill] sm:$0xff] %v13460_v21  ;;  %1237 = vperm.xlu1 %12254, %v623_v48   ;;  %1232 = vperm.xlu0 %12253, %v622_v55   ;;  %v627_v48 = vld [vmem:[%s15460_s2 + $0x3e8] sm:$0xff]  ;;  %v626_v55 = vld [vmem:[%s15460_s2 + $0x3e0] sm:$0xff] }
 0x188   : > { %2323 = vmatmul.mubr.bf16.gmra.mrb[88].mxu0 %v12371_v6  ;;  %v12374_v7 = vld [vmem:[#allocation6 + $0x170] ss:$8 sps:$4 sm:$0xff]   ;;  %v12375_v6 = vld [vmem:[#allocation6 + $0x184] ss:$8 sps:$4 sm:$0xff]  }
 0x189   : > { %2332 = vmatprep.mubr.bf16.mxu0 %v12372_v12  ;;  %v629_v12 = vld [vmem:[%s15460_s2 + $0x3f8] sm:$0xff] }
 0x18a   : > { %v13468_v37 = vpop.permute.xlu1 %1087  ;;  %v13470_v38 = vpop.permute.xlu0 %1082 }
 0x18b   : > { %15630 = vst [vmem:[#allocation52_spill] sm:$0xff] %v13468_v37  ;;  %15631 = vst [vmem:[#allocation53_spill] sm:$0xff] %v13470_v38  ;;  %1247 = vperm.xlu1 %12254, %v625_v23   ;;  %1242 = vperm.xlu0 %12253, %v624_v32   ;;  %v628_v23 = vld [vmem:[%s15460_s2 + $0x3f0] sm:$0xff] }
 0x18e   : > { %v13478_v21 = vpop.permute.xlu1 %1097  ;;  %v13480_v47 = vpop.permute.xlu0 %1092 }
 0x18f   : > { %15632 = vst [vmem:[#allocation54_spill] sm:$0xff] %v13478_v21  ;;  %15633 = vst [vmem:[#allocation55_spill] sm:$0xff] %v13480_v47  ;;  %1257 = vperm.xlu1 %12254, %v627_v48   ;;  %1252 = vperm.xlu0 %12253, %v626_v55   ;;  %v3640_v48 = vld [vmem:[%s15462_s4 + $0x8] sm:$0xff]  ;;  %v3639_v55 = vld [vmem:[%s15462_s4] sm:$0xff] }
 0x190   : > { %2333 = vmatmul.mubr.bf16.gmra.mrb[92].mxu0 %v12374_v7  ;;  %v12377_v21 = vld [vmem:[#allocation6 + $0x180] ss:$8 sps:$4 sm:$0xff]   ;;  %v3642_v7 = vld [vmem:[%s15462_s4 + $0x18] sm:$0xff] }
 0x191   : > { %2342 = vmatprep.mubr.bf16.mxu0 %v12375_v6  ;;  %v3641_v6 = vld [vmem:[%s15462_s4 + $0x10] sm:$0xff] }
 0x192   : > { %v13488_v32 = vpop.permute.xlu1 %1107  ;;  %v13490_v37 = vpop.permute.xlu0 %1102 }
 0x193   : > { %15634 = vst [vmem:[#allocation56_spill] sm:$0xff] %v13488_v32  ;;  %15635 = vst [vmem:[#allocation57_spill] sm:$0xff] %v13490_v37  ;;  %1267 = vperm.xlu1 %12254, %v629_v12   ;;  %1262 = vperm.xlu0 %12253, %v628_v23   ;;  %v12380_v32 = vld [vmem:[#allocation6 + $0x190] ss:$8 sps:$4 sm:$0xff]  }
 0x196   : > { %v638_v47 = vpop.permute.xlu1 %637  ;;  %v633_v38 = vpop.permute.xlu0 %632 }
 0x197   : > { %3774 = vperm.xlu1 %12254, %v3640_v48   ;;  %3769 = vperm.xlu0 %12253, %v3639_v55   ;;  %v3644_v48 = vld [vmem:[%s15462_s4 + $0x28] sm:$0xff]  ;;  %v3643_v55 = vld [vmem:[%s15462_s4 + $0x20] sm:$0xff] }
 0x198   : > { %2343 = vmatmul.mubr.bf16.gmra.mrb[96].mxu0 %v12377_v21  ;;  %v12381_v21 = vld [vmem:[#allocation6 + $0x1a4] ss:$8 sps:$4 sm:$0xff]  }
 0x199   : > { %2352 = vmatprep.mubr.bf16.mxu0 %v12378_v22  ;;  %v3646_v22 = vld [vmem:[%s15462_s4 + $0x38] sm:$0xff] }
 0x19a   : > { %v13504_v12 = vpop.permute.xlu1 %647  ;;  %v13506_v23 = vpop.permute.xlu0 %642 }
 0x19b   : > { %3784 = vperm.xlu1 %12254, %v3642_v7   ;;  %3779 = vperm.xlu0 %12253, %v3641_v6   ;;  %v3645_v7 = vld [vmem:[%s15462_s4 + $0x30] sm:$0xff] }
 0x19e   : > { %v13514_v37 = vpop.permute.xlu1 %657  ;;  %v13516_v60 = vpop.permute.xlu0 %652 }
 0x19f   : > { %3794 = vperm.xlu1 %12254, %v3644_v48   ;;  %3789 = vperm.xlu0 %12253, %v3643_v55   ;;  %v3648_v48 = vld [vmem:[%s15462_s4 + $0x48] sm:$0xff]  ;;  %v3647_v55 = vld [vmem:[%s15462_s4 + $0x40] sm:$0xff] }
 0x1a0   : > { %2353 = vmatmul.mubr.bf16.gmra.mrb[100].mxu0 %v12380_v32  ;;  %v12384_v32 = vld [vmem:[#allocation6 + $0x1b4] ss:$8 sps:$4 sm:$0xff]  }
 0x1a1   : > { %2362 = vmatprep.mubr.bf16.mxu0 %v12381_v21  ;;  %v3650_v21 = vld [vmem:[%s15462_s4 + $0x58] sm:$0xff] }
 0x1a2   : > { %v13524_v6 = vpop.permute.xlu1 %667  ;;  %v13526_v61 = vpop.permute.xlu0 %662 }
 0x1a3   : > { %3804 = vperm.xlu1 %12254, %v3646_v22   ;;  %3799 = vperm.xlu0 %12253, %v3645_v7   ;;  %v3649_v22 = vld [vmem:[%s15462_s4 + $0x50] sm:$0xff] }
 0x1a6   : > { %v13534_v46 = vpop.permute.xlu1 %677  ;;  %v13536_v28 = vpop.permute.xlu0 %672 }
 0x1a7   : > { %3814 = vperm.xlu1 %12254, %v3648_v48   ;;  %3809 = vperm.xlu0 %12253, %v3647_v55   ;;  %v3652_v48 = vld [vmem:[%s15462_s4 + $0x68] sm:$0xff]  ;;  %v3651_v55 = vld [vmem:[%s15462_s4 + $0x60] sm:$0xff] }
 0x1a8   : > { %2363 = vmatmul.mubr.bf16.gmra.mrb[104].mxu0 %v12383_v41 }
 0x1a9   : > { %2372 = vmatprep.mubr.bf16.mxu0 %v12384_v32 }
 0x1aa   : > { %v13544_v7 = vpop.permute.xlu1 %687  ;;  %v13546_v31 = vpop.permute.xlu0 %682 }
 0x1ab   : > { %3824 = vperm.xlu1 %12254, %v3650_v21   ;;  %3819 = vperm.xlu0 %12253, %v3649_v22   ;;  %v2104_v13 = vpop.f32.mrb[0].mxu0 }
 0x1ac   : > { %v2106_v16 = vpop.f32.mrb[1].mxu0  ;;  %v2105_v3 = vadd.f32 %v2104_v13, %v633_v38 }
 0x1ad   : > { %v2107_v32 = vadd.f32 %v2106_v16, %v633_v38  ;;  %v2108_v21 = vpop.f32.mrb[2].mxu0 }
 0x1ae   : > { %v13554_v41 = vpop.permute.xlu1 %697  ;;  %v13556_v51 = vpop.permute.xlu0 %692  ;;  %v2109_v22 = vadd.f32 %v2108_v21, %v638_v47  ;;  %v2743_v36 = vmax.f32 %v2105_v3, 0.0  ;;  %v3656_v21 = vld [vmem:[%s15462_s4 + $0x88] sm:$0xff] }
 0x1af   : > { %3834 = vperm.xlu1 %12254, %v3652_v48   ;;  %3829 = vperm.xlu0 %12253, %v3651_v55   ;;  %v2110_v42 = vpop.f32.mrb[3].mxu0  ;;  %v2744_v38 = vmax.f32 %v2107_v32, 0.0  ;;  %v12389_v3 = vld [vmem:[#allocation6 + $0x1c0] ss:$8 sps:$4 sm:$0xff]  }
 0x1b0   : > { %v2111_v13 = vadd.f32 %v2110_v42, %v638_v47  ;;  %2373 = vmatmul.mubr.bf16.gmra.mrb[108].mxu0 %v12386_v62  ;;  %v2745_v26 = vmax.f32 %v2109_v22, 0.0  ;;  %v3655_v62 = vld [vmem:[%s15462_s4 + $0x80] sm:$0xff] }
 0x1b1   : > { %2382 = vmatprep.mubr.bf16.mxu0 %v12387_v52 }
 0x1b2   : > { %v13564_v27 = vpop.permute.xlu1 %707  ;;  %v13566_v16 = vpop.permute.xlu0 %702  ;;  %v2746_v48 = vmax.f32 %v2111_v13, 0.0  ;;  %v3511_v17 = vpack.c.bf16 %v2745_v26, %v2743_v36  ;;  %v3658_v13 = vld [vmem:[%s15462_s4 + $0x98] sm:$0xff] }
 0x1b3   : > { %3844 = vperm.xlu1 %12254, %v3654_v43   ;;  %3839 = vperm.xlu0 %12253, %v3653_v33   ;;  %v2114_v55 = vpop.f32.mrb[4].mxu0  ;;  %v12390_v43 = vld [vmem:[#allocation6 + $0x1d4] ss:$8 sps:$4 sm:$0xff]  }
 0x1b4   : > { %v2116_v18 = vpop.f32.mrb[5].mxu0  ;;  %v3512_v42 = vpack.c.bf16 %v2746_v48, %v2744_v38  ;;  %v2115_v47 = vadd.f32 %v2114_v55, %v13506_v23  ;;  %v3657_v48 = vld [vmem:[%s15462_s4 + $0x90] sm:$0xff] }
 0x1b5   : > { %v2117_v32 = vadd.f32 %v2116_v18, %v13506_v23  ;;  %v2118_v22 = vpop.f32.mrb[6].mxu0 }
 0x1b6   : > { %v13575_v52 = vpop.permute.xlu1 %717  ;;  %v13577_v33 = vpop.permute.xlu0 %712  ;;  %6967 = vmatprep.subr.bf16.mxu0 %v3512_v42  ;;  %v2119_v26 = vadd.f32 %v2118_v22, %v13504_v12  ;;  %v2747_v18 = vmax.f32 %v2115_v47, 0.0  ;;  %v3659_v47 = vld [vmem:[%s15462_s4 + $0xa0] sm:$0xff] }
 0x1b7   : > { %3854 = vperm.xlu1 %12254, %v3656_v21   ;;  %3849 = vperm.xlu0 %12253, %v3655_v62   ;;  %v2120_v36 = vpop.f32.mrb[7].mxu0 }
 0x1b8   : > { %6968 = vmatpush1.bf16.msra.mxu0 %v3511_v17  ;;  %v2121_v38 = vadd.f32 %v2120_v36, %v13504_v12  ;;  %v2749_v23 = vmax.f32 %v2119_v26, 0.0  ;;  %v2748_v17 = vmax.f32 %v2117_v32, 0.0  ;;  %v3660_v12 = vld [vmem:[%s15462_s4 + $0xa8] sm:$0xff]  ;;  %v12392_v26 = vld [vmem:[#allocation6 + $0x1d0] ss:$8 sps:$4 sm:$0xff]  }
 0x1b9   : > { %2383 = vmatmul.mubr.bf16.gmra.mrb[112].mxu0 %v12389_v3 }
 0x1ba   : > { %v13588_v55 = vpop.permute.xlu1 %727  ;;  %v13590_v21 = vpop.permute.xlu0 %722  ;;  %2392 = vmatprep.mubr.bf16.mxu0 %v12390_v43  ;;  %v2750_v42 = vmax.f32 %v2121_v38, 0.0  ;;  %v3513_v3 = vpack.c.bf16 %v2749_v23, %v2747_v18 }
 0x1bb   : > { %3864 = vperm.xlu1 %12254, %v3658_v13   ;;  %3859 = vperm.xlu0 %12253, %v3657_v48   ;;  %v2124_v62 = vpop.f32.mrb[8].mxu0  ;;  %v12393_v13 = vld [vmem:[#allocation6 + $0x1e4] ss:$8 sps:$4 sm:$0xff]  }
 0x1bc   : > { %v2126_v22 = vpop.f32.mrb[9].mxu0  ;;  %v3514_v36 = vpack.c.bf16 %v2750_v42, %v2748_v17  ;;  %v2125_v8 = vadd.f32 %v2124_v62, %v13516_v60  ;;  %v3662_v17 = vld [vmem:[%s15462_s4 + $0xb8] sm:$0xff]  ;;  %v3661_v62 = vld [vmem:[%s15462_s4 + $0xb0] sm:$0xff] }
 0x1bd   : > { %v2127_v38 = vadd.f32 %v2126_v22, %v13516_v60  ;;  %v2128_v48 = vpop.f32.mrb[10].mxu0 }
 0x1be   : > { %v13599_v43 = vpop.permute.xlu1 %737  ;;  %v13601_v32 = vpop.permute.xlu0 %732  ;;  %6969 = vmatprep.subr.bf16.mxu0 %v3514_v36  ;;  %v2129_v18 = vadd.f32 %v2128_v48, %v13514_v37  ;;  %v2751_v60 = vmax.f32 %v2125_v8, 0.0  ;;  %v3663_v8 = vld [vmem:[%s15462_s4 + $0xc0] sm:$0xff] }
 0x1bf   : > { %3874 = vperm.xlu1 %12254, %v3660_v12   ;;  %3869 = vperm.xlu0 %12253, %v3659_v47   ;;  %v2130_v23 = vpop.f32.mrb[11].mxu0 }
 0x1c0   : > { %6970 = vmatpush1.bf16.msra.mxu0 %v3513_v3  ;;  %v2131_v42 = vadd.f32 %v2130_v23, %v13514_v37  ;;  %v2753_v22 = vmax.f32 %v2129_v18, 0.0  ;;  %v2752_v3 = vmax.f32 %v2127_v38, 0.0  ;;  %v3664_v37 = vld [vmem:[%s15462_s4 + $0xc8] sm:$0xff] }
 0x1c1   : > { %2393 = vmatmul.mubr.bf16.gmra.mrb[116].mxu0 %v12392_v26  ;;  %v12395_v18 = vld [vmem:[#allocation6 + $0x1e0] ss:$8 sps:$4 sm:$0xff]  }
 0x1c2   : > { %v13612_v36 = vpop.permute.xlu1 %747  ;;  %v13614_v12 = vpop.permute.xlu0 %742  ;;  %2402 = vmatprep.mubr.bf16.mxu0 %v12393_v13  ;;  %v2754_v47 = vmax.f32 %v2131_v42, 0.0  ;;  %v3515_v26 = vpack.c.bf16 %v2753_v22, %v2751_v60  ;;  %v12396_v13 = vld [vmem:[#allocation6 + $0x1f4] ss:$8 sps:$4 sm:$0xff]  }
 0x1c3   : > { %3884 = vperm.xlu1 %12254, %v3662_v17   ;;  %3879 = vperm.xlu0 %12253, %v3661_v62   ;;  %v2134_v48 = vpop.f32.mrb[12].mxu0 }
 0x1c4   : > { %v2136_v23 = vpop.f32.mrb[13].mxu0  ;;  %v3516_v11 = vpack.c.bf16 %v2754_v47, %v2752_v3  ;;  %v2135_v1 = vadd.f32 %v2134_v48, %v13526_v61  ;;  %v3666_v3 = vld [vmem:[%s15462_s4 + $0xd8] sm:$0xff] }
 0x1c5   : > { %v2137_v38 = vadd.f32 %v2136_v23, %v13526_v61  ;;  %v2138_v42 = vpop.f32.mrb[14].mxu0  ;;  %v3665_v61 = vld [vmem:[%s15462_s4 + $0xd0] sm:$0xff] }
 0x1c6   : > { %v13624_v17 = vpop.permute.xlu1 %757  ;;  %6971 = vmatprep.subr.bf16.mxu0 %v3516_v11  ;;  %v13626_v62 = vpop.permute.xlu0 %752  ;;  %v2139_v60 = vadd.f32 %v2138_v42, %v13524_v6  ;;  %v2755_v11 = vmax.f32 %v2135_v1, 0.0  ;;  %v3667_v1 = vld [vmem:[%s15462_s4 + $0xe0] sm:$0xff] }
 0x1c7   : > { %3894 = vperm.xlu1 %12254, %v3664_v37   ;;  %3889 = vperm.xlu0 %12253, %v3663_v8   ;;  %v2140_v22 = vpop.f32.mrb[15].mxu0  ;;  %v2756_v37 = vmax.f32 %v2137_v38, 0.0 }
 0x1c8   : > { %6972 = vmatpush1.bf16.msra.mxu0 %v3515_v26  ;;  %v2141_v47 = vadd.f32 %v2140_v22, %v13524_v6  ;;  %v2757_v48 = vmax.f32 %v2139_v60, 0.0  ;;  %v3668_v26 = vld [vmem:[%s15462_s4 + $0xe8] sm:$0xff]  ;;  %v12398_v60 = vld [vmem:[#allocation6 + $0x1f0] ss:$8 sps:$4 sm:$0xff]  }
 0x1c9   : > { %2403 = vmatmul.mubr.bf16.gmra.mrb[120].mxu0 %v12395_v18  ;;  %v12399_v22 = vld [vmem:[#allocation6 + $0x204] ss:$8 sps:$4 sm:$0xff]  }
 0x1ca   : > { %2412 = vmatprep.mubr.bf16.mxu0 %v12396_v13  ;;  %v2758_v23 = vmax.f32 %v2141_v47, 0.0  ;;  %v3517_v42 = vpack.c.bf16 %v2757_v48, %v2755_v11  ;;  %v13639_v2 = vpop.permute.xlu1 %767  ;;  %v13644_v13 = vpop.permute.xlu0 %762  ;;  %v3670_v48 = vld [vmem:[%s15462_s4 + $0xf8] sm:$0xff] }
 0x1cb   : > { %3904 = vperm.xlu1 %12254, %v3666_v3   ;;  %3899 = vperm.xlu0 %12253, %v3665_v61   ;;  %v2144_v8 = vpop.f32.mrb[16].mxu0 }
 0x1cc   : > { %v2146_v6 = vpop.f32.mrb[17].mxu0  ;;  %v3518_v18 = vpack.c.bf16 %v2758_v23, %v2756_v37  ;;  %v2145_v38 = vadd.f32 %v2144_v8, %v13536_v28  ;;  %v3669_v23 = vld [vmem:[%s15462_s4 + $0xf0] sm:$0xff] }
 0x1cd   : > { %v2147_v3 = vadd.f32 %v2146_v6, %v13536_v28  ;;  %v2148_v47 = vpop.f32.mrb[18].mxu0 }
 0x1ce   : > { %6973 = vmatprep.subr.bf16.mxu0 %v3518_v18  ;;  %v2149_v61 = vadd.f32 %v2148_v47, %v13534_v46  ;;  %v2150_v11 = vpop.f32.mrb[19].mxu0  ;;  %v2759_v28 = vmax.f32 %v2145_v38, 0.0  ;;  %v3671_v38 = vld [vmem:[%s15462_s4 + $0x100] sm:$0xff] }
 0x1cf   : > { %3914 = vperm.xlu1 %12254, %v3668_v26   ;;  %3909 = vperm.xlu0 %12253, %v3667_v1   ;;  %v2151_v37 = vadd.f32 %v2150_v11, %v13534_v46  ;;  %v13656_v26 = vpop.permute.xlu1 %777  ;;  %v2760_v6 = vmax.f32 %v2147_v3, 0.0  ;;  %v3672_v46 = vld [vmem:[%s15462_s4 + $0x108] sm:$0xff]  ;;  %v12402_v3 = vld [vmem:[#allocation6 + $0x214] ss:$8 sps:$4 sm:$0xff]  }
 0x1d0   : > { %6974 = vmatpush1.bf16.msra.mxu0 %v3517_v42  ;;  %v2761_v8 = vmax.f32 %v2149_v61, 0.0  ;;  %v13658_v42 = vpop.permute.xlu0 %772 }
 0x1d1   : > { %2413 = vmatmul.mubr.bf16.gmra.mrb[124].mxu0 %v12398_v60  ;;  %v2762_v18 = vmax.f32 %v2151_v37, 0.0 }
 0x1d2   : > { %2422 = vmatprep.mubr.bf16.mxu0 %v12399_v22  ;;  %v3519_v60 = vpack.c.bf16 %v2761_v8, %v2759_v28  ;;  %v12401_v22 = vld [vmem:[#allocation6 + $0x200] ss:$8 sps:$4 sm:$0xff]   ;;  %v3674_v28 = vld [vmem:[%s15462_s4 + $0x118] sm:$0xff] }
 0x1d3   : > { %3924 = vperm.xlu1 %12254, %v3670_v48   ;;  %3919 = vperm.xlu0 %12253, %v3669_v23   ;;  %v2154_v1 = vpop.f32.mrb[20].mxu0  ;;  %v3520_v11 = vpack.c.bf16 %v2762_v18, %v2760_v6  ;;  %v13672_v8 = vpop.permute.xlu1 %787 }
 0x1d4   : > { %v2156_v47 = vpop.f32.mrb[21].mxu0  ;;  %v2155_v61 = vadd.f32 %v2154_v1, %v13546_v31  ;;  %v13678_v18 = vpop.permute.xlu0 %782 }
 0x1d5   : > { %v2157_v48 = vadd.f32 %v2156_v47, %v13546_v31  ;;  %v2158_v37 = vpop.f32.mrb[22].mxu0  ;;  %6975 = vmatprep.subr.bf16.mxu0 %v3520_v11  ;;  %v3673_v31 = vld [vmem:[%s15462_s4 + $0x110] sm:$0xff] }
 0x1d6   : > { %v2159_v23 = vadd.f32 %v2158_v37, %v13544_v7  ;;  %v2160_v56 = vpop.f32.mrb[23].mxu0  ;;  %6976 = vmatpush1.bf16.msra.mxu0 %v3519_v60  ;;  %v2763_v1 = vmax.f32 %v2155_v61, 0.0  ;;  %v3675_v37 = vld [vmem:[%s15462_s4 + $0x120] sm:$0xff] }
 0x1d7   : > { %3934 = vperm.xlu1 %12254, %v3672_v46   ;;  %3929 = vperm.xlu0 %12253, %v3671_v38   ;;  %v2161_v6 = vadd.f32 %v2160_v56, %v13544_v7  ;;  %v2764_v60 = vmax.f32 %v2157_v48, 0.0  ;;  %v3676_v38 = vld [vmem:[%s15462_s4 + $0x128] sm:$0xff] }
 0x1d8   : > { %v2765_v46 = vmax.f32 %v2159_v23, 0.0  ;;  %v13687_v23 = vpop.permute.xlu1 %1117 }
 0x1d9   : > { %2423 = vmatmul.mubr.bf16.gmra.mrb[128].mxu0 %v12401_v22  ;;  %v2766_v47 = vmax.f32 %v2161_v6, 0.0  ;;  %v13690_v6 = vpop.permute.xlu0 %1112 }
 0x1da   : > { %2432 = vmatprep.mubr.bf16.mxu0 %v12402_v3  ;;  %v3521_v56 = vpack.c.bf16 %v2765_v46, %v2763_v1  ;;  %v12405_v3 = vld [vmem:[#allocation6 + $0x224] ss:$8 sps:$4 sm:$0xff]   ;;  %v3678_v46 = vld [vmem:[%s15462_s4 + $0x138] sm:$0xff] }
 0x1db   : > { %3944 = vperm.xlu1 %12254, %v3674_v28   ;;  %3939 = vperm.xlu0 %12253, %v3673_v31   ;;  %v2164_v11 = vpop.f32.mrb[24].mxu0  ;;  %v3522_v22 = vpack.c.bf16 %v2766_v47, %v2764_v60 }
 0x1dc   : > { %v2166_v7 = vpop.f32.mrb[25].mxu0  ;;  %v2165_v61 = vadd.f32 %v2164_v11, %v13556_v51 }
 0x1dd   : > { %v2167_v48 = vadd.f32 %v2166_v7, %v13556_v51  ;;  %v2168_v28 = vpop.f32.mrb[26].mxu0  ;;  %6977 = vmatprep.subr.bf16.mxu0 %v3522_v22  ;;  %v3677_v51 = vld [vmem:[%s15462_s4 + $0x130] sm:$0xff] }
 0x1de   : > { %v2169_v31 = vadd.f32 %v2168_v28, %v13554_v41  ;;  %v2170_v1 = vpop.f32.mrb[27].mxu0  ;;  %6978 = vmatpush1.bf16.msra.mxu0 %v3521_v56  ;;  %v2767_v47 = vmax.f32 %v2165_v61, 0.0  ;;  %v3680_v56 = vld [vmem:[%s15462_s4 + $0x148] sm:$0xff]  ;;  %v13703_v28 = vpop.permute.xlu1 %1127  ;;  %v3679_v61 = vld [vmem:[%s15462_s4 + $0x140] sm:$0xff] }
 0x1df   : > { %3954 = vperm.xlu1 %12254, %v3676_v38   ;;  %3949 = vperm.xlu0 %12253, %v3675_v37   ;;  %v2171_v60 = vadd.f32 %v2170_v1, %v13554_v41  ;;  %v2768_v38 = vmax.f32 %v2167_v48, 0.0  ;;  %v12408_v1 = vld [vmem:[#allocation6 + $0x234] ss:$8 sps:$4 sm:$0xff]  }
 0x1e0   : > { %v2769_v11 = vmax.f32 %v2169_v31, 0.0  ;;  %v12407_v31 = vld [vmem:[#allocation6 + $0x220] ss:$8 sps:$4 sm:$0xff]  }
 0x1e1   : > { %2433 = vmatmul.mubr.bf16.gmra.mrb[132].mxu0 %v12404_v57  ;;  %v2770_v7 = vmax.f32 %v2171_v60, 0.0 }
 0x1e2   : > { %2442 = vmatprep.mubr.bf16.mxu0 %v12405_v3  ;;  %v3523_v37 = vpack.c.bf16 %v2769_v11, %v2767_v47  ;;  %v13708_v3 = vpop.permute.xlu0 %1122  ;;  %v3682_v11 = vld [vmem:[%s15462_s4 + $0x158] sm:$0xff] }
 0x1e3   : > { %3964 = vperm.xlu1 %12254, %v3678_v46   ;;  %3959 = vperm.xlu0 %12253, %v3677_v51   ;;  %v2174_v22 = vpop.f32.mrb[28].mxu0  ;;  %v3524_v41 = vpack.c.bf16 %v2770_v7, %v2768_v38  ;;  %v3681_v7 = vld [vmem:[%s15462_s4 + $0x150] sm:$0xff] }
 0x1e4   : > { %v2176_v57 = vpop.f32.mrb[29].mxu0  ;;  %v2175_v48 = vadd.f32 %v2174_v22, %v13566_v16 }
 0x1e5   : > { %v2177_v46 = vadd.f32 %v2176_v57, %v13566_v16  ;;  %v2178_v60 = vpop.f32.mrb[30].mxu0  ;;  %6979 = vmatprep.subr.bf16.mxu0 %v3524_v41 }
 0x1e6   : > { %v2179_v51 = vadd.f32 %v2178_v60, %v13564_v27  ;;  %v2180_v47 = vpop.f32.mrb[31].mxu0  ;;  %6980 = vmatpush1.bf16.msra.mxu0 %v3523_v37  ;;  %v2771_v16 = vmax.f32 %v2175_v48, 0.0  ;;  %v13722_v37 = vpop.permute.xlu0 %1132  ;;  %v3683_v48 = vld [vmem:[%s15462_s4 + $0x160] sm:$0xff] }
 0x1e7   : > { %3974 = vperm.xlu1 %12254, %v3680_v56   ;;  %3969 = vperm.xlu0 %12253, %v3679_v61   ;;  %v2181_v38 = vadd.f32 %v2180_v47, %v13564_v27  ;;  %v13720_v56 = vpop.permute.xlu1 %1137  ;;  %v2772_v57 = vmax.f32 %v2177_v46, 0.0  ;;  %15637 = vst [vmem:[#allocation59_spill] sm:$0xff] %v13722_v37  ;;  %v3684_v27 = vld [vmem:[%s15462_s4 + $0x168] sm:$0xff] }
 0x1e8   : > { %v2773_v22 = vmax.f32 %v2179_v51, 0.0  ;;  %15636 = vst [vmem:[#allocation58_spill] sm:$0xff] %v13720_v56  ;;  %v12411_v46 = vld [vmem:[#allocation6 + $0x244] ss:$8 sps:$4 sm:$0xff]  }
 0x1e9   : > { %2443 = vmatmul.mubr.bf16.gmra.mrb[136].mxu0 %v12407_v31  ;;  %v2774_v41 = vmax.f32 %v2181_v38, 0.0 }
 0x1ea   : > { %2452 = vmatprep.mubr.bf16.mxu0 %v12408_v1  ;;  %v3525_v31 = vpack.c.bf16 %v2773_v22, %v2771_v16  ;;  %v12410_v1 = vld [vmem:[#allocation6 + $0x230] ss:$8 sps:$4 sm:$0xff]  }
 0x1eb   : > { %3984 = vperm.xlu1 %12254, %v3682_v11   ;;  %3979 = vperm.xlu0 %12253, %v3681_v7   ;;  %v2184_v61 = vpop.f32.mrb[32].mxu0  ;;  %v3526_v47 = vpack.c.bf16 %v2774_v41, %v2772_v57  ;;  %v3686_v16 = vld [vmem:[%s15462_s4 + $0x178] sm:$0xff]  ;;  %v13736_v22 = vpop.permute.xlu1 %1147 }
 0x1ec   : > { %v2186_v60 = vpop.f32.mrb[33].mxu0  ;;  %v2185_v51 = vadd.f32 %v2184_v61, %v13577_v33  ;;  %15638 = vst [vmem:[#allocation60_spill] sm:$0xff] %v13736_v22  ;;  %v13742_v41 = vpop.permute.xlu0 %1142  ;;  %v12413_v22 = vld [vmem:[#allocation6 + $0x240] ss:$8 sps:$4 sm:$0xff]  }
 0x1ed   : > { %v2187_v11 = vadd.f32 %v2186_v60, %v13577_v33  ;;  %v2188_v38 = vpop.f32.mrb[34].mxu0  ;;  %6981 = vmatprep.subr.bf16.mxu0 %v3526_v47  ;;  %v3685_v33 = vld [vmem:[%s15462_s4 + $0x170] sm:$0xff]  ;;  %15639 = vst [vmem:[#allocation61_spill] sm:$0xff] %v13742_v41 }
 0x1ee   : > { %v2189_v7 = vadd.f32 %v2188_v38, %v13575_v52  ;;  %v2190_v56 = vpop.f32.mrb[35].mxu0  ;;  %6982 = vmatpush1.bf16.msra.mxu0 %v3525_v31  ;;  %v2775_v61 = vmax.f32 %v2185_v51, 0.0  ;;  %v3687_v38 = vld [vmem:[%s15462_s4 + $0x180] sm:$0xff] }
 0x1ef   : > { %3994 = vperm.xlu1 %12254, %v3684_v27   ;;  %3989 = vperm.xlu0 %12253, %v3683_v48   ;;  %v2191_v57 = vadd.f32 %v2190_v56, %v13575_v52  ;;  %v2776_v31 = vmax.f32 %v2187_v11, 0.0  ;;  %v3688_v48 = vld [vmem:[%s15462_s4 + $0x188] sm:$0xff] }
 0x1f0   : > { %v2777_v27 = vmax.f32 %v2189_v7, 0.0  ;;  %v13751_v7 = vpop.permute.xlu1 %1157 }
 0x1f1   : > { %2453 = vmatmul.mubr.bf16.gmra.mrb[140].mxu0 %v12410_v1  ;;  %v2778_v60 = vmax.f32 %v2191_v57, 0.0  ;;  %15640 = vst [vmem:[#allocation62_spill] sm:$0xff] %v13751_v7  ;;  %v13754_v57 = vpop.permute.xlu0 %1152 }
 0x1f2   : > { %2462 = vmatprep.mubr.bf16.mxu0 %v12411_v46  ;;  %v3527_v52 = vpack.c.bf16 %v2777_v27, %v2775_v61  ;;  %v12414_v46 = vld [vmem:[#allocation6 + $0x254] ss:$8 sps:$4 sm:$0xff]   ;;  %15641 = vst [vmem:[#allocation63_spill] sm:$0xff] %v13754_v57 }
 0x1f3   : > { %4004 = vperm.xlu1 %12254, %v3686_v16   ;;  %3999 = vperm.xlu0 %12253, %v3685_v33   ;;  %v2194_v47 = vpop.f32.mrb[36].mxu0  ;;  %v3528_v1 = vpack.c.bf16 %v2778_v60, %v2776_v31  ;;  %v3690_v27 = vld [vmem:[%s15462_s4 + $0x198] sm:$0xff] }
 0x1f4   : > { %v2196_v56 = vpop.f32.mrb[37].mxu0  ;;  %v2195_v51 = vadd.f32 %v2194_v47, %v13590_v21 }
 0x1f5   : > { %v2197_v11 = vadd.f32 %v2196_v56, %v13590_v21  ;;  %v2198_v16 = vpop.f32.mrb[38].mxu0  ;;  %6983 = vmatprep.subr.bf16.mxu0 %v3528_v1  ;;  %v3689_v21 = vld [vmem:[%s15462_s4 + $0x190] sm:$0xff] }
 0x1f6   : > { %v2199_v33 = vadd.f32 %v2198_v16, %v13588_v55  ;;  %v2200_v61 = vpop.f32.mrb[39].mxu0  ;;  %6984 = vmatpush1.bf16.msra.mxu0 %v3527_v52  ;;  %v2779_v60 = vmax.f32 %v2195_v51, 0.0  ;;  %v3692_v52 = vld [vmem:[%s15462_s4 + $0x1a8] sm:$0xff]  ;;  %v13767_v16 = vpop.permute.xlu1 %1167  ;;  %v3691_v51 = vld [vmem:[%s15462_s4 + $0x1a0] sm:$0xff] }
 0x1f7   : > { %4014 = vperm.xlu1 %12254, %v3688_v48   ;;  %4009 = vperm.xlu0 %12253, %v3687_v38   ;;  %v2201_v31 = vadd.f32 %v2200_v61, %v13588_v55  ;;  %v2780_v48 = vmax.f32 %v2197_v11, 0.0  ;;  %15642 = vst [vmem:[#allocation64_spill] sm:$0xff] %v13767_v16  ;;  %v12417_v61 = vld [vmem:[#allocation6 + $0x264] ss:$8 sps:$4 sm:$0xff]   ;;  %v15703_v16 = vld [vmem:[#allocation29_spill] sm:$0xff] }
 0x1f8   : > { %v2781_v47 = vmax.f32 %v2199_v33, 0.0  ;;  %v12416_v33 = vld [vmem:[#allocation6 + $0x250] ss:$8 sps:$4 sm:$0xff]  }
 0x1f9   : > { %2463 = vmatmul.mubr.bf16.gmra.mrb[144].mxu0 %v12413_v22  ;;  %v2782_v56 = vmax.f32 %v2201_v31, 0.0 }
 0x1fa   : > { %2472 = vmatprep.mubr.bf16.mxu0 %v12414_v46  ;;  %v3529_v38 = vpack.c.bf16 %v2781_v47, %v2779_v60  ;;  %v13772_v46 = vpop.permute.xlu0 %1162  ;;  %v3694_v47 = vld [vmem:[%s15462_s4 + $0x1b8] sm:$0xff] }
 0x1fb   : > { %4024 = vperm.xlu1 %12254, %v3690_v27   ;;  %4019 = vperm.xlu0 %12253, %v3689_v21   ;;  %v2204_v1 = vpop.f32.mrb[40].mxu0  ;;  %v3530_v22 = vpack.c.bf16 %v2782_v56, %v2780_v48  ;;  %15643 = vst [vmem:[#allocation65_spill] sm:$0xff] %v13772_v46  ;;  %v3693_v56 = vld [vmem:[%s15462_s4 + $0x1b0] sm:$0xff] }
 0x1fc   : > { %v2206_v55 = vpop.f32.mrb[41].mxu0  ;;  %v2205_v11 = vadd.f32 %v2204_v1, %v13601_v32 }
 0x1fd   : > { %v2207_v27 = vadd.f32 %v2206_v55, %v13601_v32  ;;  %v2208_v31 = vpop.f32.mrb[42].mxu0  ;;  %6985 = vmatprep.subr.bf16.mxu0 %v3530_v22 }
 0x1fe   : > { %v2209_v21 = vadd.f32 %v2208_v31, %v13599_v43  ;;  %v2210_v60 = vpop.f32.mrb[43].mxu0  ;;  %6986 = vmatpush1.bf16.msra.mxu0 %v3529_v38  ;;  %v2783_v32 = vmax.f32 %v2205_v11, 0.0  ;;  %v13786_v38 = vpop.permute.xlu0 %1172  ;;  %v3695_v11 = vld [vmem:[%s15462_s4 + $0x1c0] sm:$0xff] }
 0x1ff   : > { %4034 = vperm.xlu1 %12254, %v3692_v52   ;;  %4029 = vperm.xlu0 %12253, %v3691_v51   ;;  %v2211_v48 = vadd.f32 %v2210_v60, %v13599_v43  ;;  %v13784_v52 = vpop.permute.xlu1 %1177  ;;  %v2784_v55 = vmax.f32 %v2207_v27, 0.0  ;;  %15645 = vst [vmem:[#allocation67_spill] sm:$0xff] %v13786_v38  ;;  %v3696_v43 = vld [vmem:[%s15462_s4 + $0x1c8] sm:$0xff]  ;;  %v12420_v27 = vld [vmem:[#allocation6 + $0x274] ss:$8 sps:$4 sm:$0xff]  }
 0x200   : > { %v2785_v1 = vmax.f32 %v2209_v21, 0.0  ;;  %15644 = vst [vmem:[#allocation66_spill] sm:$0xff] %v13784_v52  ;;  %v3172_v38 = vld [vmem:[#allocation8 + $0x568] sm:$0xff] }
 0x201   : > { %2473 = vmatmul.mubr.bf16.gmra.mrb[148].mxu0 %v12416_v33  ;;  %v2786_v22 = vmax.f32 %v2211_v48, 0.0 }
 0x202   : > { %2482 = vmatprep.mubr.bf16.mxu0 %v12417_v61  ;;  %v3531_v33 = vpack.c.bf16 %v2785_v1, %v2783_v32  ;;  %v12419_v61 = vld [vmem:[#allocation6 + $0x260] ss:$8 sps:$4 sm:$0xff]   ;;  %v3698_v32 = vld [vmem:[%s15462_s4 + $0x1d8] sm:$0xff] }
 0x203   : > { %4044 = vperm.xlu1 %12254, %v3694_v47   ;;  %4039 = vperm.xlu0 %12253, %v3693_v56   ;;  %v2214_v51 = vpop.f32.mrb[44].mxu0  ;;  %v3532_v60 = vpack.c.bf16 %v2786_v22, %v2784_v55  ;;  %v13800_v1 = vpop.permute.xlu1 %1187 }
 0x204   : > { %v2216_v31 = vpop.f32.mrb[45].mxu0  ;;  %v2215_v21 = vadd.f32 %v2214_v51, %v13614_v12  ;;  %15646 = vst [vmem:[#allocation68_spill] sm:$0xff] %v13800_v1  ;;  %v13806_v22 = vpop.permute.xlu0 %1182  ;;  %v12422_v1 = vld [vmem:[#allocation6 + $0x270] ss:$8 sps:$4 sm:$0xff]  }
 0x205   : > { %v2217_v47 = vadd.f32 %v2216_v31, %v13614_v12  ;;  %v2218_v48 = vpop.f32.mrb[46].mxu0  ;;  %6987 = vmatprep.subr.bf16.mxu0 %v3532_v60  ;;  %v3697_v12 = vld [vmem:[%s15462_s4 + $0x1d0] sm:$0xff]  ;;  %15647 = vst [vmem:[#allocation69_spill] sm:$0xff] %v13806_v22 }
 0x206   : > { %v2219_v56 = vadd.f32 %v2218_v48, %v13612_v36  ;;  %v2220_v52 = vpop.f32.mrb[47].mxu0  ;;  %6988 = vmatpush1.bf16.msra.mxu0 %v3531_v33  ;;  %v2787_v51 = vmax.f32 %v2215_v21, 0.0  ;;  %v3699_v48 = vld [vmem:[%s15462_s4 + $0x1e0] sm:$0xff] }
 0x207   : > { %4054 = vperm.xlu1 %12254, %v3696_v43   ;;  %4049 = vperm.xlu0 %12253, %v3695_v11   ;;  %v2221_v55 = vadd.f32 %v2220_v52, %v13612_v36  ;;  %v2788_v33 = vmax.f32 %v2217_v47, 0.0  ;;  %v3700_v11 = vld [vmem:[%s15462_s4 + $0x1e8] sm:$0xff] }
 0x208   : > { %v2789_v43 = vmax.f32 %v2219_v56, 0.0  ;;  %v13815_v56 = vpop.permute.xlu1 %1197 }
 0x209   : > { %2483 = vmatmul.mubr.bf16.gmra.mrb[152].mxu0 %v12419_v61  ;;  %v2790_v31 = vmax.f32 %v2221_v55, 0.0  ;;  %15648 = vst [vmem:[#allocation70_spill] sm:$0xff] %v13815_v56  ;;  %v13818_v55 = vpop.permute.xlu0 %1192 }
 0x20a   : > { %2492 = vmatprep.mubr.bf16.mxu0 %v12420_v27  ;;  %v3533_v36 = vpack.c.bf16 %v2789_v43, %v2787_v51  ;;  %v12423_v27 = vld [vmem:[#allocation6 + $0x284] ss:$8 sps:$4 sm:$0xff]   ;;  %15649 = vst [vmem:[#allocation71_spill] sm:$0xff] %v13818_v55  ;;  %v3702_v43 = vld [vmem:[%s15462_s4 + $0x1f8] sm:$0xff] }
 0x20b   : > { %4064 = vperm.xlu1 %12254, %v3698_v32   ;;  %4059 = vperm.xlu0 %12253, %v3697_v12   ;;  %v2224_v60 = vpop.f32.mrb[48].mxu0  ;;  %v3534_v61 = vpack.c.bf16 %v2790_v31, %v2788_v33  ;;  %v12482_v55 = vld [vmem:[#allocation6 + $0x3b0] ss:$8 sps:$4 sm:$0xff]  }
 0x20c   : > { %v2226_v52 = vpop.f32.mrb[49].mxu0  ;;  %v2225_v21 = vadd.f32 %v2224_v60, %v13626_v62 }
 0x20d   : > { %v2227_v47 = vadd.f32 %v2226_v52, %v13626_v62  ;;  %v2228_v32 = vpop.f32.mrb[50].mxu0  ;;  %6989 = vmatprep.subr.bf16.mxu0 %v3534_v61  ;;  %v3701_v62 = vld [vmem:[%s15462_s4 + $0x1f0] sm:$0xff] }
 0x20e   : > { %v2229_v12 = vadd.f32 %v2228_v32, %v13624_v17  ;;  %v2230_v51 = vpop.f32.mrb[51].mxu0  ;;  %6990 = vmatpush1.bf16.msra.mxu0 %v3533_v36  ;;  %v2791_v31 = vmax.f32 %v2225_v21, 0.0  ;;  %v3704_v36 = vld [vmem:[%s15462_s4 + $0x208] sm:$0xff]  ;;  %v13831_v32 = vpop.permute.xlu1 %1207  ;;  %v3703_v21 = vld [vmem:[%s15462_s4 + $0x200] sm:$0xff] }
 0x20f   : > { %4074 = vperm.xlu1 %12254, %v3700_v11   ;;  %4069 = vperm.xlu0 %12253, %v3699_v48   ;;  %v2231_v33 = vadd.f32 %v2230_v51, %v13624_v17  ;;  %v2792_v11 = vmax.f32 %v2227_v47, 0.0  ;;  %15650 = vst [vmem:[#allocation72_spill] sm:$0xff] %v13831_v32  ;;  %v12426_v51 = vld [vmem:[#allocation6 + $0x294] ss:$8 sps:$4 sm:$0xff]  }
 0x210   : > { %v2793_v60 = vmax.f32 %v2229_v12, 0.0  ;;  %v12425_v12 = vld [vmem:[#allocation6 + $0x280] ss:$8 sps:$4 sm:$0xff]  }
 0x211   : > { %2493 = vmatmul.mubr.bf16.gmra.mrb[156].mxu0 %v12422_v1  ;;  %v2794_v52 = vmax.f32 %v2231_v33, 0.0 }
 0x212   : > { %2502 = vmatprep.mubr.bf16.mxu0 %v12423_v27  ;;  %v3535_v48 = vpack.c.bf16 %v2793_v60, %v2791_v31  ;;  %v13836_v27 = vpop.permute.xlu0 %1202  ;;  %v3706_v60 = vld [vmem:[%s15462_s4 + $0x218] sm:$0xff] }
 0x213   : > { %4084 = vperm.xlu1 %12254, %v3702_v43   ;;  %4079 = vperm.xlu0 %12253, %v3701_v62   ;;  %v2234_v61 = vpop.f32.mrb[52].mxu0  ;;  %v3536_v1 = vpack.c.bf16 %v2794_v52, %v2792_v11  ;;  %15651 = vst [vmem:[#allocation73_spill] sm:$0xff] %v13836_v27  ;;  %v3705_v52 = vld [vmem:[%s15462_s4 + $0x210] sm:$0xff] }
 0x214   : > { %v2236_v17 = vpop.f32.mrb[53].mxu0  ;;  %v2235_v47 = vadd.f32 %v2234_v61, %v13644_v13 }
 0x215   : > { %v2237_v43 = vadd.f32 %v2236_v17, %v13644_v13  ;;  %v2238_v33 = vpop.f32.mrb[54].mxu0  ;;  %6991 = vmatprep.subr.bf16.mxu0 %v3536_v1 }
 0x216   : > { %v2239_v62 = vadd.f32 %v2238_v33, %v13639_v2  ;;  %v2240_v31 = vpop.f32.mrb[55].mxu0  ;;  %6992 = vmatpush1.bf16.msra.mxu0 %v3535_v48  ;;  %v2795_v13 = vmax.f32 %v2235_v47, 0.0  ;;  %v13850_v48 = vpop.permute.xlu0 %1212  ;;  %v3707_v47 = vld [vmem:[%s15462_s4 + $0x220] sm:$0xff] }
 0x217   : > { %4094 = vperm.xlu1 %12254, %v3704_v36   ;;  %4089 = vperm.xlu0 %12253, %v3703_v21   ;;  %v2241_v11 = vadd.f32 %v2240_v31, %v13639_v2  ;;  %v13848_v36 = vpop.permute.xlu1 %1217  ;;  %v2796_v17 = vmax.f32 %v2237_v43, 0.0  ;;  %15653 = vst [vmem:[#allocation75_spill] sm:$0xff] %v13850_v48  ;;  %v3708_v2 = vld [vmem:[%s15462_s4 + $0x228] sm:$0xff] }
 0x218   : > { %v2797_v61 = vmax.f32 %v2239_v62, 0.0  ;;  %15652 = vst [vmem:[#allocation74_spill] sm:$0xff] %v13848_v36  ;;  %v12429_v43 = vld [vmem:[#allocation6 + $0x2a4] ss:$8 sps:$4 sm:$0xff]  }
 0x219   : > { %2503 = vmatmul.mubr.bf16.gmra.mrb[160].mxu0 %v12425_v12  ;;  %v2798_v1 = vmax.f32 %v2241_v11, 0.0 }
 0x21a   : > { %2512 = vmatprep.mubr.bf16.mxu0 %v12426_v51  ;;  %v3537_v12 = vpack.c.bf16 %v2797_v61, %v2795_v13  ;;  %v12428_v51 = vld [vmem:[#allocation6 + $0x290] ss:$8 sps:$4 sm:$0xff]  }
 0x21b   : > { %4104 = vperm.xlu1 %12254, %v3706_v60   ;;  %4099 = vperm.xlu0 %12253, %v3705_v52   ;;  %v2244_v21 = vpop.f32.mrb[56].mxu0  ;;  %v3538_v31 = vpack.c.bf16 %v2798_v1, %v2796_v17  ;;  %v3710_v13 = vld [vmem:[%s15462_s4 + $0x238] sm:$0xff]  ;;  %v13864_v61 = vpop.permute.xlu1 %1227 }
 0x21c   : > { %v2246_v33 = vpop.f32.mrb[57].mxu0  ;;  %v2245_v62 = vadd.f32 %v2244_v21, %v13658_v42  ;;  %15654 = vst [vmem:[#allocation76_spill] sm:$0xff] %v13864_v61  ;;  %v13870_v1 = vpop.permute.xlu0 %1222  ;;  %v12431_v61 = vld [vmem:[#allocation6 + $0x2a0] ss:$8 sps:$4 sm:$0xff]  }
 0x21d   : > { %v2247_v60 = vadd.f32 %v2246_v33, %v13658_v42  ;;  %v2248_v11 = vpop.f32.mrb[58].mxu0  ;;  %6993 = vmatprep.subr.bf16.mxu0 %v3538_v31  ;;  %v3709_v42 = vld [vmem:[%s15462_s4 + $0x230] sm:$0xff]  ;;  %15655 = vst [vmem:[#allocation77_spill] sm:$0xff] %v13870_v1 }
 0x21e   : > { %v2249_v52 = vadd.f32 %v2248_v11, %v13656_v26  ;;  %v2250_v36 = vpop.f32.mrb[59].mxu0  ;;  %6994 = vmatpush1.bf16.msra.mxu0 %v3537_v12  ;;  %v2799_v21 = vmax.f32 %v2245_v62, 0.0  ;;  %v3711_v11 = vld [vmem:[%s15462_s4 + $0x240] sm:$0xff] }
 0x21f   : > { %4114 = vperm.xlu1 %12254, %v3708_v2   ;;  %4109 = vperm.xlu0 %12253, %v3707_v47   ;;  %v2251_v17 = vadd.f32 %v2250_v36, %v13656_v26  ;;  %v2800_v12 = vmax.f32 %v2247_v60, 0.0  ;;  %v3712_v47 = vld [vmem:[%s15462_s4 + $0x248] sm:$0xff] }
 0x220   : > { %v2801_v2 = vmax.f32 %v2249_v52, 0.0  ;;  %v13879_v52 = vpop.permute.xlu1 %1237 }
 0x221   : > { %2513 = vmatmul.mubr.bf16.gmra.mrb[164].mxu0 %v12428_v51  ;;  %v2802_v33 = vmax.f32 %v2251_v17, 0.0  ;;  %15656 = vst [vmem:[#allocation78_spill] sm:$0xff] %v13879_v52  ;;  %v13882_v17 = vpop.permute.xlu0 %1232 }
 0x222   : > { %2522 = vmatprep.mubr.bf16.mxu0 %v12429_v43  ;;  %v3539_v26 = vpack.c.bf16 %v2801_v2, %v2799_v21  ;;  %v12432_v43 = vld [vmem:[#allocation6 + $0x2b4] ss:$8 sps:$4 sm:$0xff]   ;;  %15657 = vst [vmem:[#allocation79_spill] sm:$0xff] %v13882_v17 }
 0x223   : > { %4124 = vperm.xlu1 %12254, %v3710_v13   ;;  %4119 = vperm.xlu0 %12253, %v3709_v42   ;;  %v2254_v31 = vpop.f32.mrb[60].mxu0  ;;  %v3540_v51 = vpack.c.bf16 %v2802_v33, %v2800_v12  ;;  %v3714_v2 = vld [vmem:[%s15462_s4 + $0x258] sm:$0xff] }
 0x224   : > { %v2256_v36 = vpop.f32.mrb[61].mxu0  ;;  %v2255_v62 = vadd.f32 %v2254_v31, %v13678_v18 }
 0x225   : > { %v2257_v60 = vadd.f32 %v2256_v36, %v13678_v18  ;;  %v2258_v13 = vpop.f32.mrb[62].mxu0  ;;  %6995 = vmatprep.subr.bf16.mxu0 %v3540_v51  ;;  %v3713_v18 = vld [vmem:[%s15462_s4 + $0x250] sm:$0xff] }
 0x226   : > { %v2259_v42 = vadd.f32 %v2258_v13, %v13672_v8  ;;  %v2260_v21 = vpop.f32.mrb[63].mxu0  ;;  %6996 = vmatpush1.bf16.msra.mxu0 %v3539_v26  ;;  %v2803_v33 = vmax.f32 %v2255_v62, 0.0  ;;  %v3716_v26 = vld [vmem:[%s15462_s4 + $0x268] sm:$0xff]  ;;  %v13895_v13 = vpop.permute.xlu1 %1247  ;;  %v3715_v62 = vld [vmem:[%s15462_s4 + $0x260] sm:$0xff] }
 0x227   : > { %4134 = vperm.xlu1 %12254, %v3712_v47   ;;  %4129 = vperm.xlu0 %12253, %v3711_v11   ;;  %v2261_v12 = vadd.f32 %v2260_v21, %v13672_v8  ;;  %v2804_v47 = vmax.f32 %v2257_v60, 0.0  ;;  %15658 = vst [vmem:[#allocation80_spill] sm:$0xff] %v13895_v13  ;;  %v12435_v21 = vld [vmem:[#allocation6 + $0x2c4] ss:$8 sps:$4 sm:$0xff]  }
 0x228   : > { %v2805_v31 = vmax.f32 %v2259_v42, 0.0  ;;  %v12434_v42 = vld [vmem:[#allocation6 + $0x2b0] ss:$8 sps:$4 sm:$0xff]  }
 0x229   : > { %2523 = vmatmul.mubr.bf16.gmra.mrb[168].mxu0 %v12431_v61  ;;  %v2806_v36 = vmax.f32 %v2261_v12, 0.0 }
 0x22a   : > { %2532 = vmatprep.mubr.bf16.mxu0 %v12432_v43  ;;  %v3541_v11 = vpack.c.bf16 %v2805_v31, %v2803_v33  ;;  %v13900_v43 = vpop.permute.xlu0 %1242  ;;  %v3718_v33 = vld [vmem:[%s15462_s4 + $0x278] sm:$0xff] }
 0x22b   : > { %4144 = vperm.xlu1 %12254, %v3714_v2   ;;  %4139 = vperm.xlu0 %12253, %v3713_v18   ;;  %v2264_v51 = vpop.f32.mrb[64].mxu0  ;;  %v3542_v61 = vpack.c.bf16 %v2806_v36, %v2804_v47  ;;  %15659 = vst [vmem:[#allocation81_spill] sm:$0xff] %v13900_v43  ;;  %v13908_v47 = vld [vmem:[#allocation8 + $0x4c8] sm:$0xff] }
 0x22c   : > { %v2266_v8 = vpop.f32.mrb[65].mxu0  ;;  %v2265_v60 = vadd.f32 %v2264_v51, %v13180_v54  ;;  %v13910_v36 = vld [vmem:[#allocation8 + $0x4e8] sm:$0xff] }
 0x22d   : > { %v2267_v2 = vadd.f32 %v2266_v8, %v13180_v54  ;;  %v2268_v12 = vpop.f32.mrb[66].mxu0  ;;  %6997 = vmatprep.subr.bf16.mxu0 %v3542_v61  ;;  %v3717_v54 = vld [vmem:[%s15462_s4 + $0x270] sm:$0xff] }
 0x22e   : > { %v2270_v18 = vpop.f32.mrb[67].mxu0  ;;  %6998 = vmatpush1.bf16.msra.mxu0 %v3541_v11  ;;  %v2269_v31 = vadd.f32 %v2268_v12, %v13190_v59  ;;  %v2807_v11 = vmax.f32 %v2265_v60, 0.0 }
 0x22f   : > { %4154 = vperm.xlu1 %12254, %v3716_v26   ;;  %4149 = vperm.xlu0 %12253, %v3715_v62   ;;  %v2271_v51 = vadd.f32 %v2270_v18, %v13190_v59  ;;  %v10735_v26 = vcombine.high %v13908_v47, %v13910_v36  ;;  %v13920_v62 = vpop.permute.xlu1 %1257  ;;  %v2808_v12 = vmax.f32 %v2267_v2, 0.0  ;;  %v13922_v59 = vpop.permute.xlu0 %1252  ;;  %v3719_v2 = vld [vmem:[%s15462_s4 + $0x280] sm:$0xff] }
 0x230   : > { %v2809_v8 = vmax.f32 %v2269_v31, 0.0  ;;  %15660 = vst [vmem:[#allocation82_spill] sm:$0xff] %v13920_v62  ;;  %15661 = vst [vmem:[#allocation83_spill] sm:$0xff] %v13922_v59 }
 0x231   : > { %2533 = vmatmul.mubr.bf16.gmra.mrb[172].mxu0 %v12434_v42  ;;  %v2810_v13 = vmax.f32 %v2271_v51, 0.0  ;;  %7862 = vmatprep.mubr.bf16.mxu1 %v10735_v26 }
 0x232   : > { %2542 = vmatprep.mubr.bf16.mxu0 %v12435_v21  ;;  %v13924_v18 = vpack.c.bf16 %v2809_v8, %v2807_v11  ;;  %v3720_v21 = vld [vmem:[%s15462_s4 + $0x288] sm:$0xff] }
 0x233   : > { %4164 = vperm.xlu1 %12254, %v3718_v33   ;;  %4159 = vperm.xlu0 %12253, %v3717_v54   ;;  %v2274_v42 = vpop.f32.mrb[68].mxu0  ;;  %v3544_v31 = vpack.c.bf16 %v2810_v13, %v2808_v12  ;;  %v12437_v33 = vld [vmem:[#allocation6 + $0x2c0] ss:$8 sps:$4 sm:$0xff]   ;;  %v12438_v54 = vld [vmem:[#allocation6 + $0x2d4] ss:$8 sps:$4 sm:$0xff]   ;;  %v13936_v12 = vpop.permute.xlu1 %1267 }
 0x234   : > { %v2275_v43 = vadd.f32 %v2274_v42, %v13178_v53  ;;  %v2276_v60 = vpop.f32.mrb[69].mxu0  ;;  %15662 = vst [vmem:[#allocation84_spill] sm:$0xff] %v13936_v12  ;;  %v3721_v42 = vld [vmem:[%s15462_s4 + $0x290] sm:$0xff] }
 0x235   : > { %v2277_v51 = vadd.f32 %v2276_v60, %v13178_v53  ;;  %v2278_v26 = vpop.f32.mrb[70].mxu0  ;;  %7640 = vmatprep.subr.bf16.mxu0 %v3544_v31  ;;  %11099 = vmatprep.subr.bf16.mxu1 %v3544_v31  ;;  %v3722_v53 = vld [vmem:[%s15462_s4 + $0x298] sm:$0xff] }
 0x236   : > { %v2279_v11 = vadd.f32 %v2278_v26, %v13188_v58  ;;  %v2280_v8 = vpop.f32.mrb[71].mxu0  ;;  %11115 = vmatpush1.bf16.msra.mxu1 %v13924_v18  ;;  %v2811_v60 = vmax.f32 %v2275_v43, 0.0  ;;  %v13945_v26 = vpop.permute.xlu0 %1262  ;;  %v3724_v43 = vld [vmem:[%s15462_s4 + $0x2a8] sm:$0xff] }
 0x237   : > { %4174 = vperm.xlu1 %12254, %v3720_v21   ;;  %4169 = vperm.xlu0 %12253, %v3719_v2   ;;  %v2281_v13 = vadd.f32 %v2280_v8, %v13188_v58  ;;  %15663 = vst [vmem:[#allocation85_spill] sm:$0xff] %v13945_v26  ;;  %v2812_v21 = vmax.f32 %v2277_v51, 0.0  ;;  %v3723_v51 = vld [vmem:[%s15462_s4 + $0x2a0] sm:$0xff] }
 0x238   : > { %v2813_v31 = vmax.f32 %v2279_v11, 0.0  ;;  %v12440_v11 = vld [vmem:[#allocation6 + $0x2d0] ss:$8 sps:$4 sm:$0xff]  }
 0x239   : > { %2543 = vmatmul.mubr.bf16.gmra.mrb[176].mxu0 %v12437_v33  ;;  %v2814_v2 = vmax.f32 %v2281_v13, 0.0 }
 0x23a   : > { %2552 = vmatprep.mubr.bf16.mxu0 %v12438_v54  ;;  %v13947_v58 = vpack.c.bf16 %v2813_v31, %v2811_v60 }
 0x23b   : > { %4184 = vperm.xlu1 %12254, %v3722_v53   ;;  %4179 = vperm.xlu0 %12253, %v3721_v42   ;;  %v2284_v33 = vpop.f32.mrb[72].mxu0  ;;  %v13949_v8 = vpack.c.bf16 %v2814_v2, %v2812_v21  ;;  %v12441_v53 = vld [vmem:[#allocation6 + $0x2e4] ss:$8 sps:$4 sm:$0xff]   ;;  %v13960_v42 = vpop.permute.xlu1 %3774 }
 0x23c   : > { %v2285_v61 = vadd.f32 %v2284_v33, %v13200_v0  ;;  %v2286_v12 = vpop.f32.mrb[73].mxu0  ;;  %15664 = vst [vmem:[#allocation86_spill] sm:$0xff] %v13960_v42  ;;  %v13964_v21 = vpop.permute.xlu0 %3769 }
 0x23d   : > { %v2287_v54 = vadd.f32 %v2286_v12, %v13200_v0  ;;  %v2288_v13 = vpop.f32.mrb[74].mxu0  ;;  %11100 = vmatprep.subr.bf16.mxu1 %v13949_v8  ;;  %15665 = vst [vmem:[#allocation87_spill] sm:$0xff] %v13964_v21  ;;  %v3726_v0 = vld [vmem:[%s15462_s4 + $0x2b8] sm:$0xff]  ;;  %v3725_v12 = vld [vmem:[%s15462_s4 + $0x2b0] sm:$0xff] }
 0x23e   : > { %v2289_v60 = vadd.f32 %v2288_v13, %v13198_v63  ;;  %v2290_v31 = vpop.f32.mrb[75].mxu0  ;;  %11116 = vmatpush1.bf16.msra.mxu1 %v13947_v58  ;;  %v2815_v33 = vmax.f32 %v2285_v61, 0.0  ;;  %v3728_v61 = vld [vmem:[%s15462_s4 + $0x2c8] sm:$0xff] }
 0x23f   : > { %4194 = vperm.xlu1 %12254, %v3724_v43   ;;  %4189 = vperm.xlu0 %12253, %v3723_v51   ;;  %v2291_v2 = vadd.f32 %v2290_v31, %v13198_v63  ;;  %v2816_v42 = vmax.f32 %v2287_v54, 0.0  ;;  %v13977_v51 = vpop.permute.xlu1 %3784  ;;  %v3727_v54 = vld [vmem:[%s15462_s4 + $0x2c0] sm:$0xff] }
 0x240   : > { %v2817_v13 = vmax.f32 %v2289_v60, 0.0  ;;  %15666 = vst [vmem:[#allocation88_spill] sm:$0xff] %v13977_v51  ;;  %v13986_v60 = vpop.permute.xlu0 %3779 }
 0x241   : > { %2553 = vmatmul.mubr.bf16.gmra.mrb[180].mxu0 %v12440_v11  ;;  %v2818_v26 = vmax.f32 %v2291_v2, 0.0  ;;  %15667 = vst [vmem:[#allocation89_spill] sm:$0xff] %v13986_v60 }
 0x242   : > { %2562 = vmatprep.mubr.bf16.mxu0 %v12441_v53  ;;  %v13973_v62 = vpack.c.bf16 %v2817_v13, %v2815_v33  ;;  %v12443_v53 = vld [vmem:[#allocation6 + $0x2e0] ss:$8 sps:$4 sm:$0xff]  }
 0x243   : > { %4204 = vperm.xlu1 %12254, %v3726_v0   ;;  %4199 = vperm.xlu0 %12253, %v3725_v12   ;;  %v2294_v43 = vpop.f32.mrb[76].mxu0  ;;  %v13975_v63 = vpack.c.bf16 %v2818_v26, %v2816_v42  ;;  %v12444_v42 = vld [vmem:[#allocation6 + $0x2f4] ss:$8 sps:$4 sm:$0xff]   ;;  %v13999_v60 = vpop.permute.xlu1 %3794 }
 0x244   : > { %v2295_v11 = vadd.f32 %v2294_v43, %v13210_v5  ;;  %v2296_v31 = vpop.f32.mrb[77].mxu0  ;;  %15668 = vst [vmem:[#allocation90_spill] sm:$0xff] %v13999_v60 }
 0x245   : > { %v2297_v2 = vadd.f32 %v2296_v31, %v13210_v5  ;;  %v2298_v26 = vpop.f32.mrb[78].mxu0  ;;  %11101 = vmatprep.subr.bf16.mxu1 %v13975_v63  ;;  %v3730_v5 = vld [vmem:[%s15462_s4 + $0x2d8] sm:$0xff]  ;;  %v3729_v31 = vld [vmem:[%s15462_s4 + $0x2d0] sm:$0xff] }
 0x246   : > { %v2299_v0 = vadd.f32 %v2298_v26, %v13208_v4  ;;  %v2300_v12 = vpop.f32.mrb[79].mxu0  ;;  %11117 = vmatpush1.bf16.msra.mxu1 %v13973_v62  ;;  %v2819_v13 = vmax.f32 %v2295_v11, 0.0 }
 0x247   : > { %4214 = vperm.xlu1 %12254, %v3728_v61   ;;  %4209 = vperm.xlu0 %12253, %v3727_v54   ;;  %v2301_v33 = vadd.f32 %v2300_v12, %v13208_v4  ;;  %v2820_v51 = vmax.f32 %v2297_v2, 0.0  ;;  %v14003_v54 = vpop.permute.xlu0 %3789  ;;  %v3732_v2 = vld [vmem:[%s15462_s4 + $0x2e8] sm:$0xff]  ;;  %v12446_v12 = vld [vmem:[#allocation6 + $0x2f0] ss:$8 sps:$4 sm:$0xff]  }
 0x248   : > { %v2821_v43 = vmax.f32 %v2299_v0, 0.0  ;;  %15669 = vst [vmem:[#allocation91_spill] sm:$0xff] %v14003_v54 }
 0x249   : > { %2563 = vmatmul.mubr.bf16.gmra.mrb[184].mxu0 %v12443_v53  ;;  %v2822_v26 = vmax.f32 %v2301_v33, 0.0 }
 0x24a   : > { %2572 = vmatprep.mubr.bf16.mxu0 %v12444_v42  ;;  %v14001_v61 = vpack.c.bf16 %v2821_v43, %v2819_v13  ;;  %v3731_v42 = vld [vmem:[%s15462_s4 + $0x2e0] sm:$0xff] }
 0x24b   : > { %4224 = vperm.xlu1 %12254, %v3730_v5   ;;  %4219 = vperm.xlu0 %12253, %v3729_v31   ;;  %v2304_v4 = vpop.f32.mrb[80].mxu0  ;;  %v14005_v11 = vpack.c.bf16 %v2822_v26, %v2820_v51  ;;  %v12447_v43 = vld [vmem:[#allocation6 + $0x304] ss:$8 sps:$4 sm:$0xff]   ;;  %v14019_v26 = vpop.permute.xlu1 %3804 }
 0x24c   : > { %v2305_v53 = vadd.f32 %v2304_v4, %v13220_v10  ;;  %v2306_v0 = vpop.f32.mrb[81].mxu0  ;;  %15670 = vst [vmem:[#allocation92_spill] sm:$0xff] %v14019_v26 }
 0x24d   : > { %v2307_v33 = vadd.f32 %v2306_v0, %v13220_v10  ;;  %v2308_v13 = vpop.f32.mrb[82].mxu0  ;;  %11102 = vmatprep.subr.bf16.mxu1 %v14005_v11  ;;  %v3734_v10 = vld [vmem:[%s15462_s4 + $0x2f8] sm:$0xff]  ;;  %v3733_v0 = vld [vmem:[%s15462_s4 + $0x2f0] sm:$0xff] }
 0x24e   : > { %v2309_v51 = vadd.f32 %v2308_v13, %v13218_v9  ;;  %v2310_v5 = vpop.f32.mrb[83].mxu0  ;;  %11118 = vmatpush1.bf16.msra.mxu1 %v14001_v61  ;;  %v2823_v4 = vmax.f32 %v2305_v53, 0.0  ;;  %v14027_v13 = vpop.permute.xlu0 %3799 }
 0x24f   : > { %4234 = vperm.xlu1 %12254, %v3732_v2   ;;  %4229 = vperm.xlu0 %12253, %v3731_v42   ;;  %v2311_v31 = vadd.f32 %v2310_v5, %v13218_v9  ;;  %15671 = vst [vmem:[#allocation93_spill] sm:$0xff] %v14027_v13  ;;  %v2824_v54 = vmax.f32 %v2307_v33, 0.0  ;;  %v3736_v5 = vld [vmem:[%s15462_s4 + $0x308] sm:$0xff]  ;;  %v3735_v33 = vld [vmem:[%s15462_s4 + $0x300] sm:$0xff] }
 0x250   : > { %v2825_v60 = vmax.f32 %v2309_v51, 0.0 }
 0x251   : > { %2573 = vmatmul.mubr.bf16.gmra.mrb[188].mxu0 %v12446_v12  ;;  %v2826_v2 = vmax.f32 %v2311_v31, 0.0  ;;  %v12449_v31 = vld [vmem:[#allocation6 + $0x300] ss:$8 sps:$4 sm:$0xff]  }
 0x252   : > { %2582 = vmatprep.mubr.bf16.mxu0 %v12447_v43  ;;  %v14029_v42 = vpack.c.bf16 %v2825_v60, %v2823_v4  ;;  %v12450_v4 = vld [vmem:[#allocation6 + $0x314] ss:$8 sps:$4 sm:$0xff]  }
 0x253   : > { %4244 = vperm.xlu1 %12254, %v3734_v10   ;;  %4239 = vperm.xlu0 %12253, %v3733_v0   ;;  %v2314_v9 = vpop.f32.mrb[84].mxu0  ;;  %v14031_v53 = vpack.c.bf16 %v2826_v2, %v2824_v54  ;;  %v14042_v54 = vpop.permute.xlu1 %3814 }
 0x254   : > { %v2315_v12 = vadd.f32 %v2314_v9, %v13230_v15  ;;  %v2316_v51 = vpop.f32.mrb[85].mxu0  ;;  %15672 = vst [vmem:[#allocation94_spill] sm:$0xff] %v14042_v54  ;;  %v14046_v2 = vpop.permute.xlu0 %3809 }
 0x255   : > { %v2317_v60 = vadd.f32 %v2316_v51, %v13230_v15  ;;  %v2318_v43 = vpop.f32.mrb[86].mxu0  ;;  %11103 = vmatprep.subr.bf16.mxu1 %v14031_v53  ;;  %15673 = vst [vmem:[#allocation95_spill] sm:$0xff] %v14046_v2  ;;  %v3738_v15 = vld [vmem:[%s15462_s4 + $0x318] sm:$0xff]  ;;  %v3737_v51 = vld [vmem:[%s15462_s4 + $0x310] sm:$0xff] }
 0x256   : > { %v2319_v10 = vadd.f32 %v2318_v43, %v13228_v14  ;;  %v2320_v0 = vpop.f32.mrb[87].mxu0  ;;  %11119 = vmatpush1.bf16.msra.mxu1 %v14029_v42  ;;  %v2827_v26 = vmax.f32 %v2315_v12, 0.0 }
 0x257   : > { %4254 = vperm.xlu1 %12254, %v3736_v5   ;;  %4249 = vperm.xlu0 %12253, %v3735_v33   ;;  %v2321_v9 = vadd.f32 %v2320_v0, %v13228_v14  ;;  %v2828_v43 = vmax.f32 %v2317_v60, 0.0  ;;  %v14059_v12 = vpop.permute.xlu1 %3824  ;;  %v3739_v60 = vld [vmem:[%s15462_s4 + $0x320] sm:$0xff] }
 0x258   : > { %v2829_v13 = vmax.f32 %v2319_v10, 0.0  ;;  %15674 = vst [vmem:[#allocation96_spill] sm:$0xff] %v14059_v12  ;;  %v3740_v10 = vld [vmem:[%s15462_s4 + $0x328] sm:$0xff] }
 0x259   : > { %2583 = vmatmul.mubr.bf16.gmra.mrb[192].mxu0 %v12449_v31  ;;  %v2830_v54 = vmax.f32 %v2321_v9, 0.0  ;;  %v12453_v0 = vld [vmem:[#allocation6 + $0x324] ss:$8 sps:$4 sm:$0xff]  }
 0x25a   : > { %2592 = vmatprep.mubr.bf16.mxu0 %v12450_v4  ;;  %v14055_v21 = vpack.c.bf16 %v2829_v13, %v2827_v26  ;;  %v12452_v26 = vld [vmem:[#allocation6 + $0x310] ss:$8 sps:$4 sm:$0xff]   ;;  %v14068_v13 = vpop.permute.xlu0 %3819 }
 0x25b   : > { %4264 = vperm.xlu1 %12254, %v3738_v15   ;;  %4259 = vperm.xlu0 %12253, %v3737_v51   ;;  %v2324_v5 = vpop.f32.mrb[88].mxu0  ;;  %v14057_v14 = vpack.c.bf16 %v2830_v54, %v2828_v43  ;;  %15675 = vst [vmem:[#allocation97_spill] sm:$0xff] %v14068_v13  ;;  %v14081_v13 = vpop.permute.xlu1 %3834 }
 0x25c   : > { %v2325_v33 = vadd.f32 %v2324_v5, %v13240_v20  ;;  %v2326_v31 = vpop.f32.mrb[89].mxu0  ;;  %15676 = vst [vmem:[#allocation98_spill] sm:$0xff] %v14081_v13 }
 0x25d   : > { %v2327_v4 = vadd.f32 %v2326_v31, %v13240_v20  ;;  %v2328_v54 = vpop.f32.mrb[90].mxu0  ;;  %11104 = vmatprep.subr.bf16.mxu1 %v14057_v14  ;;  %v3742_v20 = vld [vmem:[%s15462_s4 + $0x338] sm:$0xff]  ;;  %v3741_v31 = vld [vmem:[%s15462_s4 + $0x330] sm:$0xff] }
 0x25e   : > { %v2329_v9 = vadd.f32 %v2328_v54, %v13238_v19  ;;  %v2330_v15 = vpop.f32.mrb[91].mxu0  ;;  %11120 = vmatpush1.bf16.msra.mxu1 %v14055_v21  ;;  %v2831_v43 = vmax.f32 %v2325_v33, 0.0 }
 0x25f   : > { %4274 = vperm.xlu1 %12254, %v3740_v10   ;;  %4269 = vperm.xlu0 %12253, %v3739_v60   ;;  %v2331_v51 = vadd.f32 %v2330_v15, %v13238_v19  ;;  %v2832_v12 = vmax.f32 %v2327_v4, 0.0  ;;  %v14085_v60 = vpop.permute.xlu0 %3829  ;;  %v3744_v4 = vld [vmem:[%s15462_s4 + $0x348] sm:$0xff] }
 0x260   : > { %v2833_v5 = vmax.f32 %v2329_v9, 0.0  ;;  %15677 = vst [vmem:[#allocation99_spill] sm:$0xff] %v14085_v60  ;;  %v12455_v15 = vld [vmem:[#allocation6 + $0x320] ss:$8 sps:$4 sm:$0xff]  }
 0x261   : > { %2593 = vmatmul.mubr.bf16.gmra.mrb[196].mxu0 %v12452_v26  ;;  %v2834_v54 = vmax.f32 %v2331_v51, 0.0 }
 0x262   : > { %2602 = vmatprep.mubr.bf16.mxu0 %v12453_v0  ;;  %v14083_v10 = vpack.c.bf16 %v2833_v5, %v2831_v43  ;;  %v3743_v0 = vld [vmem:[%s15462_s4 + $0x340] sm:$0xff]  ;;  %v12456_v5 = vld [vmem:[#allocation6 + $0x334] ss:$8 sps:$4 sm:$0xff]  }
 0x263   : > { %4284 = vperm.xlu1 %12254, %v3742_v20   ;;  %4279 = vperm.xlu0 %12253, %v3741_v31   ;;  %v2334_v19 = vpop.f32.mrb[92].mxu0  ;;  %v14087_v33 = vpack.c.bf16 %v2834_v54, %v2832_v12  ;;  %v14101_v54 = vpop.permute.xlu1 %3844 }
 0x264   : > { %v2335_v26 = vadd.f32 %v2334_v19, %v13250_v25  ;;  %v2336_v9 = vpop.f32.mrb[93].mxu0  ;;  %15678 = vst [vmem:[#allocation100_spill] sm:$0xff] %v14101_v54 }
 0x265   : > { %v2337_v51 = vadd.f32 %v2336_v9, %v13250_v25  ;;  %v2338_v43 = vpop.f32.mrb[94].mxu0  ;;  %11105 = vmatprep.subr.bf16.mxu1 %v14087_v33  ;;  %v3746_v25 = vld [vmem:[%s15462_s4 + $0x358] sm:$0xff]  ;;  %v3745_v9 = vld [vmem:[%s15462_s4 + $0x350] sm:$0xff] }
 0x266   : > { %v2339_v12 = vadd.f32 %v2338_v43, %v13248_v24  ;;  %v2340_v20 = vpop.f32.mrb[95].mxu0  ;;  %11121 = vmatpush1.bf16.msra.mxu1 %v14083_v10  ;;  %v2835_v19 = vmax.f32 %v2335_v26, 0.0  ;;  %v14109_v43 = vpop.permute.xlu0 %3839 }
 0x267   : > { %4294 = vperm.xlu1 %12254, %v3744_v4   ;;  %4289 = vperm.xlu0 %12253, %v3743_v0   ;;  %v2341_v31 = vadd.f32 %v2340_v20, %v13248_v24  ;;  %15679 = vst [vmem:[#allocation101_spill] sm:$0xff] %v14109_v43  ;;  %v2836_v60 = vmax.f32 %v2337_v51, 0.0  ;;  %v3748_v20 = vld [vmem:[%s15462_s4 + $0x368] sm:$0xff]  ;;  %v3747_v51 = vld [vmem:[%s15462_s4 + $0x360] sm:$0xff] }
 0x268   : > { %v2837_v13 = vmax.f32 %v2339_v12, 0.0 }
 0x269   : > { %2603 = vmatmul.mubr.bf16.gmra.mrb[200].mxu0 %v12455_v15  ;;  %v2838_v4 = vmax.f32 %v2341_v31, 0.0  ;;  %v12458_v31 = vld [vmem:[#allocation6 + $0x330] ss:$8 sps:$4 sm:$0xff]  }
 0x26a   : > { %2612 = vmatprep.mubr.bf16.mxu0 %v12456_v5  ;;  %v14111_v0 = vpack.c.bf16 %v2837_v13, %v2835_v19  ;;  %v12459_v19 = vld [vmem:[#allocation6 + $0x344] ss:$8 sps:$4 sm:$0xff]  }
 0x26b   : > { %4304 = vperm.xlu1 %12254, %v3746_v25   ;;  %4299 = vperm.xlu0 %12253, %v3745_v9   ;;  %v2344_v24 = vpop.f32.mrb[96].mxu0  ;;  %v14113_v26 = vpack.c.bf16 %v2838_v4, %v2836_v60  ;;  %v14124_v60 = vpop.permute.xlu1 %3854 }
 0x26c   : > { %v2345_v15 = vadd.f32 %v2344_v24, %v13260_v30  ;;  %v2346_v12 = vpop.f32.mrb[97].mxu0  ;;  %15680 = vst [vmem:[#allocation102_spill] sm:$0xff] %v14124_v60  ;;  %v14128_v4 = vpop.permute.xlu0 %3849 }
 0x26d   : > { %v2347_v13 = vadd.f32 %v2346_v12, %v13260_v30  ;;  %v2348_v5 = vpop.f32.mrb[98].mxu0  ;;  %11106 = vmatprep.subr.bf16.mxu1 %v14113_v26  ;;  %15681 = vst [vmem:[#allocation103_spill] sm:$0xff] %v14128_v4  ;;  %v3750_v30 = vld [vmem:[%s15462_s4 + $0x378] sm:$0xff]  ;;  %v3749_v12 = vld [vmem:[%s15462_s4 + $0x370] sm:$0xff] }
 0x26e   : > { %v2349_v25 = vadd.f32 %v2348_v5, %v13258_v29  ;;  %v2350_v9 = vpop.f32.mrb[99].mxu0  ;;  %11122 = vmatpush1.bf16.msra.mxu1 %v14111_v0  ;;  %v2839_v54 = vmax.f32 %v2345_v15, 0.0 }
 0x26f   : > { %4314 = vperm.xlu1 %12254, %v3748_v20   ;;  %4309 = vperm.xlu0 %12253, %v3747_v51   ;;  %v2351_v24 = vadd.f32 %v2350_v9, %v13258_v29  ;;  %v2840_v5 = vmax.f32 %v2347_v13, 0.0  ;;  %v14141_v15 = vpop.permute.xlu1 %3864  ;;  %v3751_v13 = vld [vmem:[%s15462_s4 + $0x380] sm:$0xff]  ;;  %v12462_v9 = vld [vmem:[#allocation6 + $0x354] ss:$8 sps:$4 sm:$0xff]  }
 0x270   : > { %v2841_v43 = vmax.f32 %v2349_v25, 0.0  ;;  %15682 = vst [vmem:[#allocation104_spill] sm:$0xff] %v14141_v15  ;;  %v3752_v25 = vld [vmem:[%s15462_s4 + $0x388] sm:$0xff] }
 0x271   : > { %2613 = vmatmul.mubr.bf16.gmra.mrb[204].mxu0 %v12458_v31  ;;  %v2842_v60 = vmax.f32 %v2351_v24, 0.0 }
 0x272   : > { %2622 = vmatprep.mubr.bf16.mxu0 %v12459_v19  ;;  %v14137_v2 = vpack.c.bf16 %v2841_v43, %v2839_v54  ;;  %v12461_v54 = vld [vmem:[#allocation6 + $0x340] ss:$8 sps:$4 sm:$0xff]   ;;  %v14150_v43 = vpop.permute.xlu0 %3859 }
 0x273   : > { %4324 = vperm.xlu1 %12254, %v3750_v30   ;;  %4319 = vperm.xlu0 %12253, %v3749_v12   ;;  %v2354_v20 = vpop.f32.mrb[100].mxu0  ;;  %v14139_v29 = vpack.c.bf16 %v2842_v60, %v2840_v5  ;;  %15683 = vst [vmem:[#allocation105_spill] sm:$0xff] %v14150_v43  ;;  %v14163_v43 = vpop.permute.xlu1 %3874 }
 0x274   : > { %v2355_v51 = vadd.f32 %v2354_v20, %v13270_v35  ;;  %v2356_v31 = vpop.f32.mrb[101].mxu0  ;;  %15684 = vst [vmem:[#allocation106_spill] sm:$0xff] %v14163_v43 }
 0x275   : > { %v2357_v19 = vadd.f32 %v2356_v31, %v13270_v35  ;;  %v2358_v60 = vpop.f32.mrb[102].mxu0  ;;  %11107 = vmatprep.subr.bf16.mxu1 %v14139_v29  ;;  %v3754_v35 = vld [vmem:[%s15462_s4 + $0x398] sm:$0xff]  ;;  %v3753_v31 = vld [vmem:[%s15462_s4 + $0x390] sm:$0xff] }
 0x276   : > { %v2359_v24 = vadd.f32 %v2358_v60, %v13268_v34  ;;  %v2360_v30 = vpop.f32.mrb[103].mxu0  ;;  %11123 = vmatpush1.bf16.msra.mxu1 %v14137_v2  ;;  %v2843_v5 = vmax.f32 %v2355_v51, 0.0 }
 0x277   : > { %4334 = vperm.xlu1 %12254, %v3752_v25   ;;  %4329 = vperm.xlu0 %12253, %v3751_v13   ;;  %v2361_v12 = vadd.f32 %v2360_v30, %v13268_v34  ;;  %v2844_v15 = vmax.f32 %v2357_v19, 0.0  ;;  %v14167_v13 = vpop.permute.xlu0 %3869  ;;  %v3756_v19 = vld [vmem:[%s15462_s4 + $0x3a8] sm:$0xff]  ;;  %v12464_v30 = vld [vmem:[#allocation6 + $0x350] ss:$8 sps:$4 sm:$0xff]  }
 0x278   : > { %v2845_v20 = vmax.f32 %v2359_v24, 0.0  ;;  %15685 = vst [vmem:[#allocation107_spill] sm:$0xff] %v14167_v13 }
 0x279   : > { %2623 = vmatmul.mubr.bf16.gmra.mrb[208].mxu0 %v12461_v54  ;;  %v2846_v60 = vmax.f32 %v2361_v12, 0.0 }
 0x27a   : > { %2632 = vmatprep.mubr.bf16.mxu0 %v12462_v9  ;;  %v14165_v25 = vpack.c.bf16 %v2845_v20, %v2843_v5  ;;  %v3755_v9 = vld [vmem:[%s15462_s4 + $0x3a0] sm:$0xff] }
 0x27b   : > { %4344 = vperm.xlu1 %12254, %v3754_v35   ;;  %4339 = vperm.xlu0 %12253, %v3753_v31   ;;  %v2364_v34 = vpop.f32.mrb[104].mxu0  ;;  %v14169_v51 = vpack.c.bf16 %v2846_v60, %v2844_v15  ;;  %v12465_v20 = vld [vmem:[#allocation6 + $0x364] ss:$8 sps:$4 sm:$0xff]   ;;  %v14183_v60 = vpop.permute.xlu1 %3884 }
 0x27c   : > { %v2365_v54 = vadd.f32 %v2364_v34, %v13280_v40  ;;  %v2366_v24 = vpop.f32.mrb[105].mxu0  ;;  %15686 = vst [vmem:[#allocation108_spill] sm:$0xff] %v14183_v60 }
 0x27d   : > { %v2367_v12 = vadd.f32 %v2366_v24, %v13280_v40  ;;  %v2368_v5 = vpop.f32.mrb[106].mxu0  ;;  %11108 = vmatprep.subr.bf16.mxu1 %v14169_v51  ;;  %v3758_v40 = vld [vmem:[%s15462_s4 + $0x3b8] sm:$0xff]  ;;  %v3757_v24 = vld [vmem:[%s15462_s4 + $0x3b0] sm:$0xff] }
 0x27e   : > { %v2369_v15 = vadd.f32 %v2368_v5, %v13278_v39  ;;  %v2370_v35 = vpop.f32.mrb[107].mxu0  ;;  %11124 = vmatpush1.bf16.msra.mxu1 %v14165_v25  ;;  %v2847_v34 = vmax.f32 %v2365_v54, 0.0  ;;  %v14191_v5 = vpop.permute.xlu0 %3879 }
 0x27f   : > { %4354 = vperm.xlu1 %12254, %v3756_v19   ;;  %4349 = vperm.xlu0 %12253, %v3755_v9   ;;  %v2371_v31 = vadd.f32 %v2370_v35, %v13278_v39  ;;  %15687 = vst [vmem:[#allocation109_spill] sm:$0xff] %v14191_v5  ;;  %v2848_v13 = vmax.f32 %v2367_v12, 0.0  ;;  %v3760_v35 = vld [vmem:[%s15462_s4 + $0x3c8] sm:$0xff]  ;;  %v3759_v12 = vld [vmem:[%s15462_s4 + $0x3c0] sm:$0xff] }
 0x280   : > { %v2849_v43 = vmax.f32 %v2369_v15, 0.0 }
 0x281   : > { %2633 = vmatmul.mubr.bf16.gmra.mrb[212].mxu0 %v12464_v30  ;;  %v2850_v19 = vmax.f32 %v2371_v31, 0.0  ;;  %v12467_v31 = vld [vmem:[#allocation6 + $0x360] ss:$8 sps:$4 sm:$0xff]  }
 0x282   : > { %2642 = vmatprep.mubr.bf16.mxu0 %v12465_v20  ;;  %v14193_v9 = vpack.c.bf16 %v2849_v43, %v2847_v34  ;;  %v12468_v34 = vld [vmem:[#allocation6 + $0x374] ss:$8 sps:$4 sm:$0xff]  }
 0x283   : > { %4364 = vperm.xlu1 %12254, %v3758_v40   ;;  %4359 = vperm.xlu0 %12253, %v3757_v24   ;;  %v2374_v39 = vpop.f32.mrb[108].mxu0  ;;  %v14195_v54 = vpack.c.bf16 %v2850_v19, %v2848_v13  ;;  %v14206_v13 = vpop.permute.xlu1 %3894 }
 0x284   : > { %v2375_v30 = vadd.f32 %v2374_v39, %v13290_v45  ;;  %v2376_v15 = vpop.f32.mrb[109].mxu0  ;;  %15688 = vst [vmem:[#allocation110_spill] sm:$0xff] %v14206_v13  ;;  %v14210_v19 = vpop.permute.xlu0 %3889 }
 0x285   : > { %v2377_v43 = vadd.f32 %v2376_v15, %v13290_v45  ;;  %v2378_v20 = vpop.f32.mrb[110].mxu0  ;;  %11109 = vmatprep.subr.bf16.mxu1 %v14195_v54  ;;  %15689 = vst [vmem:[#allocation111_spill] sm:$0xff] %v14210_v19  ;;  %v3762_v45 = vld [vmem:[%s15462_s4 + $0x3d8] sm:$0xff]  ;;  %v3761_v15 = vld [vmem:[%s15462_s4 + $0x3d0] sm:$0xff]  ;;  %v12473_v19 = vld [vmem:[#allocation6 + $0x380] ss:$8 sps:$4 sm:$0xff]  }
 0x286   : > { %v2379_v40 = vadd.f32 %v2378_v20, %v13288_v44  ;;  %v2380_v24 = vpop.f32.mrb[111].mxu0  ;;  %11125 = vmatpush1.bf16.msra.mxu1 %v14193_v9  ;;  %v2851_v60 = vmax.f32 %v2375_v30, 0.0 }
 0x287   : > { %4374 = vperm.xlu1 %12254, %v3760_v35   ;;  %4369 = vperm.xlu0 %12253, %v3759_v12   ;;  %v2381_v39 = vadd.f32 %v2380_v24, %v13288_v44  ;;  %v2852_v20 = vmax.f32 %v2377_v43, 0.0  ;;  %v14223_v30 = vpop.permute.xlu1 %3904  ;;  %v3763_v43 = vld [vmem:[%s15462_s4 + $0x3e0] sm:$0xff] }
 0x288   : > { %v2853_v5 = vmax.f32 %v2379_v40, 0.0  ;;  %15690 = vst [vmem:[#allocation112_spill] sm:$0xff] %v14223_v30  ;;  %v3764_v40 = vld [vmem:[%s15462_s4 + $0x3e8] sm:$0xff] }
 0x289   : > { %2643 = vmatmul.mubr.bf16.gmra.mrb[216].mxu0 %v12467_v31  ;;  %v2854_v13 = vmax.f32 %v2381_v39, 0.0  ;;  %v12471_v24 = vld [vmem:[#allocation6 + $0x384] ss:$8 sps:$4 sm:$0xff]  }
 0x28a   : > { %2652 = vmatprep.mubr.bf16.mxu0 %v12468_v34  ;;  %v14219_v4 = vpack.c.bf16 %v2853_v5, %v2851_v60  ;;  %v12470_v60 = vld [vmem:[#allocation6 + $0x370] ss:$8 sps:$4 sm:$0xff]   ;;  %v14232_v5 = vpop.permute.xlu0 %3899 }
 0x28b   : > { %4384 = vperm.xlu1 %12254, %v3762_v45   ;;  %4379 = vperm.xlu0 %12253, %v3761_v15   ;;  %v14221_v44 = vpack.c.bf16 %v2854_v13, %v2852_v20  ;;  %15691 = vst [vmem:[#allocation113_spill] sm:$0xff] %v14232_v5  ;;  %v14245_v5 = vpop.permute.xlu1 %3914 }
 0x28c   : > { %v2384_v35 = vpop.f32.mrb[112].mxu0  ;;  %15692 = vst [vmem:[#allocation114_spill] sm:$0xff] %v14245_v5 }
 0x28d   : > { %v2385_v12 = vadd.f32 %v2384_v35, %v13300_v50  ;;  %v2386_v31 = vpop.f32.mrb[113].mxu0  ;;  %11110 = vmatprep.subr.bf16.mxu1 %v14221_v44 }
 0x28e   : > { %v2387_v34 = vadd.f32 %v2386_v31, %v13300_v50  ;;  %v2388_v13 = vpop.f32.mrb[114].mxu0  ;;  %11126 = vmatpush1.bf16.msra.mxu1 %v14219_v4  ;;  %v3766_v50 = vld [vmem:[%s15462_s4 + $0x3f8] sm:$0xff]  ;;  %v3765_v31 = vld [vmem:[%s15462_s4 + $0x3f0] sm:$0xff] }
 0x28f   : > { %v2389_v39 = vadd.f32 %v2388_v13, %v13298_v49  ;;  %v2390_v45 = vpop.f32.mrb[115].mxu0  ;;  %4394 = vperm.xlu1 %12254, %v3764_v40   ;;  %4389 = vperm.xlu0 %12253, %v3763_v43   ;;  %v2855_v20 = vmax.f32 %v2385_v12, 0.0  ;;  %v14249_v43 = vpop.permute.xlu0 %3909 }
 0x290   : > { %v2391_v15 = vadd.f32 %v2390_v45, %v13298_v49  ;;  %v2856_v30 = vmax.f32 %v2387_v34, 0.0  ;;  %15693 = vst [vmem:[#allocation115_spill] sm:$0xff] %v14249_v43  ;;  %v15696_v43 = vld [vmem:[#allocation23_spill] sm:$0xff] }
 0x291   : > { %v2857_v35 = vmax.f32 %v2389_v39, 0.0  ;;  %2653 = vmatmul.mubr.bf16.gmra.mrb[220].mxu0 %v12470_v60  ;;  %v15694_v60 = vld [vmem:[#allocation21_spill] sm:$0xff] }
 0x292   : > { %v2858_v13 = vmax.f32 %v2391_v15, 0.0  ;;  %2662 = vmatprep.mubr.bf16.mxu0 %v12471_v24  ;;  %v12474_v24 = vld [vmem:[#allocation6 + $0x394] ss:$8 sps:$4 sm:$0xff]   ;;  %v15695_v15 = vld [vmem:[#allocation20_spill] sm:$0xff] }
 0x293   : > { %v14247_v40 = vpack.c.bf16 %v2857_v35, %v2855_v20  ;;  %4404 = vperm.xlu1 %12254, %v3766_v50   ;;  %4399 = vperm.xlu0 %12253, %v3765_v31  }
 0x294   : > { %v2394_v49 = vpop.f32.mrb[116].mxu0  ;;  %v14251_v12 = vpack.c.bf16 %v2858_v13, %v2856_v30 }
 0x295   : > { %v2395_v39 = vadd.f32 %v2394_v49, %v15694_v60  ;;  %v2396_v45 = vpop.f32.mrb[117].mxu0 }
 0x296   : > { %v2397_v59 = vadd.f32 %v2396_v45, %v15694_v60  ;;  %v2398_v34 = vpop.f32.mrb[118].mxu0  ;;  %11111 = vmatprep.subr.bf16.mxu1 %v14251_v12 }
 0x297   : > { %v2399_v20 = vadd.f32 %v2398_v34, %v15695_v15  ;;  %v2400_v35 = vpop.f32.mrb[119].mxu0  ;;  %11127 = vmatpush1.bf16.msra.mxu1 %v14247_v40  ;;  %v2859_v31 = vmax.f32 %v2395_v39, 0.0  ;;  %v12476_v34 = vld [vmem:[#allocation6 + $0x390] ss:$8 sps:$4 sm:$0xff]   ;;  %v12477_v39 = vld [vmem:[#allocation6 + $0x3a4] ss:$8 sps:$4 sm:$0xff]  }
 0x298   : > { %v2401_v50 = vadd.f32 %v2400_v35, %v15695_v15  ;;  %v2860_v13 = vmax.f32 %v2397_v59, 0.0  ;;  %v15697_v15 = vld [vmem:[#allocation22_spill] sm:$0xff] }
 0x299   : > { %v2861_v30 = vmax.f32 %v2399_v20, 0.0  ;;  %2663 = vmatmul.mubr.bf16.gmra.mrb[224].mxu0 %v12473_v19 }
 0x29a   : > { %v2862_v49 = vmax.f32 %v2401_v50, 0.0  ;;  %2672 = vmatprep.mubr.bf16.mxu0 %v12474_v24 }
 0x29b   : > { %v14259_v5 = vpack.c.bf16 %v2861_v30, %v2859_v31 }
 0x29c   : > { %v2404_v60 = vpop.f32.mrb[120].mxu0  ;;  %v14261_v45 = vpack.c.bf16 %v2862_v49, %v2860_v13  ;;  %v15698_v13 = vld [vmem:[#allocation25_spill] sm:$0xff] }
 0x29d   : > { %v2405_v52 = vadd.f32 %v2404_v60, %v15696_v43  ;;  %v2406_v17 = vpop.f32.mrb[121].mxu0 }
 0x29e   : > { %v2407_v1 = vadd.f32 %v2406_v17, %v15696_v43  ;;  %v2408_v48 = vpop.f32.mrb[122].mxu0  ;;  %11112 = vmatprep.subr.bf16.mxu1 %v14261_v45 }
 0x29f   : > { %v2409_v19 = vadd.f32 %v2408_v48, %v15697_v15  ;;  %v2410_v59 = vpop.f32.mrb[123].mxu0  ;;  %11128 = vmatpush1.bf16.msra.mxu1 %v14259_v5  ;;  %v2863_v20 = vmax.f32 %v2405_v52, 0.0  ;;  %v12479_v48 = vld [vmem:[#allocation6 + $0x3a0] ss:$8 sps:$4 sm:$0xff]   ;;  %v12480_v52 = vld [vmem:[#allocation6 + $0x3b4] ss:$8 sps:$4 sm:$0xff]  }
 0x2a0   : > { %v2411_v24 = vadd.f32 %v2410_v59, %v15697_v15  ;;  %v2864_v50 = vmax.f32 %v2407_v1, 0.0  ;;  %v15699_v15 = vld [vmem:[#allocation24_spill] sm:$0xff] }
 0x2a1   : > { %v2865_v35 = vmax.f32 %v2409_v19, 0.0  ;;  %2673 = vmatmul.mubr.bf16.gmra.mrb[228].mxu0 %v12476_v34 }
 0x2a2   : > { %v2866_v31 = vmax.f32 %v2411_v24, 0.0  ;;  %2682 = vmatprep.mubr.bf16.mxu0 %v12477_v39 }
 0x2a3   : > { %v14269_v30 = vpack.c.bf16 %v2865_v35, %v2863_v20 }
 0x2a4   : > { %v2414_v17 = vpop.f32.mrb[124].mxu0  ;;  %v14271_v43 = vpack.c.bf16 %v2866_v31, %v2864_v50 }
 0x2a5   : > { %v2415_v49 = vadd.f32 %v2414_v17, %v15698_v13  ;;  %v2416_v60 = vpop.f32.mrb[125].mxu0  ;;  %v3160_v17 = vld [vmem:[#allocation8 + $0x508] sm:$0xff] }
 0x2a6   : > { %v2417_v32 = vadd.f32 %v2416_v60, %v15698_v13  ;;  %v2418_v27 = vpop.f32.mrb[126].mxu0  ;;  %11113 = vmatprep.subr.bf16.mxu1 %v14271_v43  ;;  %v3164_v13 = vld [vmem:[#allocation8 + $0x528] sm:$0xff] }
 0x2a7   : > { %v2419_v34 = vadd.f32 %v2418_v27, %v15699_v15  ;;  %v2420_v1 = vpop.f32.mrb[127].mxu0  ;;  %11129 = vmatpush1.bf16.msra.mxu1 %v14269_v30  ;;  %v2867_v19 = vmax.f32 %v2415_v49, 0.0  ;;  %v15700_v60 = vld [vmem:[#allocation27_spill] sm:$0xff] }
 0x2a8   : > { %v2421_v39 = vadd.f32 %v2420_v1, %v15699_v15  ;;  %v2868_v24 = vmax.f32 %v2417_v32, 0.0  ;;  %v12483_v49 = vld [vmem:[#allocation6 + $0x3c4] ss:$8 sps:$4 sm:$0xff]   ;;  %v15701_v32 = vld [vmem:[#allocation26_spill] sm:$0xff] }
 0x2a9   : > { %v2869_v59 = vmax.f32 %v2419_v34, 0.0  ;;  %2683 = vmatmul.mubr.bf16.gmra.mrb[232].mxu0 %v12479_v48  ;;  %v10743_v34 = vcombine.high %v3160_v17, %v3164_v13 }
 0x2aa   : > { %v2870_v20 = vmax.f32 %v2421_v39, 0.0  ;;  %2692 = vmatprep.mubr.bf16.mxu0 %v12480_v52 }
 0x2ab   : > { %v14279_v35 = vpack.c.bf16 %v2869_v59, %v2867_v19 }
 0x2ac   : > { %v2424_v50 = vpop.f32.mrb[128].mxu0  ;;  %v14281_v31 = vpack.c.bf16 %v2870_v20, %v2868_v24 }
 0x2ad   : > { %v2425_v27 = vadd.f32 %v2424_v50, %v15700_v60  ;;  %v2426_v56 = vpop.f32.mrb[129].mxu0 }
 0x2ae   : > { %v2427_v22 = vadd.f32 %v2426_v56, %v15700_v60  ;;  %v2428_v15 = vpop.f32.mrb[130].mxu0  ;;  %11114 = vmatprep.subr.bf16.mxu1 %v14281_v31  ;;  %v15702_v56 = vcombine.low %v13908_v47, %v13910_v36 }
 0x2af   : > { %v2429_v48 = vadd.f32 %v2428_v15, %v15701_v32  ;;  %v2430_v52 = vpop.f32.mrb[131].mxu0  ;;  %11130 = vmatpush1.bf16.msra.mxu1 %v14279_v35  ;;  %v2871_v39 = vmax.f32 %v2425_v27, 0.0  ;;  %v3168_v15 = vld [vmem:[#allocation8 + $0x548] sm:$0xff] }
 0x2b0   : > { %v2431_v1 = vadd.f32 %v2430_v52, %v15701_v32  ;;  %v2872_v59 = vmax.f32 %v2427_v22, 0.0  ;;  %v12485_v32 = vld [vmem:[#allocation6 + $0x3c0] ss:$8 sps:$4 sm:$0xff]   ;;  %v12486_v22 = vld [vmem:[#allocation6 + $0x3d4] ss:$8 sps:$4 sm:$0xff]   ;;  %v15704_v52 = vld [vmem:[#allocation28_spill] sm:$0xff]  ;;  %v10751_v36 = vcombine.high %v3168_v15, %v3172_v38 }
 0x2b1   : > { %v2873_v19 = vmax.f32 %v2429_v48, 0.0  ;;  %2693 = vmatmul.mubr.bf16.gmra.mrb[236].mxu0 %v12482_v55  ;;  %v10742_v55 = vcombine.low %v3160_v17, %v3164_v13  ;;  %v3176_v13 = vld [vmem:[#allocation8 + $0x588] sm:$0xff] }
 0x2b2   : > { %v2874_v24 = vmax.f32 %v2431_v1, 0.0  ;;  %7863 = vmatmul.mubr.bf16.vlgmr.msra.gmra.mrb[0].mxu1 %v15702_v56  ;;  %2702 = vmatprep.mubr.bf16.mxu0 %v12483_v49  ;;  %v3180_v56 = vld [vmem:[#allocation8 + $0x5a8] sm:$0xff] }
 0x2b3   : > { %v3575_v20 = vpack.c.bf16 %v2873_v19, %v2871_v39  ;;  %7872 = vmatprep.mubr.bf16.mxu1 %v10743_v34 }
 0x2b4   : > { %v2434_v50 = vpop.f32.mrb[132].mxu0  ;;  %v3576_v60 = vpack.c.bf16 %v2874_v24, %v2872_v59 }
 0x2b5   : > { %v2435_v46 = vadd.f32 %v2434_v50, %v15703_v16  ;;  %v2436_v7 = vpop.f32.mrb[133].mxu0 }
 0x2b6   : > { %v2438_v27 = vpop.f32.mrb[134].mxu0  ;;  %8313 = vmatprep.subr.bf16.mxu1 %v3576_v60  ;;  %v2437_v48 = vadd.f32 %v2436_v7, %v15703_v16  ;;  %v15705_v7 = vld [vmem:[#allocation31_spill] sm:$0xff]  ;;  %v12488_v60 = vld [vmem:[#allocation6 + $0x3d0] ss:$8 sps:$4 sm:$0xff]  }
 0x2b7   : > { %v2439_v47 = vadd.f32 %v2438_v27, %v15704_v52  ;;  %8314 = vmatpush1.bf16.msra.mxu1 %v3575_v20  ;;  %v2440_v49 = vpop.f32.mrb[135].mxu0  ;;  %v2875_v34 = vmax.f32 %v2435_v46, 0.0  ;;  %v10750_v46 = vcombine.low %v3168_v15, %v3172_v38  ;;  %v3184_v15 = vld [vmem:[#allocation8 + $0x5c8] sm:$0xff] }
 0x2b8   : > { %v2441_v39 = vadd.f32 %v2440_v49, %v15704_v52  ;;  %v2876_v19 = vmax.f32 %v2437_v48, 0.0 }
 0x2b9   : > { %v2877_v1 = vmax.f32 %v2439_v47, 0.0  ;;  %2703 = vmatmul.mubr.bf16.gmra.mrb[240].mxu0 %v12485_v32  ;;  %v12489_v47 = vld [vmem:[#allocation6 + $0x3e4] ss:$8 sps:$4 sm:$0xff]   ;;  %v15706_v32 = vld [vmem:[#allocation30_spill] sm:$0xff] }
 0x2ba   : > { %7873 = vmatmul.mubr.bf16.gmra.mrb[4].mxu1 %v10742_v55  ;;  %2712 = vmatprep.mubr.bf16.mxu0 %v12486_v22  ;;  %v2878_v24 = vmax.f32 %v2441_v39, 0.0  ;;  %v10759_v22 = vcombine.high %v3176_v13, %v3180_v56 }
 0x2bb   : > { %v3577_v59 = vpack.c.bf16 %v2877_v1, %v2875_v34  ;;  %7882 = vmatprep.mubr.bf16.mxu1 %v10751_v36 }
 0x2bc   : > { %v2444_v17 = vpop.f32.mrb[136].mxu0  ;;  %v3578_v20 = vpack.c.bf16 %v2878_v24, %v2876_v19  ;;  %v3188_v24 = vld [vmem:[#allocation8 + $0x5e8] sm:$0xff] }
 0x2bd   : > { %v2445_v16 = vadd.f32 %v2444_v17, %v15705_v7  ;;  %v2446_v50 = vpop.f32.mrb[137].mxu0  ;;  %v15707_v17 = vld [vmem:[#allocation33_spill] sm:$0xff]  ;;  %v10766_v57 = vcombine.low %v3184_v15, %v3188_v24 }
 0x2be   : > { %v2448_v27 = vpop.f32.mrb[138].mxu0  ;;  %v2447_v52 = vadd.f32 %v2446_v50, %v15705_v7  ;;  %8315 = vmatprep.subr.bf16.mxu1 %v3578_v20 }
 0x2bf   : > { %v2449_v55 = vadd.f32 %v2448_v27, %v15706_v32  ;;  %v2450_v48 = vpop.f32.mrb[139].mxu0  ;;  %8316 = vmatpush1.bf16.msra.mxu1 %v3577_v59  ;;  %v2879_v36 = vmax.f32 %v2445_v16, 0.0  ;;  %v12491_v27 = vld [vmem:[#allocation6 + $0x3e0] ss:$8 sps:$4 sm:$0xff]   ;;  %v10758_v16 = vcombine.low %v3176_v13, %v3180_v56 }
 0x2c0   : > { %v2451_v34 = vadd.f32 %v2450_v48, %v15706_v32  ;;  %v2880_v1 = vmax.f32 %v2447_v52, 0.0  ;;  %v2999_v13 = vld [vmem:[#allocation8] sm:$0xff] }
 0x2c1   : > { %v2881_v49 = vmax.f32 %v2449_v55, 0.0  ;;  %2713 = vmatmul.mubr.bf16.gmra.mrb[244].mxu0 %v12488_v60  ;;  %v12492_v55 = vld [vmem:[#allocation6 + $0x3f4] ss:$8 sps:$4 sm:$0xff]   ;;  %v15708_v60 = vld [vmem:[#allocation32_spill] sm:$0xff]  ;;  %v3003_v56 = vld [vmem:[#allocation8 + $0x20] sm:$0xff] }
 0x2c2   : > { %7883 = vmatmul.mubr.bf16.gmra.mrb[8].mxu1 %v10750_v46  ;;  %2722 = vmatprep.mubr.bf16.mxu0 %v12489_v47  ;;  %v2882_v19 = vmax.f32 %v2451_v34, 0.0  ;;  %v10767_v47 = vcombine.high %v3184_v15, %v3188_v24  ;;  %v3007_v24 = vld [vmem:[#allocation8 + $0x40] sm:$0xff]  ;;  %v10580_v41 = vcombine.low %v2999_v13, %v3003_v56 }
 0x2c3   : > { %v3579_v39 = vpack.c.bf16 %v2881_v49, %v2879_v36  ;;  %7892 = vmatprep.mubr.bf16.mxu1 %v10759_v22 }
 0x2c4   : > { %v2454_v38 = vpop.f32.mrb[140].mxu0  ;;  %v3580_v20 = vpack.c.bf16 %v2882_v19, %v2880_v1 }
 0x2c5   : > { %v2455_v7 = vadd.f32 %v2454_v38, %v15707_v17  ;;  %v2456_v50 = vpop.f32.mrb[141].mxu0  ;;  %v3192_v38 = vld [vmem:[#allocation8 + $0x608] sm:$0xff] }
 0x2c6   : > { %v2458_v59 = vpop.f32.mrb[142].mxu0  ;;  %v2457_v32 = vadd.f32 %v2456_v50, %v15707_v17  ;;  %8317 = vmatprep.subr.bf16.mxu1 %v3580_v20  ;;  %v3196_v17 = vld [vmem:[#allocation8 + $0x628] sm:$0xff] }
 0x2c7   : > { %v2459_v46 = vadd.f32 %v2458_v59, %v15708_v60  ;;  %v2460_v52 = vpop.f32.mrb[143].mxu0  ;;  %8318 = vmatpush1.bf16.msra.mxu1 %v3579_v39  ;;  %v2883_v22 = vmax.f32 %v2455_v7, 0.0  ;;  %v15709_v50 = vld [vmem:[#allocation35_spill] sm:$0xff]  ;;  %v12494_v7 = vld [vmem:[#allocation6 + $0x3f0] ss:$8 sps:$4 sm:$0xff]   ;;  %v10774_v37 = vcombine.low %v3192_v38, %v3196_v17 }
 0x2c8   : > { %v2461_v36 = vadd.f32 %v2460_v52, %v15708_v60  ;;  %v2884_v49 = vmax.f32 %v2457_v32, 0.0  ;;  %v10581_v60 = vcombine.high %v2999_v13, %v3003_v56  ;;  %v10775_v32 = vcombine.high %v3192_v38, %v3196_v17 }
 0x2c9   : > { %v2885_v48 = vmax.f32 %v2459_v46, 0.0  ;;  %2723 = vmatmul.mubr.bf16.gmra.mrb[248].mxu0 %v12491_v27 }
 0x2ca   : > { %7893 = vmatmul.mubr.bf16.gmra.mrb[12].mxu1 %v10758_v16  ;;  %2732 = vmatprep.mubr.bf16.mxu0 %v12492_v55  ;;  %v2886_v1 = vmax.f32 %v2461_v36, 0.0  ;;  %v15710_v16 = vld [vmem:[#allocation34_spill] sm:$0xff] }
 0x2cb   : > { %v3581_v34 = vpack.c.bf16 %v2885_v48, %v2883_v22  ;;  %7902 = vmatprep.mubr.bf16.mxu1 %v10767_v47 }
 0x2cc   : > { %v2464_v19 = vpop.f32.mrb[144].mxu0  ;;  %v3582_v39 = vpack.c.bf16 %v2886_v1, %v2884_v49 }
 0x2cd   : > { %v2465_v20 = vadd.f32 %v2464_v19, %v15709_v50  ;;  %v2466_v59 = vpop.f32.mrb[145].mxu0  ;;  %v3011_v19 = vld [vmem:[#allocation8 + $0x60] sm:$0xff] }
 0x2ce   : > { %v2468_v46 = vpop.f32.mrb[146].mxu0  ;;  %v2467_v27 = vadd.f32 %v2466_v59, %v15709_v50  ;;  %8319 = vmatprep.subr.bf16.mxu1 %v3582_v39  ;;  %v15711_v50 = vld [vmem:[#allocation37_spill] sm:$0xff] }
 0x2cf   : > { %v2469_v55 = vadd.f32 %v2468_v46, %v15710_v16  ;;  %v2470_v47 = vpop.f32.mrb[147].mxu0  ;;  %8320 = vmatpush1.bf16.msra.mxu1 %v3581_v34  ;;  %v2887_v52 = vmax.f32 %v2465_v20, 0.0  ;;  %v3200_v34 = vld [vmem:[#allocation8 + $0x648] sm:$0xff] }
 0x2d0   : > { %v2471_v48 = vadd.f32 %v2470_v47, %v15710_v16  ;;  %v2888_v36 = vmax.f32 %v2467_v27, 0.0  ;;  %v3204_v20 = vld [vmem:[#allocation8 + $0x668] sm:$0xff]  ;;  %v10589_v27 = vcombine.high %v3007_v24, %v3011_v19 }
 0x2d1   : > { %v2889_v22 = vmax.f32 %v2469_v55, 0.0  ;;  %2733 = vmatmul.mubr.bf16.gmra.mrb[252].mxu0 %v12494_v7 }
 0x2d2   : > { %7903 = vmatmul.mubr.bf16.gmra.mrb[16].mxu1 %v10766_v57  ;;  %6999 = vmatprep.mubr.bf16.mxu0 %v10581_v60  ;;  %v2890_v1 = vmax.f32 %v2471_v48, 0.0  ;;  %v15712_v57 = vld [vmem:[#allocation36_spill] sm:$0xff]  ;;  %v3015_v48 = vld [vmem:[#allocation8 + $0x80] sm:$0xff] }
 0x2d3   : > { %v3583_v49 = vpack.c.bf16 %v2889_v22, %v2887_v52  ;;  %7912 = vmatprep.mubr.bf16.mxu1 %v10775_v32  ;;  %v10783_v32 = vcombine.high %v3200_v34, %v3204_v20 }
 0x2d4   : > { %v2474_v15 = vpop.f32.mrb[148].mxu0  ;;  %v3584_v46 = vpack.c.bf16 %v2890_v1, %v2888_v36  ;;  %v3019_v36 = vld [vmem:[#allocation8 + $0xa0] sm:$0xff] }
 0x2d5   : > { %v2475_v59 = vadd.f32 %v2474_v15, %v15711_v50  ;;  %v2476_v39 = vpop.f32.mrb[149].mxu0 }
 0x2d6   : > { %v2478_v55 = vpop.f32.mrb[150].mxu0  ;;  %v2477_v7 = vadd.f32 %v2476_v39, %v15711_v50  ;;  %8321 = vmatprep.subr.bf16.mxu1 %v3584_v46  ;;  %v3208_v39 = vld [vmem:[#allocation8 + $0x688] sm:$0xff] }
 0x2d7   : > { %v2479_v60 = vadd.f32 %v2478_v55, %v15712_v57  ;;  %v2480_v16 = vpop.f32.mrb[151].mxu0  ;;  %8322 = vmatpush1.bf16.msra.mxu1 %v3583_v49  ;;  %v2891_v47 = vmax.f32 %v2475_v59, 0.0  ;;  %v15713_v49 = vld [vmem:[#allocation39_spill] sm:$0xff]  ;;  %v10588_v59 = vcombine.low %v3007_v24, %v3011_v19  ;;  %v15714_v55 = vld [vmem:[#allocation38_spill] sm:$0xff] }
 0x2d8   : > { %v2481_v22 = vadd.f32 %v2480_v16, %v15712_v57  ;;  %v2892_v13 = vmax.f32 %v2477_v7, 0.0  ;;  %v10597_v7 = vcombine.high %v3015_v48, %v3019_v36 }
 0x2d9   : > { %v2893_v52 = vmax.f32 %v2479_v60, 0.0  ;;  %7000 = vmatmul.mubr.bf16.vlgmr.msra.gmra.mrb[0].mxu0 %v10580_v41  ;;  %v3212_v41 = vld [vmem:[#allocation8 + $0x6a8] sm:$0xff] }
 0x2da   : > { %7641 = vmatpush1.bf16.msra.mxu0 %v13924_v18  ;;  %7913 = vmatmul.mubr.bf16.gmra.mrb[20].mxu1 %v10774_v37  ;;  %v2894_v38 = vmax.f32 %v2481_v22, 0.0  ;;  %v10782_v18 = vcombine.low %v3200_v34, %v3204_v20  ;;  %v10791_v60 = vcombine.high %v3208_v39, %v3212_v41  ;;  %v3023_v20 = vld [vmem:[#allocation8 + $0xc0] sm:$0xff] }
 0x2db   : > { %v3585_v56 = vpack.c.bf16 %v2893_v52, %v2891_v47  ;;  %7642 = vmatprep.subr.bf16.mxu0 %v13949_v8  ;;  %7009 = vmatprep.mubr.bf16.mxu0 %v10589_v27  ;;  %v15715_v47 = vld [vmem:[#allocation41_spill] sm:$0xff] }
 0x2dc   : > { %v2484_v17 = vpop.f32.mrb[152].mxu0  ;;  %7922 = vmatprep.mubr.bf16.mxu1 %v10783_v32  ;;  %v3586_v50 = vpack.c.bf16 %v2894_v38, %v2892_v13  ;;  %v3027_v32 = vld [vmem:[#allocation8 + $0xe0] sm:$0xff]  ;;  %v3216_v38 = vld [vmem:[#allocation8 + $0x6c8] sm:$0xff] }
 0x2dd   : > { %v2485_v1 = vadd.f32 %v2484_v17, %v15713_v49  ;;  %v2486_v15 = vpop.f32.mrb[153].mxu0  ;;  %v3220_v17 = vld [vmem:[#allocation8 + $0x6e8] sm:$0xff] }
 0x2de   : > { %7643 = vmatpush1.bf16.msra.mxu0 %v13947_v58  ;;  %v2488_v37 = vpop.f32.mrb[154].mxu0  ;;  %v2487_v46 = vadd.f32 %v2486_v15, %v15713_v49  ;;  %8323 = vmatprep.subr.bf16.mxu1 %v3586_v50  ;;  %v10790_v49 = vcombine.low %v3208_v39, %v3212_v41  ;;  %v15716_v15 = vld [vmem:[#allocation40_spill] sm:$0xff]  ;;  %v10605_v50 = vcombine.high %v3023_v20, %v3027_v32  ;;  %v3031_v41 = vld [vmem:[#allocation8 + $0x100] sm:$0xff] }
 0x2df   : > { %v2489_v8 = vadd.f32 %v2488_v37, %v15714_v55  ;;  %7644 = vmatprep.subr.bf16.mxu0 %v13975_v63  ;;  %v2490_v57 = vpop.f32.mrb[155].mxu0  ;;  %8324 = vmatpush1.bf16.msra.mxu1 %v3585_v56  ;;  %v2895_v27 = vmax.f32 %v2485_v1, 0.0  ;;  %v10596_v56 = vcombine.low %v3015_v48, %v3019_v36  ;;  %v10799_v37 = vcombine.high %v3216_v38, %v3220_v17 }
 0x2e0   : > { %v2491_v24 = vadd.f32 %v2490_v57, %v15714_v55  ;;  %v2896_v58 = vmax.f32 %v2487_v46, 0.0  ;;  %v3035_v55 = vld [vmem:[#allocation8 + $0x120] sm:$0xff] }
 0x2e1   : > { %v2897_v16 = vmax.f32 %v2489_v8, 0.0  ;;  %7010 = vmatmul.mubr.bf16.gmra.mrb[4].mxu0 %v10588_v59  ;;  %v15717_v8 = vld [vmem:[#allocation43_spill] sm:$0xff] }
 0x2e2   : > { %7645 = vmatpush1.bf16.msra.mxu0 %v13973_v62  ;;  %7923 = vmatmul.mubr.bf16.gmra.mrb[24].mxu1 %v10782_v18  ;;  %v2898_v34 = vmax.f32 %v2491_v24, 0.0  ;;  %v3228_v24 = vld [vmem:[#allocation8 + $0x728] sm:$0xff] }
 0x2e3   : > { %v3587_v19 = vpack.c.bf16 %v2897_v16, %v2895_v27  ;;  %7646 = vmatprep.subr.bf16.mxu0 %v14005_v11  ;;  %7019 = vmatprep.mubr.bf16.mxu0 %v10597_v7  ;;  %v10604_v27 = vcombine.low %v3023_v20, %v3027_v32  ;;  %v3224_v16 = vld [vmem:[#allocation8 + $0x708] sm:$0xff] }
 0x2e4   : > { %v2494_v63 = vpop.f32.mrb[156].mxu0  ;;  %7932 = vmatprep.mubr.bf16.mxu1 %v10791_v60  ;;  %v3588_v13 = vpack.c.bf16 %v2898_v34, %v2896_v58  ;;  %v10798_v58 = vcombine.low %v3216_v38, %v3220_v17  ;;  %v15718_v34 = vld [vmem:[#allocation42_spill] sm:$0xff] }
 0x2e5   : > { %v2495_v52 = vadd.f32 %v2494_v63, %v15715_v47  ;;  %v2496_v22 = vpop.f32.mrb[157].mxu0  ;;  %v10613_v63 = vcombine.high %v3031_v41, %v3035_v55  ;;  %v3039_v38 = vld [vmem:[#allocation8 + $0x140] sm:$0xff] }
 0x2e6   : > { %7647 = vmatpush1.bf16.msra.mxu0 %v14001_v61  ;;  %v2498_v62 = vpop.f32.mrb[158].mxu0  ;;  %v2497_v1 = vadd.f32 %v2496_v22, %v15715_v47  ;;  %8325 = vmatprep.subr.bf16.mxu1 %v3588_v13  ;;  %v3043_v17 = vld [vmem:[#allocation8 + $0x160] sm:$0xff] }
 0x2e7   : > { %v2499_v11 = vadd.f32 %v2498_v62, %v15716_v15  ;;  %7648 = vmatprep.subr.bf16.mxu0 %v14031_v53  ;;  %v2500_v59 = vpop.f32.mrb[159].mxu0  ;;  %8326 = vmatpush1.bf16.msra.mxu1 %v3587_v19  ;;  %v2899_v18 = vmax.f32 %v2495_v52, 0.0  ;;  %v10807_v52 = vcombine.high %v3224_v16, %v3228_v24  ;;  %v15719_v62 = vld [vmem:[#allocation45_spill] sm:$0xff] }
 0x2e8   : > { %v2501_v48 = vadd.f32 %v2500_v59, %v15716_v15  ;;  %v2900_v61 = vmax.f32 %v2497_v1, 0.0  ;;  %v3236_v59 = vld [vmem:[#allocation8 + $0x768] sm:$0xff] }
 0x2e9   : > { %v2901_v46 = vmax.f32 %v2499_v11, 0.0  ;;  %7020 = vmatmul.mubr.bf16.gmra.mrb[8].mxu0 %v10596_v56  ;;  %v10612_v11 = vcombine.low %v3031_v41, %v3035_v55 }
 0x2ea   : > { %7649 = vmatpush1.bf16.msra.mxu0 %v14029_v42  ;;  %7933 = vmatmul.mubr.bf16.gmra.mrb[28].mxu1 %v10790_v49  ;;  %v2902_v39 = vmax.f32 %v2501_v48, 0.0  ;;  %v10621_v48 = vcombine.high %v3039_v38, %v3043_v17 }
 0x2eb   : > { %v3589_v36 = vpack.c.bf16 %v2901_v46, %v2899_v18  ;;  %7650 = vmatprep.subr.bf16.mxu0 %v14057_v14  ;;  %7029 = vmatprep.mubr.bf16.mxu0 %v10605_v50  ;;  %v3232_v50 = vld [vmem:[#allocation8 + $0x748] sm:$0xff] }
 0x2ec   : > { %v2504_v53 = vpop.f32.mrb[160].mxu0  ;;  %7942 = vmatprep.mubr.bf16.mxu1 %v10799_v37  ;;  %v3590_v60 = vpack.c.bf16 %v2902_v39, %v2900_v61  ;;  %v10806_v37 = vcombine.low %v3224_v16, %v3228_v24  ;;  %v15720_v46 = vld [vmem:[#allocation44_spill] sm:$0xff] }
 0x2ed   : > { %v2505_v7 = vadd.f32 %v2504_v53, %v15717_v8  ;;  %v2506_v57 = vpop.f32.mrb[161].mxu0 }
 0x2ee   : > { %7651 = vmatpush1.bf16.msra.mxu0 %v14055_v21  ;;  %v2508_v42 = vpop.f32.mrb[162].mxu0  ;;  %v2507_v19 = vadd.f32 %v2506_v57, %v15717_v8  ;;  %8327 = vmatprep.subr.bf16.mxu1 %v3590_v60  ;;  %v3051_v57 = vld [vmem:[#allocation8 + $0x1a0] sm:$0xff] }
 0x2ef   : > { %v2509_v14 = vadd.f32 %v2508_v42, %v15718_v34  ;;  %7652 = vmatprep.subr.bf16.mxu0 %v14087_v33  ;;  %v2510_v47 = vpop.f32.mrb[163].mxu0  ;;  %8328 = vmatpush1.bf16.msra.mxu1 %v3589_v36  ;;  %v2903_v22 = vmax.f32 %v2505_v7, 0.0  ;;  %v10815_v36 = vcombine.high %v3232_v50, %v3236_v59  ;;  %v3047_v7 = vld [vmem:[#allocation8 + $0x180] sm:$0xff]  ;;  %v10620_v42 = vcombine.low %v3039_v38, %v3043_v17  ;;  %v15723_v17 = vld [vmem:[#allocation49_spill] sm:$0xff] }
 0x2f0   : > { %v2511_v20 = vadd.f32 %v2510_v47, %v15718_v34  ;;  %v2904_v21 = vmax.f32 %v2507_v19, 0.0  ;;  %v15721_v60 = vld [vmem:[#allocation47_spill] sm:$0xff]  ;;  %v10814_v34 = vcombine.low %v3232_v50, %v3236_v59  ;;  %v10629_v47 = vcombine.high %v3047_v7, %v3051_v57 }
 0x2f1   : > { %v2905_v13 = vmax.f32 %v2509_v14, 0.0  ;;  %7030 = vmatmul.mubr.bf16.gmra.mrb[12].mxu0 %v10604_v27  ;;  %v3244_v19 = vld [vmem:[#allocation8 + $0x7a8] sm:$0xff]  ;;  %v3059_v38 = vld [vmem:[#allocation8 + $0x1e0] sm:$0xff] }
 0x2f2   : > { %7653 = vmatpush1.bf16.msra.mxu0 %v14083_v10  ;;  %7943 = vmatmul.mubr.bf16.gmra.mrb[32].mxu1 %v10798_v58  ;;  %v2906_v56 = vmax.f32 %v2511_v20, 0.0  ;;  %v3240_v58 = vld [vmem:[#allocation8 + $0x788] sm:$0xff] }
 0x2f3   : > { %v3591_v32 = vpack.c.bf16 %v2905_v13, %v2903_v22  ;;  %7654 = vmatprep.subr.bf16.mxu0 %v14113_v26  ;;  %7039 = vmatprep.mubr.bf16.mxu0 %v10613_v63  ;;  %v15722_v63 = vld [vmem:[#allocation46_spill] sm:$0xff]  ;;  %v10823_v22 = vcombine.high %v3240_v58, %v3244_v19  ;;  %v3252_v50 = vld [vmem:[#allocation8 + $0x7e8] sm:$0xff]  ;;  %v10822_v59 = vcombine.low %v3240_v58, %v3244_v19 }
 0x2f4   : > { %v2514_v33 = vpop.f32.mrb[164].mxu0  ;;  %7952 = vmatprep.mubr.bf16.mxu1 %v10807_v52  ;;  %v3592_v15 = vpack.c.bf16 %v2906_v56, %v2904_v21 }
 0x2f5   : > { %v2515_v49 = vadd.f32 %v2514_v33, %v15719_v62  ;;  %v2516_v1 = vpop.f32.mrb[165].mxu0  ;;  %v3055_v33 = vld [vmem:[#allocation8 + $0x1c0] sm:$0xff] }
 0x2f6   : > { %7655 = vmatpush1.bf16.msra.mxu0 %v14111_v0  ;;  %v2518_v10 = vpop.f32.mrb[166].mxu0  ;;  %v2517_v18 = vadd.f32 %v2516_v1, %v15719_v62  ;;  %8329 = vmatprep.subr.bf16.mxu1 %v3592_v15  ;;  %v10628_v15 = vcombine.low %v3047_v7, %v3051_v57  ;;  %v10636_v57 = vcombine.low %v3055_v33, %v3059_v38 }
 0x2f7   : > { %v2519_v26 = vadd.f32 %v2518_v10, %v15720_v46  ;;  %7656 = vmatprep.subr.bf16.mxu0 %v14139_v29  ;;  %v2520_v61 = vpop.f32.mrb[167].mxu0  ;;  %8330 = vmatpush1.bf16.msra.mxu1 %v3591_v32  ;;  %v2907_v39 = vmax.f32 %v2515_v49, 0.0 }
 0x2f8   : > { %v2521_v41 = vadd.f32 %v2520_v61, %v15720_v46  ;;  %v2908_v0 = vmax.f32 %v2517_v18, 0.0  ;;  %v10637_v18 = vcombine.high %v3055_v33, %v3059_v38 }
 0x2f9   : > { %v2909_v53 = vmax.f32 %v2519_v26, 0.0  ;;  %7040 = vmatmul.mubr.bf16.gmra.mrb[16].mxu0 %v10612_v11  ;;  %v3248_v11 = vld [vmem:[#allocation8 + $0x7c8] sm:$0xff] }
 0x2fa   : > { %7657 = vmatpush1.bf16.msra.mxu0 %v14137_v2  ;;  %7953 = vmatmul.mubr.bf16.gmra.mrb[36].mxu1 %v10806_v37  ;;  %v2910_v8 = vmax.f32 %v2521_v41, 0.0  ;;  %v15724_v37 = vld [vmem:[#allocation48_spill] sm:$0xff]  ;;  %v10831_v26 = vcombine.high %v3248_v11, %v3252_v50  ;;  %v3063_v41 = vld [vmem:[#allocation8 + $0x200] sm:$0xff] }
 0x2fb   : > { %v3593_v55 = vpack.c.bf16 %v2909_v53, %v2907_v39  ;;  %7658 = vmatprep.subr.bf16.mxu0 %v14169_v51  ;;  %7049 = vmatprep.mubr.bf16.mxu0 %v10621_v48 }
 0x2fc   : > { %v2524_v29 = vpop.f32.mrb[168].mxu0  ;;  %7962 = vmatprep.mubr.bf16.mxu1 %v10815_v36  ;;  %v3594_v24 = vpack.c.bf16 %v2910_v8, %v2908_v0  ;;  %v3067_v0 = vld [vmem:[#allocation8 + $0x220] sm:$0xff] }
 0x2fd   : > { %v2525_v27 = vadd.f32 %v2524_v29, %v15721_v60  ;;  %v2526_v16 = vpop.f32.mrb[169].mxu0  ;;  %v10645_v58 = vcombine.high %v3063_v41, %v3067_v0 }
 0x2fe   : > { %7659 = vmatpush1.bf16.msra.mxu0 %v14165_v25  ;;  %v2528_v2 = vpop.f32.mrb[170].mxu0  ;;  %v2527_v14 = vadd.f32 %v2526_v16, %v15721_v60  ;;  %8331 = vmatprep.subr.bf16.mxu1 %v3594_v24  ;;  %v3256_v60 = vld [vmem:[#allocation8 + $0x808] sm:$0xff]  ;;  %v10830_v16 = vcombine.low %v3248_v11, %v3252_v50 }
 0x2ff   : > { %v2529_v51 = vadd.f32 %v2528_v2, %v15722_v63  ;;  %7660 = vmatprep.subr.bf16.mxu0 %v14195_v54  ;;  %v2530_v52 = vpop.f32.mrb[171].mxu0  ;;  %8332 = vmatpush1.bf16.msra.mxu1 %v3593_v55  ;;  %v2911_v13 = vmax.f32 %v2525_v27, 0.0  ;;  %v15725_v55 = vld [vmem:[#allocation51_spill] sm:$0xff] }
 0x300   : > { %v2531_v21 = vadd.f32 %v2530_v52, %v15722_v63  ;;  %v2912_v25 = vmax.f32 %v2527_v14, 0.0  ;;  %v3260_v27 = vld [vmem:[#allocation8 + $0x828] sm:$0xff]  ;;  %v3075_v52 = vld [vmem:[#allocation8 + $0x260] sm:$0xff] }
 0x301   : > { %v2913_v20 = vmax.f32 %v2529_v51, 0.0  ;;  %7050 = vmatmul.mubr.bf16.gmra.mrb[20].mxu0 %v10620_v42  ;;  %v15726_v42 = vld [vmem:[#allocation50_spill] sm:$0xff]  ;;  %v10839_v2 = vcombine.high %v3256_v60, %v3260_v27  ;;  %v10838_v38 = vcombine.low %v3256_v60, %v3260_v27 }
 0x302   : > { %7661 = vmatpush1.bf16.msra.mxu0 %v14193_v9  ;;  %7963 = vmatmul.mubr.bf16.gmra.mrb[40].mxu1 %v10814_v34  ;;  %v2914_v56 = vmax.f32 %v2531_v21, 0.0  ;;  %v15727_v21 = vld [vmem:[#allocation53_spill] sm:$0xff] }
 0x303   : > { %v3595_v32 = vpack.c.bf16 %v2913_v20, %v2911_v13  ;;  %7662 = vmatprep.subr.bf16.mxu0 %v14221_v44  ;;  %7059 = vmatprep.mubr.bf16.mxu0 %v10629_v47  ;;  %v3264_v13 = vld [vmem:[#allocation8 + $0x848] sm:$0xff] }
 0x304   : > { %v2534_v54 = vpop.f32.mrb[172].mxu0  ;;  %7972 = vmatprep.mubr.bf16.mxu1 %v10823_v22  ;;  %v3596_v1 = vpack.c.bf16 %v2914_v56, %v2912_v25  ;;  %v3268_v20 = vld [vmem:[#allocation8 + $0x868] sm:$0xff] }
 0x305   : > { %v2535_v62 = vadd.f32 %v2534_v54, %v15723_v17  ;;  %v2536_v49 = vpop.f32.mrb[173].mxu0  ;;  %v10644_v54 = vcombine.low %v3063_v41, %v3067_v0  ;;  %v15730_v0 = vld [vmem:[#allocation54_spill] sm:$0xff] }
 0x306   : > { %7663 = vmatpush1.bf16.msra.mxu0 %v14219_v4  ;;  %v2538_v9 = vpop.f32.mrb[174].mxu0  ;;  %v2537_v10 = vadd.f32 %v2536_v49, %v15723_v17  ;;  %8333 = vmatprep.subr.bf16.mxu1 %v3596_v1  ;;  %v10847_v1 = vcombine.high %v3264_v13, %v3268_v20 }
 0x307   : > { %v2539_v44 = vadd.f32 %v2538_v9, %v15724_v37  ;;  %7664 = vmatprep.subr.bf16.mxu0 %v14251_v12  ;;  %v2540_v46 = vpop.f32.mrb[175].mxu0  ;;  %8334 = vmatpush1.bf16.msra.mxu1 %v3595_v32  ;;  %v2915_v48 = vmax.f32 %v2535_v62, 0.0 }
 0x308   : > { %v2541_v36 = vadd.f32 %v2540_v46, %v15724_v37  ;;  %v2916_v4 = vmax.f32 %v2537_v10, 0.0  ;;  %v3083_v37 = vld [vmem:[#allocation8 + $0x2a0] sm:$0xff]  ;;  %v3272_v46 = vld [vmem:[#allocation8 + $0x888] sm:$0xff] }
 0x309   : > { %v2917_v61 = vmax.f32 %v2539_v44, 0.0  ;;  %7060 = vmatmul.mubr.bf16.gmra.mrb[24].mxu0 %v10628_v15 }
 0x30a   : > { %7665 = vmatpush1.bf16.msra.mxu0 %v14247_v40  ;;  %7973 = vmatmul.mubr.bf16.gmra.mrb[44].mxu1 %v10822_v59  ;;  %v2918_v53 = vmax.f32 %v2541_v36, 0.0 }
 0x30b   : > { %v3597_v39 = vpack.c.bf16 %v2917_v61, %v2915_v48  ;;  %7666 = vmatprep.subr.bf16.mxu0 %v14261_v45  ;;  %7069 = vmatprep.mubr.bf16.mxu0 %v10637_v18  ;;  %v15729_v48 = vld [vmem:[#allocation55_spill] sm:$0xff] }
 0x30c   : > { %v2544_v12 = vpop.f32.mrb[176].mxu0  ;;  %7982 = vmatprep.mubr.bf16.mxu1 %v10831_v26  ;;  %v3598_v7 = vpack.c.bf16 %v2918_v53, %v2916_v4  ;;  %v3276_v26 = vld [vmem:[#allocation8 + $0x8a8] sm:$0xff] }
 0x30d   : > { %v2545_v8 = vadd.f32 %v2544_v12, %v15725_v55  ;;  %v2546_v29 = vpop.f32.mrb[177].mxu0  ;;  %v10846_v12 = vcombine.low %v3264_v13, %v3268_v20 }
 0x30e   : > { %7667 = vmatpush1.bf16.msra.mxu0 %v14259_v5  ;;  %v2548_v40 = vpop.f32.mrb[178].mxu0  ;;  %v2547_v24 = vadd.f32 %v2546_v29, %v15725_v55  ;;  %8335 = vmatprep.subr.bf16.mxu1 %v3598_v7  ;;  %v10855_v29 = vcombine.high %v3272_v46, %v3276_v26 }
 0x30f   : > { %v2549_v45 = vadd.f32 %v2548_v40, %v15726_v42  ;;  %7668 = vmatprep.subr.bf16.mxu0 %v14271_v43  ;;  %v2550_v19 = vpop.f32.mrb[179].mxu0  ;;  %8336 = vmatpush1.bf16.msra.mxu1 %v3597_v39  ;;  %v2919_v34 = vmax.f32 %v2545_v8, 0.0  ;;  %v3071_v43 = vld [vmem:[#allocation8 + $0x240] sm:$0xff] }
 0x310   : > { %v2551_v63 = vadd.f32 %v2550_v19, %v15726_v42  ;;  %v2920_v5 = vmax.f32 %v2547_v24, 0.0  ;;  %v10653_v17 = vcombine.high %v3071_v43, %v3075_v52  ;;  %v10652_v4 = vcombine.low %v3071_v43, %v3075_v52  ;;  %v3087_v24 = vld [vmem:[#allocation8 + $0x2c0] sm:$0xff]  ;;  %v3280_v19 = vld [vmem:[#allocation8 + $0x8c8] sm:$0xff] }
 0x311   : > { %v2921_v14 = vmax.f32 %v2549_v45, 0.0  ;;  %7070 = vmatmul.mubr.bf16.gmra.mrb[28].mxu0 %v10636_v57  ;;  %v3091_v42 = vld [vmem:[#allocation8 + $0x2e0] sm:$0xff]  ;;  %v10854_v43 = vcombine.low %v3272_v46, %v3276_v26 }
 0x312   : > { %7669 = vmatpush1.bf16.msra.mxu0 %v14269_v30  ;;  %7983 = vmatmul.mubr.bf16.gmra.mrb[48].mxu1 %v10830_v16  ;;  %v2922_v47 = vmax.f32 %v2551_v63, 0.0  ;;  %v10669_v52 = vcombine.high %v3087_v24, %v3091_v42 }
 0x313   : > { %v3599_v51 = vpack.c.bf16 %v2921_v14, %v2919_v34  ;;  %7670 = vmatprep.subr.bf16.mxu0 %v14281_v31  ;;  %7079 = vmatprep.mubr.bf16.mxu0 %v10645_v58  ;;  %v15728_v31 = vld [vmem:[#allocation52_spill] sm:$0xff]  ;;  %v15731_v34 = vld [vmem:[#allocation57_spill] sm:$0xff] }
 0x314   : > { %v2554_v22 = vpop.f32.mrb[180].mxu0  ;;  %7992 = vmatprep.mubr.bf16.mxu1 %v10839_v2  ;;  %v3600_v56 = vpack.c.bf16 %v2922_v47, %v2920_v5  ;;  %v3284_v2 = vld [vmem:[#allocation8 + $0x8e8] sm:$0xff] }
 0x315   : > { %v2555_v25 = vadd.f32 %v2554_v22, %v15727_v21  ;;  %v2556_v32 = vpop.f32.mrb[181].mxu0  ;;  %v15732_v22 = vld [vmem:[#allocation56_spill] sm:$0xff] }
 0x316   : > { %v2557_v30 = vadd.f32 %v2556_v32, %v15727_v21  ;;  %7671 = vmatpush1.bf16.msra.mxu0 %v14279_v35  ;;  %v2558_v33 = vpop.f32.mrb[182].mxu0  ;;  %8337 = vmatprep.subr.bf16.mxu1 %v3600_v56  ;;  %v3079_v35 = vld [vmem:[#allocation8 + $0x280] sm:$0xff]  ;;  %v10863_v21 = vcombine.high %v3280_v19, %v3284_v2 }
 0x317   : > { %v2559_v62 = vadd.f32 %v2558_v33, %v15728_v31  ;;  %v2560_v49 = vpop.f32.mrb[183].mxu0  ;;  %8338 = vmatpush1.bf16.msra.mxu1 %v3599_v51  ;;  %v2923_v11 = vmax.f32 %v2555_v25, 0.0  ;;  %v10661_v41 = vcombine.high %v3079_v35, %v3083_v37  ;;  %v10660_v5 = vcombine.low %v3079_v35, %v3083_v37 }
 0x318   : > { %v2561_v15 = vadd.f32 %v2560_v49, %v15728_v31  ;;  %v2924_v9 = vmax.f32 %v2557_v30, 0.0  ;;  %v3288_v49 = vld [vmem:[#allocation8 + $0x908] sm:$0xff] }
 0x319   : > { %v2925_v50 = vmax.f32 %v2559_v62, 0.0  ;;  %7080 = vmatmul.mubr.bf16.gmra.mrb[32].mxu0 %v10644_v54 }
 0x31a   : > { %v2926_v59 = vmax.f32 %v2561_v15, 0.0  ;;  %7993 = vmatmul.mubr.bf16.gmra.mrb[52].mxu1 %v10838_v38  ;;  %7089 = vmatprep.mubr.bf16.mxu0 %v10653_v17  ;;  %v3095_v38 = vld [vmem:[#allocation8 + $0x300] sm:$0xff] }
 0x31b   : > { %v3601_v10 = vpack.c.bf16 %v2925_v50, %v2923_v11  ;;  %8002 = vmatprep.mubr.bf16.mxu1 %v10847_v1  ;;  %v3099_v17 = vld [vmem:[#allocation8 + $0x320] sm:$0xff]  ;;  %v3292_v1 = vld [vmem:[#allocation8 + $0x928] sm:$0xff]  ;;  %v10668_v50 = vcombine.low %v3087_v24, %v3091_v42 }
 0x31c   : > { %v2564_v44 = vpop.f32.mrb[184].mxu0  ;;  %v3602_v18 = vpack.c.bf16 %v2926_v59, %v2924_v9  ;;  %v10677_v35 = vcombine.high %v3095_v38, %v3099_v17 }
 0x31d   : > { %v2565_v61 = vadd.f32 %v2564_v44, %v15729_v48  ;;  %v2566_v36 = vpop.f32.mrb[185].mxu0 }
 0x31e   : > { %v2567_v39 = vadd.f32 %v2566_v36, %v15729_v48  ;;  %v2568_v53 = vpop.f32.mrb[186].mxu0  ;;  %8339 = vmatprep.subr.bf16.mxu1 %v3602_v18  ;;  %v10871_v18 = vcombine.high %v3288_v49, %v3292_v1 }
 0x31f   : > { %v2569_v55 = vadd.f32 %v2568_v53, %v15730_v0  ;;  %v2570_v8 = vpop.f32.mrb[187].mxu0  ;;  %8340 = vmatpush1.bf16.msra.mxu1 %v3601_v10  ;;  %v2927_v57 = vmax.f32 %v2565_v61, 0.0  ;;  %v10862_v10 = vcombine.low %v3280_v19, %v3284_v2 }
 0x320   : > { %v2571_v7 = vadd.f32 %v2570_v8, %v15730_v0  ;;  %v2928_v27 = vmax.f32 %v2567_v39, 0.0  ;;  %v3107_v39 = vld [vmem:[#allocation8 + $0x360] sm:$0xff]  ;;  %v3300_v0 = vld [vmem:[#allocation8 + $0x968] sm:$0xff] }
 0x321   : > { %v2929_v60 = vmax.f32 %v2569_v55, 0.0  ;;  %7090 = vmatmul.mubr.bf16.gmra.mrb[36].mxu0 %v10652_v4 }
 0x322   : > { %v2930_v40 = vmax.f32 %v2571_v7, 0.0  ;;  %8003 = vmatmul.mubr.bf16.gmra.mrb[56].mxu1 %v10846_v12  ;;  %7099 = vmatprep.mubr.bf16.mxu0 %v10661_v41  ;;  %v3296_v41 = vld [vmem:[#allocation8 + $0x948] sm:$0xff] }
 0x323   : > { %v3603_v16 = vpack.c.bf16 %v2929_v60, %v2927_v57  ;;  %8012 = vmatprep.mubr.bf16.mxu1 %v10855_v29  ;;  %v10870_v57 = vcombine.low %v3288_v49, %v3292_v1  ;;  %v3119_v49 = vld [vmem:[#allocation8 + $0x3c0] sm:$0xff] }
 0x324   : > { %v2574_v45 = vpop.f32.mrb[188].mxu0  ;;  %v3604_v58 = vpack.c.bf16 %v2930_v40, %v2928_v27  ;;  %v3123_v1 = vld [vmem:[#allocation8 + $0x3e0] sm:$0xff] }
 0x325   : > { %v2575_v14 = vadd.f32 %v2574_v45, %v15731_v34  ;;  %v2576_v63 = vpop.f32.mrb[189].mxu0 }
 0x326   : > { %v2577_v51 = vadd.f32 %v2576_v63, %v15731_v34  ;;  %v2578_v47 = vpop.f32.mrb[190].mxu0  ;;  %8341 = vmatprep.subr.bf16.mxu1 %v3604_v58  ;;  %v3115_v34 = vld [vmem:[#allocation8 + $0x3a0] sm:$0xff]  ;;  %v3304_v63 = vld [vmem:[#allocation8 + $0x988] sm:$0xff] }
 0x327   : > { %v2579_v13 = vadd.f32 %v2578_v47, %v15732_v22  ;;  %v2580_v20 = vpop.f32.mrb[191].mxu0  ;;  %8342 = vmatpush1.bf16.msra.mxu1 %v3603_v16  ;;  %v2931_v32 = vmax.f32 %v2575_v14, 0.0  ;;  %v10879_v16 = vcombine.high %v3296_v41, %v3300_v0  ;;  %v15733_v47 = vld [vmem:[#allocation59_spill] sm:$0xff] }
 0x328   : > { %v2581_v25 = vadd.f32 %v2580_v20, %v15732_v22  ;;  %v2932_v54 = vmax.f32 %v2577_v51, 0.0  ;;  %v10878_v20 = vcombine.low %v3296_v41, %v3300_v0 }
 0x329   : > { %v2933_v56 = vmax.f32 %v2579_v13, 0.0  ;;  %7100 = vmatmul.mubr.bf16.gmra.mrb[40].mxu0 %v10660_v5  ;;  %v3308_v5 = vld [vmem:[#allocation8 + $0x9a8] sm:$0xff] }
 0x32a   : > { %v2934_v30 = vmax.f32 %v2581_v25, 0.0  ;;  %8013 = vmatmul.mubr.bf16.gmra.mrb[60].mxu1 %v10854_v43  ;;  %7109 = vmatprep.mubr.bf16.mxu0 %v10669_v52  ;;  %v15734_v25 = vld [vmem:[#allocation58_spill] sm:$0xff] }
 0x32b   : > { %v3605_v33 = vpack.c.bf16 %v2933_v56, %v2931_v32  ;;  %8022 = vmatprep.mubr.bf16.mxu1 %v10863_v21 }
 0x32c   : > { %v2584_v31 = vpop.f32.mrb[192].mxu0  ;;  %v3606_v62 = vpack.c.bf16 %v2934_v30, %v2932_v54  ;;  %v10887_v54 = vcombine.high %v3304_v63, %v3308_v5 }
 0x32d   : > { %v2585_v15 = vadd.f32 %v2584_v31, %v13690_v6  ;;  %v2586_v11 = vpop.f32.mrb[193].mxu0 }
 0x32e   : > { %v2587_v9 = vadd.f32 %v2586_v11, %v13690_v6  ;;  %v2588_v59 = vpop.f32.mrb[194].mxu0  ;;  %8343 = vmatprep.subr.bf16.mxu1 %v3606_v62  ;;  %v3103_v6 = vld [vmem:[#allocation8 + $0x340] sm:$0xff]  ;;  %v3312_v11 = vld [vmem:[#allocation8 + $0x9c8] sm:$0xff] }
 0x32f   : > { %v2589_v37 = vadd.f32 %v2588_v59, %v13687_v23  ;;  %v2590_v44 = vpop.f32.mrb[195].mxu0  ;;  %8344 = vmatpush1.bf16.msra.mxu1 %v3605_v33  ;;  %v2935_v26 = vmax.f32 %v2585_v15, 0.0  ;;  %v10685_v60 = vcombine.high %v3103_v6, %v3107_v39  ;;  %v10684_v52 = vcombine.low %v3103_v6, %v3107_v39  ;;  %v15735_v59 = vld [vmem:[#allocation61_spill] sm:$0xff] }
 0x330   : > { %v2591_v46 = vadd.f32 %v2590_v44, %v13687_v23  ;;  %v2936_v61 = vmax.f32 %v2587_v9, 0.0  ;;  %v10676_v23 = vcombine.low %v3095_v38, %v3099_v17 }
 0x331   : > { %v2937_v48 = vmax.f32 %v2589_v37, 0.0  ;;  %7110 = vmatmul.mubr.bf16.gmra.mrb[44].mxu0 %v10668_v50  ;;  %v3316_v50 = vld [vmem:[#allocation8 + $0x9e8] sm:$0xff] }
 0x332   : > { %v2938_v36 = vmax.f32 %v2591_v46, 0.0  ;;  %8023 = vmatmul.mubr.bf16.gmra.mrb[64].mxu1 %v10862_v10  ;;  %7119 = vmatprep.mubr.bf16.mxu0 %v10677_v35  ;;  %v10886_v46 = vcombine.low %v3304_v63, %v3308_v5  ;;  %v10895_v6 = vcombine.high %v3312_v11, %v3316_v50 }
 0x333   : > { %v14387_v4 = vpack.c.bf16 %v2937_v48, %v2935_v26  ;;  %8032 = vmatprep.mubr.bf16.mxu1 %v10871_v18  ;;  %v10701_v26 = vcombine.high %v3119_v49, %v3123_v1  ;;  %v15736_v48 = vld [vmem:[#allocation60_spill] sm:$0xff] }
 0x334   : > { %v2594_v53 = vpop.f32.mrb[196].mxu0  ;;  %v3608_v12 = vpack.c.bf16 %v2938_v36, %v2936_v61 }
 0x335   : > { %v2595_v55 = vadd.f32 %v2594_v53, %v13708_v3  ;;  %v2596_v8 = vpop.f32.mrb[197].mxu0 }
 0x336   : > { %v2597_v29 = vadd.f32 %v2596_v8, %v13708_v3  ;;  %v2598_v7 = vpop.f32.mrb[198].mxu0  ;;  %8986 = vmatprep.subr.bf16.mxu1 %v3608_v12  ;;  %v3111_v3 = vld [vmem:[#allocation8 + $0x380] sm:$0xff] }
 0x337   : > { %v2599_v27 = vadd.f32 %v2598_v7, %v13703_v28  ;;  %v2600_v40 = vpop.f32.mrb[199].mxu0  ;;  %v2939_v42 = vmax.f32 %v2595_v55, 0.0  ;;  %v10693_v21 = vcombine.high %v3111_v3, %v3115_v34  ;;  %v10692_v37 = vcombine.low %v3111_v3, %v3115_v34  ;;  %v3127_v8 = vld [vmem:[#allocation8 + $0x400] sm:$0xff]  ;;  %v3320_v7 = vld [vmem:[#allocation8 + $0xa08] sm:$0xff] }
 0x338   : > { %v2601_v24 = vadd.f32 %v2600_v40, %v13703_v28  ;;  %v2940_v58 = vmax.f32 %v2597_v29, 0.0  ;;  %v15738_v3 = vld [vmem:[#allocation62_spill] sm:$0xff] }
 0x339   : > { %v2941_v45 = vmax.f32 %v2599_v27, 0.0  ;;  %7120 = vmatmul.mubr.bf16.gmra.mrb[48].mxu0 %v10676_v23  ;;  %v3131_v23 = vld [vmem:[#allocation8 + $0x420] sm:$0xff] }
 0x33a   : > { %v2942_v19 = vmax.f32 %v2601_v24, 0.0  ;;  %8033 = vmatmul.mubr.bf16.gmra.mrb[68].mxu1 %v10870_v57  ;;  %7129 = vmatprep.mubr.bf16.mxu0 %v10685_v60  ;;  %v3324_v57 = vld [vmem:[#allocation8 + $0xa28] sm:$0xff]  ;;  %v10700_v24 = vcombine.low %v3119_v49, %v3123_v1 }
 0x33b   : > { %v14393_v2 = vpack.c.bf16 %v2941_v45, %v2939_v42  ;;  %8042 = vmatprep.mubr.bf16.mxu1 %v10879_v16  ;;  %v15737_v27 = vld [vmem:[#allocation63_spill] sm:$0xff]  ;;  %v10903_v63 = vcombine.high %v3320_v7, %v3324_v57  ;;  %v10902_v49 = vcombine.low %v3320_v7, %v3324_v57  ;;  %v15742_v57 = vld [vmem:[#allocation66_spill] sm:$0xff] }
 0x33c   : > { %v2604_v14 = vpop.f32.mrb[200].mxu0  ;;  %v14395_v51 = vpack.c.bf16 %v2942_v19, %v2940_v58  ;;  %v10894_v58 = vcombine.low %v3312_v11, %v3316_v50  ;;  %v10709_v19 = vcombine.high %v3127_v8, %v3131_v23 }
 0x33d   : > { %v2605_v43 = vadd.f32 %v2604_v14, %v15733_v47  ;;  %v2606_v28 = vpop.f32.mrb[201].mxu0 }
 0x33e   : > { %v2607_v22 = vadd.f32 %v2606_v28, %v15733_v47  ;;  %v2608_v13 = vpop.f32.mrb[202].mxu0 }
 0x33f   : > { %v2609_v32 = vadd.f32 %v2608_v13, %v15734_v25  ;;  %v2610_v56 = vpop.f32.mrb[203].mxu0  ;;  %v2943_v33 = vmax.f32 %v2605_v43, 0.0  ;;  %v3135_v13 = vld [vmem:[#allocation8 + $0x440] sm:$0xff] }
 0x340   : > { %v2611_v30 = vadd.f32 %v2610_v56, %v15734_v25  ;;  %v2944_v17 = vmax.f32 %v2607_v22, 0.0  ;;  %v3328_v25 = vld [vmem:[#allocation8 + $0xa48] sm:$0xff] }
 0x341   : > { %v2945_v38 = vmax.f32 %v2609_v32, 0.0  ;;  %7130 = vmatmul.mubr.bf16.gmra.mrb[52].mxu0 %v10684_v52  ;;  %v3332_v32 = vld [vmem:[#allocation8 + $0xa68] sm:$0xff] }
 0x342   : > { %v2946_v31 = vmax.f32 %v2611_v30, 0.0  ;;  %8043 = vmatmul.mubr.bf16.gmra.mrb[72].mxu1 %v10878_v20  ;;  %7139 = vmatprep.mubr.bf16.mxu0 %v10693_v21  ;;  %v3139_v20 = vld [vmem:[#allocation8 + $0x460] sm:$0xff] }
 0x343   : > { %v14401_v62 = vpack.c.bf16 %v2945_v38, %v2943_v33  ;;  %8052 = vmatprep.mubr.bf16.mxu1 %v10887_v54  ;;  %v15739_v54 = vld [vmem:[#allocation65_spill] sm:$0xff]  ;;  %v10708_v38 = vcombine.low %v3127_v8, %v3131_v23  ;;  %v10717_v1 = vcombine.high %v3135_v13, %v3139_v20 }
 0x344   : > { %v2614_v15 = vpop.f32.mrb[204].mxu0  ;;  %v14403_v9 = vpack.c.bf16 %v2946_v31, %v2944_v17 }
 0x345   : > { %v2615_v10 = vadd.f32 %v2614_v15, %v15735_v59  ;;  %v2616_v35 = vpop.f32.mrb[205].mxu0  ;;  %v15740_v15 = vld [vmem:[#allocation64_spill] sm:$0xff] }
 0x346   : > { %v2617_v44 = vadd.f32 %v2616_v35, %v15735_v59  ;;  %v2618_v18 = vpop.f32.mrb[206].mxu0  ;;  %v10911_v59 = vcombine.high %v3328_v25, %v3332_v32 }
 0x347   : > { %v2619_v61 = vadd.f32 %v2618_v18, %v15736_v48  ;;  %v2620_v36 = vpop.f32.mrb[207].mxu0  ;;  %v2947_v53 = vmax.f32 %v2615_v10, 0.0 }
 0x348   : > { %v2621_v39 = vadd.f32 %v2620_v36, %v15736_v48  ;;  %v2948_v41 = vmax.f32 %v2617_v44, 0.0  ;;  %v3147_v48 = vld [vmem:[#allocation8 + $0x4a0] sm:$0xff]  ;;  %v3336_v36 = vld [vmem:[#allocation8 + $0xa88] sm:$0xff] }
 0x349   : > { %v2949_v12 = vmax.f32 %v2619_v61, 0.0  ;;  %7140 = vmatmul.mubr.bf16.gmra.mrb[56].mxu0 %v10692_v37 }
 0x34a   : > { %v2950_v0 = vmax.f32 %v2621_v39, 0.0  ;;  %8053 = vmatmul.mubr.bf16.gmra.mrb[76].mxu1 %v10886_v46  ;;  %7149 = vmatprep.mubr.bf16.mxu0 %v10701_v26  ;;  %v3143_v26 = vld [vmem:[#allocation8 + $0x480] sm:$0xff] }
 0x34b   : > { %v14409_v55 = vpack.c.bf16 %v2949_v12, %v2947_v53  ;;  %8062 = vmatprep.mubr.bf16.mxu1 %v10895_v6  ;;  %v3340_v6 = vld [vmem:[#allocation8 + $0xaa8] sm:$0xff]  ;;  %v10725_v7 = vcombine.high %v3143_v26, %v3147_v48 }
 0x34c   : > { %v2624_v29 = vpop.f32.mrb[208].mxu0  ;;  %v14411_v60 = vpack.c.bf16 %v2950_v0, %v2948_v41  ;;  %v15741_v53 = vld [vmem:[#allocation67_spill] sm:$0xff]  ;;  %v10716_v0 = vcombine.low %v3135_v13, %v3139_v20  ;;  %v10724_v20 = vcombine.low %v3143_v26, %v3147_v48 }
 0x34d   : > { %v2625_v40 = vadd.f32 %v2624_v29, %v15737_v27  ;;  %v2626_v16 = vpop.f32.mrb[209].mxu0  ;;  %v10910_v29 = vcombine.low %v3328_v25, %v3332_v32  ;;  %v10918_v32 = vcombine.low %v3336_v36, %v3340_v6  ;;  %v15745_v26 = vld [vmem:[#allocation71_spill] sm:$0xff] }
 0x34e   : > { %v2627_v42 = vadd.f32 %v2626_v16, %v15737_v27  ;;  %v2628_v45 = vpop.f32.mrb[210].mxu0  ;;  %v10919_v16 = vcombine.high %v3336_v36, %v3340_v6 }
 0x34f   : > { %v2629_v34 = vadd.f32 %v2628_v45, %v15738_v3  ;;  %v2630_v14 = vpop.f32.mrb[211].mxu0  ;;  %v2951_v47 = vmax.f32 %v2625_v40, 0.0 }
 0x350   : > { %v2631_v5 = vadd.f32 %v2630_v14, %v15738_v3  ;;  %v2952_v28 = vmax.f32 %v2627_v42, 0.0  ;;  %v3155_v14 = vld [vmem:[#allocation8 + $0x4e0] sm:$0xff] }
 0x351   : > { %v2953_v43 = vmax.f32 %v2629_v34, 0.0  ;;  %7150 = vmatmul.mubr.bf16.gmra.mrb[60].mxu0 %v10700_v24  ;;  %v3151_v34 = vld [vmem:[#allocation8 + $0x4c0] sm:$0xff] }
 0x352   : > { %v2954_v52 = vmax.f32 %v2631_v5, 0.0  ;;  %8063 = vmatmul.mubr.bf16.gmra.mrb[80].mxu1 %v10894_v58  ;;  %7159 = vmatprep.mubr.bf16.mxu0 %v10709_v19  ;;  %v3344_v5 = vld [vmem:[#allocation8 + $0xac8] sm:$0xff]  ;;  %v10732_v36 = vcombine.low %v3151_v34, %v3155_v14 }
 0x353   : > { %v14417_v22 = vpack.c.bf16 %v2953_v43, %v2951_v47  ;;  %8072 = vmatprep.mubr.bf16.mxu1 %v10903_v63  ;;  %v3348_v47 = vld [vmem:[#allocation8 + $0xae8] sm:$0xff] }
 0x354   : > { %v2634_v21 = vpop.f32.mrb[212].mxu0  ;;  %v14419_v56 = vpack.c.bf16 %v2954_v52, %v2952_v28  ;;  %v15743_v28 = vld [vmem:[#allocation69_spill] sm:$0xff] }
 0x355   : > { %v2635_v30 = vadd.f32 %v2634_v21, %v15739_v54  ;;  %v2636_v33 = vpop.f32.mrb[213].mxu0 }
 0x356   : > { %v2637_v17 = vadd.f32 %v2636_v33, %v15739_v54  ;;  %v2638_v31 = vpop.f32.mrb[214].mxu0  ;;  %v10733_v54 = vcombine.high %v3151_v34, %v3155_v14  ;;  %v3364_v34 = vld [vmem:[#allocation8 + $0xb68] sm:$0xff] }
 0x357   : > { %v2639_v11 = vadd.f32 %v2638_v31, %v15740_v15  ;;  %v2640_v50 = vpop.f32.mrb[215].mxu0  ;;  %v2955_v35 = vmax.f32 %v2635_v30, 0.0  ;;  %v15744_v30 = vld [vmem:[#allocation68_spill] sm:$0xff] }
 0x358   : > { %v2641_v10 = vadd.f32 %v2640_v50, %v15740_v15  ;;  %v2956_v44 = vmax.f32 %v2637_v17, 0.0  ;;  %v10927_v17 = vcombine.high %v3344_v5, %v3348_v47 }
 0x359   : > { %v2957_v37 = vmax.f32 %v2639_v11, 0.0  ;;  %7160 = vmatmul.mubr.bf16.gmra.mrb[64].mxu0 %v10708_v38 }
 0x35a   : > { %v2958_v18 = vmax.f32 %v2641_v10, 0.0  ;;  %8073 = vmatmul.mubr.bf16.gmra.mrb[84].mxu1 %v10902_v49  ;;  %7169 = vmatprep.mubr.bf16.mxu0 %v10717_v1  ;;  %v3163_v10 = vld [vmem:[#allocation8 + $0x520] sm:$0xff] }
 0x35b   : > { %v14425_v46 = vpack.c.bf16 %v2957_v37, %v2955_v35  ;;  %8082 = vmatprep.mubr.bf16.mxu1 %v10911_v59  ;;  %v3159_v59 = vld [vmem:[#allocation8 + $0x500] sm:$0xff]  ;;  %v3352_v37 = vld [vmem:[#allocation8 + $0xb08] sm:$0xff] }
 0x35c   : > { %v2644_v61 = vpop.f32.mrb[216].mxu0  ;;  %v14427_v39 = vpack.c.bf16 %v2958_v18, %v2956_v44  ;;  %v3356_v44 = vld [vmem:[#allocation8 + $0xb28] sm:$0xff] }
 0x35d   : > { %v2645_v12 = vadd.f32 %v2644_v61, %v15741_v53  ;;  %v2646_v41 = vpop.f32.mrb[217].mxu0 }
 0x35e   : > { %v2647_v8 = vadd.f32 %v2646_v41, %v15741_v53  ;;  %v2648_v23 = vpop.f32.mrb[218].mxu0  ;;  %v10741_v41 = vcombine.high %v3159_v59, %v3163_v10 }
 0x35f   : > { %v2649_v27 = vadd.f32 %v2648_v23, %v15742_v57  ;;  %v2650_v40 = vpop.f32.mrb[219].mxu0  ;;  %v2959_v42 = vmax.f32 %v2645_v12, 0.0  ;;  %v10926_v12 = vcombine.low %v3344_v5, %v3348_v47 }
 0x360   : > { %v2651_v24 = vadd.f32 %v2650_v40, %v15742_v57  ;;  %v2960_v58 = vmax.f32 %v2647_v8, 0.0 }
 0x361   : > { %v2961_v45 = vmax.f32 %v2649_v27, 0.0  ;;  %7170 = vmatmul.mubr.bf16.gmra.mrb[68].mxu0 %v10716_v0  ;;  %v15746_v0 = vld [vmem:[#allocation70_spill] sm:$0xff] }
 0x362   : > { %v2962_v19 = vmax.f32 %v2651_v24, 0.0  ;;  %8083 = vmatmul.mubr.bf16.gmra.mrb[88].mxu1 %v10910_v29  ;;  %7179 = vmatprep.mubr.bf16.mxu0 %v10725_v7  ;;  %v10935_v29 = vcombine.high %v3352_v37, %v3356_v44 }
 0x363   : > { %v14433_v3 = vpack.c.bf16 %v2961_v45, %v2959_v42  ;;  %8092 = vmatprep.mubr.bf16.mxu1 %v10919_v16  ;;  %v3167_v42 = vld [vmem:[#allocation8 + $0x540] sm:$0xff] }
 0x364   : > { %v2654_v63 = vpop.f32.mrb[220].mxu0  ;;  %v14435_v43 = vpack.c.bf16 %v2962_v19, %v2960_v58  ;;  %v3171_v45 = vld [vmem:[#allocation8 + $0x560] sm:$0xff]  ;;  %v3360_v19 = vld [vmem:[#allocation8 + $0xb48] sm:$0xff] }
 0x365   : > { %v2655_v52 = vadd.f32 %v2654_v63, %v15743_v28  ;;  %v2656_v13 = vpop.f32.mrb[221].mxu0  ;;  %v15747_v63 = vld [vmem:[#allocation73_spill] sm:$0xff] }
 0x366   : > { %v2657_v21 = vadd.f32 %v2656_v13, %v15743_v28  ;;  %v2658_v25 = vpop.f32.mrb[222].mxu0  ;;  %v10740_v28 = vcombine.low %v3159_v59, %v3163_v10  ;;  %v3368_v10 = vld [vmem:[#allocation8 + $0xb88] sm:$0xff] }
 0x367   : > { %v2659_v33 = vadd.f32 %v2658_v25, %v15744_v30  ;;  %v2660_v38 = vpop.f32.mrb[223].mxu0  ;;  %v2963_v49 = vmax.f32 %v2655_v52, 0.0  ;;  %v15748_v25 = vld [vmem:[#allocation72_spill] sm:$0xff] }
 0x368   : > { %v2661_v31 = vadd.f32 %v2660_v38, %v15744_v30  ;;  %v2964_v15 = vmax.f32 %v2657_v21, 0.0  ;;  %v10749_v21 = vcombine.high %v3167_v42, %v3171_v45  ;;  %v10943_v30 = vcombine.high %v3360_v19, %v3364_v34 }
 0x369   : > { %v2965_v1 = vmax.f32 %v2659_v33, 0.0  ;;  %7180 = vmatmul.mubr.bf16.gmra.mrb[72].mxu0 %v10724_v20  ;;  %v10934_v20 = vcombine.low %v3352_v37, %v3356_v44  ;;  %v15749_v44 = vld [vmem:[#allocation75_spill] sm:$0xff] }
 0x36a   : > { %v2966_v11 = vmax.f32 %v2661_v31, 0.0  ;;  %8093 = vmatmul.mubr.bf16.gmra.mrb[92].mxu1 %v10918_v32  ;;  %7189 = vmatprep.mubr.bf16.mxu0 %v10733_v54 }
 0x36b   : > { %v14441_v50 = vpack.c.bf16 %v2965_v1, %v2963_v49  ;;  %8102 = vmatprep.mubr.bf16.mxu1 %v10927_v17 }
 0x36c   : > { %v2664_v35 = vpop.f32.mrb[224].mxu0  ;;  %v14443_v18 = vpack.c.bf16 %v2966_v11, %v2964_v15  ;;  %v3175_v15 = vld [vmem:[#allocation8 + $0x580] sm:$0xff] }
 0x36d   : > { %v2665_v48 = vadd.f32 %v2664_v35, %v15745_v26  ;;  %v2666_v61 = vpop.f32.mrb[225].mxu0  ;;  %v3179_v11 = vld [vmem:[#allocation8 + $0x5a0] sm:$0xff]  ;;  %v3372_v35 = vld [vmem:[#allocation8 + $0xba8] sm:$0xff] }
 0x36e   : > { %v2667_v6 = vadd.f32 %v2666_v61, %v15745_v26  ;;  %v2668_v53 = vpop.f32.mrb[226].mxu0  ;;  %v10748_v61 = vcombine.low %v3167_v42, %v3171_v45  ;;  %v3183_v42 = vld [vmem:[#allocation8 + $0x5c0] sm:$0xff] }
 0x36f   : > { %v2669_v8 = vadd.f32 %v2668_v53, %v15746_v0  ;;  %v2670_v23 = vpop.f32.mrb[227].mxu0  ;;  %v2967_v57 = vmax.f32 %v2665_v48, 0.0  ;;  %v10942_v53 = vcombine.low %v3360_v19, %v3364_v34  ;;  %v3187_v45 = vld [vmem:[#allocation8 + $0x5e0] sm:$0xff]  ;;  %v3376_v19 = vld [vmem:[#allocation8 + $0xbc8] sm:$0xff] }
 0x370   : > { %v2671_v7 = vadd.f32 %v2670_v23, %v15746_v0  ;;  %v2968_v40 = vmax.f32 %v2667_v6, 0.0  ;;  %v10951_v23 = vcombine.high %v3368_v10, %v3372_v35  ;;  %v3380_v34 = vld [vmem:[#allocation8 + $0xbe8] sm:$0xff] }
 0x371   : > { %v2969_v27 = vmax.f32 %v2669_v8, 0.0  ;;  %7190 = vmatmul.mubr.bf16.gmra.mrb[76].mxu0 %v10732_v36 }
 0x372   : > { %v2970_v16 = vmax.f32 %v2671_v7, 0.0  ;;  %8103 = vmatmul.mubr.bf16.gmra.mrb[96].mxu1 %v10926_v12  ;;  %7199 = vmatprep.mubr.bf16.mxu0 %v10741_v41  ;;  %v10757_v12 = vcombine.high %v3175_v15, %v3179_v11  ;;  %v15750_v41 = vld [vmem:[#allocation74_spill] sm:$0xff] }
 0x373   : > { %v14449_v24 = vpack.c.bf16 %v2969_v27, %v2967_v57  ;;  %8112 = vmatprep.mubr.bf16.mxu1 %v10935_v29 }
 0x374   : > { %v2674_v58 = vpop.f32.mrb[228].mxu0  ;;  %v14451_v14 = vpack.c.bf16 %v2970_v16, %v2968_v40 }
 0x375   : > { %v2675_v5 = vadd.f32 %v2674_v58, %v15747_v63  ;;  %v2676_v47 = vpop.f32.mrb[229].mxu0 }
 0x376   : > { %v2677_v52 = vadd.f32 %v2676_v47, %v15747_v63  ;;  %v2678_v13 = vpop.f32.mrb[230].mxu0 }
 0x377   : > { %v2679_v32 = vadd.f32 %v2678_v13, %v15748_v25  ;;  %v2680_v54 = vpop.f32.mrb[231].mxu0  ;;  %v2971_v38 = vmax.f32 %v2675_v5, 0.0  ;;  %v15751_v5 = vld [vmem:[#allocation77_spill] sm:$0xff] }
 0x378   : > { %v2681_v33 = vadd.f32 %v2680_v54, %v15748_v25  ;;  %v2972_v31 = vmax.f32 %v2677_v52, 0.0  ;;  %v10756_v52 = vcombine.low %v3175_v15, %v3179_v11  ;;  %v10765_v25 = vcombine.high %v3183_v42, %v3187_v45  ;;  %v3191_v15 = vld [vmem:[#allocation8 + $0x600] sm:$0xff] }
 0x379   : > { %v2973_v17 = vmax.f32 %v2679_v32, 0.0  ;;  %7200 = vmatmul.mubr.bf16.gmra.mrb[80].mxu0 %v10740_v28  ;;  %v15752_v32 = vld [vmem:[#allocation76_spill] sm:$0xff]  ;;  %v3195_v11 = vld [vmem:[#allocation8 + $0x620] sm:$0xff] }
 0x37a   : > { %v2974_v49 = vmax.f32 %v2681_v33, 0.0  ;;  %8113 = vmatmul.mubr.bf16.gmra.mrb[100].mxu1 %v10934_v20  ;;  %7209 = vmatprep.mubr.bf16.mxu0 %v10749_v21  ;;  %v10950_v21 = vcombine.low %v3368_v10, %v3372_v35  ;;  %v10959_v33 = vcombine.high %v3376_v19, %v3380_v34  ;;  %v3384_v35 = vld [vmem:[#allocation8 + $0xc08] sm:$0xff] }
 0x37b   : > { %v14457_v1 = vpack.c.bf16 %v2973_v17, %v2971_v38  ;;  %8122 = vmatprep.mubr.bf16.mxu1 %v10943_v30 }
 0x37c   : > { %v2684_v59 = vpop.f32.mrb[232].mxu0  ;;  %v14459_v37 = vpack.c.bf16 %v2974_v49, %v2972_v31 }
 0x37d   : > { %v2685_v26 = vadd.f32 %v2684_v59, %v15749_v44  ;;  %v2686_v48 = vpop.f32.mrb[233].mxu0 }
 0x37e   : > { %v2687_v36 = vadd.f32 %v2686_v48, %v15749_v44  ;;  %v2688_v6 = vpop.f32.mrb[234].mxu0 }
 0x37f   : > { %v2689_v0 = vadd.f32 %v2688_v6, %v15750_v41  ;;  %v2690_v8 = vpop.f32.mrb[235].mxu0  ;;  %v2975_v7 = vmax.f32 %v2685_v26, 0.0  ;;  %v3388_v26 = vld [vmem:[#allocation8 + $0xc28] sm:$0xff] }
 0x380   : > { %v2691_v29 = vadd.f32 %v2690_v8, %v15750_v41  ;;  %v2976_v27 = vmax.f32 %v2687_v36, 0.0  ;;  %v10773_v8 = vcombine.high %v3191_v15, %v3195_v11 }
 0x381   : > { %v2977_v57 = vmax.f32 %v2689_v0, 0.0  ;;  %7210 = vmatmul.mubr.bf16.gmra.mrb[84].mxu0 %v10748_v61  ;;  %v15753_v61 = vld [vmem:[#allocation79_spill] sm:$0xff]  ;;  %v10958_v0 = vcombine.low %v3376_v19, %v3380_v34 }
 0x382   : > { %v2978_v40 = vmax.f32 %v2691_v29, 0.0  ;;  %8123 = vmatmul.mubr.bf16.gmra.mrb[104].mxu1 %v10942_v53  ;;  %7219 = vmatprep.mubr.bf16.mxu0 %v10757_v12  ;;  %v10764_v53 = vcombine.low %v3183_v42, %v3187_v45  ;;  %v3199_v42 = vld [vmem:[#allocation8 + $0x640] sm:$0xff]  ;;  %v3392_v34 = vld [vmem:[#allocation8 + $0xc48] sm:$0xff] }
 0x383   : > { %v14465_v16 = vpack.c.bf16 %v2977_v57, %v2975_v7  ;;  %8132 = vmatprep.mubr.bf16.mxu1 %v10951_v23  ;;  %v15754_v23 = vld [vmem:[#allocation78_spill] sm:$0xff]  ;;  %v10967_v57 = vcombine.high %v3384_v35, %v3388_v26 }
 0x384   : > { %v2694_v58 = vpop.f32.mrb[236].mxu0  ;;  %v14467_v63 = vpack.c.bf16 %v2978_v40, %v2976_v27  ;;  %v3203_v45 = vld [vmem:[#allocation8 + $0x660] sm:$0xff] }
 0x385   : > { %v2695_v47 = vadd.f32 %v2694_v58, %v15751_v5  ;;  %v2696_v28 = vpop.f32.mrb[237].mxu0 }
 0x386   : > { %v2697_v13 = vadd.f32 %v2696_v28, %v15751_v5  ;;  %v2698_v20 = vpop.f32.mrb[238].mxu0 }
 0x387   : > { %v2699_v54 = vadd.f32 %v2698_v20, %v15752_v32  ;;  %v2700_v30 = vpop.f32.mrb[239].mxu0  ;;  %v2979_v17 = vmax.f32 %v2695_v47, 0.0  ;;  %v15755_v20 = vld [vmem:[#allocation81_spill] sm:$0xff] }
 0x388   : > { %v2701_v38 = vadd.f32 %v2700_v30, %v15752_v32  ;;  %v2980_v49 = vmax.f32 %v2697_v13, 0.0  ;;  %v10772_v32 = vcombine.low %v3191_v15, %v3195_v11  ;;  %v3207_v15 = vld [vmem:[#allocation8 + $0x680] sm:$0xff] }
 0x389   : > { %v2981_v31 = vmax.f32 %v2699_v54, 0.0  ;;  %7220 = vmatmul.mubr.bf16.gmra.mrb[88].mxu0 %v10756_v52  ;;  %v3396_v52 = vld [vmem:[#allocation8 + $0xc68] sm:$0xff]  ;;  %v3211_v11 = vld [vmem:[#allocation8 + $0x6a0] sm:$0xff] }
 0x38a   : > { %v2982_v59 = vmax.f32 %v2701_v38, 0.0  ;;  %8133 = vmatmul.mubr.bf16.gmra.mrb[108].mxu1 %v10950_v21  ;;  %7229 = vmatprep.mubr.bf16.mxu0 %v10765_v25  ;;  %v10781_v38 = vcombine.high %v3199_v42, %v3203_v45 }
 0x38b   : > { %v14473_v44 = vpack.c.bf16 %v2981_v31, %v2979_v17  ;;  %8142 = vmatprep.mubr.bf16.mxu1 %v10959_v33  ;;  %v10966_v33 = vcombine.low %v3384_v35, %v3388_v26  ;;  %v15756_v17 = vld [vmem:[#allocation80_spill] sm:$0xff] }
 0x38c   : > { %v2704_v10 = vpop.f32.mrb[240].mxu0  ;;  %v14475_v48 = vpack.c.bf16 %v2982_v59, %v2980_v49  ;;  %v10975_v59 = vcombine.high %v3392_v34, %v3396_v52  ;;  %v3400_v26 = vld [vmem:[#allocation8 + $0xc88] sm:$0xff] }
 0x38d   : > { %v2705_v36 = vadd.f32 %v2704_v10, %v15753_v61  ;;  %v2706_v6 = vpop.f32.mrb[241].mxu0 }
 0x38e   : > { %v2707_v12 = vadd.f32 %v2706_v6, %v15753_v61  ;;  %v2708_v41 = vpop.f32.mrb[242].mxu0 }
 0x38f   : > { %v2709_v29 = vadd.f32 %v2708_v41, %v15754_v23  ;;  %v2710_v7 = vpop.f32.mrb[243].mxu0  ;;  %v2983_v40 = vmax.f32 %v2705_v36, 0.0  ;;  %v3404_v41 = vld [vmem:[#allocation8 + $0xca8] sm:$0xff] }
 0x390   : > { %v2711_v27 = vadd.f32 %v2710_v7, %v15754_v23  ;;  %v2984_v5 = vmax.f32 %v2707_v12, 0.0  ;;  %v10780_v7 = vcombine.low %v3199_v42, %v3203_v45  ;;  %v3215_v42 = vld [vmem:[#allocation8 + $0x6c0] sm:$0xff] }
 0x391   : > { %v2985_v58 = vmax.f32 %v2709_v29, 0.0  ;;  %7230 = vmatmul.mubr.bf16.gmra.mrb[92].mxu0 %v10764_v53  ;;  %v3219_v45 = vld [vmem:[#allocation8 + $0x6e0] sm:$0xff] }
 0x392   : > { %v2986_v47 = vmax.f32 %v2711_v27, 0.0  ;;  %8143 = vmatmul.mubr.bf16.gmra.mrb[112].mxu1 %v10958_v0  ;;  %7239 = vmatprep.mubr.bf16.mxu0 %v10773_v8  ;;  %v15757_v8 = vld [vmem:[#allocation83_spill] sm:$0xff] }
 0x393   : > { %v14481_v28 = vpack.c.bf16 %v2985_v58, %v2983_v40  ;;  %8152 = vmatprep.mubr.bf16.mxu1 %v10967_v57  ;;  %v10974_v40 = vcombine.low %v3392_v34, %v3396_v52  ;;  %v10789_v58 = vcombine.high %v3207_v15, %v3211_v11  ;;  %v3408_v52 = vld [vmem:[#allocation8 + $0xcc8] sm:$0xff] }
 0x394   : > { %v2714_v19 = vpop.f32.mrb[244].mxu0  ;;  %v14483_v13 = vpack.c.bf16 %v2986_v47, %v2984_v5  ;;  %v15758_v5 = vld [vmem:[#allocation82_spill] sm:$0xff] }
 0x395   : > { %v2715_v21 = vadd.f32 %v2714_v19, %v15755_v20  ;;  %v2716_v25 = vpop.f32.mrb[245].mxu0 }
 0x396   : > { %v2717_v54 = vadd.f32 %v2716_v25, %v15755_v20  ;;  %v2718_v30 = vpop.f32.mrb[246].mxu0  ;;  %v10983_v20 = vcombine.high %v3400_v26, %v3404_v41 }
 0x397   : > { %v2719_v31 = vadd.f32 %v2718_v30, %v15756_v17  ;;  %v2720_v49 = vpop.f32.mrb[247].mxu0  ;;  %v2987_v61 = vmax.f32 %v2715_v21, 0.0 }
 0x398   : > { %v2721_v10 = vadd.f32 %v2720_v49, %v15756_v17  ;;  %v2988_v6 = vmax.f32 %v2717_v54, 0.0 }
 0x399   : > { %v2989_v36 = vmax.f32 %v2719_v31, 0.0  ;;  %7240 = vmatmul.mubr.bf16.gmra.mrb[96].mxu0 %v10772_v32  ;;  %v15759_v31 = vld [vmem:[#allocation85_spill] sm:$0xff] }
 0x39a   : > { %v2990_v53 = vmax.f32 %v2721_v10, 0.0  ;;  %8153 = vmatmul.mubr.bf16.gmra.mrb[116].mxu1 %v10966_v33  ;;  %7249 = vmatprep.mubr.bf16.mxu0 %v10781_v38  ;;  %v3412_v38 = vld [vmem:[#allocation8 + $0xce8] sm:$0xff]  ;;  %v10788_v10 = vcombine.low %v3207_v15, %v3211_v11  ;;  %v3223_v15 = vld [vmem:[#allocation8 + $0x700] sm:$0xff] }
 0x39b   : > { %v14489_v12 = vpack.c.bf16 %v2989_v36, %v2987_v61  ;;  %8162 = vmatprep.mubr.bf16.mxu1 %v10975_v59  ;;  %v3227_v11 = vld [vmem:[#allocation8 + $0x720] sm:$0xff] }
 0x39c   : > { %v2724_v35 = vpop.f32.mrb[248].mxu0  ;;  %v14491_v0 = vpack.c.bf16 %v2990_v53, %v2988_v6  ;;  %v10982_v6 = vcombine.low %v3400_v26, %v3404_v41  ;;  %v10797_v53 = vcombine.high %v3215_v42, %v3219_v45  ;;  %v3416_v26 = vld [vmem:[#allocation8 + $0xd08] sm:$0xff] }
 0x39d   : > { %v2725_v23 = vadd.f32 %v2724_v35, %v15757_v8  ;;  %v2726_v29 = vpop.f32.mrb[249].mxu0  ;;  %v15760_v35 = vld [vmem:[#allocation84_spill] sm:$0xff] }
 0x39e   : > { %v2727_v57 = vadd.f32 %v2726_v29, %v15757_v8  ;;  %v2728_v27 = vpop.f32.mrb[250].mxu0  ;;  %v10991_v29 = vcombine.high %v3408_v52, %v3412_v38  ;;  %v3420_v41 = vld [vmem:[#allocation8 + $0xd28] sm:$0xff] }
 0x39f   : > { %v2729_v47 = vadd.f32 %v2728_v27, %v15758_v5  ;;  %v2730_v19 = vpop.f32.mrb[251].mxu0  ;;  %v2991_v25 = vmax.f32 %v2725_v23, 0.0 }
 0x3a0   : > { %v2731_v21 = vadd.f32 %v2730_v19, %v15758_v5  ;;  %v2992_v54 = vmax.f32 %v2727_v57, 0.0  ;;  %v10796_v19 = vcombine.low %v3215_v42, %v3219_v45  ;;  %v3239_v42 = vld [vmem:[#allocation8 + $0x780] sm:$0xff] }
 0x3a1   : > { %v2993_v32 = vmax.f32 %v2729_v47, 0.0  ;;  %7250 = vmatmul.mubr.bf16.gmra.mrb[100].mxu0 %v10780_v7  ;;  %v3243_v45 = vld [vmem:[#allocation8 + $0x7a0] sm:$0xff] }
 0x3a2   : > { %v2994_v30 = vmax.f32 %v2731_v21, 0.0  ;;  %8163 = vmatmul.mubr.bf16.gmra.mrb[120].mxu1 %v10974_v40  ;;  %7259 = vmatprep.mubr.bf16.mxu0 %v10789_v58  ;;  %v10805_v21 = vcombine.high %v3223_v15, %v3227_v11 }
 0x3a3   : > { %v14497_v33 = vpack.c.bf16 %v2993_v32, %v2991_v25  ;;  %8172 = vmatprep.mubr.bf16.mxu1 %v10983_v20  ;;  %v10990_v20 = vcombine.low %v3408_v52, %v3412_v38  ;;  %v10999_v25 = vcombine.high %v3416_v26, %v3420_v41  ;;  %v3231_v32 = vld [vmem:[#allocation8 + $0x740] sm:$0xff]  ;;  %v3432_v52 = vld [vmem:[#allocation8 + $0xd88] sm:$0xff] }
 0x3a4   : > { %v2734_v34 = vpop.f32.mrb[252].mxu0  ;;  %v14499_v17 = vpack.c.bf16 %v2994_v30, %v2992_v54  ;;  %v3235_v54 = vld [vmem:[#allocation8 + $0x760] sm:$0xff]  ;;  %v3424_v30 = vld [vmem:[#allocation8 + $0xd48] sm:$0xff] }
 0x3a5   : > { %v2735_v49 = vadd.f32 %v2734_v34, %v15759_v31  ;;  %v2736_v59 = vpop.f32.mrb[253].mxu0  ;;  %v3428_v34 = vld [vmem:[#allocation8 + $0xd68] sm:$0xff] }
 0x3a6   : > { %v2737_v61 = vadd.f32 %v2736_v59, %v15759_v31  ;;  %v2738_v36 = vpop.f32.mrb[254].mxu0  ;;  %v10804_v31 = vcombine.low %v3223_v15, %v3227_v11  ;;  %v10813_v59 = vcombine.high %v3231_v32, %v3235_v54  ;;  %v3436_v38 = vld [vmem:[#allocation8 + $0xda8] sm:$0xff]  ;;  %v3259_v15 = vld [vmem:[#allocation8 + $0x820] sm:$0xff] }
 0x3a7   : > { %v2739_v8 = vadd.f32 %v2738_v36, %v15760_v35  ;;  %v2740_v23 = vpop.f32.mrb[255].mxu0  ;;  %v2995_v57 = vmax.f32 %v2735_v49, 0.0  ;;  %v10998_v49 = vcombine.low %v3416_v26, %v3420_v41  ;;  %v11006_v36 = vcombine.low %v3424_v30, %v3428_v34  ;;  %v3448_v11 = vld [vmem:[#allocation8 + $0xe08] sm:$0xff] }
 0x3a8   : > { %v2741_v7 = vadd.f32 %v2740_v23, %v15760_v35  ;;  %v2996_v40 = vmax.f32 %v2737_v61, 0.0  ;;  %v10812_v61 = vcombine.low %v3231_v32, %v3235_v54  ;;  %v3247_v35 = vld [vmem:[#allocation8 + $0x7c0] sm:$0xff]  ;;  %v3440_v23 = vld [vmem:[#allocation8 + $0xdc8] sm:$0xff] }
 0x3a9   : > { %v2997_v27 = vmax.f32 %v2739_v8, 0.0  ;;  %7260 = vmatmul.mubr.bf16.gmra.mrb[104].mxu0 %v10788_v10  ;;  %v11007_v10 = vcombine.high %v3424_v30, %v3428_v34  ;;  %v3251_v8 = vld [vmem:[#allocation8 + $0x7e0] sm:$0xff]  ;;  %v3452_v26 = vld [vmem:[#allocation8 + $0xe28] sm:$0xff] }
 0x3aa   : > { %v2998_v58 = vmax.f32 %v2741_v7, 0.0  ;;  %8173 = vmatmul.mubr.bf16.gmra.mrb[124].mxu1 %v10982_v6  ;;  %7269 = vmatprep.mubr.bf16.mxu0 %v10797_v53  ;;  %v10821_v6 = vcombine.high %v3239_v42, %v3243_v45  ;;  %v11015_v53 = vcombine.high %v3432_v52, %v3436_v38  ;;  %v10820_v7 = vcombine.low %v3239_v42, %v3243_v45  ;;  %v3267_v32 = vld [vmem:[#allocation8 + $0x860] sm:$0xff]  ;;  %v3456_v54 = vld [vmem:[#allocation8 + $0xe48] sm:$0xff] }
 0x3ab   : > { %v14505_v5 = vpack.c.bf16 %v2997_v27, %v2995_v57  ;;  %8182 = vmatprep.mubr.bf16.mxu1 %v10991_v29  ;;  %v3444_v29 = vld [vmem:[#allocation8 + $0xde8] sm:$0xff]  ;;  %v11014_v57 = vcombine.low %v3432_v52, %v3436_v38  ;;  %v10829_v27 = vcombine.high %v3247_v35, %v3251_v8  ;;  %v10828_v41 = vcombine.low %v3247_v35, %v3251_v8  ;;  %v3275_v42 = vld [vmem:[#allocation8 + $0x8a0] sm:$0xff] }
 0x3ac   : > { %v14507_v47 = vpack.c.bf16 %v2998_v58, %v2996_v40  ;;  %v11023_v40 = vcombine.high %v3440_v23, %v3444_v29  ;;  %v3255_v58 = vld [vmem:[#allocation8 + $0x800] sm:$0xff]  ;;  %v3460_v30 = vld [vmem:[#allocation8 + $0xe68] sm:$0xff] }
 0x3ad   : > { %v10836_v34 = vcombine.low %v3255_v58, %v3259_v15  ;;  %v3464_v45 = vld [vmem:[#allocation8 + $0xe88] sm:$0xff]  ;;  %v3283_v35 = vld [vmem:[#allocation8 + $0x8e0] sm:$0xff] }
 0x3ae   : > { %v3468_v52 = vld [vmem:[#allocation8 + $0xea8] sm:$0xff] }
 0x3af   : > { %v3472_v8 = vld [vmem:[#allocation8 + $0xec8] sm:$0xff] }
 0x3b1   : > { %7270 = vmatmul.mubr.bf16.gmra.mrb[108].mxu0 %v10796_v19  ;;  %v11022_v19 = vcombine.low %v3440_v23, %v3444_v29  ;;  %v3476_v23 = vld [vmem:[#allocation8 + $0xee8] sm:$0xff] }
 0x3b2   : > { %8183 = vmatmul.mubr.bf16.gmra.mrb[128].mxu1 %v10990_v20  ;;  %7279 = vmatprep.mubr.bf16.mxu0 %v10805_v21  ;;  %v10837_v20 = vcombine.high %v3255_v58, %v3259_v15  ;;  %v11031_v21 = vcombine.high %v3448_v11, %v3452_v26  ;;  %v3291_v58 = vld [vmem:[#allocation8 + $0x920] sm:$0xff]  ;;  %v3480_v15 = vld [vmem:[#allocation8 + $0xf08] sm:$0xff] }
 0x3b3   : > { %8192 = vmatprep.mubr.bf16.mxu1 %v10999_v25  ;;  %v3263_v25 = vld [vmem:[#allocation8 + $0x840] sm:$0xff] }
 0x3b4   : > { %v10844_v38 = vcombine.low %v3263_v25, %v3267_v32 }
 0x3b9   : > { %7280 = vmatmul.mubr.bf16.gmra.mrb[112].mxu0 %v10804_v31  ;;  %v11030_v31 = vcombine.low %v3448_v11, %v3452_v26  ;;  %v3484_v11 = vld [vmem:[#allocation8 + $0xf28] sm:$0xff] }
 0x3ba   : > { %8193 = vmatmul.mubr.bf16.gmra.mrb[132].mxu1 %v10998_v49  ;;  %7289 = vmatprep.mubr.bf16.mxu0 %v10813_v59  ;;  %v10845_v49 = vcombine.high %v3263_v25, %v3267_v32  ;;  %v11039_v59 = vcombine.high %v3456_v54, %v3460_v30  ;;  %v3299_v25 = vld [vmem:[#allocation8 + $0x960] sm:$0xff]  ;;  %v3488_v32 = vld [vmem:[#allocation8 + $0xf48] sm:$0xff] }
 0x3bb   : > { %8202 = vmatprep.mubr.bf16.mxu1 %v11007_v10  ;;  %v3271_v10 = vld [vmem:[#allocation8 + $0x880] sm:$0xff] }
 0x3bc   : > { %v10852_v29 = vcombine.low %v3271_v10, %v3275_v42 }
 0x3c1   : > { %7290 = vmatmul.mubr.bf16.gmra.mrb[116].mxu0 %v10812_v61  ;;  %v11038_v61 = vcombine.low %v3456_v54, %v3460_v30  ;;  %v3492_v54 = vld [vmem:[#allocation8 + $0xf68] sm:$0xff] }
 0x3c2   : > { %8203 = vmatmul.mubr.bf16.gmra.mrb[136].mxu1 %v11006_v36  ;;  %7299 = vmatprep.mubr.bf16.mxu0 %v10821_v6  ;;  %v10853_v36 = vcombine.high %v3271_v10, %v3275_v42  ;;  %v11047_v6 = vcombine.high %v3464_v45, %v3468_v52  ;;  %v3307_v10 = vld [vmem:[#allocation8 + $0x9a0] sm:$0xff]  ;;  %v3496_v42 = vld [vmem:[#allocation8 + $0xf88] sm:$0xff] }
 0x3c3   : > { %8212 = vmatprep.mubr.bf16.mxu1 %v11015_v53  ;;  %v3279_v53 = vld [vmem:[#allocation8 + $0x8c0] sm:$0xff] }
 0x3c4   : > { %v10860_v26 = vcombine.low %v3279_v53, %v3283_v35 }
 0x3c9   : > { %7300 = vmatmul.mubr.bf16.gmra.mrb[120].mxu0 %v10820_v7  ;;  %v11046_v7 = vcombine.low %v3464_v45, %v3468_v52  ;;  %v3500_v45 = vld [vmem:[#allocation8 + $0xfa8] sm:$0xff] }
 0x3ca   : > { %8213 = vmatmul.mubr.bf16.gmra.mrb[140].mxu1 %v11014_v57  ;;  %7309 = vmatprep.mubr.bf16.mxu0 %v10829_v27  ;;  %v10861_v57 = vcombine.high %v3279_v53, %v3283_v35  ;;  %v11055_v27 = vcombine.high %v3472_v8, %v3476_v23  ;;  %v3315_v53 = vld [vmem:[#allocation8 + $0x9e0] sm:$0xff]  ;;  %v3504_v35 = vld [vmem:[#allocation8 + $0xfc8] sm:$0xff] }
 0x3cb   : > { %8222 = vmatprep.mubr.bf16.mxu1 %v11023_v40  ;;  %v3287_v40 = vld [vmem:[#allocation8 + $0x900] sm:$0xff] }
 0x3cc   : > { %v10868_v30 = vcombine.low %v3287_v40, %v3291_v58 }
 0x3d1   : > { %7310 = vmatmul.mubr.bf16.gmra.mrb[124].mxu0 %v10828_v41  ;;  %v11054_v41 = vcombine.low %v3472_v8, %v3476_v23  ;;  %v3508_v8 = vld [vmem:[#allocation8 + $0xfe8] sm:$0xff] }
 0x3d2   : > { %8223 = vmatmul.mubr.bf16.gmra.mrb[144].mxu1 %v11022_v19  ;;  %7319 = vmatprep.mubr.bf16.mxu0 %v10837_v20  ;;  %v10869_v19 = vcombine.high %v3287_v40, %v3291_v58  ;;  %v11063_v20 = vcombine.high %v3480_v15, %v3484_v11  ;;  %v3323_v40 = vld [vmem:[#allocation8 + $0xa20] sm:$0xff]  ;;  %v3001_v58 = vld [vmem:[#allocation8 + $0x10] sm:$0xff] }
 0x3d3   : > { %8232 = vmatprep.mubr.bf16.mxu1 %v11031_v21  ;;  %v3295_v21 = vld [vmem:[#allocation8 + $0x940] sm:$0xff] }
 0x3d4   : > { %v10876_v52 = vcombine.low %v3295_v21, %v3299_v25 }
 0x3d9   : > { %7320 = vmatmul.mubr.bf16.gmra.mrb[128].mxu0 %v10836_v34  ;;  %v11062_v34 = vcombine.low %v3480_v15, %v3484_v11  ;;  %v3005_v15 = vld [vmem:[#allocation8 + $0x30] sm:$0xff] }
 0x3da   : > { %8233 = vmatmul.mubr.bf16.gmra.mrb[148].mxu1 %v11030_v31  ;;  %7329 = vmatprep.mubr.bf16.mxu0 %v10845_v49  ;;  %v10877_v31 = vcombine.high %v3295_v21, %v3299_v25  ;;  %v11071_v49 = vcombine.high %v3488_v32, %v3492_v54  ;;  %v3331_v21 = vld [vmem:[#allocation8 + $0xa60] sm:$0xff]  ;;  %v3009_v25 = vld [vmem:[#allocation8 + $0x50] sm:$0xff] }
 0x3db   : > { %8242 = vmatprep.mubr.bf16.mxu1 %v11039_v59  ;;  %v3303_v59 = vld [vmem:[#allocation8 + $0x980] sm:$0xff] }
 0x3dc   : > { %v10884_v23 = vcombine.low %v3303_v59, %v3307_v10 }
 0x3e1   : > { %7330 = vmatmul.mubr.bf16.gmra.mrb[132].mxu0 %v10844_v38  ;;  %v11070_v38 = vcombine.low %v3488_v32, %v3492_v54  ;;  %v3013_v32 = vld [vmem:[#allocation8 + $0x70] sm:$0xff] }
 0x3e2   : > { %8243 = vmatmul.mubr.bf16.gmra.mrb[152].mxu1 %v11038_v61  ;;  %7339 = vmatprep.mubr.bf16.mxu0 %v10853_v36  ;;  %v10885_v61 = vcombine.high %v3303_v59, %v3307_v10  ;;  %v11079_v36 = vcombine.high %v3496_v42, %v3500_v45  ;;  %v3339_v59 = vld [vmem:[#allocation8 + $0xaa0] sm:$0xff]  ;;  %v3017_v10 = vld [vmem:[#allocation8 + $0x90] sm:$0xff] }
 0x3e3   : > { %8252 = vmatprep.mubr.bf16.mxu1 %v11047_v6  ;;  %v3311_v6 = vld [vmem:[#allocation8 + $0x9c0] sm:$0xff] }
 0x3e4   : > { %v10892_v11 = vcombine.low %v3311_v6, %v3315_v53 }
 0x3e9   : > { %7340 = vmatmul.mubr.bf16.gmra.mrb[136].mxu0 %v10852_v29  ;;  %v11078_v29 = vcombine.low %v3496_v42, %v3500_v45  ;;  %v3021_v42 = vld [vmem:[#allocation8 + $0xb0] sm:$0xff] }
 0x3ea   : > { %8253 = vmatmul.mubr.bf16.gmra.mrb[156].mxu1 %v11046_v7  ;;  %7349 = vmatprep.mubr.bf16.mxu0 %v10861_v57  ;;  %v10893_v7 = vcombine.high %v3311_v6, %v3315_v53  ;;  %v11087_v57 = vcombine.high %v3504_v35, %v3508_v8  ;;  %v3029_v6 = vld [vmem:[#allocation8 + $0xf0] sm:$0xff] }
 0x3eb   : > { %8262 = vmatprep.mubr.bf16.mxu1 %v11055_v27  ;;  %v3319_v27 = vld [vmem:[#allocation8 + $0xa00] sm:$0xff] }
 0x3ec   : > { %v10900_v54 = vcombine.low %v3319_v27, %v3323_v40 }
 0x3f1   : > { %7350 = vmatmul.mubr.bf16.gmra.mrb[140].mxu0 %v10860_v26  ;;  %v11086_v26 = vcombine.low %v3504_v35, %v3508_v8  ;;  %v10600_v35 = vcombine.low %v3017_v10, %v3021_v42 }
 0x3f2   : > { %8263 = vmatmul.mubr.bf16.gmra.mrb[160].mxu1 %v11054_v41  ;;  %7359 = vmatprep.mubr.bf16.mxu0 %v10869_v19  ;;  %v10901_v41 = vcombine.high %v3319_v27, %v3323_v40  ;;  %v10585_v19 = vcombine.high %v3001_v58, %v3005_v15  ;;  %v3045_v27 = vld [vmem:[#allocation8 + $0x170] sm:$0xff] }
 0x3f3   : > { %8272 = vmatprep.mubr.bf16.mxu1 %v11063_v20  ;;  %v3327_v20 = vld [vmem:[#allocation8 + $0xa40] sm:$0xff] }
 0x3f4   : > { %v10908_v45 = vcombine.low %v3327_v20, %v3331_v21 }
 0x3f9   : > { %7360 = vmatmul.mubr.bf16.gmra.mrb[144].mxu0 %v10868_v30  ;;  %v10584_v30 = vcombine.low %v3001_v58, %v3005_v15 }
 0x3fa   : > { %8273 = vmatmul.mubr.bf16.gmra.mrb[164].mxu1 %v11062_v34  ;;  %7369 = vmatprep.mubr.bf16.mxu0 %v10877_v31  ;;  %v10909_v34 = vcombine.high %v3327_v20, %v3331_v21  ;;  %v10593_v31 = vcombine.high %v3009_v25, %v3013_v32  ;;  %v3057_v20 = vld [vmem:[#allocation8 + $0x1d0] sm:$0xff] }
 0x3fb   : > { %8282 = vmatprep.mubr.bf16.mxu1 %v11071_v49  ;;  %v3335_v49 = vld [vmem:[#allocation8 + $0xa80] sm:$0xff]  ;;  %v3061_v21 = vld [vmem:[#allocation8 + $0x1f0] sm:$0xff] }
 0x3fc   : > { %v10916_v53 = vcombine.low %v3335_v49, %v3339_v59 }
 0x401   : > { %7370 = vmatmul.mubr.bf16.gmra.mrb[148].mxu0 %v10876_v52  ;;  %v10592_v52 = vcombine.low %v3009_v25, %v3013_v32 }
 0x402   : > { %8283 = vmatmul.mubr.bf16.gmra.mrb[168].mxu1 %v11070_v38  ;;  %7379 = vmatprep.mubr.bf16.mxu0 %v10885_v61  ;;  %v10917_v38 = vcombine.high %v3335_v49, %v3339_v59  ;;  %v10601_v61 = vcombine.high %v3017_v10, %v3021_v42  ;;  %v3065_v49 = vld [vmem:[#allocation8 + $0x210] sm:$0xff] }
 0x403   : > { %8292 = vmatprep.mubr.bf16.mxu1 %v11079_v36  ;;  %v3347_v36 = vld [vmem:[#allocation8 + $0xae0] sm:$0xff]  ;;  %v3069_v59 = vld [vmem:[#allocation8 + $0x230] sm:$0xff] }
 0x409   : > { %7380 = vmatmul.mubr.bf16.gmra.mrb[152].mxu0 %v10884_v23  ;;  %v3037_v23 = vld [vmem:[#allocation8 + $0x130] sm:$0xff] }
 0x40a   : > { %8293 = vmatmul.mubr.bf16.gmra.mrb[172].mxu1 %v11078_v29  ;;  %7389 = vmatprep.mubr.bf16.mxu0 %v10893_v7 }
 0x40b   : > { %8302 = vmatprep.mubr.bf16.mxu1 %v11087_v57 }
 0x411   : > { %7390 = vmatmul.mubr.bf16.gmra.mrb[156].mxu0 %v10892_v11  ;;  %v3053_v11 = vld [vmem:[#allocation8 + $0x1b0] sm:$0xff] }
 0x412   : > { %8303 = vmatmul.mubr.bf16.gmra.mrb[176].mxu1 %v11086_v26  ;;  %7399 = vmatprep.mubr.bf16.mxu0 %v10901_v41 }
 0x413   : > { %8345 = vmatprep.mubr.bf16.mxu1 %v10585_v19 }
 0x419   : > { %7400 = vmatmul.mubr.bf16.gmra.mrb[160].mxu0 %v10900_v54 }
 0x41a   : > { %8346 = vmatmul.mubr.bf16.vlgmr.msra.gmra.mrb[180].mxu1 %v10584_v30  ;;  %7409 = vmatprep.mubr.bf16.mxu0 %v10909_v34  ;;  %v3387_v34 = vld [vmem:[#allocation8 + $0xc20] sm:$0xff] }
 0x41b   : > { %8987 = vmatpush1.bf16.msra.mxu1 %v14387_v4  ;;  %8355 = vmatprep.mubr.bf16.mxu1 %v10593_v31  ;;  %v3343_v4 = vld [vmem:[#allocation8 + $0xac0] sm:$0xff] }
 0x41c   : > { %8988 = vmatprep.subr.bf16.mxu1 %v14395_v51  ;;  %v3025_v51 = vld [vmem:[#allocation8 + $0xd0] sm:$0xff]  ;;  %v10925_v8 = vcombine.high %v3343_v4, %v3347_v36  ;;  %v10924_v29 = vcombine.low %v3343_v4, %v3347_v36 }
 0x41d   : > { %v10608_v7 = vcombine.low %v3025_v51, %v3029_v6  ;;  %v3073_v4 = vld [vmem:[#allocation8 + $0x250] sm:$0xff] }
 0x41e   : > { %v3077_v36 = vld [vmem:[#allocation8 + $0x270] sm:$0xff] }
 0x41f   : > { %8989 = vmatpush1.bf16.msra.mxu1 %v14393_v2  ;;  %v10609_v2 = vcombine.high %v3025_v51, %v3029_v6 }
 0x420   : > { %8990 = vmatprep.subr.bf16.mxu1 %v14403_v9  ;;  %v3355_v9 = vld [vmem:[#allocation8 + $0xb20] sm:$0xff] }
 0x421   : > { %7410 = vmatmul.mubr.bf16.gmra.mrb[164].mxu0 %v10908_v45 }
 0x422   : > { %8356 = vmatmul.mubr.bf16.gmra.mrb[184].mxu1 %v10592_v52  ;;  %7419 = vmatprep.mubr.bf16.mxu0 %v10917_v38  ;;  %v3395_v38 = vld [vmem:[#allocation8 + $0xc60] sm:$0xff] }
 0x423   : > { %8991 = vmatpush1.bf16.msra.mxu1 %v14401_v62  ;;  %8365 = vmatprep.mubr.bf16.mxu1 %v10601_v61  ;;  %v3351_v62 = vld [vmem:[#allocation8 + $0xb00] sm:$0xff] }
 0x424   : > { %8992 = vmatprep.subr.bf16.mxu1 %v14411_v60  ;;  %v3033_v60 = vld [vmem:[#allocation8 + $0x110] sm:$0xff]  ;;  %v10933_v57 = vcombine.high %v3351_v62, %v3355_v9  ;;  %v10932_v40 = vcombine.low %v3351_v62, %v3355_v9 }
 0x425   : > { %v10616_v58 = vcombine.low %v3033_v60, %v3037_v23  ;;  %v3081_v62 = vld [vmem:[#allocation8 + $0x290] sm:$0xff] }
 0x426   : > { %v3085_v9 = vld [vmem:[#allocation8 + $0x2b0] sm:$0xff] }
 0x427   : > { %8993 = vmatpush1.bf16.msra.mxu1 %v14409_v55  ;;  %v10617_v55 = vcombine.high %v3033_v60, %v3037_v23 }
 0x428   : > { %8994 = vmatprep.subr.bf16.mxu1 %v14419_v56  ;;  %v3363_v56 = vld [vmem:[#allocation8 + $0xb60] sm:$0xff] }
 0x429   : > { %7420 = vmatmul.mubr.bf16.gmra.mrb[168].mxu0 %v10916_v53 }
 0x42a   : > { %8366 = vmatmul.mubr.bf16.gmra.mrb[188].mxu1 %v10600_v35  ;;  %7429 = vmatprep.mubr.bf16.mxu0 %v10925_v8  ;;  %v3403_v8 = vld [vmem:[#allocation8 + $0xca0] sm:$0xff] }
 0x42b   : > { %8995 = vmatpush1.bf16.msra.mxu1 %v14417_v22  ;;  %8375 = vmatprep.mubr.bf16.mxu1 %v10609_v2  ;;  %v3359_v22 = vld [vmem:[#allocation8 + $0xb40] sm:$0xff] }
 0x42c   : > { %8996 = vmatprep.subr.bf16.mxu1 %v14427_v39  ;;  %v3041_v39 = vld [vmem:[#allocation8 + $0x150] sm:$0xff]  ;;  %v10941_v15 = vcombine.high %v3359_v22, %v3363_v56  ;;  %v10940_v26 = vcombine.low %v3359_v22, %v3363_v56  ;;  %v3407_v22 = vld [vmem:[#allocation8 + $0xcc0] sm:$0xff] }
 0x42d   : > { %v10624_v41 = vcombine.low %v3041_v39, %v3045_v27  ;;  %v3411_v56 = vld [vmem:[#allocation8 + $0xce0] sm:$0xff] }
 0x42f   : > { %8997 = vmatpush1.bf16.msra.mxu1 %v14425_v46  ;;  %v10625_v46 = vcombine.high %v3041_v39, %v3045_v27  ;;  %v3089_v27 = vld [vmem:[#allocation8 + $0x2d0] sm:$0xff] }
 0x430   : > { %8998 = vmatprep.subr.bf16.mxu1 %v14435_v43  ;;  %v3371_v43 = vld [vmem:[#allocation8 + $0xba0] sm:$0xff] }
 0x431   : > { %7430 = vmatmul.mubr.bf16.gmra.mrb[172].mxu0 %v10924_v29 }
 0x432   : > { %8376 = vmatmul.mubr.bf16.gmra.mrb[192].mxu1 %v10608_v7  ;;  %7439 = vmatprep.mubr.bf16.mxu0 %v10933_v57  ;;  %v10656_v7 = vcombine.low %v3073_v4, %v3077_v36 }
 0x433   : > { %8999 = vmatpush1.bf16.msra.mxu1 %v14433_v3  ;;  %8385 = vmatprep.mubr.bf16.mxu1 %v10617_v55  ;;  %v3367_v3 = vld [vmem:[#allocation8 + $0xb80] sm:$0xff]  ;;  %v10665_v55 = vcombine.high %v3081_v62, %v3085_v9 }
 0x434   : > { %9000 = vmatprep.subr.bf16.mxu1 %v14443_v18  ;;  %v3049_v18 = vld [vmem:[#allocation8 + $0x190] sm:$0xff]  ;;  %v10949_v19 = vcombine.high %v3367_v3, %v3371_v43 }
 0x437   : > { %9001 = vmatpush1.bf16.msra.mxu1 %v14441_v50  ;;  %v10633_v50 = vcombine.high %v3049_v18, %v3053_v11 }
 0x438   : > { %9002 = vmatprep.subr.bf16.mxu1 %v14451_v14  ;;  %v3379_v14 = vld [vmem:[#allocation8 + $0xbe0] sm:$0xff] }
 0x439   : > { %7440 = vmatmul.mubr.bf16.gmra.mrb[176].mxu0 %v10932_v40  ;;  %v3093_v40 = vld [vmem:[#allocation8 + $0x2f0] sm:$0xff] }
 0x43a   : > { %8386 = vmatmul.mubr.bf16.gmra.mrb[196].mxu1 %v10616_v58  ;;  %7449 = vmatprep.mubr.bf16.mxu0 %v10941_v15 }
 0x43b   : > { %9003 = vmatpush1.bf16.msra.mxu1 %v14449_v24  ;;  %8395 = vmatprep.mubr.bf16.mxu1 %v10625_v46  ;;  %v3375_v24 = vld [vmem:[#allocation8 + $0xbc0] sm:$0xff] }
 0x43c   : > { %9004 = vmatprep.subr.bf16.mxu1 %v14459_v37  ;;  %v10957_v54 = vcombine.high %v3375_v24, %v3379_v14  ;;  %v10956_v10 = vcombine.low %v3375_v24, %v3379_v14  ;;  %v3101_v24 = vld [vmem:[#allocation8 + $0x330] sm:$0xff] }
 0x43f   : > { %9005 = vmatpush1.bf16.msra.mxu1 %v14457_v1  ;;  %v10948_v1 = vcombine.low %v3367_v3, %v3371_v43  ;;  %v10664_v3 = vcombine.low %v3081_v62, %v3085_v9  ;;  %v10989_v43 = vcombine.high %v3407_v22, %v3411_v56 }
 0x440   : > { %9006 = vmatprep.subr.bf16.mxu1 %v14467_v63  ;;  %v10632_v63 = vcombine.low %v3049_v18, %v3053_v11  ;;  %v10673_v11 = vcombine.high %v3089_v27, %v3093_v40 }
 0x441   : > { %7450 = vmatmul.mubr.bf16.gmra.mrb[180].mxu0 %v10940_v26  ;;  %v3415_v26 = vld [vmem:[#allocation8 + $0xd00] sm:$0xff] }
 0x442   : > { %8396 = vmatmul.mubr.bf16.gmra.mrb[200].mxu1 %v10624_v41  ;;  %7459 = vmatprep.mubr.bf16.mxu0 %v10949_v19  ;;  %v3419_v41 = vld [vmem:[#allocation8 + $0xd20] sm:$0xff] }
 0x443   : > { %9007 = vmatpush1.bf16.msra.mxu1 %v14465_v16  ;;  %8405 = vmatprep.mubr.bf16.mxu1 %v10633_v50  ;;  %v10641_v16 = vcombine.high %v3057_v20, %v3061_v21  ;;  %v3097_v50 = vld [vmem:[#allocation8 + $0x310] sm:$0xff] }
 0x444   : > { %9008 = vmatprep.subr.bf16.mxu1 %v14475_v48  ;;  %v14531_v37 = vpop.f32.mrb[76].mxu0  ;;  %v3383_v48 = vld [vmem:[#allocation8 + $0xc00] sm:$0xff] }
 0x445   : > { %15761 = vst [vmem:[#allocation21_spill] sm:$0xff] %v14531_v37  ;;  %v14533_v25 = vpop.f32.mrb[77].mxu0  ;;  %v10965_v45 = vcombine.high %v3383_v48, %v3387_v34  ;;  %v10964_v51 = vcombine.low %v3383_v48, %v3387_v34  ;;  %v3423_v48 = vld [vmem:[#allocation8 + $0xd40] sm:$0xff] }
 0x446   : > { %15762 = vst [vmem:[#allocation20_spill] sm:$0xff] %v14533_v25  ;;  %v14535_v32 = vpop.f32.mrb[78].mxu0  ;;  %v3427_v34 = vld [vmem:[#allocation8 + $0xd60] sm:$0xff]  ;;  %v3014_v25 = vld [vmem:[#allocation8 + $0x78] sm:$0xff] }
 0x447   : > { %15763 = vst [vmem:[#allocation23_spill] sm:$0xff] %v14535_v32  ;;  %9009 = vmatpush1.bf16.msra.mxu1 %v14473_v44  ;;  %v14538_v30 = vpop.f32.mrb[79].mxu0  ;;  %v11004_v62 = vcombine.low %v3423_v48, %v3427_v34 }
 0x448   : > { %15764 = vst [vmem:[#allocation22_spill] sm:$0xff] %v14538_v30  ;;  %9010 = vmatprep.subr.bf16.mxu1 %v14483_v13  ;;  %v10640_v13 = vcombine.low %v3057_v20, %v3061_v21  ;;  %v10988_v20 = vcombine.low %v3407_v22, %v3411_v56  ;;  %v3439_v22 = vld [vmem:[#allocation8 + $0xdc0] sm:$0xff] }
 0x449   : > { %7460 = vmatmul.mubr.bf16.gmra.mrb[184].mxu0 %v10948_v1  ;;  %v10672_v1 = vcombine.low %v3089_v27, %v3093_v40  ;;  %v3443_v56 = vld [vmem:[#allocation8 + $0xde0] sm:$0xff]  ;;  %v3121_v40 = vld [vmem:[#allocation8 + $0x3d0] sm:$0xff] }
 0x44a   : > { %8406 = vmatmul.mubr.bf16.gmra.mrb[204].mxu1 %v10632_v63  ;;  %7469 = vmatprep.mubr.bf16.mxu0 %v10957_v54  ;;  %v10997_v63 = vcombine.high %v3415_v26, %v3419_v41 }
 0x44b   : > { %9011 = vmatpush1.bf16.msra.mxu1 %v14481_v28  ;;  %8415 = vmatprep.mubr.bf16.mxu1 %v10641_v16  ;;  %v10649_v28 = vcombine.high %v3065_v49, %v3069_v59  ;;  %v10681_v16 = vcombine.high %v3097_v50, %v3101_v24 }
 0x44c   : > { %9012 = vmatprep.subr.bf16.mxu1 %v14491_v0  ;;  %v14543_v31 = vpop.f32.mrb[80].mxu0  ;;  %v3391_v0 = vld [vmem:[#allocation8 + $0xc40] sm:$0xff] }
 0x44d   : > { %15765 = vst [vmem:[#allocation25_spill] sm:$0xff] %v14543_v31  ;;  %v14545_v44 = vpop.f32.mrb[81].mxu0  ;;  %v10973_v53 = vcombine.high %v3391_v0, %v3395_v38  ;;  %v10972_v23 = vcombine.low %v3391_v0, %v3395_v38  ;;  %v10680_v0 = vcombine.low %v3097_v50, %v3101_v24  ;;  %v11005_v38 = vcombine.high %v3423_v48, %v3427_v34  ;;  %v3133_v48 = vld [vmem:[#allocation8 + $0x430] sm:$0xff] }
 0x44e   : > { %15766 = vst [vmem:[#allocation24_spill] sm:$0xff] %v14545_v44  ;;  %v14547_v42 = vpop.f32.mrb[82].mxu0  ;;  %v3006_v44 = vld [vmem:[#allocation8 + $0x38] sm:$0xff] }
 0x44f   : > { %15767 = vst [vmem:[#allocation27_spill] sm:$0xff] %v14547_v42  ;;  %9013 = vmatpush1.bf16.msra.mxu1 %v14489_v12  ;;  %v14550_v52 = vpop.f32.mrb[83].mxu0 }
 0x450   : > { %15768 = vst [vmem:[#allocation26_spill] sm:$0xff] %v14550_v52  ;;  %9014 = vmatprep.subr.bf16.mxu1 %v14499_v17  ;;  %v10648_v17 = vcombine.low %v3065_v49, %v3069_v59  ;;  %v3105_v59 = vld [vmem:[#allocation8 + $0x350] sm:$0xff] }
 0x451   : > { %7470 = vmatmul.mubr.bf16.gmra.mrb[188].mxu0 %v10956_v10  ;;  %v3109_v10 = vld [vmem:[#allocation8 + $0x370] sm:$0xff] }
 0x452   : > { %8416 = vmatmul.mubr.bf16.gmra.mrb[208].mxu1 %v10640_v13  ;;  %7479 = vmatprep.mubr.bf16.mxu0 %v10965_v45  ;;  %v10996_v45 = vcombine.low %v3415_v26, %v3419_v41  ;;  %v11021_v41 = vcombine.high %v3439_v22, %v3443_v56 }
 0x453   : > { %9015 = vmatpush1.bf16.msra.mxu1 %v14497_v33  ;;  %8425 = vmatprep.mubr.bf16.mxu1 %v10649_v28  ;;  %v10657_v33 = vcombine.high %v3073_v4, %v3077_v36  ;;  %v10689_v36 = vcombine.high %v3105_v59, %v3109_v10 }
 0x454   : > { %9016 = vmatprep.subr.bf16.mxu1 %v14507_v47  ;;  %v14555_v61 = vpop.f32.mrb[84].mxu0  ;;  %v3399_v47 = vld [vmem:[#allocation8 + $0xc80] sm:$0xff] }
 0x455   : > { %15769 = vst [vmem:[#allocation29_spill] sm:$0xff] %v14555_v61  ;;  %v14557_v12 = vpop.f32.mrb[85].mxu0  ;;  %v10980_v15 = vcombine.low %v3399_v47, %v3403_v8 }
 0x456   : > { %15770 = vst [vmem:[#allocation28_spill] sm:$0xff] %v14557_v12  ;;  %v14559_v6 = vpop.f32.mrb[86].mxu0  ;;  %v3509_v12 = vld [vmem:[#allocation8 + $0xff0] sm:$0xff] }
 0x457   : > { %15771 = vst [vmem:[#allocation31_spill] sm:$0xff] %v14559_v6  ;;  %9017 = vmatpush1.bf16.msra.mxu1 %v14505_v5  ;;  %v14562_v35 = vpop.f32.mrb[87].mxu0  ;;  %v10981_v5 = vcombine.high %v3399_v47, %v3403_v8  ;;  %v3117_v47 = vld [vmem:[#allocation8 + $0x3b0] sm:$0xff] }
 0x458   : > { %15772 = vst [vmem:[#allocation30_spill] sm:$0xff] %v14562_v35 }
 0x459   : > { %7480 = vmatmul.mubr.bf16.gmra.mrb[192].mxu0 %v10964_v51  ;;  %v3431_v51 = vld [vmem:[#allocation8 + $0xd80] sm:$0xff] }
 0x45a   : > { %8426 = vmatmul.mubr.bf16.gmra.mrb[212].mxu1 %v10648_v17  ;;  %7489 = vmatprep.mubr.bf16.mxu0 %v10973_v53  ;;  %v3435_v17 = vld [vmem:[#allocation8 + $0xda0] sm:$0xff] }
 0x45b   : > { %8435 = vmatprep.mubr.bf16.mxu1 %v10657_v33  ;;  %v3113_v33 = vld [vmem:[#allocation8 + $0x390] sm:$0xff] }
 0x45c   : > { %v14564_v2 = vpop.f32.mrb[88].mxu0  ;;  %v10696_v26 = vcombine.low %v3113_v33, %v3117_v47 }
 0x45d   : > { %15773 = vst [vmem:[#allocation33_spill] sm:$0xff] %v14564_v2  ;;  %v14566_v60 = vpop.f32.mrb[89].mxu0 }
 0x45e   : > { %15774 = vst [vmem:[#allocation32_spill] sm:$0xff] %v14566_v60  ;;  %v14568_v29 = vpop.f32.mrb[90].mxu0  ;;  %v3501_v60 = vld [vmem:[#allocation8 + $0xfb0] sm:$0xff] }
 0x45f   : > { %15775 = vst [vmem:[#allocation35_spill] sm:$0xff] %v14568_v29  ;;  %v14570_v57 = vpop.f32.mrb[91].mxu0 }
 0x460   : > { %15776 = vst [vmem:[#allocation34_spill] sm:$0xff] %v14570_v57 }
 0x461   : > { %7490 = vmatmul.mubr.bf16.gmra.mrb[196].mxu0 %v10972_v23  ;;  %v10688_v23 = vcombine.low %v3105_v59, %v3109_v10  ;;  %v11020_v59 = vcombine.low %v3439_v22, %v3443_v56 }
 0x462   : > { %8436 = vmatmul.mubr.bf16.gmra.mrb[216].mxu1 %v10656_v7  ;;  %7499 = vmatprep.mubr.bf16.mxu0 %v10981_v5  ;;  %v11013_v7 = vcombine.high %v3431_v51, %v3435_v17 }
 0x463   : > { %8445 = vmatprep.mubr.bf16.mxu1 %v10665_v55  ;;  %v10697_v55 = vcombine.high %v3113_v33, %v3117_v47  ;;  %v3137_v47 = vld [vmem:[#allocation8 + $0x450] sm:$0xff] }
 0x464   : > { %v14572_v39 = vpop.f32.mrb[92].mxu0 }
 0x465   : > { %15777 = vst [vmem:[#allocation37_spill] sm:$0xff] %v14572_v39  ;;  %v14574_v58 = vpop.f32.mrb[93].mxu0 }
 0x466   : > { %15778 = vst [vmem:[#allocation36_spill] sm:$0xff] %v14574_v58  ;;  %v14576_v46 = vpop.f32.mrb[94].mxu0  ;;  %v3493_v58 = vld [vmem:[#allocation8 + $0xf70] sm:$0xff] }
 0x467   : > { %15779 = vst [vmem:[#allocation39_spill] sm:$0xff] %v14576_v46  ;;  %v14578_v18 = vpop.f32.mrb[95].mxu0 }
 0x468   : > { %15780 = vst [vmem:[#allocation38_spill] sm:$0xff] %v14578_v18 }
 0x469   : > { %7500 = vmatmul.mubr.bf16.gmra.mrb[200].mxu0 %v10980_v15  ;;  %v3125_v15 = vld [vmem:[#allocation8 + $0x3f0] sm:$0xff] }
 0x46a   : > { %8446 = vmatmul.mubr.bf16.gmra.mrb[220].mxu1 %v10664_v3  ;;  %7509 = vmatprep.mubr.bf16.mxu0 %v10989_v43  ;;  %v11012_v43 = vcombine.low %v3431_v51, %v3435_v17  ;;  %v10705_v24 = vcombine.high %v3121_v40, %v3125_v15  ;;  %v3455_v51 = vld [vmem:[#allocation8 + $0xe40] sm:$0xff] }
 0x46b   : > { %8455 = vmatprep.mubr.bf16.mxu1 %v10673_v11  ;;  %v3459_v17 = vld [vmem:[#allocation8 + $0xe60] sm:$0xff] }
 0x46c   : > { %v14580_v19 = vpop.f32.mrb[96].mxu0  ;;  %v11037_v56 = vcombine.high %v3455_v51, %v3459_v17 }
 0x46d   : > { %15781 = vst [vmem:[#allocation41_spill] sm:$0xff] %v14580_v19  ;;  %v14582_v14 = vpop.f32.mrb[97].mxu0 }
 0x46e   : > { %15782 = vst [vmem:[#allocation40_spill] sm:$0xff] %v14582_v14  ;;  %v14584_v21 = vpop.f32.mrb[98].mxu0  ;;  %v3485_v14 = vld [vmem:[#allocation8 + $0xf30] sm:$0xff] }
 0x46f   : > { %15783 = vst [vmem:[#allocation43_spill] sm:$0xff] %v14584_v21  ;;  %v14586_v54 = vpop.f32.mrb[99].mxu0 }
 0x470   : > { %15784 = vst [vmem:[#allocation42_spill] sm:$0xff] %v14586_v54 }
 0x471   : > { %7510 = vmatmul.mubr.bf16.gmra.mrb[204].mxu0 %v10988_v20  ;;  %v3447_v20 = vld [vmem:[#allocation8 + $0xe00] sm:$0xff] }
 0x472   : > { %8456 = vmatmul.mubr.bf16.gmra.mrb[224].mxu1 %v10672_v1  ;;  %7519 = vmatprep.mubr.bf16.mxu0 %v10997_v63  ;;  %v3451_v1 = vld [vmem:[#allocation8 + $0xe20] sm:$0xff] }
 0x473   : > { %8465 = vmatprep.mubr.bf16.mxu1 %v10681_v16  ;;  %v3129_v16 = vld [vmem:[#allocation8 + $0x410] sm:$0xff] }
 0x474   : > { %v14588_v49 = vpop.f32.mrb[100].mxu0  ;;  %v10712_v22 = vcombine.low %v3129_v16, %v3133_v48 }
 0x475   : > { %15785 = vst [vmem:[#allocation45_spill] sm:$0xff] %v14588_v49  ;;  %v14590_v13 = vpop.f32.mrb[101].mxu0 }
 0x476   : > { %15786 = vst [vmem:[#allocation44_spill] sm:$0xff] %v14590_v13  ;;  %v14592_v28 = vpop.f32.mrb[102].mxu0  ;;  %v3477_v13 = vld [vmem:[#allocation8 + $0xef0] sm:$0xff] }
 0x477   : > { %15787 = vst [vmem:[#allocation47_spill] sm:$0xff] %v14592_v28  ;;  %v14594_v4 = vpop.f32.mrb[103].mxu0 }
 0x478   : > { %15788 = vst [vmem:[#allocation46_spill] sm:$0xff] %v14594_v4 }
 0x479   : > { %7520 = vmatmul.mubr.bf16.gmra.mrb[208].mxu0 %v10996_v45  ;;  %v10704_v45 = vcombine.low %v3121_v40, %v3125_v15 }
 0x47a   : > { %8466 = vmatmul.mubr.bf16.gmra.mrb[228].mxu1 %v10680_v0  ;;  %7529 = vmatprep.mubr.bf16.mxu0 %v11005_v38  ;;  %v11029_v0 = vcombine.high %v3447_v20, %v3451_v1 }
 0x47b   : > { %8475 = vmatprep.mubr.bf16.mxu1 %v10689_v36  ;;  %v10713_v36 = vcombine.high %v3129_v16, %v3133_v48 }
 0x47c   : > { %v14596_v53 = vpop.f32.mrb[104].mxu0 }
 0x47d   : > { %15789 = vst [vmem:[#allocation49_spill] sm:$0xff] %v14596_v53  ;;  %v14598_v8 = vpop.f32.mrb[105].mxu0 }
 0x47e   : > { %15790 = vst [vmem:[#allocation48_spill] sm:$0xff] %v14598_v8  ;;  %v14600_v9 = vpop.f32.mrb[106].mxu0  ;;  %v3469_v8 = vld [vmem:[#allocation8 + $0xeb0] sm:$0xff] }
 0x47f   : > { %15791 = vst [vmem:[#allocation51_spill] sm:$0xff] %v14600_v9  ;;  %v14602_v5 = vpop.f32.mrb[107].mxu0 }
 0x480   : > { %15792 = vst [vmem:[#allocation50_spill] sm:$0xff] %v14602_v5 }
 0x481   : > { %7530 = vmatmul.mubr.bf16.gmra.mrb[212].mxu0 %v11004_v62  ;;  %v3141_v62 = vld [vmem:[#allocation8 + $0x470] sm:$0xff] }
 0x482   : > { %8476 = vmatmul.mubr.bf16.gmra.mrb[232].mxu1 %v10688_v23  ;;  %7539 = vmatprep.mubr.bf16.mxu0 %v11013_v7  ;;  %v11028_v7 = vcombine.low %v3447_v20, %v3451_v1  ;;  %v10721_v15 = vcombine.high %v3137_v47, %v3141_v62  ;;  %v11036_v20 = vcombine.low %v3455_v51, %v3459_v17 }
 0x483   : > { %8485 = vmatprep.mubr.bf16.mxu1 %v10697_v55  ;;  %v10720_v16 = vcombine.low %v3137_v47, %v3141_v62 }
 0x484   : > { %v14604_v27 = vpop.f32.mrb[108].mxu0 }
 0x485   : > { %15793 = vst [vmem:[#allocation53_spill] sm:$0xff] %v14604_v27  ;;  %v14606_v3 = vpop.f32.mrb[109].mxu0 }
 0x486   : > { %15794 = vst [vmem:[#allocation52_spill] sm:$0xff] %v14606_v3  ;;  %v14608_v11 = vpop.f32.mrb[110].mxu0  ;;  %v3461_v3 = vld [vmem:[#allocation8 + $0xe70] sm:$0xff] }
 0x487   : > { %15795 = vst [vmem:[#allocation55_spill] sm:$0xff] %v14608_v11  ;;  %v14610_v50 = vpop.f32.mrb[111].mxu0 }
 0x488   : > { %15796 = vst [vmem:[#allocation54_spill] sm:$0xff] %v14610_v50 }
 0x489   : > { %7540 = vmatmul.mubr.bf16.gmra.mrb[216].mxu0 %v11012_v43  ;;  %v3463_v43 = vld [vmem:[#allocation8 + $0xe80] sm:$0xff] }
 0x48a   : > { %8486 = vmatmul.mubr.bf16.gmra.mrb[236].mxu1 %v10696_v26  ;;  %7549 = vmatprep.mubr.bf16.mxu0 %v11021_v41  ;;  %v3467_v26 = vld [vmem:[#allocation8 + $0xea0] sm:$0xff] }
 0x48b   : > { %8495 = vmatprep.mubr.bf16.mxu1 %v10705_v24  ;;  %v3145_v24 = vld [vmem:[#allocation8 + $0x490] sm:$0xff]  ;;  %v11045_v48 = vcombine.high %v3463_v43, %v3467_v26  ;;  %v11044_v51 = vcombine.low %v3463_v43, %v3467_v26 }
 0x48c   : > { %v14612_v63 = vpop.f32.mrb[112].mxu0 }
 0x48d   : > { %15797 = vst [vmem:[#allocation57_spill] sm:$0xff] %v14612_v63  ;;  %v14614_v34 = vpop.f32.mrb[113].mxu0 }
 0x48e   : > { %15798 = vst [vmem:[#allocation56_spill] sm:$0xff] %v14614_v34  ;;  %v14616_v10 = vpop.f32.mrb[114].mxu0  ;;  %v3453_v34 = vld [vmem:[#allocation8 + $0xe30] sm:$0xff] }
 0x48f   : > { %15799 = vst [vmem:[#allocation59_spill] sm:$0xff] %v14616_v10  ;;  %v14618_v38 = vpop.f32.mrb[115].mxu0 }
 0x490   : > { %15800 = vst [vmem:[#allocation58_spill] sm:$0xff] %v14618_v38 }
 0x491   : > { %7550 = vmatmul.mubr.bf16.gmra.mrb[220].mxu0 %v11020_v59  ;;  %v3149_v59 = vld [vmem:[#allocation8 + $0x4b0] sm:$0xff] }
 0x492   : > { %8496 = vmatmul.mubr.bf16.gmra.mrb[240].mxu1 %v10704_v45  ;;  %7559 = vmatprep.mubr.bf16.mxu0 %v11029_v0  ;;  %v10728_v47 = vcombine.low %v3145_v24, %v3149_v59 }
 0x493   : > { %8505 = vmatprep.mubr.bf16.mxu1 %v10713_v36  ;;  %v10729_v36 = vcombine.high %v3145_v24, %v3149_v59 }
 0x494   : > { %v14620_v33 = vpop.f32.mrb[116].mxu0 }
 0x495   : > { %15801 = vst [vmem:[#allocation61_spill] sm:$0xff] %v14620_v33  ;;  %v14622_v23 = vpop.f32.mrb[117].mxu0 }
 0x496   : > { %15802 = vst [vmem:[#allocation60_spill] sm:$0xff] %v14622_v23  ;;  %v14624_v55 = vpop.f32.mrb[118].mxu0  ;;  %v3445_v23 = vld [vmem:[#allocation8 + $0xdf0] sm:$0xff] }
 0x497   : > { %15803 = vst [vmem:[#allocation63_spill] sm:$0xff] %v14624_v55  ;;  %v14626_v40 = vpop.f32.mrb[119].mxu0 }
 0x498   : > { %15804 = vst [vmem:[#allocation62_spill] sm:$0xff] %v14626_v40 }
 0x499   : > { %7560 = vmatmul.mubr.bf16.gmra.mrb[224].mxu0 %v11028_v7  ;;  %v3471_v7 = vld [vmem:[#allocation8 + $0xec0] sm:$0xff] }
 0x49a   : > { %8506 = vmatmul.mubr.bf16.gmra.mrb[244].mxu1 %v10712_v22  ;;  %7569 = vmatprep.mubr.bf16.mxu0 %v11037_v56  ;;  %v3475_v22 = vld [vmem:[#allocation8 + $0xee0] sm:$0xff] }
 0x49b   : > { %8515 = vmatprep.mubr.bf16.mxu1 %v10721_v15  ;;  %v3153_v15 = vld [vmem:[#allocation8 + $0x4d0] sm:$0xff]  ;;  %v11053_v62 = vcombine.high %v3471_v7, %v3475_v22  ;;  %v11052_v43 = vcombine.low %v3471_v7, %v3475_v22 }
 0x49c   : > { %v14628_v41 = vpop.f32.mrb[120].mxu0 }
 0x49d   : > { %15805 = vst [vmem:[#allocation65_spill] sm:$0xff] %v14628_v41  ;;  %v14630_v45 = vpop.f32.mrb[121].mxu0  ;;  %v3157_v41 = vld [vmem:[#allocation8 + $0x4f0] sm:$0xff] }
 0x49e   : > { %15806 = vst [vmem:[#allocation64_spill] sm:$0xff] %v14630_v45  ;;  %v14632_v1 = vpop.f32.mrb[122].mxu0  ;;  %v10736_v24 = vcombine.low %v3153_v15, %v3157_v41 }
 0x49f   : > { %15807 = vst [vmem:[#allocation67_spill] sm:$0xff] %v14632_v1  ;;  %v14634_v0 = vpop.f32.mrb[123].mxu0 }
 0x4a0   : > { %15808 = vst [vmem:[#allocation66_spill] sm:$0xff] %v14634_v0  ;;  %v10737_v0 = vcombine.high %v3153_v15, %v3157_v41 }
 0x4a1   : > { %7570 = vmatmul.mubr.bf16.gmra.mrb[228].mxu0 %v11036_v20  ;;  %v3479_v20 = vld [vmem:[#allocation8 + $0xf00] sm:$0xff] }
 0x4a2   : > { %8516 = vmatmul.mubr.bf16.gmra.mrb[248].mxu1 %v10720_v16  ;;  %7579 = vmatprep.mubr.bf16.mxu0 %v11045_v48  ;;  %v3483_v16 = vld [vmem:[#allocation8 + $0xf20] sm:$0xff] }
 0x4a3   : > { %8525 = vmatprep.mubr.bf16.mxu1 %v10729_v36  ;;  %v3161_v36 = vld [vmem:[#allocation8 + $0x510] sm:$0xff]  ;;  %v11061_v59 = vcombine.high %v3479_v20, %v3483_v16  ;;  %v11060_v7 = vcombine.low %v3479_v20, %v3483_v16 }
 0x4a4   : > { %v14636_v56 = vpop.f32.mrb[124].mxu0 }
 0x4a5   : > { %15809 = vst [vmem:[#allocation69_spill] sm:$0xff] %v14636_v56  ;;  %v14638_v40 = vpop.f32.mrb[125].mxu0  ;;  %v3165_v56 = vld [vmem:[#allocation8 + $0x530] sm:$0xff] }
 0x4a6   : > { %15810 = vst [vmem:[#allocation68_spill] sm:$0xff] %v14638_v40  ;;  %v14640_v17 = vpop.f32.mrb[126].mxu0  ;;  %v10744_v41 = vcombine.low %v3161_v36, %v3165_v56 }
 0x4a7   : > { %15811 = vst [vmem:[#allocation71_spill] sm:$0xff] %v14640_v17  ;;  %v14642_v1 = vpop.f32.mrb[127].mxu0 }
 0x4a8   : > { %15812 = vst [vmem:[#allocation70_spill] sm:$0xff] %v14642_v1  ;;  %v10745_v1 = vcombine.high %v3161_v36, %v3165_v56 }
 0x4a9   : > { %7580 = vmatmul.mubr.bf16.gmra.mrb[232].mxu0 %v11044_v51  ;;  %v3491_v51 = vld [vmem:[#allocation8 + $0xf60] sm:$0xff] }
 0x4aa   : > { %8526 = vmatmul.mubr.bf16.gmra.mrb[252].mxu1 %v10728_v47  ;;  %7589 = vmatprep.mubr.bf16.mxu0 %v11053_v62  ;;  %v3169_v62 = vld [vmem:[#allocation8 + $0x550] sm:$0xff] }
 0x4ab   : > { %8535 = vmatprep.mubr.bf16.mxu1 %v10737_v0  ;;  %v3487_v0 = vld [vmem:[#allocation8 + $0xf40] sm:$0xff] }
 0x4ac   : > { %v14644_v48 = vpop.f32.mrb[128].mxu0  ;;  %v11069_v15 = vcombine.high %v3487_v0, %v3491_v51  ;;  %v11068_v20 = vcombine.low %v3487_v0, %v3491_v51 }
 0x4ad   : > { %15813 = vst [vmem:[#allocation73_spill] sm:$0xff] %v14644_v48  ;;  %v14646_v45 = vpop.f32.mrb[129].mxu0  ;;  %v3173_v48 = vld [vmem:[#allocation8 + $0x570] sm:$0xff] }
 0x4ae   : > { %15814 = vst [vmem:[#allocation72_spill] sm:$0xff] %v14646_v45  ;;  %v14648_v26 = vpop.f32.mrb[130].mxu0  ;;  %v10752_v56 = vcombine.low %v3169_v62, %v3173_v48 }
 0x4af   : > { %15815 = vst [vmem:[#allocation75_spill] sm:$0xff] %v14648_v26  ;;  %v14650_v17 = vpop.f32.mrb[131].mxu0 }
 0x4b0   : > { %15816 = vst [vmem:[#allocation74_spill] sm:$0xff] %v14650_v17  ;;  %v10753_v17 = vcombine.high %v3169_v62, %v3173_v48 }
 0x4b1   : > { %7590 = vmatmul.mubr.bf16.gmra.mrb[236].mxu0 %v11052_v43  ;;  %v3499_v43 = vld [vmem:[#allocation8 + $0xfa0] sm:$0xff] }
 0x4b2   : > { %8536 = vmatmul.mubr.bf16.gmra.mrb[0].mxu1 %v10736_v24  ;;  %7599 = vmatprep.mubr.bf16.mxu0 %v11061_v59  ;;  %v3177_v59 = vld [vmem:[#allocation8 + $0x590] sm:$0xff] }
 0x4b3   : > { %8545 = vmatprep.mubr.bf16.mxu1 %v10745_v1  ;;  %v3495_v1 = vld [vmem:[#allocation8 + $0xf80] sm:$0xff] }
 0x4b4   : > { %v14652_v47 = vpop.f32.mrb[132].mxu0  ;;  %v11077_v36 = vcombine.high %v3495_v1, %v3499_v43  ;;  %v11076_v0 = vcombine.low %v3495_v1, %v3499_v43 }
 0x4b5   : > { %15817 = vst [vmem:[#allocation77_spill] sm:$0xff] %v14652_v47  ;;  %v14654_v40 = vpop.f32.mrb[133].mxu0  ;;  %v3181_v47 = vld [vmem:[#allocation8 + $0x5b0] sm:$0xff] }
 0x4b6   : > { %15818 = vst [vmem:[#allocation76_spill] sm:$0xff] %v14654_v40  ;;  %v14656_v22 = vpop.f32.mrb[134].mxu0  ;;  %v10760_v48 = vcombine.low %v3177_v59, %v3181_v47 }
 0x4b7   : > { %15819 = vst [vmem:[#allocation79_spill] sm:$0xff] %v14656_v22  ;;  %v14658_v26 = vpop.f32.mrb[135].mxu0 }
 0x4b8   : > { %15820 = vst [vmem:[#allocation78_spill] sm:$0xff] %v14658_v26  ;;  %v10761_v26 = vcombine.high %v3177_v59, %v3181_v47 }
 0x4b9   : > { %7600 = vmatmul.mubr.bf16.gmra.mrb[240].mxu0 %v11060_v7  ;;  %v3507_v7 = vld [vmem:[#allocation8 + $0xfe0] sm:$0xff] }
 0x4ba   : > { %8546 = vmatmul.mubr.bf16.gmra.mrb[4].mxu1 %v10744_v41  ;;  %7609 = vmatprep.mubr.bf16.mxu0 %v11069_v15  ;;  %v3185_v15 = vld [vmem:[#allocation8 + $0x5d0] sm:$0xff] }
 0x4bb   : > { %8555 = vmatprep.mubr.bf16.mxu1 %v10753_v17  ;;  %v3503_v17 = vld [vmem:[#allocation8 + $0xfc0] sm:$0xff] }
 0x4bc   : > { %v14660_v24 = vpop.f32.mrb[136].mxu0  ;;  %v11085_v62 = vcombine.high %v3503_v17, %v3507_v7  ;;  %v11084_v1 = vcombine.low %v3503_v17, %v3507_v7 }
 0x4bd   : > { %15821 = vst [vmem:[#allocation81_spill] sm:$0xff] %v14660_v24  ;;  %v14662_v45 = vpop.f32.mrb[137].mxu0  ;;  %v3189_v24 = vld [vmem:[#allocation8 + $0x5f0] sm:$0xff] }
 0x4be   : > { %15822 = vst [vmem:[#allocation80_spill] sm:$0xff] %v14662_v45  ;;  %v14664_v16 = vpop.f32.mrb[138].mxu0  ;;  %v10768_v47 = vcombine.low %v3185_v15, %v3189_v24 }
 0x4bf   : > { %15823 = vst [vmem:[#allocation83_spill] sm:$0xff] %v14664_v16  ;;  %v14666_v22 = vpop.f32.mrb[139].mxu0 }
 0x4c0   : > { %15824 = vst [vmem:[#allocation82_spill] sm:$0xff] %v14666_v22  ;;  %v10769_v22 = vcombine.high %v3185_v15, %v3189_v24 }
 0x4c1   : > { %7610 = vmatmul.mubr.bf16.gmra.mrb[244].mxu0 %v11068_v20  ;;  %v3004_v20 = vld [vmem:[#allocation8 + $0x28] sm:$0xff] }
 0x4c2   : > { %8556 = vmatmul.mubr.bf16.gmra.mrb[8].mxu1 %v10752_v56  ;;  %7619 = vmatprep.mubr.bf16.mxu0 %v11077_v36  ;;  %v3193_v36 = vld [vmem:[#allocation8 + $0x610] sm:$0xff] }
 0x4c3   : > { %8565 = vmatprep.mubr.bf16.mxu1 %v10761_v26  ;;  %v3000_v26 = vld [vmem:[#allocation8 + $0x8] sm:$0xff] }
 0x4c4   : > { %v14668_v41 = vpop.f32.mrb[140].mxu0  ;;  %v10583_v59 = vcombine.high %v3000_v26, %v3004_v20  ;;  %v10582_v17 = vcombine.low %v3000_v26, %v3004_v20 }
 0x4c5   : > { %15825 = vst [vmem:[#allocation85_spill] sm:$0xff] %v14668_v41  ;;  %v14670_v40 = vpop.f32.mrb[141].mxu0  ;;  %v3197_v41 = vld [vmem:[#allocation8 + $0x630] sm:$0xff] }
 0x4c6   : > { %15826 = vst [vmem:[#allocation84_spill] sm:$0xff] %v14670_v40  ;;  %v14672_v51 = vpop.f32.mrb[142].mxu0  ;;  %v10776_v24 = vcombine.low %v3193_v36, %v3197_v41 }
 0x4c7   : > { %15827 = vst [vmem:[#allocation116_spill] sm:$0xff] %v14672_v51  ;;  %v14674_v16 = vpop.f32.mrb[143].mxu0 }
 0x4c8   : > { %15828 = vst [vmem:[#allocation117_spill] sm:$0xff] %v14674_v16  ;;  %v10777_v16 = vcombine.high %v3193_v36, %v3197_v41 }
 0x4c9   : > { %7620 = vmatmul.mubr.bf16.gmra.mrb[248].mxu0 %v11076_v0  ;;  %v3012_v0 = vld [vmem:[#allocation8 + $0x68] sm:$0xff] }
 0x4ca   : > { %8566 = vmatmul.mubr.bf16.gmra.mrb[12].mxu1 %v10760_v48  ;;  %7629 = vmatprep.mubr.bf16.mxu0 %v11085_v62  ;;  %v3201_v62 = vld [vmem:[#allocation8 + $0x650] sm:$0xff] }
 0x4cb   : > { %8575 = vmatprep.mubr.bf16.mxu1 %v10769_v22  ;;  %v3008_v22 = vld [vmem:[#allocation8 + $0x48] sm:$0xff] }
 0x4cc   : > { %v14676_v56 = vpop.f32.mrb[144].mxu0  ;;  %v10591_v15 = vcombine.high %v3008_v22, %v3012_v0  ;;  %v10590_v26 = vcombine.low %v3008_v22, %v3012_v0 }
 0x4cd   : > { %15829 = vst [vmem:[#allocation118_spill] sm:$0xff] %v14676_v56  ;;  %v14678_v45 = vpop.f32.mrb[145].mxu0  ;;  %v3205_v56 = vld [vmem:[#allocation8 + $0x670] sm:$0xff] }
 0x4ce   : > { %15830 = vst [vmem:[#allocation119_spill] sm:$0xff] %v14678_v45  ;;  %v14680_v43 = vpop.f32.mrb[146].mxu0  ;;  %v10784_v41 = vcombine.low %v3201_v62, %v3205_v56 }
 0x4cf   : > { %15831 = vst [vmem:[#allocation120_spill] sm:$0xff] %v14680_v43  ;;  %v14682_v51 = vpop.f32.mrb[147].mxu0 }
 0x4d0   : > { %15832 = vst [vmem:[#allocation121_spill] sm:$0xff] %v14682_v51  ;;  %v10785_v51 = vcombine.high %v3201_v62, %v3205_v56 }
 0x4d1   : > { %7630 = vmatmul.mubr.bf16.gmra.mrb[252].mxu0 %v11084_v1  ;;  %v3020_v1 = vld [vmem:[#allocation8 + $0xa8] sm:$0xff] }
 0x4d2   : > { %8576 = vmatmul.mubr.bf16.gmra.mrb[16].mxu1 %v10768_v47  ;;  %7672 = vmatprep.mubr.bf16.mxu0 %v10583_v59  ;;  %v3209_v59 = vld [vmem:[#allocation8 + $0x690] sm:$0xff] }
 0x4d3   : > { %8585 = vmatprep.mubr.bf16.mxu1 %v10777_v16  ;;  %v3016_v16 = vld [vmem:[#allocation8 + $0x88] sm:$0xff] }
 0x4d4   : > { %v14684_v48 = vpop.f32.mrb[148].mxu0  ;;  %v10599_v36 = vcombine.high %v3016_v16, %v3020_v1  ;;  %v10598_v22 = vcombine.low %v3016_v16, %v3020_v1 }
 0x4d5   : > { %15833 = vst [vmem:[#allocation122_spill] sm:$0xff] %v14684_v48  ;;  %v14686_v40 = vpop.f32.mrb[149].mxu0  ;;  %v3213_v48 = vld [vmem:[#allocation8 + $0x6b0] sm:$0xff] }
 0x4d6   : > { %15834 = vst [vmem:[#allocation123_spill] sm:$0xff] %v14686_v40  ;;  %v14688_v7 = vpop.f32.mrb[150].mxu0  ;;  %v10792_v56 = vcombine.low %v3209_v59, %v3213_v48 }
 0x4d7   : > { %15835 = vst [vmem:[#allocation124_spill] sm:$0xff] %v14688_v7  ;;  %v14690_v43 = vpop.f32.mrb[151].mxu0 }
 0x4d8   : > { %15836 = vst [vmem:[#allocation125_spill] sm:$0xff] %v14690_v43  ;;  %v10793_v43 = vcombine.high %v3209_v59, %v3213_v48 }
 0x4d9   : > { %7673 = vmatmul.mubr.bf16.vlgmr.msra.gmra.mrb[0].mxu0 %v10582_v17  ;;  %v3028_v17 = vld [vmem:[#allocation8 + $0xe8] sm:$0xff] }
 0x4da   : > { %8586 = vmatmul.mubr.bf16.gmra.mrb[20].mxu1 %v10776_v24  ;;  %7682 = vmatprep.mubr.bf16.mxu0 %v10591_v15  ;;  %v3217_v15 = vld [vmem:[#allocation8 + $0x6d0] sm:$0xff] }
 0x4db   : > { %8595 = vmatprep.mubr.bf16.mxu1 %v10785_v51  ;;  %v3024_v51 = vld [vmem:[#allocation8 + $0xc8] sm:$0xff] }
 0x4dc   : > { %v14692_v47 = vpop.f32.mrb[152].mxu0  ;;  %v10607_v62 = vcombine.high %v3024_v51, %v3028_v17  ;;  %v10606_v16 = vcombine.low %v3024_v51, %v3028_v17 }
 0x4dd   : > { %15837 = vst [vmem:[#allocation126_spill] sm:$0xff] %v14692_v47  ;;  %v14694_v45 = vpop.f32.mrb[153].mxu0  ;;  %v3221_v47 = vld [vmem:[#allocation8 + $0x6f0] sm:$0xff] }
 0x4de   : > { %15838 = vst [vmem:[#allocation127_spill] sm:$0xff] %v14694_v45  ;;  %v14696_v20 = vpop.f32.mrb[154].mxu0  ;;  %v10800_v48 = vcombine.low %v3217_v15, %v3221_v47 }
 0x4df   : > { %15839 = vst [vmem:[#allocation128_spill] sm:$0xff] %v14696_v20  ;;  %v14698_v7 = vpop.f32.mrb[155].mxu0 }
 0x4e0   : > { %15840 = vst [vmem:[#allocation129_spill] sm:$0xff] %v14698_v7  ;;  %v10801_v7 = vcombine.high %v3217_v15, %v3221_v47 }
 0x4e1   : > { %7683 = vmatmul.mubr.bf16.gmra.mrb[4].mxu0 %v10590_v26  ;;  %v3036_v26 = vld [vmem:[#allocation8 + $0x128] sm:$0xff] }
 0x4e2   : > { %8596 = vmatmul.mubr.bf16.gmra.mrb[24].mxu1 %v10784_v41  ;;  %7692 = vmatprep.mubr.bf16.mxu0 %v10599_v36  ;;  %v3225_v36 = vld [vmem:[#allocation8 + $0x710] sm:$0xff] }
 0x4e3   : > { %8605 = vmatprep.mubr.bf16.mxu1 %v10793_v43  ;;  %v3032_v43 = vld [vmem:[#allocation8 + $0x108] sm:$0xff] }
 0x4e4   : > { %v14700_v24 = vpop.f32.mrb[156].mxu0  ;;  %v10615_v59 = vcombine.high %v3032_v43, %v3036_v26  ;;  %v10614_v51 = vcombine.low %v3032_v43, %v3036_v26 }
 0x4e5   : > { %15841 = vst [vmem:[#allocation130_spill] sm:$0xff] %v14700_v24  ;;  %v14702_v40 = vpop.f32.mrb[157].mxu0  ;;  %v3229_v24 = vld [vmem:[#allocation8 + $0x730] sm:$0xff] }
 0x4e6   : > { %15842 = vst [vmem:[#allocation131_spill] sm:$0xff] %v14702_v40  ;;  %v14704_v0 = vpop.f32.mrb[158].mxu0  ;;  %v10808_v47 = vcombine.low %v3225_v36, %v3229_v24 }
 0x4e7   : > { %15843 = vst [vmem:[#allocation132_spill] sm:$0xff] %v14704_v0  ;;  %v14706_v20 = vpop.f32.mrb[159].mxu0 }
 0x4e8   : > { %15844 = vst [vmem:[#allocation133_spill] sm:$0xff] %v14706_v20  ;;  %v10809_v20 = vcombine.high %v3225_v36, %v3229_v24 }
 0x4e9   : > { %7693 = vmatmul.mubr.bf16.gmra.mrb[8].mxu0 %v10598_v22  ;;  %v3044_v22 = vld [vmem:[#allocation8 + $0x168] sm:$0xff] }
 0x4ea   : > { %8606 = vmatmul.mubr.bf16.gmra.mrb[28].mxu1 %v10792_v56  ;;  %7702 = vmatprep.mubr.bf16.mxu0 %v10607_v62  ;;  %v3233_v62 = vld [vmem:[#allocation8 + $0x750] sm:$0xff] }
 0x4eb   : > { %8615 = vmatprep.mubr.bf16.mxu1 %v10801_v7  ;;  %v3040_v7 = vld [vmem:[#allocation8 + $0x148] sm:$0xff] }
 0x4ec   : > { %v14708_v41 = vpop.f32.mrb[160].mxu0  ;;  %v10623_v15 = vcombine.high %v3040_v7, %v3044_v22  ;;  %v10622_v43 = vcombine.low %v3040_v7, %v3044_v22 }
 0x4ed   : > { %15845 = vst [vmem:[#allocation134_spill] sm:$0xff] %v14708_v41  ;;  %v14710_v45 = vpop.f32.mrb[161].mxu0  ;;  %v3237_v41 = vld [vmem:[#allocation8 + $0x770] sm:$0xff] }
 0x4ee   : > { %15846 = vst [vmem:[#allocation135_spill] sm:$0xff] %v14710_v45  ;;  %v14712_v1 = vpop.f32.mrb[162].mxu0  ;;  %v10816_v24 = vcombine.low %v3233_v62, %v3237_v41 }
 0x4ef   : > { %15847 = vst [vmem:[#allocation136_spill] sm:$0xff] %v14712_v1  ;;  %v14714_v0 = vpop.f32.mrb[163].mxu0 }
 0x4f0   : > { %15848 = vst [vmem:[#allocation137_spill] sm:$0xff] %v14714_v0  ;;  %v10817_v0 = vcombine.high %v3233_v62, %v3237_v41 }
 0x4f1   : > { %7703 = vmatmul.mubr.bf16.gmra.mrb[12].mxu0 %v10606_v16  ;;  %v3052_v16 = vld [vmem:[#allocation8 + $0x1a8] sm:$0xff] }
 0x4f2   : > { %8616 = vmatmul.mubr.bf16.gmra.mrb[32].mxu1 %v10800_v48  ;;  %7712 = vmatprep.mubr.bf16.mxu0 %v10615_v59  ;;  %v3241_v59 = vld [vmem:[#allocation8 + $0x790] sm:$0xff] }
 0x4f3   : > { %8625 = vmatprep.mubr.bf16.mxu1 %v10809_v20  ;;  %v3048_v20 = vld [vmem:[#allocation8 + $0x188] sm:$0xff] }
 0x4f4   : > { %v14716_v56 = vpop.f32.mrb[164].mxu0  ;;  %v10631_v36 = vcombine.high %v3048_v20, %v3052_v16  ;;  %v10630_v7 = vcombine.low %v3048_v20, %v3052_v16 }
 0x4f5   : > { %15849 = vst [vmem:[#allocation138_spill] sm:$0xff] %v14716_v56  ;;  %v14718_v40 = vpop.f32.mrb[165].mxu0  ;;  %v3245_v56 = vld [vmem:[#allocation8 + $0x7b0] sm:$0xff] }
 0x4f6   : > { %15850 = vst [vmem:[#allocation139_spill] sm:$0xff] %v14718_v40  ;;  %v14720_v17 = vpop.f32.mrb[166].mxu0  ;;  %v10824_v41 = vcombine.low %v3241_v59, %v3245_v56 }
 0x4f7   : > { %15851 = vst [vmem:[#allocation140_spill] sm:$0xff] %v14720_v17  ;;  %v14722_v1 = vpop.f32.mrb[167].mxu0 }
 0x4f8   : > { %15852 = vst [vmem:[#allocation141_spill] sm:$0xff] %v14722_v1  ;;  %v10825_v1 = vcombine.high %v3241_v59, %v3245_v56 }
 0x4f9   : > { %7713 = vmatmul.mubr.bf16.gmra.mrb[16].mxu0 %v10614_v51  ;;  %v3060_v51 = vld [vmem:[#allocation8 + $0x1e8] sm:$0xff] }
 0x4fa   : > { %8626 = vmatmul.mubr.bf16.gmra.mrb[36].mxu1 %v10808_v47  ;;  %7722 = vmatprep.mubr.bf16.mxu0 %v10623_v15  ;;  %v3249_v15 = vld [vmem:[#allocation8 + $0x7d0] sm:$0xff] }
 0x4fb   : > { %8635 = vmatprep.mubr.bf16.mxu1 %v10817_v0  ;;  %v3056_v0 = vld [vmem:[#allocation8 + $0x1c8] sm:$0xff] }
 0x4fc   : > { %v14724_v48 = vpop.f32.mrb[168].mxu0  ;;  %v10639_v62 = vcombine.high %v3056_v0, %v3060_v51  ;;  %v10638_v20 = vcombine.low %v3056_v0, %v3060_v51 }
 0x4fd   : > { %15853 = vst [vmem:[#allocation142_spill] sm:$0xff] %v14724_v48  ;;  %v14726_v45 = vpop.f32.mrb[169].mxu0  ;;  %v3253_v48 = vld [vmem:[#allocation8 + $0x7f0] sm:$0xff] }
 0x4fe   : > { %15854 = vst [vmem:[#allocation143_spill] sm:$0xff] %v14726_v45  ;;  %v14728_v26 = vpop.f32.mrb[170].mxu0  ;;  %v10832_v56 = vcombine.low %v3249_v15, %v3253_v48 }
 0x4ff   : > { %15855 = vst [vmem:[#allocation144_spill] sm:$0xff] %v14728_v26  ;;  %v14730_v17 = vpop.f32.mrb[171].mxu0 }
 0x500   : > { %15856 = vst [vmem:[#allocation145_spill] sm:$0xff] %v14730_v17  ;;  %v10833_v17 = vcombine.high %v3249_v15, %v3253_v48 }
 0x501   : > { %7723 = vmatmul.mubr.bf16.gmra.mrb[20].mxu0 %v10622_v43  ;;  %v3068_v43 = vld [vmem:[#allocation8 + $0x228] sm:$0xff] }
 0x502   : > { %8636 = vmatmul.mubr.bf16.gmra.mrb[40].mxu1 %v10816_v24  ;;  %7732 = vmatprep.mubr.bf16.mxu0 %v10631_v36  ;;  %v3257_v36 = vld [vmem:[#allocation8 + $0x810] sm:$0xff] }
 0x503   : > { %8645 = vmatprep.mubr.bf16.mxu1 %v10825_v1  ;;  %v3064_v1 = vld [vmem:[#allocation8 + $0x208] sm:$0xff] }
 0x504   : > { %v14732_v47 = vpop.f32.mrb[172].mxu0  ;;  %v10647_v59 = vcombine.high %v3064_v1, %v3068_v43  ;;  %v10646_v0 = vcombine.low %v3064_v1, %v3068_v43 }
 0x505   : > { %15857 = vst [vmem:[#allocation146_spill] sm:$0xff] %v14732_v47  ;;  %v14734_v40 = vpop.f32.mrb[173].mxu0  ;;  %v3261_v47 = vld [vmem:[#allocation8 + $0x830] sm:$0xff] }
 0x506   : > { %15858 = vst [vmem:[#allocation147_spill] sm:$0xff] %v14734_v40  ;;  %v14736_v22 = vpop.f32.mrb[174].mxu0  ;;  %v10840_v48 = vcombine.low %v3257_v36, %v3261_v47 }
 0x507   : > { %15859 = vst [vmem:[#allocation148_spill] sm:$0xff] %v14736_v22  ;;  %v14738_v26 = vpop.f32.mrb[175].mxu0 }
 0x508   : > { %15860 = vst [vmem:[#allocation149_spill] sm:$0xff] %v14738_v26  ;;  %v10841_v26 = vcombine.high %v3257_v36, %v3261_v47 }
 0x509   : > { %7733 = vmatmul.mubr.bf16.gmra.mrb[24].mxu0 %v10630_v7  ;;  %v3076_v7 = vld [vmem:[#allocation8 + $0x268] sm:$0xff] }
 0x50a   : > { %8646 = vmatmul.mubr.bf16.gmra.mrb[44].mxu1 %v10824_v41  ;;  %7742 = vmatprep.mubr.bf16.mxu0 %v10639_v62  ;;  %v3265_v62 = vld [vmem:[#allocation8 + $0x850] sm:$0xff] }
 0x50b   : > { %8655 = vmatprep.mubr.bf16.mxu1 %v10833_v17  ;;  %v3072_v17 = vld [vmem:[#allocation8 + $0x248] sm:$0xff] }
 0x50c   : > { %v14740_v24 = vpop.f32.mrb[176].mxu0  ;;  %v10655_v15 = vcombine.high %v3072_v17, %v3076_v7  ;;  %v10654_v1 = vcombine.low %v3072_v17, %v3076_v7 }
 0x50d   : > { %15861 = vst [vmem:[#allocation150_spill] sm:$0xff] %v14740_v24  ;;  %v14742_v45 = vpop.f32.mrb[177].mxu0  ;;  %v3269_v24 = vld [vmem:[#allocation8 + $0x870] sm:$0xff] }
 0x50e   : > { %15862 = vst [vmem:[#allocation151_spill] sm:$0xff] %v14742_v45  ;;  %v14744_v16 = vpop.f32.mrb[178].mxu0  ;;  %v10848_v47 = vcombine.low %v3265_v62, %v3269_v24 }
 0x50f   : > { %15863 = vst [vmem:[#allocation152_spill] sm:$0xff] %v14744_v16  ;;  %v14746_v22 = vpop.f32.mrb[179].mxu0 }
 0x510   : > { %15864 = vst [vmem:[#allocation153_spill] sm:$0xff] %v14746_v22  ;;  %v10849_v22 = vcombine.high %v3265_v62, %v3269_v24 }
 0x511   : > { %7743 = vmatmul.mubr.bf16.gmra.mrb[28].mxu0 %v10638_v20  ;;  %v3084_v20 = vld [vmem:[#allocation8 + $0x2a8] sm:$0xff] }
 0x512   : > { %8656 = vmatmul.mubr.bf16.gmra.mrb[48].mxu1 %v10832_v56  ;;  %7752 = vmatprep.mubr.bf16.mxu0 %v10647_v59  ;;  %v3273_v59 = vld [vmem:[#allocation8 + $0x890] sm:$0xff] }
 0x513   : > { %8665 = vmatprep.mubr.bf16.mxu1 %v10841_v26  ;;  %v3080_v26 = vld [vmem:[#allocation8 + $0x288] sm:$0xff] }
 0x514   : > { %v14748_v41 = vpop.f32.mrb[180].mxu0  ;;  %v10663_v36 = vcombine.high %v3080_v26, %v3084_v20  ;;  %v10662_v17 = vcombine.low %v3080_v26, %v3084_v20 }
 0x515   : > { %15865 = vst [vmem:[#allocation154_spill] sm:$0xff] %v14748_v41  ;;  %v14750_v40 = vpop.f32.mrb[181].mxu0  ;;  %v3277_v41 = vld [vmem:[#allocation8 + $0x8b0] sm:$0xff] }
 0x516   : > { %15866 = vst [vmem:[#allocation155_spill] sm:$0xff] %v14750_v40  ;;  %v14752_v51 = vpop.f32.mrb[182].mxu0  ;;  %v10856_v24 = vcombine.low %v3273_v59, %v3277_v41 }
 0x517   : > { %15867 = vst [vmem:[#allocation156_spill] sm:$0xff] %v14752_v51  ;;  %v14754_v16 = vpop.f32.mrb[183].mxu0 }
 0x518   : > { %15868 = vst [vmem:[#allocation157_spill] sm:$0xff] %v14754_v16  ;;  %v10857_v16 = vcombine.high %v3273_v59, %v3277_v41 }
 0x519   : > { %7753 = vmatmul.mubr.bf16.gmra.mrb[32].mxu0 %v10646_v0  ;;  %v3092_v0 = vld [vmem:[#allocation8 + $0x2e8] sm:$0xff] }
 0x51a   : > { %8666 = vmatmul.mubr.bf16.gmra.mrb[52].mxu1 %v10840_v48  ;;  %7762 = vmatprep.mubr.bf16.mxu0 %v10655_v15  ;;  %v3281_v15 = vld [vmem:[#allocation8 + $0x8d0] sm:$0xff] }
 0x51b   : > { %8675 = vmatprep.mubr.bf16.mxu1 %v10849_v22  ;;  %v3088_v22 = vld [vmem:[#allocation8 + $0x2c8] sm:$0xff] }
 0x51c   : > { %v14756_v56 = vpop.f32.mrb[184].mxu0  ;;  %v10671_v62 = vcombine.high %v3088_v22, %v3092_v0  ;;  %v10670_v26 = vcombine.low %v3088_v22, %v3092_v0 }
 0x51d   : > { %15869 = vst [vmem:[#allocation158_spill] sm:$0xff] %v14756_v56  ;;  %v14758_v45 = vpop.f32.mrb[185].mxu0  ;;  %v3285_v56 = vld [vmem:[#allocation8 + $0x8f0] sm:$0xff] }
 0x51e   : > { %15870 = vst [vmem:[#allocation159_spill] sm:$0xff] %v14758_v45  ;;  %v14760_v43 = vpop.f32.mrb[186].mxu0  ;;  %v10864_v41 = vcombine.low %v3281_v15, %v3285_v56 }
 0x51f   : > { %15871 = vst [vmem:[#allocation160_spill] sm:$0xff] %v14760_v43  ;;  %v14762_v51 = vpop.f32.mrb[187].mxu0 }
 0x520   : > { %15872 = vst [vmem:[#allocation161_spill] sm:$0xff] %v14762_v51  ;;  %v10865_v51 = vcombine.high %v3281_v15, %v3285_v56 }
 0x521   : > { %7763 = vmatmul.mubr.bf16.gmra.mrb[36].mxu0 %v10654_v1  ;;  %v3100_v1 = vld [vmem:[#allocation8 + $0x328] sm:$0xff] }
 0x522   : > { %8676 = vmatmul.mubr.bf16.gmra.mrb[56].mxu1 %v10848_v47  ;;  %7772 = vmatprep.mubr.bf16.mxu0 %v10663_v36  ;;  %v3289_v36 = vld [vmem:[#allocation8 + $0x910] sm:$0xff] }
 0x523   : > { %8685 = vmatprep.mubr.bf16.mxu1 %v10857_v16  ;;  %v3096_v16 = vld [vmem:[#allocation8 + $0x308] sm:$0xff] }
 0x524   : > { %v14764_v48 = vpop.f32.mrb[188].mxu0  ;;  %v10679_v59 = vcombine.high %v3096_v16, %v3100_v1  ;;  %v10678_v22 = vcombine.low %v3096_v16, %v3100_v1 }
 0x525   : > { %15873 = vst [vmem:[#allocation162_spill] sm:$0xff] %v14764_v48  ;;  %v14766_v40 = vpop.f32.mrb[189].mxu0  ;;  %v3293_v48 = vld [vmem:[#allocation8 + $0x930] sm:$0xff] }
 0x526   : > { %15874 = vst [vmem:[#allocation163_spill] sm:$0xff] %v14766_v40  ;;  %v14768_v7 = vpop.f32.mrb[190].mxu0  ;;  %v10872_v56 = vcombine.low %v3289_v36, %v3293_v48 }
 0x527   : > { %15875 = vst [vmem:[#allocation164_spill] sm:$0xff] %v14768_v7  ;;  %v14770_v43 = vpop.f32.mrb[191].mxu0 }
 0x528   : > { %15876 = vst [vmem:[#allocation165_spill] sm:$0xff] %v14770_v43  ;;  %v10873_v43 = vcombine.high %v3289_v36, %v3293_v48 }
 0x529   : > { %7773 = vmatmul.mubr.bf16.gmra.mrb[40].mxu0 %v10662_v17  ;;  %v3108_v17 = vld [vmem:[#allocation8 + $0x368] sm:$0xff] }
 0x52a   : > { %8686 = vmatmul.mubr.bf16.gmra.mrb[60].mxu1 %v10856_v24  ;;  %7782 = vmatprep.mubr.bf16.mxu0 %v10671_v62  ;;  %v3297_v62 = vld [vmem:[#allocation8 + $0x950] sm:$0xff] }
 0x52b   : > { %8695 = vmatprep.mubr.bf16.mxu1 %v10865_v51  ;;  %v3104_v51 = vld [vmem:[#allocation8 + $0x348] sm:$0xff] }
 0x52c   : > { %v14772_v47 = vpop.f32.mrb[192].mxu0  ;;  %v10687_v15 = vcombine.high %v3104_v51, %v3108_v17  ;;  %v10686_v16 = vcombine.low %v3104_v51, %v3108_v17 }
 0x52d   : > { %15877 = vst [vmem:[#allocation166_spill] sm:$0xff] %v14772_v47  ;;  %v14774_v45 = vpop.f32.mrb[193].mxu0  ;;  %v3301_v47 = vld [vmem:[#allocation8 + $0x970] sm:$0xff] }
 0x52e   : > { %15878 = vst [vmem:[#allocation167_spill] sm:$0xff] %v14774_v45  ;;  %v14776_v20 = vpop.f32.mrb[194].mxu0  ;;  %v10880_v48 = vcombine.low %v3297_v62, %v3301_v47 }
 0x52f   : > { %15879 = vst [vmem:[#allocation168_spill] sm:$0xff] %v14776_v20  ;;  %v14778_v7 = vpop.f32.mrb[195].mxu0 }
 0x530   : > { %15880 = vst [vmem:[#allocation169_spill] sm:$0xff] %v14778_v7  ;;  %v10881_v7 = vcombine.high %v3297_v62, %v3301_v47 }
 0x531   : > { %7783 = vmatmul.mubr.bf16.gmra.mrb[44].mxu0 %v10670_v26  ;;  %v3116_v26 = vld [vmem:[#allocation8 + $0x3a8] sm:$0xff] }
 0x532   : > { %8696 = vmatmul.mubr.bf16.gmra.mrb[64].mxu1 %v10864_v41  ;;  %7792 = vmatprep.mubr.bf16.mxu0 %v10679_v59  ;;  %v3305_v59 = vld [vmem:[#allocation8 + $0x990] sm:$0xff] }
 0x533   : > { %8705 = vmatprep.mubr.bf16.mxu1 %v10873_v43  ;;  %v3112_v43 = vld [vmem:[#allocation8 + $0x388] sm:$0xff] }
 0x534   : > { %v14780_v24 = vpop.f32.mrb[196].mxu0  ;;  %v10695_v36 = vcombine.high %v3112_v43, %v3116_v26  ;;  %v10694_v51 = vcombine.low %v3112_v43, %v3116_v26 }
 0x535   : > { %15881 = vst [vmem:[#allocation170_spill] sm:$0xff] %v14780_v24  ;;  %v14782_v40 = vpop.f32.mrb[197].mxu0  ;;  %v3309_v24 = vld [vmem:[#allocation8 + $0x9b0] sm:$0xff] }
 0x536   : > { %15882 = vst [vmem:[#allocation171_spill] sm:$0xff] %v14782_v40  ;;  %v14784_v0 = vpop.f32.mrb[198].mxu0  ;;  %v10888_v47 = vcombine.low %v3305_v59, %v3309_v24 }
 0x537   : > { %15883 = vst [vmem:[#allocation172_spill] sm:$0xff] %v14784_v0  ;;  %v14786_v20 = vpop.f32.mrb[199].mxu0 }
 0x538   : > { %15884 = vst [vmem:[#allocation173_spill] sm:$0xff] %v14786_v20  ;;  %v10889_v20 = vcombine.high %v3305_v59, %v3309_v24 }
 0x539   : > { %7793 = vmatmul.mubr.bf16.gmra.mrb[48].mxu0 %v10678_v22  ;;  %v3124_v22 = vld [vmem:[#allocation8 + $0x3e8] sm:$0xff] }
 0x53a   : > { %8706 = vmatmul.mubr.bf16.gmra.mrb[68].mxu1 %v10872_v56  ;;  %7802 = vmatprep.mubr.bf16.mxu0 %v10687_v15  ;;  %v3313_v15 = vld [vmem:[#allocation8 + $0x9d0] sm:$0xff] }
 0x53b   : > { %8715 = vmatprep.mubr.bf16.mxu1 %v10881_v7  ;;  %v3120_v7 = vld [vmem:[#allocation8 + $0x3c8] sm:$0xff] }
 0x53c   : > { %v14788_v41 = vpop.f32.mrb[200].mxu0  ;;  %v10703_v62 = vcombine.high %v3120_v7, %v3124_v22  ;;  %v10702_v43 = vcombine.low %v3120_v7, %v3124_v22 }
 0x53d   : > { %15885 = vst [vmem:[#allocation174_spill] sm:$0xff] %v14788_v41  ;;  %v14790_v45 = vpop.f32.mrb[201].mxu0  ;;  %v3317_v41 = vld [vmem:[#allocation8 + $0x9f0] sm:$0xff] }
 0x53e   : > { %15886 = vst [vmem:[#allocation175_spill] sm:$0xff] %v14790_v45  ;;  %v14792_v1 = vpop.f32.mrb[202].mxu0  ;;  %v10896_v24 = vcombine.low %v3313_v15, %v3317_v41 }
 0x53f   : > { %15887 = vst [vmem:[#allocation176_spill] sm:$0xff] %v14792_v1  ;;  %v14794_v0 = vpop.f32.mrb[203].mxu0 }
 0x540   : > { %15888 = vst [vmem:[#allocation177_spill] sm:$0xff] %v14794_v0  ;;  %v10897_v0 = vcombine.high %v3313_v15, %v3317_v41 }
 0x541   : > { %7803 = vmatmul.mubr.bf16.gmra.mrb[52].mxu0 %v10686_v16  ;;  %v3132_v16 = vld [vmem:[#allocation8 + $0x428] sm:$0xff] }
 0x542   : > { %8716 = vmatmul.mubr.bf16.gmra.mrb[72].mxu1 %v10880_v48  ;;  %7812 = vmatprep.mubr.bf16.mxu0 %v10695_v36  ;;  %v3321_v36 = vld [vmem:[#allocation8 + $0xa10] sm:$0xff] }
 0x543   : > { %8725 = vmatprep.mubr.bf16.mxu1 %v10889_v20  ;;  %v3128_v20 = vld [vmem:[#allocation8 + $0x408] sm:$0xff] }
 0x544   : > { %v14796_v56 = vpop.f32.mrb[204].mxu0  ;;  %v10711_v59 = vcombine.high %v3128_v20, %v3132_v16  ;;  %v10710_v7 = vcombine.low %v3128_v20, %v3132_v16 }
 0x545   : > { %15889 = vst [vmem:[#allocation178_spill] sm:$0xff] %v14796_v56  ;;  %v14798_v40 = vpop.f32.mrb[205].mxu0  ;;  %v3325_v56 = vld [vmem:[#allocation8 + $0xa30] sm:$0xff] }
 0x546   : > { %15890 = vst [vmem:[#allocation179_spill] sm:$0xff] %v14798_v40  ;;  %v14800_v17 = vpop.f32.mrb[206].mxu0  ;;  %v10904_v41 = vcombine.low %v3321_v36, %v3325_v56 }
 0x547   : > { %15891 = vst [vmem:[#allocation180_spill] sm:$0xff] %v14800_v17  ;;  %v14802_v1 = vpop.f32.mrb[207].mxu0 }
 0x548   : > { %15892 = vst [vmem:[#allocation181_spill] sm:$0xff] %v14802_v1  ;;  %v10905_v1 = vcombine.high %v3321_v36, %v3325_v56 }
 0x549   : > { %7813 = vmatmul.mubr.bf16.gmra.mrb[56].mxu0 %v10694_v51  ;;  %v3140_v51 = vld [vmem:[#allocation8 + $0x468] sm:$0xff] }
 0x54a   : > { %8726 = vmatmul.mubr.bf16.gmra.mrb[76].mxu1 %v10888_v47  ;;  %7822 = vmatprep.mubr.bf16.mxu0 %v10703_v62  ;;  %v3329_v62 = vld [vmem:[#allocation8 + $0xa50] sm:$0xff] }
 0x54b   : > { %8735 = vmatprep.mubr.bf16.mxu1 %v10897_v0  ;;  %v3136_v0 = vld [vmem:[#allocation8 + $0x448] sm:$0xff] }
 0x54c   : > { %v14804_v48 = vpop.f32.mrb[208].mxu0  ;;  %v10719_v15 = vcombine.high %v3136_v0, %v3140_v51  ;;  %v10718_v20 = vcombine.low %v3136_v0, %v3140_v51 }
 0x54d   : > { %15893 = vst [vmem:[#allocation182_spill] sm:$0xff] %v14804_v48  ;;  %v14806_v45 = vpop.f32.mrb[209].mxu0  ;;  %v3333_v48 = vld [vmem:[#allocation8 + $0xa70] sm:$0xff] }
 0x54e   : > { %15894 = vst [vmem:[#allocation183_spill] sm:$0xff] %v14806_v45  ;;  %v14808_v26 = vpop.f32.mrb[210].mxu0  ;;  %v10912_v56 = vcombine.low %v3329_v62, %v3333_v48 }
 0x54f   : > { %15895 = vst [vmem:[#allocation184_spill] sm:$0xff] %v14808_v26  ;;  %v14810_v17 = vpop.f32.mrb[211].mxu0 }
 0x550   : > { %15896 = vst [vmem:[#allocation185_spill] sm:$0xff] %v14810_v17  ;;  %v10913_v17 = vcombine.high %v3329_v62, %v3333_v48 }
 0x551   : > { %7823 = vmatmul.mubr.bf16.gmra.mrb[60].mxu0 %v10702_v43  ;;  %v3148_v43 = vld [vmem:[#allocation8 + $0x4a8] sm:$0xff] }
 0x552   : > { %8736 = vmatmul.mubr.bf16.gmra.mrb[80].mxu1 %v10896_v24  ;;  %7832 = vmatprep.mubr.bf16.mxu0 %v10711_v59  ;;  %v3337_v59 = vld [vmem:[#allocation8 + $0xa90] sm:$0xff] }
 0x553   : > { %8745 = vmatprep.mubr.bf16.mxu1 %v10905_v1  ;;  %v3144_v1 = vld [vmem:[#allocation8 + $0x488] sm:$0xff] }
 0x554   : > { %v14812_v47 = vpop.f32.mrb[212].mxu0  ;;  %v10727_v36 = vcombine.high %v3144_v1, %v3148_v43 }
 0x555   : > { %15897 = vst [vmem:[#allocation186_spill] sm:$0xff] %v14812_v47  ;;  %v14814_v40 = vpop.f32.mrb[213].mxu0  ;;  %v3341_v47 = vld [vmem:[#allocation8 + $0xab0] sm:$0xff] }
 0x556   : > { %15898 = vst [vmem:[#allocation187_spill] sm:$0xff] %v14814_v40  ;;  %v14816_v22 = vpop.f32.mrb[214].mxu0  ;;  %v10920_v0 = vcombine.low %v3337_v59, %v3341_v47 }
 0x557   : > { %15899 = vst [vmem:[#allocation188_spill] sm:$0xff] %v14816_v22  ;;  %v14818_v26 = vpop.f32.mrb[215].mxu0 }
 0x558   : > { %15900 = vst [vmem:[#allocation189_spill] sm:$0xff] %v14818_v26  ;;  %v10921_v26 = vcombine.high %v3337_v59, %v3341_v47 }
 0x559   : > { %7833 = vmatmul.mubr.bf16.gmra.mrb[64].mxu0 %v10710_v7  ;;  %v3345_v7 = vld [vmem:[#allocation8 + $0xad0] sm:$0xff] }
 0x55a   : > { %8746 = vmatmul.mubr.bf16.gmra.mrb[84].mxu1 %v10904_v41  ;;  %7842 = vmatprep.mubr.bf16.mxu0 %v10719_v15  ;;  %v3349_v41 = vld [vmem:[#allocation8 + $0xaf0] sm:$0xff] }
 0x55b   : > { %8755 = vmatprep.mubr.bf16.mxu1 %v10913_v17  ;;  %v10929_v48 = vcombine.high %v3345_v7, %v3349_v41 }
 0x55c   : > { %v14820_v24 = vpop.f32.mrb[216].mxu0 }
 0x55d   : > { %15901 = vst [vmem:[#allocation190_spill] sm:$0xff] %v14820_v24  ;;  %v14822_v45 = vpop.f32.mrb[217].mxu0  ;;  %v10726_v24 = vcombine.low %v3144_v1, %v3148_v43  ;;  %v3361_v43 = vld [vmem:[#allocation8 + $0xb50] sm:$0xff] }
 0x55e   : > { %15902 = vst [vmem:[#allocation191_spill] sm:$0xff] %v14822_v45  ;;  %v14824_v16 = vpop.f32.mrb[218].mxu0 }
 0x55f   : > { %15903 = vst [vmem:[#allocation192_spill] sm:$0xff] %v14824_v16  ;;  %v14826_v22 = vpop.f32.mrb[219].mxu0 }
 0x560   : > { %15904 = vst [vmem:[#allocation193_spill] sm:$0xff] %v14826_v22  ;;  %v3437_v22 = vld [vmem:[#allocation8 + $0xdb0] sm:$0xff] }
 0x561   : > { %7843 = vmatmul.mubr.bf16.gmra.mrb[68].mxu0 %v10718_v20  ;;  %v3353_v20 = vld [vmem:[#allocation8 + $0xb10] sm:$0xff] }
 0x562   : > { %8756 = vmatmul.mubr.bf16.gmra.mrb[88].mxu1 %v10912_v56  ;;  %7852 = vmatprep.mubr.bf16.mxu0 %v10727_v36 }
 0x563   : > { %8765 = vmatprep.mubr.bf16.mxu1 %v10921_v26  ;;  %v3357_v26 = vld [vmem:[#allocation8 + $0xb30] sm:$0xff] }
 0x564   : > { %v14828_v17 = vpop.f32.mrb[220].mxu0  ;;  %v10937_v1 = vcombine.high %v3353_v20, %v3357_v26 }
 0x565   : > { %15905 = vst [vmem:[#allocation194_spill] sm:$0xff] %v14828_v17  ;;  %v14830_v15 = vpop.f32.mrb[221].mxu0  ;;  %v10928_v17 = vcombine.low %v3345_v7, %v3349_v41  ;;  %v3369_v41 = vld [vmem:[#allocation8 + $0xb90] sm:$0xff] }
 0x566   : > { %15906 = vst [vmem:[#allocation195_spill] sm:$0xff] %v14830_v15  ;;  %v14832_v45 = vpop.f32.mrb[222].mxu0 }
 0x567   : > { %15907 = vst [vmem:[#allocation196_spill] sm:$0xff] %v14832_v45  ;;  %v14834_v51 = vpop.f32.mrb[223].mxu0 }
 0x568   : > { %15908 = vst [vmem:[#allocation197_spill] sm:$0xff] %v14834_v51 }
 0x569   : > { %7853 = vmatmul.mubr.bf16.gmra.mrb[72].mxu0 %v10726_v24  ;;  %v3365_v24 = vld [vmem:[#allocation8 + $0xb70] sm:$0xff] }
 0x56a   : > { %8766 = vmatmul.mubr.bf16.gmra.mrb[92].mxu1 %v10920_v0 }
 0x56b   : > { %8775 = vmatprep.mubr.bf16.mxu1 %v10929_v48  ;;  %v10936_v48 = vcombine.low %v3353_v20, %v3357_v26  ;;  %v3377_v26 = vld [vmem:[#allocation8 + $0xbd0] sm:$0xff] }
 0x56c   : > { %v14836_v62 = vpop.f32.mrb[224].mxu0 }
 0x56d   : > { %15909 = vst [vmem:[#allocation198_spill] sm:$0xff] %v14836_v62  ;;  %v14838_v56 = vpop.f32.mrb[225].mxu0 }
 0x56e   : > { %15910 = vst [vmem:[#allocation199_spill] sm:$0xff] %v14838_v56  ;;  %v14840_v36 = vpop.f32.mrb[226].mxu0  ;;  %v10945_v56 = vcombine.high %v3361_v43, %v3365_v24 }
 0x56f   : > { %15911 = vst [vmem:[#allocation200_spill] sm:$0xff] %v14840_v36  ;;  %v14842_v15 = vpop.f32.mrb[227].mxu0 }
 0x570   : > { %15912 = vst [vmem:[#allocation201_spill] sm:$0xff] %v14842_v15  ;;  %v3373_v15 = vld [vmem:[#allocation8 + $0xbb0] sm:$0xff] }
 0x572   : > { %8776 = vmatmul.mubr.bf16.gmra.mrb[96].mxu1 %v10928_v17 }
 0x573   : > { %8785 = vmatprep.mubr.bf16.mxu1 %v10937_v1 }
 0x574   : > { %v14844_v47 = vpop.f32.mrb[228].mxu0 }
 0x575   : > { %15913 = vst [vmem:[#allocation202_spill] sm:$0xff] %v14844_v47  ;;  %v14846_v59 = vpop.f32.mrb[229].mxu0  ;;  %v10944_v47 = vcombine.low %v3361_v43, %v3365_v24  ;;  %v3385_v24 = vld [vmem:[#allocation8 + $0xc10] sm:$0xff] }
 0x576   : > { %15914 = vst [vmem:[#allocation203_spill] sm:$0xff] %v14846_v59  ;;  %v14848_v0 = vpop.f32.mrb[230].mxu0  ;;  %v10953_v59 = vcombine.high %v3369_v41, %v3373_v15 }
 0x577   : > { %15915 = vst [vmem:[#allocation204_spill] sm:$0xff] %v14848_v0  ;;  %v14850_v62 = vpop.f32.mrb[231].mxu0 }
 0x578   : > { %15916 = vst [vmem:[#allocation205_spill] sm:$0xff] %v14850_v62  ;;  %v3381_v62 = vld [vmem:[#allocation8 + $0xbf0] sm:$0xff] }
 0x57a   : > { %8786 = vmatmul.mubr.bf16.gmra.mrb[100].mxu1 %v10936_v48 }
 0x57b   : > { %8795 = vmatprep.mubr.bf16.mxu1 %v10945_v56 }
 0x57c   : > { %v14852_v7 = vpop.f32.mrb[232].mxu0 }
 0x57d   : > { %15917 = vst [vmem:[#allocation206_spill] sm:$0xff] %v14852_v7  ;;  %v14854_v17 = vpop.f32.mrb[233].mxu0  ;;  %v10952_v7 = vcombine.low %v3369_v41, %v3373_v15  ;;  %v3393_v41 = vld [vmem:[#allocation8 + $0xc50] sm:$0xff] }
 0x57e   : > { %15918 = vst [vmem:[#allocation207_spill] sm:$0xff] %v14854_v17  ;;  %v14856_v1 = vpop.f32.mrb[234].mxu0  ;;  %v10961_v17 = vcombine.high %v3377_v26, %v3381_v62 }
 0x57f   : > { %15919 = vst [vmem:[#allocation208_spill] sm:$0xff] %v14856_v1  ;;  %v14858_v36 = vpop.f32.mrb[235].mxu0 }
 0x580   : > { %15920 = vst [vmem:[#allocation209_spill] sm:$0xff] %v14858_v36  ;;  %v3389_v36 = vld [vmem:[#allocation8 + $0xc30] sm:$0xff] }
 0x582   : > { %8796 = vmatmul.mubr.bf16.gmra.mrb[104].mxu1 %v10944_v47 }
 0x583   : > { %8805 = vmatprep.mubr.bf16.mxu1 %v10953_v59 }
 0x584   : > { %v14860_v20 = vpop.f32.mrb[236].mxu0 }
 0x585   : > { %15921 = vst [vmem:[#allocation210_spill] sm:$0xff] %v14860_v20  ;;  %v14862_v48 = vpop.f32.mrb[237].mxu0  ;;  %v10960_v20 = vcombine.low %v3377_v26, %v3381_v62  ;;  %v3401_v26 = vld [vmem:[#allocation8 + $0xc90] sm:$0xff] }
 0x586   : > { %15922 = vst [vmem:[#allocation211_spill] sm:$0xff] %v14862_v48  ;;  %v14864_v56 = vpop.f32.mrb[238].mxu0  ;;  %v10969_v48 = vcombine.high %v3385_v24, %v3389_v36 }
 0x587   : > { %15923 = vst [vmem:[#allocation212_spill] sm:$0xff] %v14864_v56  ;;  %v14866_v0 = vpop.f32.mrb[239].mxu0 }
 0x588   : > { %15924 = vst [vmem:[#allocation213_spill] sm:$0xff] %v14866_v0  ;;  %v3397_v0 = vld [vmem:[#allocation8 + $0xc70] sm:$0xff] }
 0x58a   : > { %8806 = vmatmul.mubr.bf16.gmra.mrb[108].mxu1 %v10952_v7 }
 0x58b   : > { %8815 = vmatprep.mubr.bf16.mxu1 %v10961_v17 }
 0x58c   : > { %v14868_v43 = vpop.f32.mrb[240].mxu0 }
 0x58d   : > { %15925 = vst [vmem:[#allocation214_spill] sm:$0xff] %v14868_v43  ;;  %v14870_v47 = vpop.f32.mrb[241].mxu0  ;;  %v10968_v43 = vcombine.low %v3385_v24, %v3389_v36  ;;  %v3409_v24 = vld [vmem:[#allocation8 + $0xcd0] sm:$0xff] }
 0x58e   : > { %15926 = vst [vmem:[#allocation215_spill] sm:$0xff] %v14870_v47  ;;  %v14872_v59 = vpop.f32.mrb[242].mxu0  ;;  %v10977_v47 = vcombine.high %v3393_v41, %v3397_v0 }
 0x58f   : > { %15927 = vst [vmem:[#allocation216_spill] sm:$0xff] %v14872_v59  ;;  %v14874_v1 = vpop.f32.mrb[243].mxu0 }
 0x590   : > { %15928 = vst [vmem:[#allocation217_spill] sm:$0xff] %v14874_v1  ;;  %v3405_v1 = vld [vmem:[#allocation8 + $0xcb0] sm:$0xff] }
 0x592   : > { %8816 = vmatmul.mubr.bf16.gmra.mrb[112].mxu1 %v10960_v20 }
 0x593   : > { %8825 = vmatprep.mubr.bf16.mxu1 %v10969_v48 }
 0x594   : > { %v14876_v15 = vpop.f32.mrb[244].mxu0 }
 0x595   : > { %15929 = vst [vmem:[#allocation218_spill] sm:$0xff] %v14876_v15  ;;  %v14878_v7 = vpop.f32.mrb[245].mxu0  ;;  %v10976_v15 = vcombine.low %v3393_v41, %v3397_v0  ;;  %v3417_v41 = vld [vmem:[#allocation8 + $0xd10] sm:$0xff] }
 0x596   : > { %15930 = vst [vmem:[#allocation219_spill] sm:$0xff] %v14878_v7  ;;  %v14880_v17 = vpop.f32.mrb[246].mxu0  ;;  %v10985_v7 = vcombine.high %v3401_v26, %v3405_v1 }
 0x597   : > { %15931 = vst [vmem:[#allocation220_spill] sm:$0xff] %v14880_v17  ;;  %v14882_v56 = vpop.f32.mrb[247].mxu0 }
 0x598   : > { %15932 = vst [vmem:[#allocation221_spill] sm:$0xff] %v14882_v56  ;;  %v3413_v56 = vld [vmem:[#allocation8 + $0xcf0] sm:$0xff] }
 0x59a   : > { %8826 = vmatmul.mubr.bf16.gmra.mrb[116].mxu1 %v10968_v43 }
 0x59b   : > { %8835 = vmatprep.mubr.bf16.mxu1 %v10977_v47 }
 0x59c   : > { %v14884_v62 = vpop.f32.mrb[248].mxu0 }
 0x59d   : > { %15933 = vst [vmem:[#allocation222_spill] sm:$0xff] %v14884_v62  ;;  %v14886_v20 = vpop.f32.mrb[249].mxu0  ;;  %v10984_v62 = vcombine.low %v3401_v26, %v3405_v1  ;;  %v3425_v26 = vld [vmem:[#allocation8 + $0xd50] sm:$0xff] }
 0x59e   : > { %15934 = vst [vmem:[#allocation223_spill] sm:$0xff] %v14886_v20  ;;  %v14888_v48 = vpop.f32.mrb[250].mxu0  ;;  %v10993_v20 = vcombine.high %v3409_v24, %v3413_v56 }
 0x59f   : > { %15935 = vst [vmem:[#allocation224_spill] sm:$0xff] %v14888_v48  ;;  %v14890_v59 = vpop.f32.mrb[251].mxu0 }
 0x5a0   : > { %15936 = vst [vmem:[#allocation225_spill] sm:$0xff] %v14890_v59  ;;  %v3421_v59 = vld [vmem:[#allocation8 + $0xd30] sm:$0xff] }
 0x5a2   : > { %8836 = vmatmul.mubr.bf16.gmra.mrb[120].mxu1 %v10976_v15 }
 0x5a3   : > { %8845 = vmatprep.mubr.bf16.mxu1 %v10985_v7 }
 0x5a4   : > { %v14892_v36 = vpop.f32.mrb[252].mxu0 }
 0x5a5   : > { %15937 = vst [vmem:[#allocation226_spill] sm:$0xff] %v14892_v36  ;;  %v14894_v43 = vpop.f32.mrb[253].mxu0  ;;  %v10992_v36 = vcombine.low %v3409_v24, %v3413_v56  ;;  %v3433_v24 = vld [vmem:[#allocation8 + $0xd90] sm:$0xff] }
 0x5a6   : > { %15938 = vst [vmem:[#allocation227_spill] sm:$0xff] %v14894_v43  ;;  %v14896_v47 = vpop.f32.mrb[254].mxu0  ;;  %v11001_v43 = vcombine.high %v3417_v41, %v3421_v59  ;;  %v11017_v55 = vcombine.high %v3433_v24, %v3437_v22  ;;  %v11016_v33 = vcombine.low %v3433_v24, %v3437_v22  ;;  %v3457_v24 = vld [vmem:[#allocation8 + $0xe50] sm:$0xff] }
 0x5a7   : > { %15939 = vst [vmem:[#allocation228_spill] sm:$0xff] %v14896_v47  ;;  %v14898_v17 = vpop.f32.mrb[255].mxu0  ;;  %v11000_v47 = vcombine.low %v3417_v41, %v3421_v59  ;;  %v3441_v41 = vld [vmem:[#allocation8 + $0xdd0] sm:$0xff]  ;;  %v11041_v9 = vcombine.high %v3457_v24, %v3461_v3  ;;  %v11040_v53 = vcombine.low %v3457_v24, %v3461_v3 }
 0x5a8   : > { %15940 = vst [vmem:[#allocation229_spill] sm:$0xff] %v14898_v17  ;;  %v3429_v17 = vld [vmem:[#allocation8 + $0xd70] sm:$0xff]  ;;  %v11025_v10 = vcombine.high %v3441_v41, %v3445_v23  ;;  %v11024_v63 = vcombine.low %v3441_v41, %v3445_v23 }
 0x5a9   : > { %v11009_v45 = vcombine.high %v3425_v26, %v3429_v17  ;;  %v11008_v16 = vcombine.low %v3425_v26, %v3429_v17  ;;  %v3449_v26 = vld [vmem:[#allocation8 + $0xe10] sm:$0xff] }
 0x5aa   : > { %8846 = vmatmul.mubr.bf16.gmra.mrb[124].mxu1 %v10984_v62  ;;  %v11033_v11 = vcombine.high %v3449_v26, %v3453_v34  ;;  %v11032_v27 = vcombine.low %v3449_v26, %v3453_v34  ;;  %v3465_v41 = vld [vmem:[#allocation8 + $0xe90] sm:$0xff] }
 0x5ab   : > { %8855 = vmatprep.mubr.bf16.mxu1 %v10993_v20  ;;  %v11049_v28 = vcombine.high %v3465_v41, %v3469_v8  ;;  %v3473_v26 = vld [vmem:[#allocation8 + $0xed0] sm:$0xff]  ;;  %v11048_v49 = vcombine.low %v3465_v41, %v3469_v8 }
 0x5ac   : > { %v14900_v0 = vpop.f32.mrb[0].mxu0  ;;  %v11057_v21 = vcombine.high %v3473_v26, %v3477_v13  ;;  %v3481_v24 = vld [vmem:[#allocation8 + $0xf10] sm:$0xff]  ;;  %v11056_v19 = vcombine.low %v3473_v26, %v3477_v13 }
 0x5ad   : > { %v14902_v15 = vpop.f32.mrb[1].mxu0  ;;  %v11065_v46 = vcombine.high %v3481_v24, %v3485_v14  ;;  %v3489_v41 = vld [vmem:[#allocation8 + $0xf50] sm:$0xff]  ;;  %v11064_v39 = vcombine.low %v3481_v24, %v3485_v14 }
 0x5ae   : > { %v14904_v7 = vpop.f32.mrb[2].mxu0  ;;  %v11073_v29 = vcombine.high %v3489_v41, %v3493_v58  ;;  %v3497_v26 = vld [vmem:[#allocation8 + $0xf90] sm:$0xff]  ;;  %v11072_v2 = vcombine.low %v3489_v41, %v3493_v58  ;;  %v3002_v41 = vld [vmem:[#allocation8 + $0x18] sm:$0xff] }
 0x5af   : > { %v14906_v48 = vpop.f32.mrb[3].mxu0  ;;  %v11081_v6 = vcombine.high %v3497_v26, %v3501_v60  ;;  %v3505_v24 = vld [vmem:[#allocation8 + $0xfd0] sm:$0xff]  ;;  %v11080_v61 = vcombine.low %v3497_v26, %v3501_v60  ;;  %v10587_v32 = vcombine.high %v3002_v41, %v3006_v44  ;;  %v3010_v26 = vld [vmem:[#allocation8 + $0x58] sm:$0xff]  ;;  %v10586_v37 = vcombine.low %v3002_v41, %v3006_v44 }
 0x5b0   : > { %v11089_v42 = vcombine.high %v3505_v24, %v3509_v12  ;;  %v11088_v31 = vcombine.low %v3505_v24, %v3509_v12  ;;  %v3018_v24 = vld [vmem:[#allocation8 + $0x98] sm:$0xff] }
 0x5b1   : > { %v3026_v41 = vld [vmem:[#allocation8 + $0xd8] sm:$0xff] }
 0x5b2   : > { %8856 = vmatmul.mubr.bf16.gmra.mrb[128].mxu1 %v10992_v36 }
 0x5b3   : > { %8865 = vmatprep.mubr.bf16.mxu1 %v11001_v43 }
 0x5b4   : > { %v14908_v1 = vpop.f32.mrb[4].mxu0 }
 0x5b5   : > { %v14910_v62 = vpop.f32.mrb[5].mxu0 }
 0x5b6   : > { %v14912_v20 = vpop.f32.mrb[6].mxu0 }
 0x5b7   : > { %v14914_v51 = vpop.f32.mrb[7].mxu0 }
 0x5ba   : > { %8866 = vmatmul.mubr.bf16.gmra.mrb[132].mxu1 %v11000_v47 }
 0x5bb   : > { %8875 = vmatprep.mubr.bf16.mxu1 %v11009_v45 }
 0x5bc   : > { %v14916_v56 = vpop.f32.mrb[8].mxu0 }
 0x5bd   : > { %v14918_v36 = vpop.f32.mrb[9].mxu0 }
 0x5be   : > { %v14920_v43 = vpop.f32.mrb[10].mxu0 }
 0x5bf   : > { %v14922_v40 = vpop.f32.mrb[11].mxu0 }
 0x5c2   : > { %8876 = vmatmul.mubr.bf16.gmra.mrb[136].mxu1 %v11008_v16 }
 0x5c3   : > { %8885 = vmatprep.mubr.bf16.mxu1 %v11017_v55 }
 0x5c4   : > { %v14924_v59 = vpop.f32.mrb[12].mxu0 }
 0x5c5   : > { %v14926_v47 = vpop.f32.mrb[13].mxu0 }
 0x5c6   : > { %v14928_v45 = vpop.f32.mrb[14].mxu0 }
 0x5c7   : > { %v14930_v38 = vpop.f32.mrb[15].mxu0 }
 0x5ca   : > { %8886 = vmatmul.mubr.bf16.gmra.mrb[140].mxu1 %v11016_v33 }
 0x5cb   : > { %8895 = vmatprep.mubr.bf16.mxu1 %v11025_v10 }
 0x5cc   : > { %v14932_v17 = vpop.f32.mrb[16].mxu0 }
 0x5cd   : > { %v14934_v16 = vpop.f32.mrb[17].mxu0 }
 0x5ce   : > { %v14936_v55 = vpop.f32.mrb[18].mxu0 }
 0x5cf   : > { %v14938_v50 = vpop.f32.mrb[19].mxu0 }
 0x5d2   : > { %8896 = vmatmul.mubr.bf16.gmra.mrb[144].mxu1 %v11024_v63 }
 0x5d3   : > { %8905 = vmatprep.mubr.bf16.mxu1 %v11033_v11 }
 0x5d4   : > { %v14940_v22 = vpop.f32.mrb[20].mxu0 }
 0x5d5   : > { %v14942_v33 = vpop.f32.mrb[21].mxu0 }
 0x5d6   : > { %v14944_v10 = vpop.f32.mrb[22].mxu0 }
 0x5d7   : > { %v14946_v5 = vpop.f32.mrb[23].mxu0 }
 0x5da   : > { %8906 = vmatmul.mubr.bf16.gmra.mrb[148].mxu1 %v11032_v27 }
 0x5db   : > { %8915 = vmatprep.mubr.bf16.mxu1 %v11041_v9 }
 0x5dc   : > { %v14948_v23 = vpop.f32.mrb[24].mxu0 }
 0x5dd   : > { %v14950_v63 = vpop.f32.mrb[25].mxu0 }
 0x5de   : > { %v14952_v11 = vpop.f32.mrb[26].mxu0 }
 0x5df   : > { %v14954_v4 = vpop.f32.mrb[27].mxu0 }
 0x5e2   : > { %8916 = vmatmul.mubr.bf16.gmra.mrb[152].mxu1 %v11040_v53 }
 0x5e3   : > { %8925 = vmatprep.mubr.bf16.mxu1 %v11049_v28 }
 0x5e4   : > { %v14956_v34 = vpop.f32.mrb[28].mxu0 }
 0x5e5   : > { %v14958_v27 = vpop.f32.mrb[29].mxu0 }
 0x5e6   : > { %v14960_v9 = vpop.f32.mrb[30].mxu0 }
 0x5e7   : > { %v14962_v54 = vpop.f32.mrb[31].mxu0 }
 0x5ea   : > { %8926 = vmatmul.mubr.bf16.gmra.mrb[156].mxu1 %v11048_v49 }
 0x5eb   : > { %8935 = vmatprep.mubr.bf16.mxu1 %v11057_v21 }
 0x5ec   : > { %v14964_v3 = vpop.f32.mrb[32].mxu0 }
 0x5ed   : > { %v14966_v53 = vpop.f32.mrb[33].mxu0 }
 0x5ee   : > { %v14968_v28 = vpop.f32.mrb[34].mxu0 }
 0x5ef   : > { %v14970_v18 = vpop.f32.mrb[35].mxu0 }
 0x5f2   : > { %8936 = vmatmul.mubr.bf16.gmra.mrb[160].mxu1 %v11056_v19 }
 0x5f3   : > { %8945 = vmatprep.mubr.bf16.mxu1 %v11065_v46 }
 0x5f4   : > { %v14972_v8 = vpop.f32.mrb[36].mxu0 }
 0x5f5   : > { %v14974_v49 = vpop.f32.mrb[37].mxu0 }
 0x5f6   : > { %v14976_v21 = vpop.f32.mrb[38].mxu0 }
 0x5f7   : > { %v14978_v57 = vpop.f32.mrb[39].mxu0 }
 0x5fa   : > { %8946 = vmatmul.mubr.bf16.gmra.mrb[164].mxu1 %v11064_v39 }
 0x5fb   : > { %8955 = vmatprep.mubr.bf16.mxu1 %v11073_v29 }
 0x5fc   : > { %v14980_v13 = vpop.f32.mrb[40].mxu0 }
 0x5fd   : > { %15941 = vst [vmem:[#allocation230_spill] sm:$0xff] %v14980_v13  ;;  %v14982_v19 = vpop.f32.mrb[41].mxu0 }
 0x5fe   : > { %15942 = vst [vmem:[#allocation231_spill] sm:$0xff] %v14982_v19  ;;  %v14984_v46 = vpop.f32.mrb[42].mxu0 }
 0x5ff   : > { %15943 = vst [vmem:[#allocation232_spill] sm:$0xff] %v14984_v46  ;;  %v14986_v35 = vpop.f32.mrb[43].mxu0 }
 0x600   : > { %15944 = vst [vmem:[#allocation233_spill] sm:$0xff] %v14986_v35 }
 0x602   : > { %8956 = vmatmul.mubr.bf16.gmra.mrb[168].mxu1 %v11072_v2 }
 0x603   : > { %8965 = vmatprep.mubr.bf16.mxu1 %v11081_v6 }
 0x604   : > { %v14988_v14 = vpop.f32.mrb[44].mxu0 }
 0x605   : > { %15945 = vst [vmem:[#allocation234_spill] sm:$0xff] %v14988_v14  ;;  %v14990_v39 = vpop.f32.mrb[45].mxu0 }
 0x606   : > { %15946 = vst [vmem:[#allocation235_spill] sm:$0xff] %v14990_v39  ;;  %v14992_v29 = vpop.f32.mrb[46].mxu0 }
 0x607   : > { %15947 = vst [vmem:[#allocation236_spill] sm:$0xff] %v14992_v29  ;;  %v14994_v52 = vpop.f32.mrb[47].mxu0 }
 0x608   : > { %15948 = vst [vmem:[#allocation237_spill] sm:$0xff] %v14994_v52 }
 0x60a   : > { %8966 = vmatmul.mubr.bf16.gmra.mrb[172].mxu1 %v11080_v61 }
 0x60b   : > { %8975 = vmatprep.mubr.bf16.mxu1 %v11089_v42 }
 0x60c   : > { %v14996_v58 = vpop.f32.mrb[48].mxu0 }
 0x60d   : > { %15949 = vst [vmem:[#allocation238_spill] sm:$0xff] %v14996_v58  ;;  %v14998_v2 = vpop.f32.mrb[49].mxu0 }
 0x60e   : > { %15950 = vst [vmem:[#allocation239_spill] sm:$0xff] %v14998_v2  ;;  %v15000_v6 = vpop.f32.mrb[50].mxu0  ;;  %v10595_v2 = vcombine.high %v3010_v26, %v3014_v25 }
 0x60f   : > { %15951 = vst [vmem:[#allocation240_spill] sm:$0xff] %v15000_v6  ;;  %v15002_v30 = vpop.f32.mrb[51].mxu0 }
 0x610   : > { %15952 = vst [vmem:[#allocation241_spill] sm:$0xff] %v15002_v30  ;;  %v3022_v30 = vld [vmem:[#allocation8 + $0xb8] sm:$0xff] }
 0x612   : > { %8976 = vmatmul.mubr.bf16.gmra.mrb[176].mxu1 %v11088_v31 }
 0x613   : > { %9018 = vmatprep.mubr.bf16.mxu1 %v10587_v32 }
 0x614   : > { %v15004_v60 = vpop.f32.mrb[52].mxu0 }
 0x615   : > { %15953 = vst [vmem:[#allocation242_spill] sm:$0xff] %v15004_v60  ;;  %v15006_v61 = vpop.f32.mrb[53].mxu0  ;;  %v10594_v60 = vcombine.low %v3010_v26, %v3014_v25  ;;  %v3034_v26 = vld [vmem:[#allocation8 + $0x118] sm:$0xff] }
 0x616   : > { %15954 = vst [vmem:[#allocation243_spill] sm:$0xff] %v15006_v61  ;;  %v15008_v42 = vpop.f32.mrb[54].mxu0  ;;  %v10603_v61 = vcombine.high %v3018_v24, %v3022_v30 }
 0x617   : > { %15955 = vst [vmem:[#allocation244_spill] sm:$0xff] %v15008_v42  ;;  %v15010_v58 = vpop.f32.mrb[55].mxu0 }
 0x618   : > { %15956 = vst [vmem:[#allocation245_spill] sm:$0xff] %v15010_v58  ;;  %v3030_v58 = vld [vmem:[#allocation8 + $0xf8] sm:$0xff] }
 0x61a   : > { %9019 = vmatmul.mubr.bf16.vlgmr.msra.gmra.mrb[180].mxu1 %v10586_v37 }
 0x61b   : > { %9028 = vmatprep.mubr.bf16.mxu1 %v10595_v2 }
 0x61c   : > { %v15012_v12 = vpop.f32.mrb[56].mxu0 }
 0x61d   : > { %15957 = vst [vmem:[#allocation246_spill] sm:$0xff] %v15012_v12  ;;  %v15014_v31 = vpop.f32.mrb[57].mxu0  ;;  %v10602_v12 = vcombine.low %v3018_v24, %v3022_v30  ;;  %v3042_v24 = vld [vmem:[#allocation8 + $0x158] sm:$0xff] }
 0x61e   : > { %15958 = vst [vmem:[#allocation247_spill] sm:$0xff] %v15014_v31  ;;  %v15016_v32 = vpop.f32.mrb[58].mxu0  ;;  %v10611_v31 = vcombine.high %v3026_v41, %v3030_v58 }
 0x61f   : > { %15959 = vst [vmem:[#allocation248_spill] sm:$0xff] %v15016_v32  ;;  %v15018_v6 = vpop.f32.mrb[59].mxu0 }
 0x620   : > { %15960 = vst [vmem:[#allocation249_spill] sm:$0xff] %v15018_v6  ;;  %v3038_v6 = vld [vmem:[#allocation8 + $0x138] sm:$0xff] }
 0x622   : > { %9029 = vmatmul.mubr.bf16.gmra.mrb[184].mxu1 %v10594_v60 }
 0x623   : > { %9038 = vmatprep.mubr.bf16.mxu1 %v10603_v61 }
 0x624   : > { %v15020_v44 = vpop.f32.mrb[60].mxu0 }
 0x625   : > { %15961 = vst [vmem:[#allocation250_spill] sm:$0xff] %v15020_v44  ;;  %v15022_v37 = vpop.f32.mrb[61].mxu0  ;;  %v10610_v44 = vcombine.low %v3026_v41, %v3030_v58  ;;  %v3050_v41 = vld [vmem:[#allocation8 + $0x198] sm:$0xff] }
 0x626   : > { %15962 = vst [vmem:[#allocation251_spill] sm:$0xff] %v15022_v37  ;;  %v15024_v2 = vpop.f32.mrb[62].mxu0  ;;  %v10619_v37 = vcombine.high %v3034_v26, %v3038_v6 }
 0x627   : > { %15963 = vst [vmem:[#allocation252_spill] sm:$0xff] %v15024_v2  ;;  %v15026_v42 = vpop.f32.mrb[63].mxu0 }
 0x628   : > { %15964 = vst [vmem:[#allocation253_spill] sm:$0xff] %v15026_v42  ;;  %v3046_v42 = vld [vmem:[#allocation8 + $0x178] sm:$0xff] }
 0x62a   : > { %9039 = vmatmul.mubr.bf16.gmra.mrb[188].mxu1 %v10602_v12 }
 0x62b   : > { %9048 = vmatprep.mubr.bf16.mxu1 %v10611_v31 }
 0x62c   : > { %v15028_v25 = vpop.f32.mrb[64].mxu0 }
 0x62d   : > { %15965 = vst [vmem:[#allocation254_spill] sm:$0xff] %v15028_v25  ;;  %v15030_v60 = vpop.f32.mrb[65].mxu0  ;;  %v10618_v25 = vcombine.low %v3034_v26, %v3038_v6  ;;  %v3058_v6 = vld [vmem:[#allocation8 + $0x1d8] sm:$0xff] }
 0x62e   : > { %15966 = vst [vmem:[#allocation255_spill] sm:$0xff] %v15030_v60  ;;  %v15032_v61 = vpop.f32.mrb[66].mxu0  ;;  %v10627_v60 = vcombine.high %v3042_v24, %v3046_v42  ;;  %v3062_v26 = vld [vmem:[#allocation8 + $0x1f8] sm:$0xff] }
 0x62f   : > { %15967 = vst [vmem:[#allocation256_spill] sm:$0xff] %v15032_v61  ;;  %v15034_v32 = vpop.f32.mrb[67].mxu0 }
 0x630   : > { %15968 = vst [vmem:[#allocation257_spill] sm:$0xff] %v15034_v32  ;;  %v3054_v32 = vld [vmem:[#allocation8 + $0x1b8] sm:$0xff] }
 0x632   : > { %9049 = vmatmul.mubr.bf16.gmra.mrb[192].mxu1 %v10610_v44 }
 0x633   : > { %9058 = vmatprep.mubr.bf16.mxu1 %v10619_v37 }
 0x634   : > { %v15036_v30 = vpop.f32.mrb[68].mxu0 }
 0x635   : > { %15969 = vst [vmem:[#allocation258_spill] sm:$0xff] %v15036_v30  ;;  %v15038_v12 = vpop.f32.mrb[69].mxu0  ;;  %v10626_v30 = vcombine.low %v3042_v24, %v3046_v42 }
 0x636   : > { %15970 = vst [vmem:[#allocation259_spill] sm:$0xff] %v15038_v12  ;;  %v15040_v31 = vpop.f32.mrb[70].mxu0  ;;  %v10635_v12 = vcombine.high %v3050_v41, %v3054_v32 }
 0x637   : > { %15971 = vst [vmem:[#allocation260_spill] sm:$0xff] %v15040_v31  ;;  %v15042_v2 = vpop.f32.mrb[71].mxu0  ;;  %v10643_v31 = vcombine.high %v3058_v6, %v3062_v26 }
 0x638   : > { %15972 = vst [vmem:[#allocation261_spill] sm:$0xff] %v15042_v2  ;;  %v10634_v2 = vcombine.low %v3050_v41, %v3054_v32  ;;  %v3090_v32 = vld [vmem:[#allocation8 + $0x2d8] sm:$0xff] }
 0x63a   : > { %9059 = vmatmul.mubr.bf16.gmra.mrb[196].mxu1 %v10618_v25  ;;  %v3066_v25 = vld [vmem:[#allocation8 + $0x218] sm:$0xff] }
 0x63b   : > { %9068 = vmatprep.mubr.bf16.mxu1 %v10627_v60  ;;  %v3070_v60 = vld [vmem:[#allocation8 + $0x238] sm:$0xff] }
 0x63c   : > { %v15044_v58 = vpop.f32.mrb[72].mxu0  ;;  %v10651_v52 = vcombine.high %v3066_v25, %v3070_v60  ;;  %v10650_v42 = vcombine.low %v3066_v25, %v3070_v60  ;;  %v3106_v25 = vld [vmem:[#allocation8 + $0x358] sm:$0xff] }
 0x63d   : > { %15973 = vst [vmem:[#allocation262_spill] sm:$0xff] %v15044_v58  ;;  %v15046_v44 = vpop.f32.mrb[73].mxu0  ;;  %v10642_v58 = vcombine.low %v3058_v6, %v3062_v26  ;;  %v3110_v60 = vld [vmem:[#allocation8 + $0x378] sm:$0xff] }
 0x63e   : > { %15974 = vst [vmem:[#allocation263_spill] sm:$0xff] %v15046_v44  ;;  %v15048_v37 = vpop.f32.mrb[74].mxu0  ;;  %v3074_v44 = vld [vmem:[#allocation8 + $0x258] sm:$0xff] }
 0x63f   : > { %15975 = vst [vmem:[#allocation264_spill] sm:$0xff] %v15048_v37  ;;  %v15050_v61 = vpop.f32.mrb[75].mxu0  ;;  %v3078_v37 = vld [vmem:[#allocation8 + $0x278] sm:$0xff] }
 0x640   : > { %15976 = vst [vmem:[#allocation265_spill] sm:$0xff] %v15050_v61  ;;  %v10659_v24 = vcombine.high %v3074_v44, %v3078_v37  ;;  %v10658_v61 = vcombine.low %v3074_v44, %v3078_v37  ;;  %v10690_v44 = vcombine.low %v3106_v25, %v3110_v60 }
 0x642   : > { %9069 = vmatmul.mubr.bf16.gmra.mrb[200].mxu1 %v10626_v30  ;;  %v3082_v30 = vld [vmem:[#allocation8 + $0x298] sm:$0xff] }
 0x643   : > { %9078 = vmatprep.mubr.bf16.mxu1 %v10635_v12  ;;  %v3086_v12 = vld [vmem:[#allocation8 + $0x2b8] sm:$0xff] }
 0x644   : > { %v10667_v29 = vcombine.high %v3082_v30, %v3086_v12 }
 0x64a   : > { %9079 = vmatmul.mubr.bf16.gmra.mrb[204].mxu1 %v10634_v2  ;;  %v3094_v2 = vld [vmem:[#allocation8 + $0x2f8] sm:$0xff] }
 0x64b   : > { %9088 = vmatprep.mubr.bf16.mxu1 %v10643_v31  ;;  %v10666_v31 = vcombine.low %v3082_v30, %v3086_v12  ;;  %v10675_v41 = vcombine.high %v3090_v32, %v3094_v2  ;;  %v10674_v6 = vcombine.low %v3090_v32, %v3094_v2  ;;  %v3122_v30 = vld [vmem:[#allocation8 + $0x3d8] sm:$0xff] }
 0x64c   : > { %v3126_v12 = vld [vmem:[#allocation8 + $0x3f8] sm:$0xff] }
 0x64d   : > { %v3130_v32 = vld [vmem:[#allocation8 + $0x418] sm:$0xff] }
 0x64e   : > { %v3134_v2 = vld [vmem:[#allocation8 + $0x438] sm:$0xff] }
 0x652   : > { %9089 = vmatmul.mubr.bf16.gmra.mrb[208].mxu1 %v10642_v58  ;;  %v3098_v58 = vld [vmem:[#allocation8 + $0x318] sm:$0xff] }
 0x653   : > { %9098 = vmatprep.mubr.bf16.mxu1 %v10651_v52  ;;  %v3102_v52 = vld [vmem:[#allocation8 + $0x338] sm:$0xff] }
 0x654   : > { %v10683_v26 = vcombine.high %v3098_v58, %v3102_v52 }
 0x65a   : > { %9099 = vmatmul.mubr.bf16.gmra.mrb[212].mxu1 %v10650_v42  ;;  %v10682_v42 = vcombine.low %v3098_v58, %v3102_v52  ;;  %v3138_v58 = vld [vmem:[#allocation8 + $0x458] sm:$0xff] }
 0x65b   : > { %9108 = vmatprep.mubr.bf16.mxu1 %v10659_v24  ;;  %v10691_v24 = vcombine.high %v3106_v25, %v3110_v60  ;;  %v3142_v52 = vld [vmem:[#allocation8 + $0x478] sm:$0xff] }
 0x65c   : > { %v3146_v25 = vld [vmem:[#allocation8 + $0x498] sm:$0xff] }
 0x65d   : > { %v3150_v60 = vld [vmem:[#allocation8 + $0x4b8] sm:$0xff] }
 0x662   : > { %9109 = vmatmul.mubr.bf16.gmra.mrb[216].mxu1 %v10658_v61  ;;  %v3114_v61 = vld [vmem:[#allocation8 + $0x398] sm:$0xff] }
 0x663   : > { %9118 = vmatprep.mubr.bf16.mxu1 %v10667_v29  ;;  %v3118_v29 = vld [vmem:[#allocation8 + $0x3b8] sm:$0xff] }
 0x664   : > { %v10699_v37 = vcombine.high %v3114_v61, %v3118_v29 }
 0x66a   : > { %9119 = vmatmul.mubr.bf16.gmra.mrb[220].mxu1 %v10666_v31  ;;  %v10698_v31 = vcombine.low %v3114_v61, %v3118_v29  ;;  %v3154_v61 = vld [vmem:[#allocation8 + $0x4d8] sm:$0xff] }
 0x66b   : > { %9128 = vmatprep.mubr.bf16.mxu1 %v10675_v41  ;;  %v10707_v41 = vcombine.high %v3122_v30, %v3126_v12  ;;  %v3158_v29 = vld [vmem:[#allocation8 + $0x4f8] sm:$0xff] }
 0x672   : > { %9129 = vmatmul.mubr.bf16.gmra.mrb[224].mxu1 %v10674_v6  ;;  %v10706_v6 = vcombine.low %v3122_v30, %v3126_v12  ;;  %v3162_v30 = vld [vmem:[#allocation8 + $0x518] sm:$0xff] }
 0x673   : > { %9138 = vmatprep.mubr.bf16.mxu1 %v10683_v26  ;;  %v10715_v26 = vcombine.high %v3130_v32, %v3134_v2  ;;  %v3166_v12 = vld [vmem:[#allocation8 + $0x538] sm:$0xff] }
 0x67a   : > { %9139 = vmatmul.mubr.bf16.gmra.mrb[228].mxu1 %v10682_v42  ;;  %v10714_v42 = vcombine.low %v3130_v32, %v3134_v2  ;;  %v3170_v32 = vld [vmem:[#allocation8 + $0x558] sm:$0xff] }
 0x67b   : > { %9148 = vmatprep.mubr.bf16.mxu1 %v10691_v24  ;;  %v10723_v24 = vcombine.high %v3138_v58, %v3142_v52  ;;  %v3174_v2 = vld [vmem:[#allocation8 + $0x578] sm:$0xff] }
 0x682   : > { %9149 = vmatmul.mubr.bf16.gmra.mrb[232].mxu1 %v10690_v44  ;;  %v10722_v44 = vcombine.low %v3138_v58, %v3142_v52  ;;  %v3178_v58 = vld [vmem:[#allocation8 + $0x598] sm:$0xff] }
 0x683   : > { %9158 = vmatprep.mubr.bf16.mxu1 %v10699_v37  ;;  %v10731_v37 = vcombine.high %v3146_v25, %v3150_v60  ;;  %v3182_v52 = vld [vmem:[#allocation8 + $0x5b8] sm:$0xff] }
 0x68a   : > { %9159 = vmatmul.mubr.bf16.gmra.mrb[236].mxu1 %v10698_v31  ;;  %v10730_v31 = vcombine.low %v3146_v25, %v3150_v60  ;;  %v3186_v25 = vld [vmem:[#allocation8 + $0x5d8] sm:$0xff] }
 0x68b   : > { %9168 = vmatprep.mubr.bf16.mxu1 %v10707_v41  ;;  %v10739_v41 = vcombine.high %v3154_v61, %v3158_v29  ;;  %v3190_v60 = vld [vmem:[#allocation8 + $0x5f8] sm:$0xff] }
 0x692   : > { %9169 = vmatmul.mubr.bf16.gmra.mrb[240].mxu1 %v10706_v6  ;;  %v10738_v6 = vcombine.low %v3154_v61, %v3158_v29  ;;  %v3194_v61 = vld [vmem:[#allocation8 + $0x618] sm:$0xff] }
 0x693   : > { %9178 = vmatprep.mubr.bf16.mxu1 %v10715_v26  ;;  %v10747_v26 = vcombine.high %v3162_v30, %v3166_v12  ;;  %v3198_v29 = vld [vmem:[#allocation8 + $0x638] sm:$0xff] }
 0x69a   : > { %9179 = vmatmul.mubr.bf16.gmra.mrb[244].mxu1 %v10714_v42  ;;  %v10746_v42 = vcombine.low %v3162_v30, %v3166_v12  ;;  %v3202_v30 = vld [vmem:[#allocation8 + $0x658] sm:$0xff] }
 0x69b   : > { %9188 = vmatprep.mubr.bf16.mxu1 %v10723_v24  ;;  %v10755_v24 = vcombine.high %v3170_v32, %v3174_v2  ;;  %v3206_v12 = vld [vmem:[#allocation8 + $0x678] sm:$0xff] }
 0x6a2   : > { %9189 = vmatmul.mubr.bf16.gmra.mrb[248].mxu1 %v10722_v44  ;;  %v10754_v44 = vcombine.low %v3170_v32, %v3174_v2  ;;  %v3210_v32 = vld [vmem:[#allocation8 + $0x698] sm:$0xff] }
 0x6a3   : > { %9198 = vmatprep.mubr.bf16.mxu1 %v10731_v37  ;;  %v10763_v37 = vcombine.high %v3178_v58, %v3182_v52  ;;  %v3214_v2 = vld [vmem:[#allocation8 + $0x6b8] sm:$0xff] }
 0x6aa   : > { %9199 = vmatmul.mubr.bf16.gmra.mrb[252].mxu1 %v10730_v31  ;;  %v10762_v31 = vcombine.low %v3178_v58, %v3182_v52  ;;  %v3218_v58 = vld [vmem:[#allocation8 + $0x6d8] sm:$0xff] }
 0x6ab   : > { %9208 = vmatprep.mubr.bf16.mxu1 %v10739_v41  ;;  %v10771_v41 = vcombine.high %v3186_v25, %v3190_v60  ;;  %v3222_v52 = vld [vmem:[#allocation8 + $0x6f8] sm:$0xff] }
 0x6b2   : > { %9209 = vmatmul.mubr.bf16.gmra.mrb[0].mxu1 %v10738_v6  ;;  %v10770_v6 = vcombine.low %v3186_v25, %v3190_v60  ;;  %v15977_v25 = vld [vmem:[#allocation87_spill] sm:$0xff] }
 0x6b3   : > { %9218 = vmatprep.mubr.bf16.mxu1 %v10747_v26  ;;  %v10779_v26 = vcombine.high %v3194_v61, %v3198_v29  ;;  %v11131_v60 = vadd.f32 %v14900_v0, %v15977_v25 }
 0x6ba   : > { %9219 = vmatmul.mubr.bf16.gmra.mrb[4].mxu1 %v10746_v42  ;;  %v10778_v42 = vcombine.low %v3194_v61, %v3198_v29  ;;  %v3230_v61 = vld [vmem:[#allocation8 + $0x738] sm:$0xff]  ;;  %v11133_v29 = vadd.f32 %v14902_v15, %v15977_v25 }
 0x6bb   : > { %9228 = vmatprep.mubr.bf16.mxu1 %v10755_v24  ;;  %v10787_v24 = vcombine.high %v3202_v30, %v3206_v12 }
 0x6c2   : > { %9229 = vmatmul.mubr.bf16.gmra.mrb[8].mxu1 %v10754_v44  ;;  %v10786_v44 = vcombine.low %v3202_v30, %v3206_v12  ;;  %v10051_v12 = vlaneseq }
 0x6c3   : > { %9238 = vmatprep.mubr.bf16.mxu1 %v10763_v37  ;;  %v10795_v37 = vcombine.high %v3210_v32, %v3214_v2 }
 0x6c4   : > { %v10052_v35 = vshrl.u32 %v10051_v12, 7  ;;  %vm10288_vm0 = vcmp.lt.s32.totalorder %v10051_v12, 256 }
 0x6ca   : > { %9239 = vmatmul.mubr.bf16.gmra.mrb[12].mxu1 %v10762_v31  ;;  %v10794_v31 = vcombine.low %v3210_v32, %v3214_v2 }
 0x6cb   : > { %9248 = vmatprep.mubr.bf16.mxu1 %v10771_v41  ;;  %v10803_v41 = vcombine.high %v3218_v58, %v3222_v52 }
 0x6d2   : > { %9249 = vmatmul.mubr.bf16.gmra.mrb[16].mxu1 %v10770_v6  ;;  %v3226_v6 = vld [vmem:[#allocation8 + $0x718] sm:$0xff] }
 0x6d3   : > { %9258 = vmatprep.mubr.bf16.mxu1 %v10779_v26  ;;  %v10811_v39 = vcombine.high %v3226_v6, %v3230_v61 }
 0x6da   : > { %9259 = vmatmul.mubr.bf16.gmra.mrb[20].mxu1 %v10778_v42  ;;  %v12698_v42 = vmov 1966171168  }
 0x6db   : > { %9268 = vmatprep.mubr.bf16.mxu1 %v10787_v24  ;;  %v10049_v30 = vunpack.c.l.s4 %v12698_v42  ;;  %v15978_v24 = vld [vmem:[#allocation86_spill] sm:$0xff] }
 0x6dc   : > { %v11137_v32 = vadd.f32 %v14906_v48, %v15978_v24 }
 0x6dd   : > { %v10050_v14 = vunpack.c.0.s8 %v10049_v30  ;;  %v3238_v30 = vld [vmem:[#allocation8 + $0x778] sm:$0xff] }
 0x6df   : > { %v15061_v42 = vsub.s32 %v10050_v14, %v10052_v35 }
 0x6e2   : > { %9269 = vmatmul.mubr.bf16.gmra.mrb[24].mxu1 %v10786_v44  ;;  %v11135_v44 = vadd.f32 %v14904_v7, %v15978_v24  ;;  %v15063_v7 = vld.sshfl [vmem:[#allocation9] sm:$0xff pattern:$0x75316420] }
 0x6e3   : > { %9278 = vmatprep.mubr.bf16.mxu1 %v10795_v37  ;;  %v10062_v14 = vcombine.high %v15063_v7, %v15063_v7 }
 0x6ea   : > { %9279 = vmatmul.mubr.bf16.gmra.mrb[28].mxu1 %v10794_v31  ;;  %v10802_v31 = vcombine.low %v3218_v58, %v3222_v52  ;;  %v15979_v58 = vld [vmem:[#allocation89_spill] sm:$0xff] }
 0x6eb   : > { %9288 = vmatprep.mubr.bf16.mxu1 %v10803_v41  ;;  %v11139_v52 = vadd.f32 %v14908_v1, %v15979_v58  ;;  %v11141_v24 = vadd.f32 %v14910_v62, %v15979_v58  ;;  %v15076_v62 = vrot.slane %v10062_v14, %v15061_v42  ;;  %v3242_v58 = vld [vmem:[#allocation8 + $0x798] sm:$0xff] }
 0x6ed   : > { %v9020_v26 = vpop.f32.mrb[180].mxu1  ;;  %10136 = vmatprep.mubr.bf16.mxu0 %v15076_v62 }
 0x6ee   : > { %v11132_v2 = vadd.f32 %v11131_v60, %v9020_v26  ;;  %v9022_v37 = vpop.f32.mrb[181].mxu1  ;;  %v3234_v26 = vld [vmem:[#allocation8 + $0x758] sm:$0xff] }
 0x6ef   : > { %v11134_v41 = vadd.f32 %v11133_v29, %v9022_v37  ;;  %v9024_v0 = vpop.f32.mrb[182].mxu1 }
 0x6f0   : > { %v11136_v15 = vadd.f32 %v11135_v44, %v9024_v0  ;;  %v9026_v25 = vpop.f32.mrb[183].mxu1  ;;  %v9659_v19 = vmax.f32 %v11132_v2, 0.0 }
 0x6f1   : > { %v11138_v46 = vadd.f32 %v11137_v32, %v9026_v25  ;;  %v9660_v48 = vmax.f32 %v11134_v41, 0.0  ;;  %v15980_v32 = vld [vmem:[#allocation88_spill] sm:$0xff] }
 0x6f2   : > { %v9661_v13 = vmax.f32 %v11136_v15, 0.0  ;;  %9289 = vmatmul.mubr.bf16.gmra.mrb[32].mxu1 %v10802_v31  ;;  %v11143_v2 = vadd.f32 %v14912_v20, %v15980_v32  ;;  %v11145_v1 = vadd.f32 %v14914_v51, %v15980_v32  ;;  %v10819_v31 = vcombine.high %v3234_v26, %v3238_v30  ;;  %v15981_v51 = vld [vmem:[#allocation91_spill] sm:$0xff] }
 0x6f3   : > { %v9662_v60 = vmax.f32 %v11138_v46, 0.0  ;;  %9298 = vmatprep.mubr.bf16.mxu1 %v10811_v39  ;;  %v10810_v39 = vcombine.low %v3226_v6, %v3230_v61 }
 0x6f4   : > { %v9916_v29 = vpack.c.bf16 %v9661_v13, %v9659_v19 }
 0x6f5   : > { %v9917_v44 = vpack.c.bf16 %v9662_v60, %v9660_v48  ;;  %v9030_v35 = vpop.f32.mrb[184].mxu1  ;;  %v11147_v48 = vadd.f32 %v14916_v56, %v15981_v51 }
 0x6f6   : > { %v11140_v37 = vadd.f32 %v11139_v52, %v9030_v35  ;;  %v9032_v46 = vpop.f32.mrb[185].mxu1  ;;  %v3246_v52 = vld [vmem:[#allocation8 + $0x7b8] sm:$0xff] }
 0x6f7   : > { %v11142_v13 = vadd.f32 %v11141_v24, %v9032_v46  ;;  %v9034_v19 = vpop.f32.mrb[186].mxu1  ;;  %10104 = vmatprep.subr.bf16.mxu0 %v9917_v44  ;;  %v11149_v24 = vadd.f32 %v14918_v36, %v15981_v51  ;;  %v15982_v35 = vld [vmem:[#allocation90_spill] sm:$0xff]  ;;  %v10827_v56 = vcombine.high %v3242_v58, %v3246_v52  ;;  %v15984_v51 = vld [vmem:[#allocation92_spill] sm:$0xff] }
 0x6f8   : > { %v11144_v41 = vadd.f32 %v11143_v2, %v9034_v19  ;;  %v9036_v0 = vpop.f32.mrb[187].mxu1  ;;  %10105 = vmatpush1.bf16.msra.mxu0 %v9916_v29  ;;  %v9663_v20 = vmax.f32 %v11140_v37, 0.0  ;;  %v11151_v14 = vadd.f32 %v14920_v43, %v15982_v35  ;;  %v10818_v37 = vcombine.low %v3234_v26, %v3238_v30  ;;  %v15983_v43 = vld [vmem:[#allocation93_spill] sm:$0xff] }
 0x6f9   : > { %v11146_v15 = vadd.f32 %v11145_v1, %v9036_v0  ;;  %v9664_v6 = vmax.f32 %v11142_v13, 0.0  ;;  %v11153_v46 = vadd.f32 %v14922_v40, %v15982_v35  ;;  %v11155_v26 = vadd.f32 %v14924_v59, %v15983_v43  ;;  %v3254_v40 = vld [vmem:[#allocation8 + $0x7f8] sm:$0xff] }
 0x6fa   : > { %v9665_v25 = vmax.f32 %v11144_v41, 0.0  ;;  %9299 = vmatmul.mubr.bf16.gmra.mrb[36].mxu1 %v10810_v39 }
 0x6fb   : > { %v9666_v61 = vmax.f32 %v11146_v15, 0.0  ;;  %9308 = vmatprep.mubr.bf16.mxu1 %v10819_v31 }
 0x6fc   : > { %v9918_v60 = vpack.c.bf16 %v9665_v25, %v9663_v20  ;;  %v3250_v20 = vld [vmem:[#allocation8 + $0x7d8] sm:$0xff]  ;;  %v11157_v25 = vadd.f32 %v14926_v47, %v15983_v43 }
 0x6fd   : > { %v9919_v44 = vpack.c.bf16 %v9666_v61, %v9664_v6  ;;  %v9040_v29 = vpop.f32.mrb[188].mxu1  ;;  %v10835_v59 = vcombine.high %v3250_v20, %v3254_v40  ;;  %v10834_v43 = vcombine.low %v3250_v20, %v3254_v40 }
 0x6fe   : > { %v11148_v32 = vadd.f32 %v11147_v48, %v9040_v29  ;;  %v9042_v2 = vpop.f32.mrb[189].mxu1  ;;  %v11159_v48 = vadd.f32 %v14928_v45, %v15984_v51  ;;  %v11161_v29 = vadd.f32 %v14930_v38, %v15984_v51  ;;  %v15985_v45 = vld [vmem:[#allocation95_spill] sm:$0xff]  ;;  %v3262_v38 = vld [vmem:[#allocation8 + $0x838] sm:$0xff] }
 0x6ff   : > { %v11150_v39 = vadd.f32 %v11149_v24, %v9042_v2  ;;  %v9044_v1 = vpop.f32.mrb[190].mxu1  ;;  %10106 = vmatprep.subr.bf16.mxu0 %v9919_v44  ;;  %v10826_v44 = vcombine.low %v3242_v58, %v3246_v52  ;;  %v11163_v58 = vadd.f32 %v14932_v17, %v15985_v45 }
 0x700   : > { %v11152_v13 = vadd.f32 %v11151_v14, %v9044_v1  ;;  %v9046_v19 = vpop.f32.mrb[191].mxu1  ;;  %10107 = vmatpush1.bf16.msra.mxu0 %v9918_v60  ;;  %v9667_v36 = vmax.f32 %v11148_v32, 0.0 }
 0x701   : > { %v11154_v31 = vadd.f32 %v11153_v46, %v9046_v19  ;;  %v9668_v0 = vmax.f32 %v11150_v39, 0.0 }
 0x702   : > { %v9669_v41 = vmax.f32 %v11152_v13, 0.0  ;;  %9309 = vmatmul.mubr.bf16.gmra.mrb[40].mxu1 %v10818_v37  ;;  %v11165_v13 = vadd.f32 %v14934_v16, %v15985_v45 }
 0x703   : > { %v9670_v15 = vmax.f32 %v11154_v31, 0.0  ;;  %9318 = vmatprep.mubr.bf16.mxu1 %v10827_v56  ;;  %v3258_v56 = vld [vmem:[#allocation8 + $0x818] sm:$0xff] }
 0x704   : > { %v9920_v30 = vpack.c.bf16 %v9669_v41, %v9667_v36  ;;  %v15986_v36 = vld [vmem:[#allocation94_spill] sm:$0xff]  ;;  %v10843_v17 = vcombine.high %v3258_v56, %v3262_v38 }
 0x705   : > { %v9921_v6 = vpack.c.bf16 %v9670_v15, %v9668_v0  ;;  %v9050_v61 = vpop.f32.mrb[192].mxu1  ;;  %v11167_v41 = vadd.f32 %v14936_v55, %v15986_v36  ;;  %v15987_v55 = vld [vmem:[#allocation97_spill] sm:$0xff] }
 0x706   : > { %v11156_v60 = vadd.f32 %v11155_v26, %v9050_v61  ;;  %v9052_v24 = vpop.f32.mrb[193].mxu1  ;;  %v11169_v26 = vadd.f32 %v14938_v50, %v15986_v36  ;;  %v11171_v20 = vadd.f32 %v14940_v22, %v15987_v55  ;;  %v3270_v50 = vld [vmem:[#allocation8 + $0x878] sm:$0xff] }
 0x707   : > { %v11158_v35 = vadd.f32 %v11157_v25, %v9052_v24  ;;  %v9054_v14 = vpop.f32.mrb[194].mxu1  ;;  %10108 = vmatprep.subr.bf16.mxu0 %v9921_v6  ;;  %v3274_v36 = vld [vmem:[#allocation8 + $0x898] sm:$0xff] }
 0x708   : > { %v11160_v32 = vadd.f32 %v11159_v48, %v9054_v14  ;;  %v9056_v2 = vpop.f32.mrb[195].mxu1  ;;  %10109 = vmatpush1.bf16.msra.mxu0 %v9920_v30  ;;  %v9671_v47 = vmax.f32 %v11156_v60, 0.0 }
 0x709   : > { %v11162_v37 = vadd.f32 %v11161_v29, %v9056_v2  ;;  %v9672_v39 = vmax.f32 %v11158_v35, 0.0  ;;  %v11173_v29 = vadd.f32 %v14942_v33, %v15987_v55 }
 0x70a   : > { %v9673_v46 = vmax.f32 %v11160_v32, 0.0  ;;  %9319 = vmatmul.mubr.bf16.gmra.mrb[44].mxu1 %v10826_v44  ;;  %v3266_v44 = vld [vmem:[#allocation8 + $0x858] sm:$0xff] }
 0x70b   : > { %v9674_v1 = vmax.f32 %v11162_v37, 0.0  ;;  %9328 = vmatprep.mubr.bf16.mxu1 %v10835_v59  ;;  %v15988_v59 = vld [vmem:[#allocation96_spill] sm:$0xff]  ;;  %v10851_v22 = vcombine.high %v3266_v44, %v3270_v50 }
 0x70c   : > { %v9922_v52 = vpack.c.bf16 %v9673_v46, %v9671_v47  ;;  %v11175_v32 = vadd.f32 %v14944_v10, %v15988_v59  ;;  %v10842_v47 = vcombine.low %v3258_v56, %v3262_v38  ;;  %v11177_v46 = vadd.f32 %v14946_v5, %v15988_v59  ;;  %v15989_v10 = vld [vmem:[#allocation99_spill] sm:$0xff]  ;;  %v3278_v5 = vld [vmem:[#allocation8 + $0x8b8] sm:$0xff]  ;;  %v15992_v59 = vld [vmem:[#allocation100_spill] sm:$0xff] }
 0x70d   : > { %v9923_v19 = vpack.c.bf16 %v9674_v1, %v9672_v39  ;;  %v9060_v31 = vpop.f32.mrb[196].mxu1  ;;  %v11179_v56 = vadd.f32 %v14948_v23, %v15989_v10  ;;  %v10859_v23 = vcombine.high %v3274_v36, %v3278_v5 }
 0x70e   : > { %v11164_v0 = vadd.f32 %v11163_v58, %v9060_v31  ;;  %v9062_v15 = vpop.f32.mrb[197].mxu1 }
 0x70f   : > { %v11166_v30 = vadd.f32 %v11165_v13, %v9062_v15  ;;  %v9064_v25 = vpop.f32.mrb[198].mxu1  ;;  %10110 = vmatprep.subr.bf16.mxu0 %v9923_v19 }
 0x710   : > { %v11168_v6 = vadd.f32 %v11167_v41, %v9064_v25  ;;  %v9066_v61 = vpop.f32.mrb[199].mxu1  ;;  %10111 = vmatpush1.bf16.msra.mxu0 %v9922_v52  ;;  %v9675_v16 = vmax.f32 %v11164_v0, 0.0  ;;  %v11181_v41 = vadd.f32 %v14950_v63, %v15989_v10  ;;  %v3290_v10 = vld [vmem:[#allocation8 + $0x918] sm:$0xff] }
 0x711   : > { %v11170_v51 = vadd.f32 %v11169_v26, %v9066_v61  ;;  %v9676_v60 = vmax.f32 %v11166_v30, 0.0 }
 0x712   : > { %v9677_v48 = vmax.f32 %v11168_v6, 0.0  ;;  %9329 = vmatmul.mubr.bf16.gmra.mrb[48].mxu1 %v10834_v43  ;;  %v15990_v43 = vld [vmem:[#allocation98_spill] sm:$0xff] }
 0x713   : > { %v9678_v24 = vmax.f32 %v11170_v51, 0.0  ;;  %9338 = vmatprep.mubr.bf16.mxu1 %v10843_v17  ;;  %v11183_v26 = vadd.f32 %v14952_v11, %v15990_v43  ;;  %v10850_v17 = vcombine.low %v3266_v44, %v3270_v50  ;;  %v11185_v6 = vadd.f32 %v14954_v4, %v15990_v43  ;;  %v15991_v11 = vld [vmem:[#allocation101_spill] sm:$0xff] }
 0x714   : > { %v9924_v40 = vpack.c.bf16 %v9677_v48, %v9675_v16  ;;  %v3282_v50 = vld [vmem:[#allocation8 + $0x8d8] sm:$0xff] }
 0x715   : > { %v9925_v35 = vpack.c.bf16 %v9678_v24, %v9676_v60  ;;  %v9070_v14 = vpop.f32.mrb[200].mxu1  ;;  %v3286_v4 = vld [vmem:[#allocation8 + $0x8f8] sm:$0xff] }
 0x716   : > { %v11172_v2 = vadd.f32 %v11171_v20, %v9070_v14  ;;  %v9072_v37 = vpop.f32.mrb[201].mxu1  ;;  %v10866_v43 = vcombine.low %v3282_v50, %v3286_v4 }
 0x717   : > { %v11174_v39 = vadd.f32 %v11173_v29, %v9072_v37  ;;  %v9074_v1 = vpop.f32.mrb[202].mxu1  ;;  %10112 = vmatprep.subr.bf16.mxu0 %v9925_v35  ;;  %v11189_v29 = vadd.f32 %v14958_v27, %v15991_v11 }
 0x718   : > { %v11176_v45 = vadd.f32 %v11175_v32, %v9074_v1  ;;  %v9076_v58 = vpop.f32.mrb[203].mxu1  ;;  %10113 = vmatpush1.bf16.msra.mxu0 %v9924_v40  ;;  %v9679_v33 = vmax.f32 %v11172_v2, 0.0  ;;  %v11187_v40 = vadd.f32 %v14956_v34, %v15991_v11  ;;  %v11191_v32 = vadd.f32 %v14960_v9, %v15992_v59  ;;  %v15993_v9 = vld [vmem:[#allocation103_spill] sm:$0xff]  ;;  %v15996_v11 = vld [vmem:[#allocation104_spill] sm:$0xff] }
 0x719   : > { %v11178_v52 = vadd.f32 %v11177_v46, %v9076_v58  ;;  %v9680_v19 = vmax.f32 %v11174_v39, 0.0  ;;  %v11193_v46 = vadd.f32 %v14962_v54, %v15992_v59  ;;  %v10867_v34 = vcombine.high %v3282_v50, %v3286_v4  ;;  %v3294_v54 = vld [vmem:[#allocation8 + $0x938] sm:$0xff] }
 0x71a   : > { %v9681_v13 = vmax.f32 %v11176_v45, 0.0  ;;  %9339 = vmatmul.mubr.bf16.gmra.mrb[52].mxu1 %v10842_v47  ;;  %v10858_v47 = vcombine.low %v3274_v36, %v3278_v5  ;;  %v15994_v5 = vld [vmem:[#allocation102_spill] sm:$0xff]  ;;  %v10874_v4 = vcombine.low %v3290_v10, %v3294_v54 }
 0x71b   : > { %v9682_v31 = vmax.f32 %v11178_v52, 0.0  ;;  %9348 = vmatprep.mubr.bf16.mxu1 %v10851_v22 }
 0x71c   : > { %v9926_v38 = vpack.c.bf16 %v9681_v13, %v9679_v33 }
 0x71d   : > { %v9927_v0 = vpack.c.bf16 %v9682_v31, %v9680_v19  ;;  %v9080_v15 = vpop.f32.mrb[204].mxu1  ;;  %v11195_v19 = vadd.f32 %v14964_v3, %v15993_v9  ;;  %v10875_v3 = vcombine.high %v3290_v10, %v3294_v54  ;;  %v16002_v54 = vld [vmem:[#allocation233_spill] sm:$0xff] }
 0x71e   : > { %v11180_v30 = vadd.f32 %v11179_v56, %v9080_v15  ;;  %v9082_v25 = vpop.f32.mrb[205].mxu1  ;;  %v11197_v56 = vadd.f32 %v14966_v53, %v15993_v9 }
 0x71f   : > { %v11182_v61 = vadd.f32 %v11181_v41, %v9082_v25  ;;  %v9084_v51 = vpop.f32.mrb[206].mxu1  ;;  %10114 = vmatprep.subr.bf16.mxu0 %v9927_v0  ;;  %v11199_v41 = vadd.f32 %v14968_v28, %v15994_v5  ;;  %v15995_v28 = vld [vmem:[#allocation105_spill] sm:$0xff] }
 0x720   : > { %v11184_v16 = vadd.f32 %v11183_v26, %v9084_v51  ;;  %v9086_v48 = vpop.f32.mrb[207].mxu1  ;;  %10115 = vmatpush1.bf16.msra.mxu0 %v9926_v38  ;;  %v9683_v63 = vmax.f32 %v11180_v30, 0.0  ;;  %v11201_v26 = vadd.f32 %v14970_v18, %v15994_v5  ;;  %v3302_v18 = vld [vmem:[#allocation8 + $0x978] sm:$0xff] }
 0x721   : > { %v11186_v60 = vadd.f32 %v11185_v6, %v9086_v48  ;;  %v9684_v55 = vmax.f32 %v11182_v61, 0.0  ;;  %v11203_v48 = vadd.f32 %v14972_v8, %v15995_v28 }
 0x722   : > { %v9685_v24 = vmax.f32 %v11184_v16, 0.0  ;;  %9349 = vmatmul.mubr.bf16.gmra.mrb[56].mxu1 %v10850_v17 }
 0x723   : > { %v9686_v20 = vmax.f32 %v11186_v60, 0.0  ;;  %9358 = vmatprep.mubr.bf16.mxu1 %v10859_v23 }
 0x724   : > { %v9928_v44 = vpack.c.bf16 %v9685_v24, %v9683_v63  ;;  %v3298_v63 = vld [vmem:[#allocation8 + $0x958] sm:$0xff]  ;;  %v11205_v24 = vadd.f32 %v14974_v49, %v15995_v28 }
 0x725   : > { %v9929_v35 = vpack.c.bf16 %v9686_v20, %v9684_v55  ;;  %v9090_v14 = vpop.f32.mrb[208].mxu1  ;;  %v10883_v8 = vcombine.high %v3298_v63, %v3302_v18  ;;  %v10882_v10 = vcombine.low %v3298_v63, %v3302_v18  ;;  %v16007_v63 = vld [vmem:[#allocation236_spill] sm:$0xff] }
 0x726   : > { %v11188_v2 = vadd.f32 %v11187_v40, %v9090_v14  ;;  %v9092_v37 = vpop.f32.mrb[209].mxu1  ;;  %v11207_v40 = vadd.f32 %v14976_v21, %v15996_v11  ;;  %v15997_v21 = vld [vmem:[#allocation107_spill] sm:$0xff] }
 0x727   : > { %v11190_v39 = vadd.f32 %v11189_v29, %v9092_v37  ;;  %v9094_v1 = vpop.f32.mrb[210].mxu1  ;;  %10116 = vmatprep.subr.bf16.mxu0 %v9929_v35  ;;  %v11209_v29 = vadd.f32 %v14978_v57, %v15996_v11  ;;  %v3310_v57 = vld [vmem:[#allocation8 + $0x9b8] sm:$0xff] }
 0x728   : > { %v11192_v22 = vadd.f32 %v11191_v32, %v9094_v1  ;;  %v9096_v45 = vpop.f32.mrb[211].mxu1  ;;  %10117 = vmatpush1.bf16.msra.mxu0 %v9928_v44  ;;  %v9687_v27 = vmax.f32 %v11188_v2, 0.0  ;;  %v16008_v11 = vld [vmem:[#allocation237_spill] sm:$0xff] }
 0x729   : > { %v11194_v58 = vadd.f32 %v11193_v46, %v9096_v45  ;;  %v9688_v33 = vmax.f32 %v11190_v39, 0.0  ;;  %v15998_v39 = vld [vmem:[#allocation230_spill] sm:$0xff]  ;;  %v15999_v45 = vld [vmem:[#allocation231_spill] sm:$0xff] }
 0x72a   : > { %v9689_v52 = vmax.f32 %v11192_v22, 0.0  ;;  %9359 = vmatmul.mubr.bf16.gmra.mrb[60].mxu1 %v10858_v47  ;;  %v11211_v1 = vadd.f32 %v15998_v39, %v15997_v21  ;;  %v3306_v22 = vld [vmem:[#allocation8 + $0x998] sm:$0xff] }
 0x72b   : > { %v9690_v13 = vmax.f32 %v11194_v58, 0.0  ;;  %9368 = vmatprep.mubr.bf16.mxu1 %v10867_v34  ;;  %v11213_v58 = vadd.f32 %v15999_v45, %v15997_v21  ;;  %v10891_v5 = vcombine.high %v3306_v22, %v3310_v57  ;;  %v3322_v21 = vld [vmem:[#allocation8 + $0xa18] sm:$0xff] }
 0x72c   : > { %v9930_v31 = vpack.c.bf16 %v9689_v52, %v9687_v27  ;;  %v3326_v39 = vld [vmem:[#allocation8 + $0xa38] sm:$0xff] }
 0x72d   : > { %v9931_v38 = vpack.c.bf16 %v9690_v13, %v9688_v33  ;;  %v9100_v36 = vpop.f32.mrb[212].mxu1  ;;  %v16000_v33 = vld [vmem:[#allocation106_spill] sm:$0xff]  ;;  %v16001_v13 = vld [vmem:[#allocation232_spill] sm:$0xff] }
 0x72e   : > { %v11196_v0 = vadd.f32 %v11195_v19, %v9100_v36  ;;  %v9102_v15 = vpop.f32.mrb[213].mxu1  ;;  %v11215_v9 = vadd.f32 %v16001_v13, %v16000_v33  ;;  %v16012_v45 = vld [vmem:[#allocation110_spill] sm:$0xff] }
 0x72f   : > { %v11198_v30 = vadd.f32 %v11197_v56, %v9102_v15  ;;  %v9104_v25 = vpop.f32.mrb[214].mxu1  ;;  %10118 = vmatprep.subr.bf16.mxu0 %v9931_v38  ;;  %v11217_v56 = vadd.f32 %v16002_v54, %v16000_v33  ;;  %v10907_v54 = vcombine.high %v3322_v21, %v3326_v39 }
 0x730   : > { %v11200_v17 = vadd.f32 %v11199_v41, %v9104_v25  ;;  %v9106_v6 = vpop.f32.mrb[215].mxu1  ;;  %10119 = vmatpush1.bf16.msra.mxu0 %v9930_v31  ;;  %v9691_v53 = vmax.f32 %v11196_v0, 0.0 }
 0x731   : > { %v11202_v61 = vadd.f32 %v11201_v26, %v9106_v6  ;;  %v9692_v23 = vmax.f32 %v11198_v30, 0.0 }
 0x732   : > { %v9693_v51 = vmax.f32 %v11200_v17, 0.0  ;;  %9369 = vmatmul.mubr.bf16.gmra.mrb[64].mxu1 %v10866_v43  ;;  %v16004_v17 = vld [vmem:[#allocation234_spill] sm:$0xff] }
 0x733   : > { %v9694_v16 = vmax.f32 %v11202_v61, 0.0  ;;  %9378 = vmatprep.mubr.bf16.mxu1 %v10875_v3  ;;  %v16003_v3 = vld [vmem:[#allocation109_spill] sm:$0xff] }
 0x734   : > { %v9932_v60 = vpack.c.bf16 %v9693_v51, %v9691_v53  ;;  %v11219_v6 = vadd.f32 %v16004_v17, %v16003_v3  ;;  %v3314_v53 = vld [vmem:[#allocation8 + $0x9d8] sm:$0xff] }
 0x735   : > { %v9933_v55 = vpack.c.bf16 %v9694_v16, %v9692_v23  ;;  %v9110_v20 = vpop.f32.mrb[216].mxu1  ;;  %v3318_v51 = vld [vmem:[#allocation8 + $0x9f8] sm:$0xff]  ;;  %v16005_v23 = vld [vmem:[#allocation235_spill] sm:$0xff] }
 0x736   : > { %v11204_v44 = vadd.f32 %v11203_v48, %v9110_v20  ;;  %v9112_v50 = vpop.f32.mrb[217].mxu1  ;;  %v11221_v16 = vadd.f32 %v16005_v23, %v16003_v3  ;;  %v10890_v20 = vcombine.low %v3306_v22, %v3310_v57  ;;  %v10898_v13 = vcombine.low %v3314_v53, %v3318_v51  ;;  %v3330_v3 = vld [vmem:[#allocation8 + $0xa58] sm:$0xff]  ;;  %v16018_v23 = vld [vmem:[#allocation112_spill] sm:$0xff] }
 0x737   : > { %v11206_v35 = vadd.f32 %v11205_v24, %v9112_v50  ;;  %v9114_v14 = vpop.f32.mrb[218].mxu1  ;;  %10120 = vmatprep.subr.bf16.mxu0 %v9933_v55  ;;  %v3334_v17 = vld [vmem:[#allocation8 + $0xa78] sm:$0xff] }
 0x738   : > { %v11208_v59 = vadd.f32 %v11207_v40, %v9114_v14  ;;  %v9116_v32 = vpop.f32.mrb[219].mxu1  ;;  %10121 = vmatpush1.bf16.msra.mxu0 %v9932_v60  ;;  %v9695_v49 = vmax.f32 %v11204_v44, 0.0  ;;  %v16006_v60 = vld [vmem:[#allocation108_spill] sm:$0xff] }
 0x739   : > { %v11210_v2 = vadd.f32 %v11209_v29, %v9116_v32  ;;  %v9696_v47 = vmax.f32 %v11206_v35, 0.0  ;;  %v11223_v18 = vadd.f32 %v16007_v63, %v16006_v60  ;;  %v11225_v40 = vadd.f32 %v16008_v11, %v16006_v60 }
 0x73a   : > { %v9697_v37 = vmax.f32 %v11208_v59, 0.0  ;;  %9379 = vmatmul.mubr.bf16.gmra.mrb[68].mxu1 %v10874_v4  ;;  %v10899_v4 = vcombine.high %v3314_v53, %v3318_v51  ;;  %v10906_v63 = vcombine.low %v3322_v21, %v3326_v39  ;;  %v10915_v11 = vcombine.high %v3330_v3, %v3334_v17 }
 0x73b   : > { %v9698_v46 = vmax.f32 %v11210_v2, 0.0  ;;  %9388 = vmatprep.mubr.bf16.mxu1 %v10883_v8 }
 0x73c   : > { %v9934_v34 = vpack.c.bf16 %v9697_v37, %v9695_v49  ;;  %v16009_v49 = vld [vmem:[#allocation111_spill] sm:$0xff]  ;;  %v16010_v37 = vld [vmem:[#allocation238_spill] sm:$0xff] }
 0x73d   : > { %v9935_v27 = vpack.c.bf16 %v9698_v46, %v9696_v47  ;;  %v9120_v52 = vpop.f32.mrb[220].mxu1  ;;  %v11227_v47 = vadd.f32 %v16010_v37, %v16009_v49  ;;  %v3342_v37 = vld [vmem:[#allocation8 + $0xab8] sm:$0xff] }
 0x73e   : > { %v11212_v19 = vadd.f32 %v11211_v1, %v9120_v52  ;;  %v9122_v31 = vpop.f32.mrb[221].mxu1  ;;  %v16011_v1 = vld [vmem:[#allocation239_spill] sm:$0xff] }
 0x73f   : > { %v11214_v38 = vadd.f32 %v11213_v58, %v9122_v31  ;;  %v9124_v36 = vpop.f32.mrb[222].mxu1  ;;  %10122 = vmatprep.subr.bf16.mxu0 %v9935_v27  ;;  %v16013_v58 = vld [vmem:[#allocation240_spill] sm:$0xff] }
 0x740   : > { %v11216_v41 = vadd.f32 %v11215_v9, %v9124_v36  ;;  %v9126_v0 = vpop.f32.mrb[223].mxu1  ;;  %10123 = vmatpush1.bf16.msra.mxu0 %v9934_v34  ;;  %v9699_v43 = vmax.f32 %v11212_v19, 0.0  ;;  %v11229_v34 = vadd.f32 %v16011_v1, %v16009_v49  ;;  %v11231_v27 = vadd.f32 %v16013_v58, %v16012_v45  ;;  %v16014_v9 = vld [vmem:[#allocation241_spill] sm:$0xff]  ;;  %v16024_v1 = vld [vmem:[#allocation114_spill] sm:$0xff] }
 0x741   : > { %v11218_v15 = vadd.f32 %v11217_v56, %v9126_v0  ;;  %v9700_v30 = vmax.f32 %v11214_v38, 0.0  ;;  %v11233_v19 = vadd.f32 %v16014_v9, %v16012_v45  ;;  %v3338_v49 = vld [vmem:[#allocation8 + $0xa98] sm:$0xff]  ;;  %v10914_v58 = vcombine.low %v3330_v3, %v3334_v17 }
 0x742   : > { %v9701_v26 = vmax.f32 %v11216_v41, 0.0  ;;  %9389 = vmatmul.mubr.bf16.gmra.mrb[72].mxu1 %v10882_v10  ;;  %v10923_v9 = vcombine.high %v3338_v49, %v3342_v37 }
 0x743   : > { %v9702_v25 = vmax.f32 %v11218_v15, 0.0  ;;  %9398 = vmatprep.mubr.bf16.mxu1 %v10891_v5 }
 0x744   : > { %v9936_v61 = vpack.c.bf16 %v9701_v26, %v9699_v43  ;;  %v16015_v43 = vld [vmem:[#allocation113_spill] sm:$0xff]  ;;  %v16016_v26 = vld [vmem:[#allocation242_spill] sm:$0xff] }
 0x745   : > { %v9937_v28 = vpack.c.bf16 %v9702_v25, %v9700_v30  ;;  %v9130_v48 = vpop.f32.mrb[224].mxu1  ;;  %v11235_v30 = vadd.f32 %v16016_v26, %v16015_v43  ;;  %v3350_v26 = vld [vmem:[#allocation8 + $0xaf8] sm:$0xff] }
 0x746   : > { %v11220_v24 = vadd.f32 %v11219_v6, %v9130_v48  ;;  %v9132_v55 = vpop.f32.mrb[225].mxu1  ;;  %v16017_v6 = vld [vmem:[#allocation243_spill] sm:$0xff] }
 0x747   : > { %v11222_v44 = vadd.f32 %v11221_v16, %v9132_v55  ;;  %v9134_v50 = vpop.f32.mrb[226].mxu1  ;;  %10124 = vmatprep.subr.bf16.mxu0 %v9937_v28  ;;  %v16019_v16 = vld [vmem:[#allocation244_spill] sm:$0xff] }
 0x748   : > { %v11224_v29 = vadd.f32 %v11223_v18, %v9134_v50  ;;  %v9136_v35 = vpop.f32.mrb[227].mxu1  ;;  %10125 = vmatpush1.bf16.msra.mxu0 %v9936_v61  ;;  %v9703_v8 = vmax.f32 %v11220_v24, 0.0  ;;  %v11237_v61 = vadd.f32 %v16017_v6, %v16015_v43  ;;  %v11239_v28 = vadd.f32 %v16019_v16, %v16018_v23  ;;  %v16020_v18 = vld [vmem:[#allocation245_spill] sm:$0xff] }
 0x749   : > { %v11226_v14 = vadd.f32 %v11225_v40, %v9136_v35  ;;  %v9704_v32 = vmax.f32 %v11222_v44, 0.0  ;;  %v11241_v24 = vadd.f32 %v16020_v18, %v16018_v23  ;;  %v3346_v43 = vld [vmem:[#allocation8 + $0xad8] sm:$0xff]  ;;  %v10922_v16 = vcombine.low %v3338_v49, %v3342_v37 }
 0x74a   : > { %v9705_v59 = vmax.f32 %v11224_v29, 0.0  ;;  %9399 = vmatmul.mubr.bf16.gmra.mrb[76].mxu1 %v10890_v20  ;;  %v10931_v18 = vcombine.high %v3346_v43, %v3350_v26 }
 0x74b   : > { %v9706_v2 = vmax.f32 %v11226_v14, 0.0  ;;  %9408 = vmatprep.mubr.bf16.mxu1 %v10899_v4 }
 0x74c   : > { %v9938_v46 = vpack.c.bf16 %v9705_v59, %v9703_v8  ;;  %v16021_v8 = vld [vmem:[#allocation115_spill] sm:$0xff]  ;;  %v16022_v59 = vld [vmem:[#allocation246_spill] sm:$0xff] }
 0x74d   : > { %v9939_v22 = vpack.c.bf16 %v9706_v2, %v9704_v32  ;;  %v9140_v57 = vpop.f32.mrb[228].mxu1  ;;  %v11243_v32 = vadd.f32 %v16022_v59, %v16021_v8  ;;  %v3358_v59 = vld [vmem:[#allocation8 + $0xb38] sm:$0xff] }
 0x74e   : > { %v11228_v52 = vadd.f32 %v11227_v47, %v9140_v57  ;;  %v9142_v33 = vpop.f32.mrb[229].mxu1  ;;  %v16023_v47 = vld [vmem:[#allocation247_spill] sm:$0xff] }
 0x74f   : > { %v11230_v31 = vadd.f32 %v11229_v34, %v9142_v33  ;;  %v9144_v10 = vpop.f32.mrb[230].mxu1  ;;  %10126 = vmatprep.subr.bf16.mxu0 %v9939_v22  ;;  %v16025_v34 = vld [vmem:[#allocation248_spill] sm:$0xff] }
 0x750   : > { %v11232_v56 = vadd.f32 %v11231_v27, %v9144_v10  ;;  %v9146_v38 = vpop.f32.mrb[231].mxu1  ;;  %10127 = vmatpush1.bf16.msra.mxu0 %v9938_v46  ;;  %v9707_v5 = vmax.f32 %v11228_v52, 0.0  ;;  %v11245_v46 = vadd.f32 %v16023_v47, %v16021_v8  ;;  %v11247_v22 = vadd.f32 %v16025_v34, %v16024_v1  ;;  %v16026_v27 = vld [vmem:[#allocation249_spill] sm:$0xff] }
 0x751   : > { %v11234_v36 = vadd.f32 %v11233_v19, %v9146_v38  ;;  %v9708_v0 = vmax.f32 %v11230_v31, 0.0  ;;  %v11249_v52 = vadd.f32 %v16026_v27, %v16024_v1  ;;  %v3920_v38 = vpop.permute.xlu0 %3919  ;;  %v3354_v8 = vld [vmem:[#allocation8 + $0xb18] sm:$0xff]  ;;  %v10930_v34 = vcombine.low %v3346_v43, %v3350_v26 }
 0x752   : > { %v9709_v41 = vmax.f32 %v11232_v56, 0.0  ;;  %9409 = vmatmul.mubr.bf16.gmra.mrb[80].mxu1 %v10898_v13  ;;  %v15193_v27 = vrot.slane %v15063_v7, %v15061_v42  ;;  %v3366_v7 = vld [vmem:[#allocation8 + $0xb78] sm:$0xff] }
 0x753   : > { %v9710_v15 = vmax.f32 %v11234_v36, 0.0  ;;  %9418 = vmatprep.mubr.bf16.mxu1 %v10907_v54 }
 0x754   : > { %v9940_v25 = vpack.c.bf16 %v9709_v41, %v9707_v5  ;;  %v16027_v41 = vld [vmem:[#allocation250_spill] sm:$0xff] }
 0x755   : > { %v9941_v53 = vpack.c.bf16 %v9710_v15, %v9708_v0  ;;  %v9150_v51 = vpop.f32.mrb[232].mxu1  ;;  %v11251_v0 = vadd.f32 %v16027_v41, %v3920_v38  ;;  %v3362_v41 = vld [vmem:[#allocation8 + $0xb58] sm:$0xff] }
 0x756   : > { %v11236_v48 = vadd.f32 %v11235_v30, %v9150_v51  ;;  %v9152_v60 = vpop.f32.mrb[233].mxu1  ;;  %v3925_v30 = vpop.permute.xlu1 %3924 }
 0x757   : > { %v11238_v55 = vadd.f32 %v11237_v61, %v9152_v60  ;;  %v9154_v20 = vpop.f32.mrb[234].mxu1  ;;  %10128 = vmatprep.subr.bf16.mxu0 %v9941_v53  ;;  %v16029_v61 = vld [vmem:[#allocation252_spill] sm:$0xff] }
 0x758   : > { %v11240_v40 = vadd.f32 %v11239_v28, %v9154_v20  ;;  %v9156_v44 = vpop.f32.mrb[235].mxu1  ;;  %10129 = vmatpush1.bf16.msra.mxu0 %v9940_v25  ;;  %v9711_v4 = vmax.f32 %v11236_v48, 0.0  ;;  %v16028_v25 = vld [vmem:[#allocation251_spill] sm:$0xff]  ;;  %v11255_v53 = vadd.f32 %v16029_v61, %v3925_v30  ;;  %v16030_v28 = vld [vmem:[#allocation253_spill] sm:$0xff]  ;;  %v10938_v61 = vcombine.low %v3354_v8, %v3358_v59 }
 0x759   : > { %v11242_v50 = vadd.f32 %v11241_v24, %v9156_v44  ;;  %v9712_v35 = vmax.f32 %v11238_v55, 0.0  ;;  %v11253_v3 = vadd.f32 %v16028_v25, %v3920_v38  ;;  %v11257_v48 = vadd.f32 %v16030_v28, %v3925_v30  ;;  %v3930_v44 = vpop.permute.xlu0 %3929  ;;  %v16035_v38 = vld [vmem:[#allocation258_spill] sm:$0xff]  ;;  %v16037_v25 = vld [vmem:[#allocation260_spill] sm:$0xff] }
 0x75a   : > { %v9713_v29 = vmax.f32 %v11240_v40, 0.0  ;;  %9419 = vmatmul.mubr.bf16.gmra.mrb[84].mxu1 %v10906_v63  ;;  %v10947_v28 = vcombine.high %v3362_v41, %v3366_v7 }
 0x75b   : > { %v9714_v14 = vmax.f32 %v11242_v50, 0.0  ;;  %9428 = vmatprep.mubr.bf16.mxu1 %v10915_v11 }
 0x75c   : > { %v9942_v2 = vpack.c.bf16 %v9713_v29, %v9711_v4  ;;  %v16031_v29 = vld [vmem:[#allocation254_spill] sm:$0xff] }
 0x75d   : > { %v9943_v21 = vpack.c.bf16 %v9714_v14, %v9712_v35  ;;  %v9160_v39 = vpop.f32.mrb[236].mxu1  ;;  %v11259_v35 = vadd.f32 %v16031_v29, %v3930_v44  ;;  %v3370_v29 = vld [vmem:[#allocation8 + $0xb98] sm:$0xff] }
 0x75e   : > { %v11244_v57 = vadd.f32 %v11243_v32, %v9160_v39  ;;  %v9162_v45 = vpop.f32.mrb[237].mxu1  ;;  %v3935_v32 = vpop.permute.xlu1 %3934 }
 0x75f   : > { %v11246_v33 = vadd.f32 %v11245_v46, %v9162_v45  ;;  %v9164_v13 = vpop.f32.mrb[238].mxu1  ;;  %10130 = vmatprep.subr.bf16.mxu0 %v9943_v21  ;;  %v16033_v46 = vld [vmem:[#allocation256_spill] sm:$0xff] }
 0x760   : > { %v11248_v19 = vadd.f32 %v11247_v22, %v9164_v13  ;;  %v9166_v31 = vpop.f32.mrb[239].mxu1  ;;  %10131 = vmatpush1.bf16.msra.mxu0 %v9942_v2  ;;  %v9715_v54 = vmax.f32 %v11244_v57, 0.0  ;;  %v16032_v2 = vld [vmem:[#allocation255_spill] sm:$0xff]  ;;  %v11263_v21 = vadd.f32 %v16033_v46, %v3935_v32  ;;  %v16034_v22 = vld [vmem:[#allocation257_spill] sm:$0xff]  ;;  %v10946_v46 = vcombine.low %v3362_v41, %v3366_v7  ;;  %v16044_v7 = vld [vmem:[#allocation20_spill] sm:$0xff] }
 0x761   : > { %v11250_v10 = vadd.f32 %v11249_v52, %v9166_v31  ;;  %v9716_v36 = vmax.f32 %v11246_v33, 0.0  ;;  %v11261_v49 = vadd.f32 %v16032_v2, %v3930_v44  ;;  %v11265_v57 = vadd.f32 %v16034_v22, %v3935_v32  ;;  %v16039_v44 = vld [vmem:[#allocation262_spill] sm:$0xff]  ;;  %v16041_v2 = vld [vmem:[#allocation264_spill] sm:$0xff] }
 0x762   : > { %v9717_v56 = vmax.f32 %v11248_v19, 0.0  ;;  %9429 = vmatmul.mubr.bf16.gmra.mrb[88].mxu1 %v10914_v58  ;;  %v10939_v52 = vcombine.high %v3354_v8, %v3358_v59  ;;  %v16040_v8 = vld [vmem:[#allocation263_spill] sm:$0xff] }
 0x763   : > { %v9718_v5 = vmax.f32 %v11250_v10, 0.0  ;;  %9438 = vmatprep.mubr.bf16.mxu1 %v10923_v9  ;;  %v3940_v10 = vpop.permute.xlu0 %3939 }
 0x764   : > { %v9944_v15 = vpack.c.bf16 %v9717_v56, %v9715_v54 }
 0x765   : > { %v9945_v17 = vpack.c.bf16 %v9718_v5, %v9716_v36  ;;  %v9170_v6 = vpop.f32.mrb[240].mxu1  ;;  %v11267_v36 = vadd.f32 %v16035_v38, %v3940_v10  ;;  %v3382_v38 = vld [vmem:[#allocation8 + $0xbf8] sm:$0xff] }
 0x766   : > { %v11252_v51 = vadd.f32 %v11251_v0, %v9170_v6  ;;  %v9172_v23 = vpop.f32.mrb[241].mxu1  ;;  %v3945_v0 = vpop.permute.xlu1 %3944 }
 0x767   : > { %v11254_v60 = vadd.f32 %v11253_v3, %v9172_v23  ;;  %v9174_v63 = vpop.f32.mrb[242].mxu1  ;;  %10132 = vmatprep.subr.bf16.mxu0 %v9945_v17  ;;  %v11271_v3 = vadd.f32 %v16037_v25, %v3945_v0 }
 0x768   : > { %v11256_v24 = vadd.f32 %v11255_v53, %v9174_v63  ;;  %v9176_v55 = vpop.f32.mrb[243].mxu1  ;;  %10133 = vmatpush1.bf16.msra.mxu0 %v9944_v15  ;;  %v9719_v11 = vmax.f32 %v11252_v51, 0.0  ;;  %v16036_v15 = vld [vmem:[#allocation259_spill] sm:$0xff]  ;;  %v16038_v53 = vld [vmem:[#allocation261_spill] sm:$0xff] }
 0x769   : > { %v11258_v20 = vadd.f32 %v11257_v48, %v9176_v55  ;;  %v9720_v50 = vmax.f32 %v11254_v60, 0.0  ;;  %v11269_v43 = vadd.f32 %v16036_v15, %v3940_v10  ;;  %v11273_v51 = vadd.f32 %v16038_v53, %v3945_v0  ;;  %v16043_v10 = vld [vmem:[#allocation21_spill] sm:$0xff] }
 0x76a   : > { %v9721_v40 = vmax.f32 %v11256_v24, 0.0  ;;  %9439 = vmatmul.mubr.bf16.gmra.mrb[92].mxu1 %v10922_v16  ;;  %v10094_v48 = vcombine.high %v15076_v62, %v15076_v62 }
 0x76b   : > { %v9722_v4 = vmax.f32 %v11258_v20, 0.0  ;;  %9448 = vmatprep.mubr.bf16.mxu1 %v10931_v18  ;;  %v3950_v20 = vpop.permute.xlu0 %3949 }
 0x76c   : > { %v9946_v14 = vpack.c.bf16 %v9721_v40, %v9719_v11  ;;  %v11277_v62 = vadd.f32 %v16040_v8, %v3950_v20 }
 0x76d   : > { %v9947_v37 = vpack.c.bf16 %v9722_v4, %v9720_v50  ;;  %v9180_v47 = vpop.f32.mrb[244].mxu1  ;;  %v11275_v50 = vadd.f32 %v16039_v44, %v3950_v20 }
 0x76e   : > { %v11260_v39 = vadd.f32 %v11259_v35, %v9180_v47  ;;  %v9182_v1 = vpop.f32.mrb[245].mxu1  ;;  %v3374_v35 = vld [vmem:[#allocation8 + $0xbb8] sm:$0xff] }
 0x76f   : > { %v11262_v45 = vadd.f32 %v11261_v49, %v9182_v1  ;;  %v9184_v58 = vpop.f32.mrb[246].mxu1  ;;  %10134 = vmatprep.subr.bf16.mxu0 %v9947_v37  ;;  %v10955_v22 = vcombine.high %v3370_v29, %v3374_v35  ;;  %v10954_v25 = vcombine.low %v3370_v29, %v3374_v35 }
 0x770   : > { %v11264_v33 = vadd.f32 %v11263_v21, %v9184_v58  ;;  %v9186_v13 = vpop.f32.mrb[247].mxu1  ;;  %10135 = vmatpush1.bf16.msra.mxu0 %v9946_v14  ;;  %v9723_v19 = vmax.f32 %v11260_v39, 0.0  ;;  %v3955_v14 = vpop.permute.xlu1 %3954  ;;  %v16042_v21 = vld [vmem:[#allocation265_spill] sm:$0xff] }
 0x771   : > { %v11266_v9 = vadd.f32 %v11265_v57, %v9186_v13  ;;  %v9724_v54 = vmax.f32 %v11262_v45, 0.0  ;;  %v11279_v49 = vadd.f32 %v16041_v2, %v3955_v14  ;;  %v11281_v39 = vadd.f32 %v16042_v21, %v3955_v14  ;;  %v3960_v13 = vpop.permute.xlu0 %3959  ;;  %v16049_v14 = vld [vmem:[#allocation27_spill] sm:$0xff]  ;;  %v16050_v2 = vld [vmem:[#allocation26_spill] sm:$0xff] }
 0x772   : > { %v9725_v31 = vmax.f32 %v11264_v33, 0.0  ;;  %9449 = vmatmul.mubr.bf16.gmra.mrb[96].mxu1 %v10930_v34  ;;  %v7194_v0 = vadd.f32 %v16044_v7, %v3960_v13 }
 0x773   : > { %v9726_v56 = vmax.f32 %v11266_v9, 0.0  ;;  %10137 = vmatmul.mubr.bf16.vlgmr.msra.gmra.mrb[76].mxu0 %v15193_v27  ;;  %9458 = vmatprep.mubr.bf16.mxu1 %v10939_v52 }
 0x774   : > { %v9948_v5 = vpack.c.bf16 %v9725_v31, %v9723_v19  ;;  %10177 = vmatprep.mubr.bf16.mxu0 %v10094_v48 }
 0x775   : > { %v9949_v26 = vpack.c.bf16 %v9726_v56, %v9724_v54  ;;  %v9190_v30 = vpop.f32.mrb[248].mxu1  ;;  %v7192_v54 = vadd.f32 %v16043_v10, %v3960_v13  ;;  %v3378_v56 = vld [vmem:[#allocation8 + $0xbd8] sm:$0xff]  ;;  %v16052_v10 = vld [vmem:[#allocation28_spill] sm:$0xff] }
 0x776   : > { %v11268_v17 = vadd.f32 %v11267_v36, %v9190_v30  ;;  %v9192_v6 = vpop.f32.mrb[249].mxu1  ;;  %v3965_v36 = vpop.permute.xlu1 %3964  ;;  %v10963_v53 = vcombine.high %v3378_v56, %v3382_v38 }
 0x777   : > { %v11270_v23 = vadd.f32 %v11269_v43, %v9192_v6  ;;  %v9194_v16 = vpop.f32.mrb[250].mxu1  ;;  %10145 = vmatprep.subr.bf16.mxu0 %v9949_v26  ;;  %v16045_v26 = vld [vmem:[#allocation23_spill] sm:$0xff]  ;;  %v16046_v6 = vld [vmem:[#allocation22_spill] sm:$0xff] }
 0x778   : > { %v11272_v60 = vadd.f32 %v11271_v3, %v9194_v16  ;;  %v9196_v63 = vpop.f32.mrb[251].mxu1  ;;  %10146 = vmatpush1.bf16.msra.mxu0 %v9948_v5  ;;  %v9727_v24 = vmax.f32 %v11268_v17, 0.0  ;;  %v7196_v30 = vadd.f32 %v16045_v26, %v3965_v36 }
 0x779   : > { %v11274_v18 = vadd.f32 %v11273_v51, %v9196_v63  ;;  %v9728_v11 = vmax.f32 %v11270_v23, 0.0 }
 0x77a   : > { %v9729_v55 = vmax.f32 %v11272_v60, 0.0  ;;  %9459 = vmatmul.mubr.bf16.gmra.mrb[100].mxu1 %v10938_v61  ;;  %v7198_v61 = vadd.f32 %v16046_v6, %v3965_v36  ;;  %v3970_v60 = vpop.permute.xlu0 %3969  ;;  %v3975_v44 = vpop.permute.xlu1 %3974  ;;  %v16053_v36 = vld [vmem:[#allocation31_spill] sm:$0xff] }
 0x77b   : > { %v9730_v40 = vmax.f32 %v11274_v18, 0.0  ;;  %9468 = vmatprep.mubr.bf16.mxu1 %v10947_v28  ;;  %v7206_v8 = vadd.f32 %v16049_v14, %v3975_v44  ;;  %v16058_v14 = vld [vmem:[#allocation34_spill] sm:$0xff] }
 0x77c   : > { %v9950_v4 = vpack.c.bf16 %v9729_v55, %v9727_v24  ;;  %v16047_v24 = vld [vmem:[#allocation25_spill] sm:$0xff] }
 0x77d   : > { %v9951_v59 = vpack.c.bf16 %v9730_v40, %v9728_v11  ;;  %v9200_v32 = vpop.f32.mrb[252].mxu1  ;;  %v7202_v55 = vadd.f32 %v16047_v24, %v3970_v60  ;;  %v3386_v11 = vld [vmem:[#allocation8 + $0xc18] sm:$0xff] }
 0x77e   : > { %v11276_v37 = vadd.f32 %v11275_v50, %v9200_v32  ;;  %v9202_v47 = vpop.f32.mrb[253].mxu1  ;;  %v3390_v40 = vld [vmem:[#allocation8 + $0xc38] sm:$0xff]  ;;  %v16048_v50 = vld [vmem:[#allocation24_spill] sm:$0xff]  ;;  %v10962_v32 = vcombine.low %v3378_v56, %v3382_v38 }
 0x77f   : > { %v11278_v1 = vadd.f32 %v11277_v62, %v9202_v47  ;;  %v9204_v34 = vpop.f32.mrb[254].mxu1  ;;  %10147 = vmatprep.subr.bf16.mxu0 %v9951_v59 }
 0x780   : > { %v11280_v57 = vadd.f32 %v11279_v49, %v9204_v34  ;;  %v9206_v45 = vpop.f32.mrb[255].mxu1  ;;  %10148 = vmatpush1.bf16.msra.mxu0 %v9950_v4  ;;  %v9731_v52 = vmax.f32 %v11276_v37, 0.0  ;;  %v7204_v4 = vadd.f32 %v16048_v50, %v3970_v60  ;;  %v7208_v49 = vadd.f32 %v16050_v2, %v3975_v44  ;;  %v16057_v44 = vld [vmem:[#allocation35_spill] sm:$0xff] }
 0x781   : > { %v11282_v58 = vadd.f32 %v11281_v39, %v9206_v45  ;;  %v9732_v9 = vmax.f32 %v11278_v1, 0.0 }
 0x782   : > { %v9733_v33 = vmax.f32 %v11280_v57, 0.0  ;;  %9469 = vmatmul.mubr.bf16.gmra.mrb[104].mxu1 %v10946_v46  ;;  %v10971_v46 = vcombine.high %v3386_v11, %v3390_v40  ;;  %v3980_v57 = vpop.permute.xlu0 %3979 }
 0x783   : > { %v9734_v19 = vmax.f32 %v11282_v58, 0.0  ;;  %9478 = vmatprep.mubr.bf16.mxu1 %v10955_v22 }
 0x784   : > { %v9952_v31 = vpack.c.bf16 %v9733_v33, %v9731_v52  ;;  %v16051_v52 = vld [vmem:[#allocation29_spill] sm:$0xff] }
 0x785   : > { %v9953_v5 = vpack.c.bf16 %v9734_v19, %v9732_v9  ;;  %v9210_v41 = vpop.f32.mrb[0].mxu1  ;;  %v7212_v33 = vadd.f32 %v16051_v52, %v3980_v57  ;;  %v3394_v9 = vld [vmem:[#allocation8 + $0xc58] sm:$0xff] }
 0x786   : > { %v11284_v15 = vadd.f32 %v9210_v41, %v7192_v54  ;;  %v9212_v43 = vpop.f32.mrb[1].mxu1  ;;  %v3398_v19 = vld [vmem:[#allocation8 + $0xc78] sm:$0xff]  ;;  %v7214_v54 = vadd.f32 %v16052_v10, %v3980_v57 }
 0x787   : > { %v11286_v3 = vadd.f32 %v9212_v43, %v7194_v0  ;;  %v9214_v17 = vpop.f32.mrb[2].mxu1  ;;  %10149 = vmatprep.subr.bf16.mxu0 %v9953_v5  ;;  %v10970_v0 = vcombine.low %v3386_v11, %v3390_v40 }
 0x788   : > { %v11288_v51 = vadd.f32 %v9214_v17, %v7196_v30  ;;  %v9216_v23 = vpop.f32.mrb[3].mxu1  ;;  %10150 = vmatpush1.bf16.msra.mxu0 %v9952_v31  ;;  %v9735_v28 = vmax.f32 %v11284_v15, 0.0  ;;  %v3985_v31 = vpop.permute.xlu1 %3984  ;;  %v16054_v15 = vld [vmem:[#allocation30_spill] sm:$0xff] }
 0x789   : > { %v11290_v16 = vadd.f32 %v9216_v23, %v7198_v61  ;;  %v9736_v63 = vmax.f32 %v11286_v3, 0.0  ;;  %v7216_v5 = vadd.f32 %v16053_v36, %v3985_v31  ;;  %v7218_v43 = vadd.f32 %v16054_v15, %v3985_v31  ;;  %v16061_v31 = vld [vmem:[#allocation39_spill] sm:$0xff]  ;;  %v16062_v36 = vld [vmem:[#allocation38_spill] sm:$0xff] }
 0x78a   : > { %v9737_v48 = vmax.f32 %v11288_v51, 0.0  ;;  %9479 = vmatmul.mubr.bf16.gmra.mrb[108].mxu1 %v10954_v25  ;;  %v10979_v25 = vcombine.high %v3394_v9, %v3398_v19  ;;  %v3990_v51 = vpop.permute.xlu0 %3989 }
 0x78b   : > { %v9738_v18 = vmax.f32 %v11290_v16, 0.0  ;;  %9488 = vmatprep.mubr.bf16.mxu1 %v10963_v53 }
 0x78c   : > { %v9954_v20 = vpack.c.bf16 %v9737_v48, %v9735_v28  ;;  %v16055_v28 = vld [vmem:[#allocation33_spill] sm:$0xff]  ;;  %v3995_v24 = vpop.permute.xlu1 %3994 }
 0x78d   : > { %v9955_v29 = vpack.c.bf16 %v9738_v18, %v9736_v63  ;;  %v9220_v35 = vpop.f32.mrb[4].mxu1  ;;  %v7222_v48 = vadd.f32 %v16055_v28, %v3990_v51  ;;  %v3402_v63 = vld [vmem:[#allocation8 + $0xc98] sm:$0xff]  ;;  %v7226_v50 = vadd.f32 %v16057_v44, %v3995_v24 }
 0x78e   : > { %v11292_v62 = vadd.f32 %v9220_v35, %v7202_v55  ;;  %v9222_v59 = vpop.f32.mrb[5].mxu1  ;;  %v3406_v18 = vld [vmem:[#allocation8 + $0xcb8] sm:$0xff]  ;;  %v16056_v55 = vld [vmem:[#allocation32_spill] sm:$0xff]  ;;  %v10978_v35 = vcombine.low %v3394_v9, %v3398_v19 }
 0x78f   : > { %v11294_v37 = vadd.f32 %v9222_v59, %v7204_v4  ;;  %v9224_v47 = vpop.f32.mrb[6].mxu1  ;;  %10151 = vmatprep.subr.bf16.mxu0 %v9955_v29  ;;  %v16066_v44 = vld [vmem:[#allocation42_spill] sm:$0xff] }
 0x790   : > { %v11296_v21 = vadd.f32 %v9224_v47, %v7206_v8  ;;  %v9226_v39 = vpop.f32.mrb[7].mxu1  ;;  %10152 = vmatpush1.bf16.msra.mxu0 %v9954_v20  ;;  %v9739_v34 = vmax.f32 %v11292_v62, 0.0  ;;  %v7224_v20 = vadd.f32 %v16056_v55, %v3990_v51  ;;  %v7228_v8 = vadd.f32 %v16058_v14, %v3995_v24  ;;  %v4005_v52 = vpop.permute.xlu1 %4004  ;;  %v16065_v24 = vld [vmem:[#allocation43_spill] sm:$0xff] }
 0x791   : > { %v11298_v1 = vadd.f32 %v9226_v39, %v7208_v49  ;;  %v9740_v45 = vmax.f32 %v11294_v37, 0.0  ;;  %v7236_v10 = vadd.f32 %v16061_v31, %v4005_v52  ;;  %v16070_v31 = vld [vmem:[#allocation46_spill] sm:$0xff] }
 0x792   : > { %v9741_v22 = vmax.f32 %v11296_v21, 0.0  ;;  %9489 = vmatmul.mubr.bf16.gmra.mrb[112].mxu1 %v10962_v32  ;;  %v10987_v32 = vcombine.high %v3402_v63, %v3406_v18  ;;  %v4000_v21 = vpop.permute.xlu0 %3999 }
 0x793   : > { %v9742_v58 = vmax.f32 %v11298_v1, 0.0  ;;  %9498 = vmatprep.mubr.bf16.mxu1 %v10971_v46 }
 0x794   : > { %v9956_v13 = vpack.c.bf16 %v9741_v22, %v9739_v34  ;;  %v16059_v34 = vld [vmem:[#allocation37_spill] sm:$0xff]  ;;  %v4015_v28 = vpop.permute.xlu1 %4014 }
 0x795   : > { %v9957_v56 = vpack.c.bf16 %v9742_v58, %v9740_v45  ;;  %v9230_v38 = vpop.f32.mrb[8].mxu1  ;;  %v7232_v22 = vadd.f32 %v16059_v34, %v4000_v21  ;;  %v3410_v45 = vld [vmem:[#allocation8 + $0xcd8] sm:$0xff]  ;;  %v7246_v55 = vadd.f32 %v16065_v24, %v4015_v28 }
 0x796   : > { %v11300_v41 = vadd.f32 %v9230_v38, %v7212_v33  ;;  %v9232_v7 = vpop.f32.mrb[9].mxu1  ;;  %v3414_v58 = vld [vmem:[#allocation8 + $0xcf8] sm:$0xff]  ;;  %v16060_v33 = vld [vmem:[#allocation36_spill] sm:$0xff]  ;;  %v10986_v38 = vcombine.low %v3402_v63, %v3406_v18 }
 0x797   : > { %v11302_v26 = vadd.f32 %v9232_v7, %v7214_v54  ;;  %v9234_v30 = vpop.f32.mrb[10].mxu1  ;;  %10153 = vmatprep.subr.bf16.mxu0 %v9957_v56  ;;  %v16074_v24 = vld [vmem:[#allocation50_spill] sm:$0xff] }
 0x798   : > { %v11304_v3 = vadd.f32 %v9234_v30, %v7216_v5  ;;  %v9236_v17 = vpop.f32.mrb[11].mxu1  ;;  %10154 = vmatpush1.bf16.msra.mxu0 %v9956_v13  ;;  %v9743_v61 = vmax.f32 %v11300_v41, 0.0  ;;  %v7234_v13 = vadd.f32 %v16060_v33, %v4000_v21  ;;  %v7238_v5 = vadd.f32 %v16062_v36, %v4005_v52  ;;  %v4025_v34 = vpop.permute.xlu1 %4024  ;;  %v16069_v52 = vld [vmem:[#allocation47_spill] sm:$0xff] }
 0x799   : > { %v11306_v6 = vadd.f32 %v9236_v17, %v7218_v43  ;;  %v9744_v23 = vmax.f32 %v11302_v26, 0.0  ;;  %v7256_v33 = vadd.f32 %v16069_v52, %v4025_v34  ;;  %v16078_v52 = vld [vmem:[#allocation54_spill] sm:$0xff] }
 0x79a   : > { %v9745_v53 = vmax.f32 %v11304_v3, 0.0  ;;  %9499 = vmatmul.mubr.bf16.gmra.mrb[116].mxu1 %v10970_v0  ;;  %v10995_v0 = vcombine.high %v3410_v45, %v3414_v58  ;;  %v4010_v3 = vpop.permute.xlu0 %4009 }
 0x79b   : > { %v9746_v16 = vmax.f32 %v11306_v6, 0.0  ;;  %9508 = vmatprep.mubr.bf16.mxu1 %v10979_v25 }
 0x79c   : > { %v9958_v60 = vpack.c.bf16 %v9745_v53, %v9743_v61  ;;  %v16063_v61 = vld [vmem:[#allocation41_spill] sm:$0xff] }
 0x79d   : > { %v9959_v11 = vpack.c.bf16 %v9746_v16, %v9744_v23  ;;  %v9240_v40 = vpop.f32.mrb[12].mxu1  ;;  %v7242_v53 = vadd.f32 %v16063_v61, %v4010_v3  ;;  %v3418_v23 = vld [vmem:[#allocation8 + $0xd18] sm:$0xff]  ;;  %v4035_v61 = vpop.permute.xlu1 %4034 }
 0x79e   : > { %v11308_v4 = vadd.f32 %v9240_v40, %v7222_v48  ;;  %v9242_v29 = vpop.f32.mrb[13].mxu1  ;;  %v3422_v16 = vld [vmem:[#allocation8 + $0xd38] sm:$0xff]  ;;  %v16064_v48 = vld [vmem:[#allocation40_spill] sm:$0xff]  ;;  %v10994_v40 = vcombine.low %v3410_v45, %v3414_v58 }
 0x79f   : > { %v11310_v62 = vadd.f32 %v9242_v29, %v7224_v20  ;;  %v9244_v59 = vpop.f32.mrb[14].mxu1  ;;  %10155 = vmatprep.subr.bf16.mxu0 %v9959_v11 }
 0x7a0   : > { %v11312_v2 = vadd.f32 %v9244_v59, %v7226_v50  ;;  %v9246_v49 = vpop.f32.mrb[15].mxu1  ;;  %10156 = vmatpush1.bf16.msra.mxu0 %v9958_v60  ;;  %v9747_v47 = vmax.f32 %v11308_v4, 0.0  ;;  %v7244_v60 = vadd.f32 %v16064_v48, %v4010_v3  ;;  %v7248_v50 = vadd.f32 %v16066_v44, %v4015_v28  ;;  %v16073_v28 = vld [vmem:[#allocation51_spill] sm:$0xff] }
 0x7a1   : > { %v11314_v37 = vadd.f32 %v9246_v49, %v7228_v8  ;;  %v9748_v39 = vmax.f32 %v11310_v62, 0.0  ;;  %v7266_v48 = vadd.f32 %v16073_v28, %v4035_v61  ;;  %v16082_v28 = vld [vmem:[#allocation58_spill] sm:$0xff] }
 0x7a2   : > { %v9749_v46 = vmax.f32 %v11312_v2, 0.0  ;;  %9509 = vmatmul.mubr.bf16.gmra.mrb[120].mxu1 %v10978_v35  ;;  %v11003_v35 = vcombine.high %v3418_v23, %v3422_v16  ;;  %v4020_v2 = vpop.permute.xlu0 %4019 }
 0x7a3   : > { %v9750_v1 = vmax.f32 %v11314_v37, 0.0  ;;  %9518 = vmatprep.mubr.bf16.mxu1 %v10987_v32 }
 0x7a4   : > { %v9960_v57 = vpack.c.bf16 %v9749_v46, %v9747_v47  ;;  %v16067_v47 = vld [vmem:[#allocation45_spill] sm:$0xff] }
 0x7a5   : > { %v9961_v9 = vpack.c.bf16 %v9750_v1, %v9748_v39  ;;  %v9250_v19 = vpop.f32.mrb[16].mxu1  ;;  %v7252_v46 = vadd.f32 %v16067_v47, %v4020_v2  ;;  %v3426_v39 = vld [vmem:[#allocation8 + $0xd58] sm:$0xff]  ;;  %v4045_v47 = vpop.permute.xlu1 %4044 }
 0x7a6   : > { %v11316_v54 = vadd.f32 %v9250_v19, %v7232_v22  ;;  %v9252_v56 = vpop.f32.mrb[17].mxu1  ;;  %v3430_v1 = vld [vmem:[#allocation8 + $0xd78] sm:$0xff]  ;;  %v16068_v22 = vld [vmem:[#allocation44_spill] sm:$0xff]  ;;  %v11002_v19 = vcombine.low %v3418_v23, %v3422_v16 }
 0x7a7   : > { %v11318_v41 = vadd.f32 %v9252_v56, %v7234_v13  ;;  %v9254_v7 = vpop.f32.mrb[18].mxu1  ;;  %10157 = vmatprep.subr.bf16.mxu0 %v9961_v9 }
 0x7a8   : > { %v11320_v15 = vadd.f32 %v9254_v7, %v7236_v10  ;;  %v9256_v43 = vpop.f32.mrb[19].mxu1  ;;  %10158 = vmatpush1.bf16.msra.mxu0 %v9960_v57  ;;  %v9751_v30 = vmax.f32 %v11316_v54, 0.0  ;;  %v7254_v57 = vadd.f32 %v16068_v22, %v4020_v2  ;;  %v7258_v10 = vadd.f32 %v16070_v31, %v4025_v34  ;;  %v16077_v34 = vld [vmem:[#allocation55_spill] sm:$0xff] }
 0x7a9   : > { %v11322_v26 = vadd.f32 %v9256_v43, %v7238_v5  ;;  %v9752_v17 = vmax.f32 %v11318_v41, 0.0  ;;  %v7276_v22 = vadd.f32 %v16077_v34, %v4045_v47  ;;  %v16086_v34 = vld [vmem:[#allocation62_spill] sm:$0xff] }
 0x7aa   : > { %v9753_v25 = vmax.f32 %v11320_v15, 0.0  ;;  %9519 = vmatmul.mubr.bf16.gmra.mrb[124].mxu1 %v10986_v38  ;;  %v11011_v38 = vcombine.high %v3426_v39, %v3430_v1  ;;  %v4030_v15 = vpop.permute.xlu0 %4029 }
 0x7ab   : > { %v9754_v6 = vmax.f32 %v11322_v26, 0.0  ;;  %9528 = vmatprep.mubr.bf16.mxu1 %v10995_v0 }
 0x7ac   : > { %v9962_v51 = vpack.c.bf16 %v9753_v25, %v9751_v30  ;;  %v16071_v30 = vld [vmem:[#allocation49_spill] sm:$0xff] }
 0x7ad   : > { %v9963_v63 = vpack.c.bf16 %v9754_v6, %v9752_v17  ;;  %v9260_v18 = vpop.f32.mrb[20].mxu1  ;;  %v7262_v25 = vadd.f32 %v16071_v30, %v4030_v15  ;;  %v3434_v17 = vld [vmem:[#allocation8 + $0xd98] sm:$0xff]  ;;  %v4055_v30 = vpop.permute.xlu1 %4054 }
 0x7ae   : > { %v11324_v20 = vadd.f32 %v9260_v18, %v7242_v53  ;;  %v9262_v11 = vpop.f32.mrb[21].mxu1  ;;  %v3438_v6 = vld [vmem:[#allocation8 + $0xdb8] sm:$0xff]  ;;  %v16072_v53 = vld [vmem:[#allocation48_spill] sm:$0xff]  ;;  %v11010_v18 = vcombine.low %v3426_v39, %v3430_v1 }
 0x7af   : > { %v11326_v4 = vadd.f32 %v9262_v11, %v7244_v60  ;;  %v9264_v29 = vpop.f32.mrb[22].mxu1  ;;  %10159 = vmatprep.subr.bf16.mxu0 %v9963_v63 }
 0x7b0   : > { %v11328_v14 = vadd.f32 %v9264_v29, %v7246_v55  ;;  %v9266_v8 = vpop.f32.mrb[23].mxu1  ;;  %10160 = vmatpush1.bf16.msra.mxu0 %v9962_v51  ;;  %v9755_v59 = vmax.f32 %v11324_v20, 0.0  ;;  %v7264_v51 = vadd.f32 %v16072_v53, %v4030_v15  ;;  %v7268_v55 = vadd.f32 %v16074_v24, %v4035_v61  ;;  %v16081_v61 = vld [vmem:[#allocation59_spill] sm:$0xff] }
 0x7b1   : > { %v11330_v62 = vadd.f32 %v9266_v8, %v7248_v50  ;;  %v9756_v49 = vmax.f32 %v11326_v4, 0.0  ;;  %v7286_v53 = vadd.f32 %v16081_v61, %v4055_v30  ;;  %v16090_v61 = vld [vmem:[#allocation66_spill] sm:$0xff] }
 0x7b2   : > { %v9757_v32 = vmax.f32 %v11328_v14, 0.0  ;;  %9529 = vmatmul.mubr.bf16.gmra.mrb[128].mxu1 %v10994_v40  ;;  %v11019_v40 = vcombine.high %v3434_v17, %v3438_v6  ;;  %v4040_v14 = vpop.permute.xlu0 %4039 }
 0x7b3   : > { %v9758_v37 = vmax.f32 %v11330_v62, 0.0  ;;  %9538 = vmatprep.mubr.bf16.mxu1 %v11003_v35 }
 0x7b4   : > { %v9964_v21 = vpack.c.bf16 %v9757_v32, %v9755_v59  ;;  %v16075_v59 = vld [vmem:[#allocation53_spill] sm:$0xff] }
 0x7b5   : > { %v9965_v45 = vpack.c.bf16 %v9758_v37, %v9756_v49  ;;  %v9270_v58 = vpop.f32.mrb[24].mxu1  ;;  %v7272_v32 = vadd.f32 %v16075_v59, %v4040_v14  ;;  %v3442_v49 = vld [vmem:[#allocation8 + $0xdd8] sm:$0xff]  ;;  %v4065_v59 = vpop.permute.xlu1 %4064 }
 0x7b6   : > { %v11332_v13 = vadd.f32 %v9270_v58, %v7252_v46  ;;  %v9272_v9 = vpop.f32.mrb[25].mxu1  ;;  %v3446_v37 = vld [vmem:[#allocation8 + $0xdf8] sm:$0xff]  ;;  %v16076_v46 = vld [vmem:[#allocation52_spill] sm:$0xff]  ;;  %v11018_v58 = vcombine.low %v3434_v17, %v3438_v6 }
 0x7b7   : > { %v11334_v54 = vadd.f32 %v9272_v9, %v7254_v57  ;;  %v9274_v56 = vpop.f32.mrb[26].mxu1  ;;  %10161 = vmatprep.subr.bf16.mxu0 %v9965_v45 }
 0x7b8   : > { %v11336_v36 = vadd.f32 %v9274_v56, %v7256_v33  ;;  %v9276_v5 = vpop.f32.mrb[27].mxu1  ;;  %10162 = vmatpush1.bf16.msra.mxu0 %v9964_v21  ;;  %v9759_v7 = vmax.f32 %v11332_v13, 0.0  ;;  %v7274_v21 = vadd.f32 %v16076_v46, %v4040_v14  ;;  %v7278_v33 = vadd.f32 %v16078_v52, %v4045_v47  ;;  %v16085_v47 = vld [vmem:[#allocation63_spill] sm:$0xff] }
 0x7b9   : > { %v11338_v41 = vadd.f32 %v9276_v5, %v7258_v10  ;;  %v9760_v43 = vmax.f32 %v11334_v54, 0.0  ;;  %v7296_v46 = vadd.f32 %v16085_v47, %v4065_v59  ;;  %v16094_v47 = vld [vmem:[#allocation70_spill] sm:$0xff] }
 0x7ba   : > { %v9761_v0 = vmax.f32 %v11336_v36, 0.0  ;;  %9539 = vmatmul.mubr.bf16.gmra.mrb[132].mxu1 %v11002_v19  ;;  %v11027_v19 = vcombine.high %v3442_v49, %v3446_v37  ;;  %v4050_v36 = vpop.permute.xlu0 %4049 }
 0x7bb   : > { %v9762_v26 = vmax.f32 %v11338_v41, 0.0  ;;  %9548 = vmatprep.mubr.bf16.mxu1 %v11011_v38 }
 0x7bc   : > { %v9966_v3 = vpack.c.bf16 %v9761_v0, %v9759_v7  ;;  %v16079_v7 = vld [vmem:[#allocation57_spill] sm:$0xff] }
 0x7bd   : > { %v9967_v23 = vpack.c.bf16 %v9762_v26, %v9760_v43  ;;  %v9280_v16 = vpop.f32.mrb[28].mxu1  ;;  %v7282_v0 = vadd.f32 %v16079_v7, %v4050_v36  ;;  %v3450_v43 = vld [vmem:[#allocation8 + $0xe18] sm:$0xff]  ;;  %v4075_v7 = vpop.permute.xlu1 %4074 }
 0x7be   : > { %v11340_v60 = vadd.f32 %v9280_v16, %v7262_v25  ;;  %v9282_v63 = vpop.f32.mrb[29].mxu1  ;;  %v3454_v26 = vld [vmem:[#allocation8 + $0xe38] sm:$0xff]  ;;  %v16080_v25 = vld [vmem:[#allocation56_spill] sm:$0xff]  ;;  %v11026_v16 = vcombine.low %v3442_v49, %v3446_v37 }
 0x7bf   : > { %v11342_v20 = vadd.f32 %v9282_v63, %v7264_v51  ;;  %v9284_v11 = vpop.f32.mrb[30].mxu1  ;;  %10163 = vmatprep.subr.bf16.mxu0 %v9967_v23 }
 0x7c0   : > { %v11344_v44 = vadd.f32 %v9284_v11, %v7266_v48  ;;  %v9286_v50 = vpop.f32.mrb[31].mxu1  ;;  %10164 = vmatpush1.bf16.msra.mxu0 %v9966_v3  ;;  %v9763_v29 = vmax.f32 %v11340_v60, 0.0  ;;  %v7284_v3 = vadd.f32 %v16080_v25, %v4050_v36  ;;  %v7288_v48 = vadd.f32 %v16082_v28, %v4055_v30  ;;  %v16089_v30 = vld [vmem:[#allocation67_spill] sm:$0xff] }
 0x7c1   : > { %v11346_v4 = vadd.f32 %v9286_v50, %v7268_v55  ;;  %v9764_v8 = vmax.f32 %v11342_v20, 0.0  ;;  %v7306_v25 = vadd.f32 %v16089_v30, %v4075_v7  ;;  %v16098_v30 = vld [vmem:[#allocation74_spill] sm:$0xff] }
 0x7c2   : > { %v9765_v35 = vmax.f32 %v11344_v44, 0.0  ;;  %9549 = vmatmul.mubr.bf16.gmra.mrb[136].mxu1 %v11010_v18  ;;  %v11035_v18 = vcombine.high %v3450_v43, %v3454_v26  ;;  %v4060_v44 = vpop.permute.xlu0 %4059 }
 0x7c3   : > { %v9766_v62 = vmax.f32 %v11346_v4, 0.0  ;;  %9558 = vmatprep.mubr.bf16.mxu1 %v11019_v40 }
 0x7c4   : > { %v9968_v2 = vpack.c.bf16 %v9765_v35, %v9763_v29  ;;  %v16083_v29 = vld [vmem:[#allocation61_spill] sm:$0xff] }
 0x7c5   : > { %v9969_v39 = vpack.c.bf16 %v9766_v62, %v9764_v8  ;;  %v9290_v1 = vpop.f32.mrb[32].mxu1  ;;  %v7292_v35 = vadd.f32 %v16083_v29, %v4060_v44  ;;  %v3458_v8 = vld [vmem:[#allocation8 + $0xe58] sm:$0xff]  ;;  %v4085_v29 = vpop.permute.xlu1 %4084 }
 0x7c6   : > { %v11348_v57 = vadd.f32 %v9290_v1, %v7272_v32  ;;  %v9292_v45 = vpop.f32.mrb[33].mxu1  ;;  %v3462_v62 = vld [vmem:[#allocation8 + $0xe78] sm:$0xff]  ;;  %v16084_v32 = vld [vmem:[#allocation60_spill] sm:$0xff]  ;;  %v11034_v1 = vcombine.low %v3450_v43, %v3454_v26 }
 0x7c7   : > { %v11350_v13 = vadd.f32 %v9292_v45, %v7274_v21  ;;  %v9294_v9 = vpop.f32.mrb[34].mxu1  ;;  %10165 = vmatprep.subr.bf16.mxu0 %v9969_v39 }
 0x7c8   : > { %v11352_v31 = vadd.f32 %v9294_v9, %v7276_v22  ;;  %v9296_v10 = vpop.f32.mrb[35].mxu1  ;;  %10166 = vmatpush1.bf16.msra.mxu0 %v9968_v2  ;;  %v9767_v56 = vmax.f32 %v11348_v57, 0.0  ;;  %v7294_v2 = vadd.f32 %v16084_v32, %v4060_v44  ;;  %v7298_v22 = vadd.f32 %v16086_v34, %v4065_v59  ;;  %v16093_v59 = vld [vmem:[#allocation71_spill] sm:$0xff] }
 0x7c9   : > { %v11354_v54 = vadd.f32 %v9296_v10, %v7278_v33  ;;  %v9768_v5 = vmax.f32 %v11350_v13, 0.0  ;;  %v7316_v32 = vadd.f32 %v16093_v59, %v4085_v29 }
 0x7ca   : > { %v9769_v38 = vmax.f32 %v11352_v31, 0.0  ;;  %9559 = vmatmul.mubr.bf16.gmra.mrb[140].mxu1 %v11018_v58  ;;  %v11043_v58 = vcombine.high %v3458_v8, %v3462_v62  ;;  %v4070_v31 = vpop.permute.xlu0 %4069 }
 0x7cb   : > { %v9770_v41 = vmax.f32 %v11354_v54, 0.0  ;;  %9568 = vmatprep.mubr.bf16.mxu1 %v11027_v19 }
 0x7cc   : > { %v9970_v15 = vpack.c.bf16 %v9769_v38, %v9767_v56  ;;  %v16087_v56 = vld [vmem:[#allocation65_spill] sm:$0xff] }
 0x7cd   : > { %v9971_v17 = vpack.c.bf16 %v9770_v41, %v9768_v5  ;;  %v9300_v6 = vpop.f32.mrb[36].mxu1  ;;  %v7302_v38 = vadd.f32 %v16087_v56, %v4070_v31  ;;  %v3466_v5 = vld [vmem:[#allocation8 + $0xe98] sm:$0xff]  ;;  %v4095_v56 = vpop.permute.xlu1 %4094 }
 0x7ce   : > { %v11356_v51 = vadd.f32 %v9300_v6, %v7282_v0  ;;  %v9302_v23 = vpop.f32.mrb[37].mxu1  ;;  %v3470_v41 = vld [vmem:[#allocation8 + $0xeb8] sm:$0xff]  ;;  %v16088_v0 = vld [vmem:[#allocation64_spill] sm:$0xff]  ;;  %v11042_v6 = vcombine.low %v3458_v8, %v3462_v62 }
 0x7cf   : > { %v11358_v60 = vadd.f32 %v9302_v23, %v7284_v3  ;;  %v9304_v63 = vpop.f32.mrb[38].mxu1  ;;  %10167 = vmatprep.subr.bf16.mxu0 %v9971_v17 }
 0x7d0   : > { %v11360_v24 = vadd.f32 %v9304_v63, %v7286_v53  ;;  %v9306_v55 = vpop.f32.mrb[39].mxu1  ;;  %10168 = vmatpush1.bf16.msra.mxu0 %v9970_v15  ;;  %v9771_v11 = vmax.f32 %v11356_v51, 0.0  ;;  %v7304_v15 = vadd.f32 %v16088_v0, %v4070_v31  ;;  %v7308_v53 = vadd.f32 %v16090_v61, %v4075_v7  ;;  %v16097_v7 = vld [vmem:[#allocation75_spill] sm:$0xff] }
 0x7d1   : > { %v11362_v20 = vadd.f32 %v9306_v55, %v7288_v48  ;;  %v9772_v50 = vmax.f32 %v11358_v60, 0.0  ;;  %v7326_v0 = vadd.f32 %v16097_v7, %v4095_v56  ;;  %v16105_v7 = vld [vmem:[#allocation83_spill] sm:$0xff] }
 0x7d2   : > { %v9773_v40 = vmax.f32 %v11360_v24, 0.0  ;;  %9569 = vmatmul.mubr.bf16.gmra.mrb[144].mxu1 %v11026_v16  ;;  %v11051_v16 = vcombine.high %v3466_v5, %v3470_v41  ;;  %v4080_v24 = vpop.permute.xlu0 %4079 }
 0x7d3   : > { %v9774_v4 = vmax.f32 %v11362_v20, 0.0  ;;  %9578 = vmatprep.mubr.bf16.mxu1 %v11035_v18 }
 0x7d4   : > { %v9972_v14 = vpack.c.bf16 %v9773_v40, %v9771_v11  ;;  %v16091_v11 = vld [vmem:[#allocation69_spill] sm:$0xff] }
 0x7d5   : > { %v9973_v49 = vpack.c.bf16 %v9774_v4, %v9772_v50  ;;  %v9310_v37 = vpop.f32.mrb[40].mxu1  ;;  %v7312_v40 = vadd.f32 %v16091_v11, %v4080_v24  ;;  %v3474_v50 = vld [vmem:[#allocation8 + $0xed8] sm:$0xff] }
 0x7d6   : > { %v11364_v21 = vadd.f32 %v9310_v37, %v7292_v35  ;;  %v9312_v39 = vpop.f32.mrb[41].mxu1  ;;  %v3478_v4 = vld [vmem:[#allocation8 + $0xef8] sm:$0xff]  ;;  %v16092_v35 = vld [vmem:[#allocation68_spill] sm:$0xff]  ;;  %v11050_v37 = vcombine.low %v3466_v5, %v3470_v41 }
 0x7d7   : > { %v11366_v57 = vadd.f32 %v9312_v39, %v7294_v2  ;;  %v9314_v45 = vpop.f32.mrb[42].mxu1  ;;  %10169 = vmatprep.subr.bf16.mxu0 %v9973_v49 }
 0x7d8   : > { %v11368_v52 = vadd.f32 %v9314_v45, %v7296_v46  ;;  %v9316_v33 = vpop.f32.mrb[43].mxu1  ;;  %10170 = vmatpush1.bf16.msra.mxu0 %v9972_v14  ;;  %v9775_v9 = vmax.f32 %v11364_v21, 0.0  ;;  %v7314_v14 = vadd.f32 %v16092_v35, %v4080_v24  ;;  %v7318_v46 = vadd.f32 %v16094_v47, %v4085_v29 }
 0x7d9   : > { %v11370_v13 = vadd.f32 %v9316_v33, %v7298_v22  ;;  %v9776_v10 = vmax.f32 %v11366_v57, 0.0 }
 0x7da   : > { %v9777_v19 = vmax.f32 %v11368_v52, 0.0  ;;  %9579 = vmatmul.mubr.bf16.gmra.mrb[148].mxu1 %v11034_v1  ;;  %v11059_v1 = vcombine.high %v3474_v50, %v3478_v4  ;;  %v4090_v52 = vpop.permute.xlu0 %4089 }
 0x7db   : > { %v9778_v54 = vmax.f32 %v11370_v13, 0.0  ;;  %9588 = vmatprep.mubr.bf16.mxu1 %v11043_v58 }
 0x7dc   : > { %v9974_v36 = vpack.c.bf16 %v9777_v19, %v9775_v9  ;;  %v16095_v9 = vld [vmem:[#allocation73_spill] sm:$0xff] }
 0x7dd   : > { %v9975_v43 = vpack.c.bf16 %v9778_v54, %v9776_v10  ;;  %v9320_v26 = vpop.f32.mrb[44].mxu1  ;;  %v7322_v19 = vadd.f32 %v16095_v9, %v4090_v52  ;;  %v3482_v10 = vld [vmem:[#allocation8 + $0xf18] sm:$0xff] }
 0x7de   : > { %v11372_v3 = vadd.f32 %v9320_v26, %v7302_v38  ;;  %v9322_v17 = vpop.f32.mrb[45].mxu1  ;;  %v3486_v54 = vld [vmem:[#allocation8 + $0xf38] sm:$0xff]  ;;  %v16096_v38 = vld [vmem:[#allocation72_spill] sm:$0xff]  ;;  %v11058_v26 = vcombine.low %v3474_v50, %v3478_v4  ;;  %v4105_v50 = vpop.permute.xlu1 %4104 }
 0x7df   : > { %v11374_v51 = vadd.f32 %v9322_v17, %v7304_v15  ;;  %v9324_v23 = vpop.f32.mrb[46].mxu1  ;;  %10171 = vmatprep.subr.bf16.mxu0 %v9975_v43  ;;  %v11067_v61 = vcombine.high %v3482_v10, %v3486_v54  ;;  %v16100_v4 = vld [vmem:[#allocation76_spill] sm:$0xff]  ;;  %v16103_v9 = vld [vmem:[#allocation81_spill] sm:$0xff] }
 0x7e0   : > { %v11376_v28 = vadd.f32 %v9324_v23, %v7306_v25  ;;  %v9326_v48 = vpop.f32.mrb[47].mxu1  ;;  %10172 = vmatpush1.bf16.msra.mxu0 %v9974_v36  ;;  %v9779_v63 = vmax.f32 %v11372_v3, 0.0  ;;  %v7324_v36 = vadd.f32 %v16096_v38, %v4090_v52  ;;  %v7328_v25 = vadd.f32 %v16098_v30, %v4095_v56  ;;  %v16104_v38 = vld [vmem:[#allocation80_spill] sm:$0xff]  ;;  %v16106_v30 = vld [vmem:[#allocation82_spill] sm:$0xff] }
 0x7e1   : > { %v11378_v60 = vadd.f32 %v9326_v48, %v7308_v53  ;;  %v9780_v55 = vmax.f32 %v11374_v51, 0.0  ;;  %v10092_v3 = vcombine.high %v15193_v27, %v15193_v27 }
 0x7e2   : > { %v9781_v18 = vmax.f32 %v11376_v28, 0.0  ;;  %9589 = vmatmul.mubr.bf16.gmra.mrb[152].mxu1 %v11042_v6  ;;  %v4115_v56 = vpop.permute.xlu1 %4114 }
 0x7e3   : > { %v9782_v20 = vmax.f32 %v11378_v60, 0.0  ;;  %9598 = vmatprep.mubr.bf16.mxu1 %v11051_v16  ;;  %v12496_v16 = vld [vmem:[#allocation9] sm:$0xff] }
 0x7e4   : > { %v9976_v44 = vpack.c.bf16 %v9781_v18, %v9779_v63  ;;  %v10047_v28 = vcombine.high %v12496_v16, %v12496_v16  ;;  %v4100_v63 = vpop.permute.xlu0 %4099 }
 0x7e5   : > { %v9977_v8 = vpack.c.bf16 %v9782_v20, %v9780_v55  ;;  %v9330_v62 = vpop.f32.mrb[48].mxu1  ;;  %v16099_v55 = vld [vmem:[#allocation77_spill] sm:$0xff]  ;;  %v7334_v29 = vadd.f32 %v16100_v4, %v4100_v63 }
 0x7e6   : > { %v11380_v2 = vadd.f32 %v9330_v62, %v7312_v40  ;;  %v9332_v49 = vpop.f32.mrb[49].mxu1  ;;  %v15265_v27 = vrot.slane %v10047_v28, %v15061_v42  ;;  %v7332_v20 = vadd.f32 %v16099_v55, %v4100_v63  ;;  %v3490_v40 = vld [vmem:[#allocation8 + $0xf58] sm:$0xff]  ;;  %v16101_v62 = vld [vmem:[#allocation79_spill] sm:$0xff] }
 0x7e7   : > { %v11382_v21 = vadd.f32 %v9332_v49, %v7314_v14  ;;  %v9334_v39 = vpop.f32.mrb[50].mxu1  ;;  %10173 = vmatprep.subr.bf16.mxu0 %v9977_v8  ;;  %v7336_v59 = vadd.f32 %v16101_v62, %v4105_v50  ;;  %v11066_v49 = vcombine.low %v3482_v10, %v3486_v54  ;;  %v3498_v10 = vld [vmem:[#allocation8 + $0xf98] sm:$0xff] }
 0x7e8   : > { %v11384_v34 = vadd.f32 %v9334_v39, %v7316_v32  ;;  %v9336_v22 = vpop.f32.mrb[51].mxu1  ;;  %10174 = vmatpush1.bf16.msra.mxu0 %v9976_v44  ;;  %v9783_v45 = vmax.f32 %v11380_v2, 0.0  ;;  %v3494_v44 = vld [vmem:[#allocation8 + $0xf78] sm:$0xff]  ;;  %v10063_v8 = vcombine.high %v15265_v27, %v15265_v27  ;;  %v4110_v52 = vpop.permute.xlu0 %4109 }
 0x7e9   : > { %v11386_v57 = vadd.f32 %v9336_v22, %v7318_v46  ;;  %v9784_v33 = vmax.f32 %v11382_v21, 0.0  ;;  %v11075_v39 = vcombine.high %v3490_v40, %v3494_v44  ;;  %v3502_v54 = vld [vmem:[#allocation8 + $0xfb8] sm:$0xff] }
 0x7ea   : > { %v9785_v58 = vmax.f32 %v11384_v34, 0.0  ;;  %9599 = vmatmul.mubr.bf16.gmra.mrb[156].mxu1 %v11050_v37  ;;  %v16102_v37 = vld [vmem:[#allocation78_spill] sm:$0xff]  ;;  %v16107_v63 = vld [vmem:[#allocation85_spill] sm:$0xff]  ;;  %v11082_v62 = vcombine.low %v3498_v10, %v3502_v54 }
 0x7eb   : > { %v9786_v13 = vmax.f32 %v11386_v57, 0.0  ;;  %9608 = vmatprep.mubr.bf16.mxu1 %v11059_v1  ;;  %v7338_v47 = vadd.f32 %v16102_v37, %v4105_v50  ;;  %v15274_v1 = vrot.slane %v10063_v8, %v15061_v42  ;;  %v3506_v55 = vld [vmem:[#allocation8 + $0xfd8] sm:$0xff] }
 0x7ec   : > { %v9978_v31 = vpack.c.bf16 %v9785_v58, %v9783_v45  ;;  %v4120_v28 = vpop.permute.xlu0 %4119 }
 0x7ed   : > { %v9979_v5 = vpack.c.bf16 %v9786_v13, %v9784_v33  ;;  %v9340_v41 = vpop.f32.mrb[52].mxu1 }
 0x7ee   : > { %v11388_v15 = vadd.f32 %v9340_v41, %v7322_v19  ;;  %v9342_v43 = vpop.f32.mrb[53].mxu1  ;;  %v7342_v19 = vadd.f32 %v16103_v9, %v4110_v52  ;;  %v16112_v9 = vld [vmem:[#allocation119_spill] sm:$0xff] }
 0x7ef   : > { %v11390_v17 = vadd.f32 %v9342_v43, %v7324_v36  ;;  %v9344_v6 = vpop.f32.mrb[54].mxu1  ;;  %10175 = vmatprep.subr.bf16.mxu0 %v9979_v5  ;;  %v7344_v36 = vadd.f32 %v16104_v38, %v4110_v52 }
 0x7f0   : > { %v11392_v53 = vadd.f32 %v9344_v6, %v7326_v0  ;;  %v9346_v51 = vpop.f32.mrb[55].mxu1  ;;  %10176 = vmatpush1.bf16.msra.mxu0 %v9978_v31  ;;  %v9787_v48 = vmax.f32 %v11388_v15, 0.0  ;;  %v7346_v0 = vadd.f32 %v16105_v7, %v4115_v56  ;;  %v11083_v6 = vcombine.high %v3498_v10, %v3502_v54  ;;  %v16113_v54 = vld [vmem:[#allocation120_spill] sm:$0xff] }
 0x7f1   : > { %v11394_v23 = vadd.f32 %v9346_v51, %v7328_v25  ;;  %v9788_v18 = vmax.f32 %v11390_v17, 0.0  ;;  %v7348_v25 = vadd.f32 %v16106_v30, %v4115_v56 }
 0x7f2   : > { %v9789_v60 = vmax.f32 %v11392_v53, 0.0  ;;  %9609 = vmatmul.mubr.bf16.gmra.mrb[160].mxu1 %v11058_v26  ;;  %v11074_v26 = vcombine.low %v3490_v40, %v3494_v44  ;;  %v16108_v40 = vld [vmem:[#allocation84_spill] sm:$0xff] }
 0x7f3   : > { %v9790_v24 = vmax.f32 %v11394_v23, 0.0  ;;  %10178 = vmatmul.mubr.bf16.vlgmr.msra.gmra.mrb[76].mxu0 %v10092_v3  ;;  %9618 = vmatprep.mubr.bf16.mxu1 %v11067_v61  ;;  %v7354_v44 = vadd.f32 %v16108_v40, %v4120_v28 }
 0x7f4   : > { %v9980_v11 = vpack.c.bf16 %v9789_v60, %v9787_v48  ;;  %10218 = vmatprep.mubr.bf16.mxu0 %v15274_v1 }
 0x7f5   : > { %v9981_v35 = vpack.c.bf16 %v9790_v24, %v9788_v18  ;;  %v9350_v14 = vpop.f32.mrb[56].mxu1  ;;  %v7352_v18 = vadd.f32 %v16107_v63, %v4120_v28  ;;  %v16116_v28 = vld [vmem:[#allocation123_spill] sm:$0xff] }
 0x7f6   : > { %v11396_v32 = vadd.f32 %v9350_v14, %v7332_v20  ;;  %v9352_v2 = vpop.f32.mrb[57].mxu1  ;;  %v3510_v20 = vld [vmem:[#allocation8 + $0xff8] sm:$0xff] }
 0x7f7   : > { %v11398_v46 = vadd.f32 %v9352_v2, %v7334_v29  ;;  %v9354_v21 = vpop.f32.mrb[58].mxu1  ;;  %10186 = vmatprep.subr.bf16.mxu0 %v9981_v35  ;;  %v16109_v29 = vld [vmem:[#allocation116_spill] sm:$0xff]  ;;  %v11091_v37 = vcombine.high %v3506_v55, %v3510_v20 }
 0x7f8   : > { %v11400_v34 = vadd.f32 %v9354_v21, %v7336_v59  ;;  %v9356_v22 = vpop.f32.mrb[59].mxu1  ;;  %10187 = vmatpush1.bf16.msra.mxu0 %v9980_v11  ;;  %v9791_v45 = vmax.f32 %v11396_v32, 0.0  ;;  %v4125_v11 = vpop.permute.xlu1 %4124  ;;  %v16110_v59 = vld [vmem:[#allocation117_spill] sm:$0xff] }
 0x7f9   : > { %v11402_v57 = vadd.f32 %v9356_v22, %v7338_v47  ;;  %v9792_v33 = vmax.f32 %v11398_v46, 0.0  ;;  %v7356_v35 = vadd.f32 %v16109_v29, %v4125_v11  ;;  %v7358_v32 = vadd.f32 %v16110_v59, %v4125_v11  ;;  %v4130_v22 = vpop.permute.xlu0 %4129  ;;  %v16118_v11 = vld [vmem:[#allocation125_spill] sm:$0xff] }
 0x7fa   : > { %v9793_v58 = vmax.f32 %v11400_v34, 0.0  ;;  %9619 = vmatmul.mubr.bf16.gmra.mrb[164].mxu1 %v11066_v49 }
 0x7fb   : > { %v9794_v13 = vmax.f32 %v11402_v57, 0.0  ;;  %9628 = vmatprep.mubr.bf16.mxu1 %v11075_v39 }
 0x7fc   : > { %v9982_v31 = vpack.c.bf16 %v9793_v58, %v9791_v45  ;;  %v16111_v58 = vld [vmem:[#allocation118_spill] sm:$0xff] }
 0x7fd   : > { %v9983_v5 = vpack.c.bf16 %v9794_v13, %v9792_v33  ;;  %v9360_v41 = vpop.f32.mrb[60].mxu1  ;;  %v7362_v52 = vadd.f32 %v16111_v58, %v4130_v22  ;;  %v4135_v13 = vpop.permute.xlu1 %4134 }
 0x7fe   : > { %v11404_v15 = vadd.f32 %v9360_v41, %v7342_v19  ;;  %v9362_v43 = vpop.f32.mrb[61].mxu1  ;;  %v7364_v19 = vadd.f32 %v16112_v9, %v4130_v22  ;;  %v7366_v56 = vadd.f32 %v16113_v54, %v4135_v13  ;;  %v16114_v41 = vld [vmem:[#allocation121_spill] sm:$0xff]  ;;  %v16121_v22 = vld [vmem:[#allocation128_spill] sm:$0xff] }
 0x7ff   : > { %v11406_v3 = vadd.f32 %v9362_v43, %v7344_v36  ;;  %v9364_v17 = vpop.f32.mrb[62].mxu1  ;;  %10188 = vmatprep.subr.bf16.mxu0 %v9983_v5  ;;  %v11090_v5 = vcombine.low %v3506_v55, %v3510_v20  ;;  %v7368_v7 = vadd.f32 %v16114_v41, %v4135_v13  ;;  %v16123_v41 = vld [vmem:[#allocation130_spill] sm:$0xff] }
 0x800   : > { %v11408_v61 = vadd.f32 %v9364_v17, %v7346_v0  ;;  %v9366_v53 = vpop.f32.mrb[63].mxu1  ;;  %10189 = vmatpush1.bf16.msra.mxu0 %v9982_v31  ;;  %v9795_v23 = vmax.f32 %v11404_v15, 0.0  ;;  %v4140_v17 = vpop.permute.xlu0 %4139 }
 0x801   : > { %v11410_v51 = vadd.f32 %v9366_v53, %v7348_v25  ;;  %v9796_v48 = vmax.f32 %v11406_v3, 0.0  ;;  %v16115_v53 = vld [vmem:[#allocation122_spill] sm:$0xff] }
 0x802   : > { %v9797_v16 = vmax.f32 %v11408_v61, 0.0  ;;  %9629 = vmatmul.mubr.bf16.gmra.mrb[168].mxu1 %v11074_v26 }
 0x803   : > { %v9798_v60 = vmax.f32 %v11410_v51, 0.0  ;;  %9638 = vmatprep.mubr.bf16.mxu1 %v11083_v6  ;;  %v7372_v51 = vadd.f32 %v16115_v53, %v4140_v17  ;;  %v16126_v53 = vld [vmem:[#allocation133_spill] sm:$0xff] }
 0x804   : > { %v9984_v24 = vpack.c.bf16 %v9797_v16, %v9795_v23  ;;  %v4145_v16 = vpop.permute.xlu1 %4144 }
 0x805   : > { %v9985_v50 = vpack.c.bf16 %v9798_v60, %v9796_v48  ;;  %v9370_v4 = vpop.f32.mrb[64].mxu1  ;;  %v7374_v48 = vadd.f32 %v16116_v28, %v4140_v17  ;;  %v7378_v40 = vadd.f32 %v16118_v11, %v4145_v16  ;;  %v16127_v11 = vld [vmem:[#allocation134_spill] sm:$0xff] }
 0x806   : > { %v11412_v14 = vadd.f32 %v9370_v4, %v7352_v18  ;;  %v9372_v8 = vpop.f32.mrb[65].mxu1  ;;  %v16117_v18 = vld [vmem:[#allocation124_spill] sm:$0xff] }
 0x807   : > { %v11414_v2 = vadd.f32 %v9372_v8, %v7354_v44  ;;  %v9374_v49 = vpop.f32.mrb[66].mxu1  ;;  %10190 = vmatprep.subr.bf16.mxu0 %v9985_v50 }
 0x808   : > { %v11416_v47 = vadd.f32 %v9374_v49, %v7356_v35  ;;  %v9376_v46 = vpop.f32.mrb[67].mxu1  ;;  %10191 = vmatpush1.bf16.msra.mxu0 %v9984_v24  ;;  %v9799_v39 = vmax.f32 %v11412_v14, 0.0  ;;  %v7376_v24 = vadd.f32 %v16117_v18, %v4145_v16 }
 0x809   : > { %v11418_v21 = vadd.f32 %v9376_v46, %v7358_v32  ;;  %v9800_v57 = vmax.f32 %v11414_v2, 0.0  ;;  %v16119_v2 = vld [vmem:[#allocation126_spill] sm:$0xff]  ;;  %v16120_v46 = vld [vmem:[#allocation127_spill] sm:$0xff] }
 0x80a   : > { %v9801_v34 = vmax.f32 %v11416_v47, 0.0  ;;  %9639 = vmatmul.mubr.bf16.gmra.mrb[172].mxu1 %v11082_v62  ;;  %v4150_v62 = vpop.permute.xlu0 %4149  ;;  %v4155_v47 = vpop.permute.xlu1 %4154 }
 0x80b   : > { %v9802_v45 = vmax.f32 %v11418_v21, 0.0  ;;  %9648 = vmatprep.mubr.bf16.mxu1 %v11091_v37  ;;  %v7382_v49 = vadd.f32 %v16119_v2, %v4150_v62  ;;  %v7384_v21 = vadd.f32 %v16120_v46, %v4150_v62  ;;  %v16130_v2 = vld [vmem:[#allocation137_spill] sm:$0xff] }
 0x80c   : > { %v9986_v33 = vpack.c.bf16 %v9801_v34, %v9799_v39 }
 0x80d   : > { %v9987_v31 = vpack.c.bf16 %v9802_v45, %v9800_v57  ;;  %v9380_v10 = vpop.f32.mrb[68].mxu1  ;;  %v7386_v57 = vadd.f32 %v16121_v22, %v4155_v47 }
 0x80e   : > { %v11420_v38 = vadd.f32 %v9380_v10, %v7362_v52  ;;  %v9382_v36 = vpop.f32.mrb[69].mxu1  ;;  %v16122_v52 = vld [vmem:[#allocation129_spill] sm:$0xff] }
 0x80f   : > { %v11422_v0 = vadd.f32 %v9382_v36, %v7364_v19  ;;  %v9384_v15 = vpop.f32.mrb[70].mxu1  ;;  %10192 = vmatprep.subr.bf16.mxu0 %v9987_v31 }
 0x810   : > { %v11424_v43 = vadd.f32 %v9384_v15, %v7366_v56  ;;  %v9386_v26 = vpop.f32.mrb[71].mxu1  ;;  %10193 = vmatpush1.bf16.msra.mxu0 %v9986_v33  ;;  %v9803_v25 = vmax.f32 %v11420_v38, 0.0  ;;  %v7388_v33 = vadd.f32 %v16122_v52, %v4155_v47  ;;  %v4160_v38 = vpop.permute.xlu0 %4159  ;;  %v16131_v52 = vld [vmem:[#allocation138_spill] sm:$0xff] }
 0x811   : > { %v11426_v30 = vadd.f32 %v9386_v26, %v7368_v7  ;;  %v9804_v6 = vmax.f32 %v11422_v0, 0.0  ;;  %v7392_v7 = vadd.f32 %v16123_v41, %v4160_v38  ;;  %v4165_v15 = vpop.permute.xlu1 %4164  ;;  %v16134_v41 = vld [vmem:[#allocation141_spill] sm:$0xff] }
 0x812   : > { %v9805_v3 = vmax.f32 %v11424_v43, 0.0  ;;  %9649 = vmatmul.mubr.bf16.gmra.mrb[176].mxu1 %v11090_v5  ;;  %v16124_v43 = vld [vmem:[#allocation131_spill] sm:$0xff] }
 0x813   : > { %v9806_v61 = vmax.f32 %v11426_v30, 0.0  ;;  %v7394_v26 = vadd.f32 %v16124_v43, %v4160_v38 }
 0x814   : > { %v9988_v23 = vpack.c.bf16 %v9805_v3, %v9803_v25  ;;  %v16125_v3 = vld [vmem:[#allocation132_spill] sm:$0xff] }
 0x815   : > { %v9989_v60 = vpack.c.bf16 %v9806_v61, %v9804_v6  ;;  %v9390_v63 = vpop.f32.mrb[72].mxu1  ;;  %v7396_v17 = vadd.f32 %v16125_v3, %v4165_v15 }
 0x816   : > { %v11428_v55 = vadd.f32 %v9390_v63, %v7372_v51  ;;  %v9392_v20 = vpop.f32.mrb[73].mxu1  ;;  %v7398_v51 = vadd.f32 %v16126_v53, %v4165_v15  ;;  %v16135_v53 = vld [vmem:[#allocation142_spill] sm:$0xff] }
 0x817   : > { %v11430_v44 = vadd.f32 %v9392_v20, %v7374_v48  ;;  %v9394_v50 = vpop.f32.mrb[74].mxu1  ;;  %10194 = vmatprep.subr.bf16.mxu0 %v9989_v60 }
 0x818   : > { %v11432_v4 = vadd.f32 %v9394_v50, %v7376_v24  ;;  %v9396_v29 = vpop.f32.mrb[75].mxu1  ;;  %10195 = vmatpush1.bf16.msra.mxu0 %v9988_v23  ;;  %v9807_v14 = vmax.f32 %v11428_v55, 0.0  ;;  %v4170_v24 = vpop.permute.xlu0 %4169 }
 0x819   : > { %v11434_v35 = vadd.f32 %v9396_v29, %v7378_v40  ;;  %v9808_v59 = vmax.f32 %v11430_v44, 0.0  ;;  %v7402_v40 = vadd.f32 %v16127_v11, %v4170_v24  ;;  %v4175_v50 = vpop.permute.xlu1 %4174  ;;  %v16138_v11 = vld [vmem:[#allocation145_spill] sm:$0xff] }
 0x81a   : > { %v9809_v8 = vmax.f32 %v11432_v4, 0.0  ;;  %v16128_v4 = vld [vmem:[#allocation135_spill] sm:$0xff] }
 0x81b   : > { %v9810_v32 = vmax.f32 %v11434_v35, 0.0  ;;  %v7404_v29 = vadd.f32 %v16128_v4, %v4170_v24 }
 0x81c   : > { %v9990_v37 = vpack.c.bf16 %v9809_v8, %v9807_v14  ;;  %v16129_v8 = vld [vmem:[#allocation136_spill] sm:$0xff] }
 0x81d   : > { %v9991_v39 = vpack.c.bf16 %v9810_v32, %v9808_v59  ;;  %v9400_v34 = vpop.f32.mrb[76].mxu1  ;;  %v7406_v62 = vadd.f32 %v16129_v8, %v4175_v50 }
 0x81e   : > { %v11436_v45 = vadd.f32 %v9400_v34, %v7382_v49  ;;  %v9402_v58 = vpop.f32.mrb[77].mxu1  ;;  %v7408_v49 = vadd.f32 %v16130_v2, %v4175_v50  ;;  %v16139_v2 = vld [vmem:[#allocation146_spill] sm:$0xff] }
 0x81f   : > { %v11438_v13 = vadd.f32 %v9402_v58, %v7384_v21  ;;  %v9404_v9 = vpop.f32.mrb[78].mxu1  ;;  %10196 = vmatprep.subr.bf16.mxu0 %v9991_v39 }
 0x820   : > { %v11440_v19 = vadd.f32 %v9404_v9, %v7386_v57  ;;  %v9406_v31 = vpop.f32.mrb[79].mxu1  ;;  %10197 = vmatpush1.bf16.msra.mxu0 %v9990_v37  ;;  %v9811_v54 = vmax.f32 %v11436_v45, 0.0  ;;  %v4180_v57 = vpop.permute.xlu0 %4179 }
 0x821   : > { %v11442_v10 = vadd.f32 %v9406_v31, %v7388_v33  ;;  %v9812_v36 = vmax.f32 %v11438_v13, 0.0  ;;  %v7412_v33 = vadd.f32 %v16131_v52, %v4180_v57  ;;  %v4185_v9 = vpop.permute.xlu1 %4184  ;;  %v16142_v52 = vld [vmem:[#allocation149_spill] sm:$0xff] }
 0x822   : > { %v9813_v56 = vmax.f32 %v11440_v19, 0.0  ;;  %v16132_v19 = vld [vmem:[#allocation139_spill] sm:$0xff] }
 0x823   : > { %v9814_v5 = vmax.f32 %v11442_v10, 0.0  ;;  %v7414_v31 = vadd.f32 %v16132_v19, %v4180_v57 }
 0x824   : > { %v9992_v0 = vpack.c.bf16 %v9813_v56, %v9811_v54  ;;  %v16133_v56 = vld [vmem:[#allocation140_spill] sm:$0xff] }
 0x825   : > { %v9993_v30 = vpack.c.bf16 %v9814_v5, %v9812_v36  ;;  %v9410_v25 = vpop.f32.mrb[80].mxu1  ;;  %v7416_v38 = vadd.f32 %v16133_v56, %v4185_v9 }
 0x826   : > { %v11444_v6 = vadd.f32 %v9410_v25, %v7392_v7  ;;  %v9412_v61 = vpop.f32.mrb[81].mxu1  ;;  %v7418_v7 = vadd.f32 %v16134_v41, %v4185_v9  ;;  %v16143_v41 = vld [vmem:[#allocation150_spill] sm:$0xff] }
 0x827   : > { %v11446_v23 = vadd.f32 %v9412_v61, %v7394_v26  ;;  %v9414_v16 = vpop.f32.mrb[82].mxu1  ;;  %10198 = vmatprep.subr.bf16.mxu0 %v9993_v30 }
 0x828   : > { %v11448_v28 = vadd.f32 %v9414_v16, %v7396_v17  ;;  %v9416_v48 = vpop.f32.mrb[83].mxu1  ;;  %10199 = vmatpush1.bf16.msra.mxu0 %v9992_v0  ;;  %v9815_v63 = vmax.f32 %v11444_v6, 0.0  ;;  %v4190_v17 = vpop.permute.xlu0 %4189 }
 0x829   : > { %v11450_v60 = vadd.f32 %v9416_v48, %v7398_v51  ;;  %v9816_v55 = vmax.f32 %v11446_v23, 0.0  ;;  %v7422_v51 = vadd.f32 %v16135_v53, %v4190_v17  ;;  %v4195_v16 = vpop.permute.xlu1 %4194  ;;  %v16146_v53 = vld [vmem:[#allocation153_spill] sm:$0xff] }
 0x82a   : > { %v9817_v18 = vmax.f32 %v11448_v28, 0.0  ;;  %v16136_v28 = vld [vmem:[#allocation143_spill] sm:$0xff] }
 0x82b   : > { %v9818_v20 = vmax.f32 %v11450_v60, 0.0  ;;  %v7424_v48 = vadd.f32 %v16136_v28, %v4190_v17 }
 0x82c   : > { %v9994_v44 = vpack.c.bf16 %v9817_v18, %v9815_v63  ;;  %v16137_v18 = vld [vmem:[#allocation144_spill] sm:$0xff] }
 0x82d   : > { %v9995_v35 = vpack.c.bf16 %v9818_v20, %v9816_v55  ;;  %v9420_v14 = vpop.f32.mrb[84].mxu1  ;;  %v7426_v24 = vadd.f32 %v16137_v18, %v4195_v16 }
 0x82e   : > { %v11452_v59 = vadd.f32 %v9420_v14, %v7402_v40  ;;  %v9422_v32 = vpop.f32.mrb[85].mxu1  ;;  %v7428_v40 = vadd.f32 %v16138_v11, %v4195_v16  ;;  %v16147_v11 = vld [vmem:[#allocation154_spill] sm:$0xff] }
 0x82f   : > { %v11454_v37 = vadd.f32 %v9422_v32, %v7404_v29  ;;  %v9424_v47 = vpop.f32.mrb[86].mxu1  ;;  %10200 = vmatprep.subr.bf16.mxu0 %v9995_v35 }
 0x830   : > { %v11456_v46 = vadd.f32 %v9424_v47, %v7406_v62  ;;  %v9426_v21 = vpop.f32.mrb[87].mxu1  ;;  %10201 = vmatpush1.bf16.msra.mxu0 %v9994_v44  ;;  %v9819_v34 = vmax.f32 %v11452_v59, 0.0  ;;  %v4200_v62 = vpop.permute.xlu0 %4199 }
 0x831   : > { %v11458_v39 = vadd.f32 %v9426_v21, %v7408_v49  ;;  %v9820_v45 = vmax.f32 %v11454_v37, 0.0  ;;  %v7432_v49 = vadd.f32 %v16139_v2, %v4200_v62  ;;  %v4205_v47 = vpop.permute.xlu1 %4204  ;;  %v16150_v2 = vld [vmem:[#allocation157_spill] sm:$0xff] }
 0x832   : > { %v9821_v22 = vmax.f32 %v11456_v46, 0.0  ;;  %v16140_v46 = vld [vmem:[#allocation147_spill] sm:$0xff] }
 0x833   : > { %v9822_v58 = vmax.f32 %v11458_v39, 0.0  ;;  %v7434_v21 = vadd.f32 %v16140_v46, %v4200_v62 }
 0x834   : > { %v9996_v13 = vpack.c.bf16 %v9821_v22, %v9819_v34  ;;  %v16141_v22 = vld [vmem:[#allocation148_spill] sm:$0xff] }
 0x835   : > { %v9997_v10 = vpack.c.bf16 %v9822_v58, %v9820_v45  ;;  %v9430_v54 = vpop.f32.mrb[88].mxu1  ;;  %v7436_v57 = vadd.f32 %v16141_v22, %v4205_v47 }
 0x836   : > { %v11460_v36 = vadd.f32 %v9430_v54, %v7412_v33  ;;  %v9432_v5 = vpop.f32.mrb[89].mxu1  ;;  %v7438_v33 = vadd.f32 %v16142_v52, %v4205_v47  ;;  %v16151_v52 = vld [vmem:[#allocation158_spill] sm:$0xff] }
 0x837   : > { %v11462_v0 = vadd.f32 %v9432_v5, %v7414_v31  ;;  %v9434_v15 = vpop.f32.mrb[90].mxu1  ;;  %10202 = vmatprep.subr.bf16.mxu0 %v9997_v10 }
 0x838   : > { %v11464_v43 = vadd.f32 %v9434_v15, %v7416_v38  ;;  %v9436_v26 = vpop.f32.mrb[91].mxu1  ;;  %10203 = vmatpush1.bf16.msra.mxu0 %v9996_v13  ;;  %v9823_v25 = vmax.f32 %v11460_v36, 0.0  ;;  %v4210_v38 = vpop.permute.xlu0 %4209 }
 0x839   : > { %v11466_v30 = vadd.f32 %v9436_v26, %v7418_v7  ;;  %v9824_v6 = vmax.f32 %v11462_v0, 0.0  ;;  %v7442_v7 = vadd.f32 %v16143_v41, %v4210_v38  ;;  %v4215_v15 = vpop.permute.xlu1 %4214  ;;  %v16154_v41 = vld [vmem:[#allocation161_spill] sm:$0xff] }
 0x83a   : > { %v9825_v3 = vmax.f32 %v11464_v43, 0.0  ;;  %v16144_v43 = vld [vmem:[#allocation151_spill] sm:$0xff] }
 0x83b   : > { %v9826_v61 = vmax.f32 %v11466_v30, 0.0  ;;  %v7444_v26 = vadd.f32 %v16144_v43, %v4210_v38 }
 0x83c   : > { %v9998_v23 = vpack.c.bf16 %v9825_v3, %v9823_v25  ;;  %v16145_v3 = vld [vmem:[#allocation152_spill] sm:$0xff] }
 0x83d   : > { %v9999_v60 = vpack.c.bf16 %v9826_v61, %v9824_v6  ;;  %v9440_v63 = vpop.f32.mrb[92].mxu1  ;;  %v7446_v17 = vadd.f32 %v16145_v3, %v4215_v15 }
 0x83e   : > { %v11468_v55 = vadd.f32 %v9440_v63, %v7422_v51  ;;  %v9442_v20 = vpop.f32.mrb[93].mxu1  ;;  %v7448_v51 = vadd.f32 %v16146_v53, %v4215_v15  ;;  %v16155_v53 = vld [vmem:[#allocation162_spill] sm:$0xff] }
 0x83f   : > { %v11470_v44 = vadd.f32 %v9442_v20, %v7424_v48  ;;  %v9444_v50 = vpop.f32.mrb[94].mxu1  ;;  %10204 = vmatprep.subr.bf16.mxu0 %v9999_v60 }
 0x840   : > { %v11472_v4 = vadd.f32 %v9444_v50, %v7426_v24  ;;  %v9446_v29 = vpop.f32.mrb[95].mxu1  ;;  %10205 = vmatpush1.bf16.msra.mxu0 %v9998_v23  ;;  %v9827_v14 = vmax.f32 %v11468_v55, 0.0  ;;  %v4220_v24 = vpop.permute.xlu0 %4219 }
 0x841   : > { %v11474_v35 = vadd.f32 %v9446_v29, %v7428_v40  ;;  %v9828_v59 = vmax.f32 %v11470_v44, 0.0  ;;  %v7452_v40 = vadd.f32 %v16147_v11, %v4220_v24  ;;  %v4225_v50 = vpop.permute.xlu1 %4224  ;;  %v16158_v11 = vld [vmem:[#allocation165_spill] sm:$0xff] }
 0x842   : > { %v9829_v8 = vmax.f32 %v11472_v4, 0.0  ;;  %v16148_v4 = vld [vmem:[#allocation155_spill] sm:$0xff] }
 0x843   : > { %v9830_v32 = vmax.f32 %v11474_v35, 0.0  ;;  %v7454_v29 = vadd.f32 %v16148_v4, %v4220_v24 }
 0x844   : > { %v10000_v37 = vpack.c.bf16 %v9829_v8, %v9827_v14  ;;  %v16149_v8 = vld [vmem:[#allocation156_spill] sm:$0xff] }
 0x845   : > { %v10001_v39 = vpack.c.bf16 %v9830_v32, %v9828_v59  ;;  %v9450_v34 = vpop.f32.mrb[96].mxu1  ;;  %v7456_v62 = vadd.f32 %v16149_v8, %v4225_v50 }
 0x846   : > { %v11476_v45 = vadd.f32 %v9450_v34, %v7432_v49  ;;  %v9452_v58 = vpop.f32.mrb[97].mxu1  ;;  %v7458_v49 = vadd.f32 %v16150_v2, %v4225_v50  ;;  %v16159_v2 = vld [vmem:[#allocation166_spill] sm:$0xff] }
 0x847   : > { %v11478_v13 = vadd.f32 %v9452_v58, %v7434_v21  ;;  %v9454_v9 = vpop.f32.mrb[98].mxu1  ;;  %10206 = vmatprep.subr.bf16.mxu0 %v10001_v39 }
 0x848   : > { %v11480_v19 = vadd.f32 %v9454_v9, %v7436_v57  ;;  %v9456_v31 = vpop.f32.mrb[99].mxu1  ;;  %10207 = vmatpush1.bf16.msra.mxu0 %v10000_v37  ;;  %v9831_v54 = vmax.f32 %v11476_v45, 0.0  ;;  %v4230_v57 = vpop.permute.xlu0 %4229 }
 0x849   : > { %v11482_v10 = vadd.f32 %v9456_v31, %v7438_v33  ;;  %v9832_v36 = vmax.f32 %v11478_v13, 0.0  ;;  %v7462_v33 = vadd.f32 %v16151_v52, %v4230_v57  ;;  %v4235_v9 = vpop.permute.xlu1 %4234  ;;  %v16162_v52 = vld [vmem:[#allocation169_spill] sm:$0xff] }
 0x84a   : > { %v9833_v56 = vmax.f32 %v11480_v19, 0.0  ;;  %v16152_v19 = vld [vmem:[#allocation159_spill] sm:$0xff] }
 0x84b   : > { %v9834_v5 = vmax.f32 %v11482_v10, 0.0  ;;  %v7464_v31 = vadd.f32 %v16152_v19, %v4230_v57  ;;  %v15339_v19 = vrot.slane %v15265_v27, %v15061_v42 }
 0x84c   : > { %v10002_v0 = vpack.c.bf16 %v9833_v56, %v9831_v54  ;;  %v16153_v56 = vld [vmem:[#allocation160_spill] sm:$0xff] }
 0x84d   : > { %v10003_v30 = vpack.c.bf16 %v9834_v5, %v9832_v36  ;;  %v9460_v25 = vpop.f32.mrb[100].mxu1  ;;  %v7466_v38 = vadd.f32 %v16153_v56, %v4235_v9 }
 0x84e   : > { %v11484_v6 = vadd.f32 %v9460_v25, %v7442_v7  ;;  %v9462_v61 = vpop.f32.mrb[101].mxu1  ;;  %v7468_v7 = vadd.f32 %v16154_v41, %v4235_v9 }
 0x84f   : > { %v11486_v23 = vadd.f32 %v9462_v61, %v7444_v26  ;;  %v9464_v16 = vpop.f32.mrb[102].mxu1  ;;  %10208 = vmatprep.subr.bf16.mxu0 %v10003_v30 }
 0x850   : > { %v11488_v28 = vadd.f32 %v9464_v16, %v7446_v17  ;;  %v9466_v48 = vpop.f32.mrb[103].mxu1  ;;  %10209 = vmatpush1.bf16.msra.mxu0 %v10002_v0  ;;  %v9835_v63 = vmax.f32 %v11484_v6, 0.0  ;;  %v4240_v17 = vpop.permute.xlu0 %4239 }
 0x851   : > { %v11490_v60 = vadd.f32 %v9466_v48, %v7448_v51  ;;  %v9836_v55 = vmax.f32 %v11486_v23, 0.0  ;;  %v7472_v51 = vadd.f32 %v16155_v53, %v4240_v17  ;;  %v4245_v16 = vpop.permute.xlu1 %4244  ;;  %v16166_v53 = vld [vmem:[#allocation173_spill] sm:$0xff] }
 0x852   : > { %v9837_v18 = vmax.f32 %v11488_v28, 0.0  ;;  %v16156_v28 = vld [vmem:[#allocation163_spill] sm:$0xff] }
 0x853   : > { %v9838_v20 = vmax.f32 %v11490_v60, 0.0  ;;  %v7474_v48 = vadd.f32 %v16156_v28, %v4240_v17  ;;  %v16165_v17 = vld [vmem:[#allocation172_spill] sm:$0xff] }
 0x854   : > { %v10004_v44 = vpack.c.bf16 %v9837_v18, %v9835_v63  ;;  %v16157_v18 = vld [vmem:[#allocation164_spill] sm:$0xff] }
 0x855   : > { %v10005_v35 = vpack.c.bf16 %v9838_v20, %v9836_v55  ;;  %v9470_v14 = vpop.f32.mrb[104].mxu1  ;;  %v7476_v24 = vadd.f32 %v16157_v18, %v4245_v16 }
 0x856   : > { %v11492_v59 = vadd.f32 %v9470_v14, %v7452_v40  ;;  %v9472_v32 = vpop.f32.mrb[105].mxu1  ;;  %v7478_v40 = vadd.f32 %v16158_v11, %v4245_v16  ;;  %v16167_v11 = vld [vmem:[#allocation174_spill] sm:$0xff] }
 0x857   : > { %v11494_v37 = vadd.f32 %v9472_v32, %v7454_v29  ;;  %v9474_v47 = vpop.f32.mrb[106].mxu1  ;;  %10210 = vmatprep.subr.bf16.mxu0 %v10005_v35 }
 0x858   : > { %v11496_v46 = vadd.f32 %v9474_v47, %v7456_v62  ;;  %v9476_v21 = vpop.f32.mrb[107].mxu1  ;;  %10211 = vmatpush1.bf16.msra.mxu0 %v10004_v44  ;;  %v9839_v34 = vmax.f32 %v11492_v59, 0.0  ;;  %v4250_v62 = vpop.permute.xlu0 %4249 }
 0x859   : > { %v11498_v39 = vadd.f32 %v9476_v21, %v7458_v49  ;;  %v9840_v45 = vmax.f32 %v11494_v37, 0.0  ;;  %v7482_v49 = vadd.f32 %v16159_v2, %v4250_v62  ;;  %v4255_v47 = vpop.permute.xlu1 %4254  ;;  %v16170_v2 = vld [vmem:[#allocation177_spill] sm:$0xff] }
 0x85a   : > { %v9841_v22 = vmax.f32 %v11496_v46, 0.0  ;;  %v16160_v46 = vld [vmem:[#allocation167_spill] sm:$0xff] }
 0x85b   : > { %v9842_v58 = vmax.f32 %v11498_v39, 0.0  ;;  %v7484_v21 = vadd.f32 %v16160_v46, %v4250_v62 }
 0x85c   : > { %v10006_v13 = vpack.c.bf16 %v9841_v22, %v9839_v34  ;;  %v16161_v22 = vld [vmem:[#allocation168_spill] sm:$0xff] }
 0x85d   : > { %v10007_v10 = vpack.c.bf16 %v9842_v58, %v9840_v45  ;;  %v9480_v54 = vpop.f32.mrb[108].mxu1  ;;  %v7486_v57 = vadd.f32 %v16161_v22, %v4255_v47  ;;  %v4265_v27 = vpop.permute.xlu1 %4264 }
 0x85e   : > { %v11500_v36 = vadd.f32 %v9480_v54, %v7462_v33  ;;  %v9482_v5 = vpop.f32.mrb[109].mxu1  ;;  %v7488_v33 = vadd.f32 %v16162_v52, %v4255_v47  ;;  %v10095_v54 = vcombine.high %v15274_v1, %v15274_v1  ;;  %v16171_v52 = vld [vmem:[#allocation178_spill] sm:$0xff] }
 0x85f   : > { %v11502_v0 = vadd.f32 %v9482_v5, %v7464_v31  ;;  %v9484_v15 = vpop.f32.mrb[110].mxu1  ;;  %10212 = vmatprep.subr.bf16.mxu0 %v10007_v10  ;;  %v4260_v5 = vpop.permute.xlu0 %4259 }
 0x860   : > { %v11504_v43 = vadd.f32 %v9484_v15, %v7466_v38  ;;  %v9486_v26 = vpop.f32.mrb[111].mxu1  ;;  %10213 = vmatpush1.bf16.msra.mxu0 %v10006_v13  ;;  %v9843_v25 = vmax.f32 %v11500_v36, 0.0 }
 0x861   : > { %v11506_v30 = vadd.f32 %v9486_v26, %v7468_v7  ;;  %v9844_v6 = vmax.f32 %v11502_v0, 0.0  ;;  %v16163_v0 = vld [vmem:[#allocation170_spill] sm:$0xff]  ;;  %v16164_v26 = vld [vmem:[#allocation171_spill] sm:$0xff] }
 0x862   : > { %v9845_v3 = vmax.f32 %v11504_v43, 0.0  ;;  %v7492_v15 = vadd.f32 %v16163_v0, %v4260_v5 }
 0x863   : > { %v9846_v61 = vmax.f32 %v11506_v30, 0.0  ;;  %v7494_v30 = vadd.f32 %v16164_v26, %v4260_v5 }
 0x864   : > { %v10008_v23 = vpack.c.bf16 %v9845_v3, %v9843_v25 }
 0x865   : > { %v10009_v60 = vpack.c.bf16 %v9846_v61, %v9844_v6  ;;  %v9490_v63 = vpop.f32.mrb[112].mxu1  ;;  %v7496_v6 = vadd.f32 %v16165_v17, %v4265_v27 }
 0x866   : > { %v11508_v55 = vadd.f32 %v9490_v63, %v7472_v51  ;;  %v9492_v20 = vpop.f32.mrb[113].mxu1  ;;  %v7498_v51 = vadd.f32 %v16166_v53, %v4265_v27 }
 0x867   : > { %v11510_v44 = vadd.f32 %v9492_v20, %v7474_v48  ;;  %v9494_v50 = vpop.f32.mrb[114].mxu1  ;;  %10214 = vmatprep.subr.bf16.mxu0 %v10009_v60 }
 0x868   : > { %v11512_v4 = vadd.f32 %v9494_v50, %v7476_v24  ;;  %v9496_v29 = vpop.f32.mrb[115].mxu1  ;;  %10215 = vmatpush1.bf16.msra.mxu0 %v10008_v23  ;;  %v9847_v14 = vmax.f32 %v11508_v55, 0.0  ;;  %v4270_v24 = vpop.permute.xlu0 %4269 }
 0x869   : > { %v11514_v35 = vadd.f32 %v9496_v29, %v7478_v40  ;;  %v9848_v59 = vmax.f32 %v11510_v44, 0.0  ;;  %v7502_v40 = vadd.f32 %v16167_v11, %v4270_v24  ;;  %v4275_v50 = vpop.permute.xlu1 %4274 }
 0x86a   : > { %v9849_v8 = vmax.f32 %v11512_v4, 0.0  ;;  %v16168_v4 = vld [vmem:[#allocation175_spill] sm:$0xff] }
 0x86b   : > { %v9850_v32 = vmax.f32 %v11514_v35, 0.0  ;;  %v7504_v29 = vadd.f32 %v16168_v4, %v4270_v24 }
 0x86c   : > { %v10010_v37 = vpack.c.bf16 %v9849_v8, %v9847_v14  ;;  %v16169_v8 = vld [vmem:[#allocation176_spill] sm:$0xff] }
 0x86d   : > { %v10011_v39 = vpack.c.bf16 %v9850_v32, %v9848_v59  ;;  %v9500_v34 = vpop.f32.mrb[116].mxu1  ;;  %v7506_v62 = vadd.f32 %v16169_v8, %v4275_v50 }
 0x86e   : > { %v11516_v45 = vadd.f32 %v9500_v34, %v7482_v49  ;;  %v9502_v58 = vpop.f32.mrb[117].mxu1  ;;  %v7508_v49 = vadd.f32 %v16170_v2, %v4275_v50 }
 0x86f   : > { %v11518_v13 = vadd.f32 %v9502_v58, %v7484_v21  ;;  %v9504_v9 = vpop.f32.mrb[118].mxu1  ;;  %10216 = vmatprep.subr.bf16.mxu0 %v10011_v39 }
 0x870   : > { %v11520_v31 = vadd.f32 %v9504_v9, %v7486_v57  ;;  %v9506_v10 = vpop.f32.mrb[119].mxu1  ;;  %10217 = vmatpush1.bf16.msra.mxu0 %v10010_v37  ;;  %v9851_v38 = vmax.f32 %v11516_v45, 0.0  ;;  %v4280_v57 = vpop.permute.xlu0 %4279 }
 0x871   : > { %v11522_v56 = vadd.f32 %v9506_v10, %v7488_v33  ;;  %v9852_v41 = vmax.f32 %v11518_v13, 0.0  ;;  %v7512_v33 = vadd.f32 %v16171_v52, %v4280_v57  ;;  %v4285_v9 = vpop.permute.xlu1 %4284 }
 0x872   : > { %v9853_v36 = vmax.f32 %v11520_v31, 0.0  ;;  %v16172_v31 = vld [vmem:[#allocation179_spill] sm:$0xff] }
 0x873   : > { %v9854_v7 = vmax.f32 %v11522_v56, 0.0  ;;  %10219 = vmatmul.mubr.bf16.vlgmr.msra.gmra.mrb[76].mxu0 %v15339_v19  ;;  %v7514_v10 = vadd.f32 %v16172_v31, %v4280_v57 }
 0x874   : > { %v10012_v43 = vpack.c.bf16 %v9853_v36, %v9851_v38  ;;  %10259 = vmatprep.mubr.bf16.mxu0 %v10095_v54  ;;  %v16173_v38 = vld [vmem:[#allocation180_spill] sm:$0xff]  ;;  %v4290_v17 = vpop.permute.xlu0 %4289 }
 0x875   : > { %v10013_v25 = vpack.c.bf16 %v9854_v7, %v9852_v41  ;;  %v9510_v3 = vpop.f32.mrb[120].mxu1  ;;  %v7516_v36 = vadd.f32 %v16173_v38, %v4285_v9  ;;  %v16174_v7 = vld [vmem:[#allocation181_spill] sm:$0xff] }
 0x876   : > { %v11524_v1 = vadd.f32 %v9510_v3, %v7492_v15  ;;  %v9512_v61 = vpop.f32.mrb[121].mxu1  ;;  %v7518_v0 = vadd.f32 %v16174_v7, %v4285_v9 }
 0x877   : > { %v11526_v23 = vadd.f32 %v9512_v61, %v7494_v30  ;;  %v9514_v16 = vpop.f32.mrb[122].mxu1  ;;  %10227 = vmatprep.subr.bf16.mxu0 %v10013_v25  ;;  %v16175_v61 = vld [vmem:[#allocation182_spill] sm:$0xff] }
 0x878   : > { %v11528_v28 = vadd.f32 %v9514_v16, %v7496_v6  ;;  %v9516_v48 = vpop.f32.mrb[123].mxu1  ;;  %10228 = vmatpush1.bf16.msra.mxu0 %v10012_v43  ;;  %v9855_v63 = vmax.f32 %v11524_v1, 0.0  ;;  %v7522_v53 = vadd.f32 %v16175_v61, %v4290_v17  ;;  %v16176_v16 = vld [vmem:[#allocation183_spill] sm:$0xff]  ;;  %v4300_v8 = vpop.permute.xlu0 %4299 }
 0x879   : > { %v11530_v60 = vadd.f32 %v9516_v48, %v7498_v51  ;;  %v9856_v55 = vmax.f32 %v11526_v23, 0.0  ;;  %v4295_v23 = vpop.permute.xlu1 %4294 }
 0x87a   : > { %v9857_v18 = vmax.f32 %v11528_v28, 0.0  ;;  %v7524_v28 = vadd.f32 %v16176_v16, %v4290_v17 }
 0x87b   : > { %v9858_v20 = vmax.f32 %v11530_v60, 0.0 }
 0x87c   : > { %v10014_v44 = vpack.c.bf16 %v9857_v18, %v9855_v63  ;;  %v16177_v63 = vld [vmem:[#allocation184_spill] sm:$0xff]  ;;  %v4310_v38 = vpop.permute.xlu0 %4309 }
 0x87d   : > { %v10015_v35 = vpack.c.bf16 %v9858_v20, %v9856_v55  ;;  %v9520_v14 = vpop.f32.mrb[124].mxu1  ;;  %v7526_v18 = vadd.f32 %v16177_v63, %v4295_v23  ;;  %v16178_v20 = vld [vmem:[#allocation185_spill] sm:$0xff] }
 0x87e   : > { %v11532_v59 = vadd.f32 %v9520_v14, %v7502_v40  ;;  %v9522_v32 = vpop.f32.mrb[125].mxu1  ;;  %v7528_v11 = vadd.f32 %v16178_v20, %v4295_v23 }
 0x87f   : > { %v11534_v37 = vadd.f32 %v9522_v32, %v7504_v29  ;;  %v9524_v47 = vpop.f32.mrb[126].mxu1  ;;  %10229 = vmatprep.subr.bf16.mxu0 %v10015_v35  ;;  %v16179_v32 = vld [vmem:[#allocation186_spill] sm:$0xff] }
 0x880   : > { %v11536_v46 = vadd.f32 %v9524_v47, %v7506_v62  ;;  %v9526_v21 = vpop.f32.mrb[127].mxu1  ;;  %10230 = vmatpush1.bf16.msra.mxu0 %v10014_v44  ;;  %v9859_v34 = vmax.f32 %v11532_v59, 0.0  ;;  %v7532_v2 = vadd.f32 %v16179_v32, %v4300_v8  ;;  %v16180_v47 = vld [vmem:[#allocation187_spill] sm:$0xff]  ;;  %v4320_v63 = vpop.permute.xlu0 %4319 }
 0x881   : > { %v11538_v39 = vadd.f32 %v9526_v21, %v7508_v49  ;;  %v9860_v45 = vmax.f32 %v11534_v37, 0.0  ;;  %v4305_v37 = vpop.permute.xlu1 %4304 }
 0x882   : > { %v9861_v22 = vmax.f32 %v11536_v46, 0.0  ;;  %v7534_v46 = vadd.f32 %v16180_v47, %v4300_v8 }
 0x883   : > { %v9862_v58 = vmax.f32 %v11538_v39, 0.0 }
 0x884   : > { %v10016_v13 = vpack.c.bf16 %v9861_v22, %v9859_v34  ;;  %v16181_v34 = vld [vmem:[#allocation188_spill] sm:$0xff] }
 0x885   : > { %v10017_v54 = vpack.c.bf16 %v9862_v58, %v9860_v45  ;;  %v9530_v56 = vpop.f32.mrb[128].mxu1  ;;  %v7536_v22 = vadd.f32 %v16181_v34, %v4305_v37  ;;  %v16182_v58 = vld [vmem:[#allocation189_spill] sm:$0xff]  ;;  %v4330_v34 = vpop.permute.xlu0 %4329 }
 0x886   : > { %v11540_v5 = vadd.f32 %v9530_v56, %v7512_v33  ;;  %v9532_v41 = vpop.f32.mrb[129].mxu1  ;;  %v7538_v52 = vadd.f32 %v16182_v58, %v4305_v37 }
 0x887   : > { %v11542_v15 = vadd.f32 %v9532_v41, %v7514_v10  ;;  %v9534_v43 = vpop.f32.mrb[130].mxu1  ;;  %10231 = vmatprep.subr.bf16.mxu0 %v10017_v54  ;;  %v16183_v41 = vld [vmem:[#allocation190_spill] sm:$0xff] }
 0x888   : > { %v11544_v27 = vadd.f32 %v9534_v43, %v7516_v36  ;;  %v9536_v26 = vpop.f32.mrb[131].mxu1  ;;  %10232 = vmatpush1.bf16.msra.mxu0 %v10016_v13  ;;  %v9863_v25 = vmax.f32 %v11540_v5, 0.0  ;;  %v7542_v7 = vadd.f32 %v16183_v41, %v4310_v38  ;;  %v16184_v43 = vld [vmem:[#allocation191_spill] sm:$0xff] }
 0x889   : > { %v11546_v30 = vadd.f32 %v9536_v26, %v7518_v0  ;;  %v9864_v6 = vmax.f32 %v11542_v15, 0.0  ;;  %v4315_v15 = vpop.permute.xlu1 %4314 }
 0x88a   : > { %v9865_v3 = vmax.f32 %v11544_v27, 0.0  ;;  %v7544_v27 = vadd.f32 %v16184_v43, %v4310_v38 }
 0x88b   : > { %v9866_v1 = vmax.f32 %v11546_v30, 0.0 }
 0x88c   : > { %v10018_v51 = vpack.c.bf16 %v9865_v3, %v9863_v25  ;;  %v16185_v25 = vld [vmem:[#allocation192_spill] sm:$0xff] }
 0x88d   : > { %v10019_v48 = vpack.c.bf16 %v9866_v1, %v9864_v6  ;;  %v9540_v60 = vpop.f32.mrb[132].mxu1  ;;  %v7546_v3 = vadd.f32 %v16185_v25, %v4315_v15  ;;  %v16186_v1 = vld [vmem:[#allocation193_spill] sm:$0xff]  ;;  %v4340_v25 = vpop.permute.xlu0 %4339 }
 0x88e   : > { %v11548_v24 = vadd.f32 %v9540_v60, %v7522_v53  ;;  %v9542_v55 = vpop.f32.mrb[133].mxu1  ;;  %v7548_v61 = vadd.f32 %v16186_v1, %v4315_v15 }
 0x88f   : > { %v11550_v40 = vadd.f32 %v9542_v55, %v7524_v28  ;;  %v9544_v44 = vpop.f32.mrb[134].mxu1  ;;  %10233 = vmatprep.subr.bf16.mxu0 %v10019_v48  ;;  %v16187_v55 = vld [vmem:[#allocation194_spill] sm:$0xff] }
 0x890   : > { %v11552_v50 = vadd.f32 %v9544_v44, %v7526_v18  ;;  %v9546_v4 = vpop.f32.mrb[135].mxu1  ;;  %10234 = vmatpush1.bf16.msra.mxu0 %v10018_v51  ;;  %v9867_v35 = vmax.f32 %v11548_v24, 0.0  ;;  %v7552_v20 = vadd.f32 %v16187_v55, %v4320_v63  ;;  %v16188_v44 = vld [vmem:[#allocation195_spill] sm:$0xff] }
 0x891   : > { %v11554_v29 = vadd.f32 %v9546_v4, %v7528_v11  ;;  %v9868_v62 = vmax.f32 %v11550_v40, 0.0  ;;  %v4325_v40 = vpop.permute.xlu1 %4324 }
 0x892   : > { %v9869_v14 = vmax.f32 %v11552_v50, 0.0  ;;  %v7554_v50 = vadd.f32 %v16188_v44, %v4320_v63 }
 0x893   : > { %v9870_v59 = vmax.f32 %v11554_v29, 0.0 }
 0x894   : > { %v10020_v49 = vpack.c.bf16 %v9869_v14, %v9867_v35  ;;  %v16189_v35 = vld [vmem:[#allocation196_spill] sm:$0xff] }
 0x895   : > { %v10021_v21 = vpack.c.bf16 %v9870_v59, %v9868_v62  ;;  %v9550_v39 = vpop.f32.mrb[136].mxu1  ;;  %v7556_v14 = vadd.f32 %v16189_v35, %v4325_v40  ;;  %v16190_v59 = vld [vmem:[#allocation197_spill] sm:$0xff]  ;;  %v4350_v35 = vpop.permute.xlu0 %4349 }
 0x896   : > { %v11556_v57 = vadd.f32 %v9550_v39, %v7532_v2  ;;  %v9552_v45 = vpop.f32.mrb[137].mxu1  ;;  %v7558_v32 = vadd.f32 %v16190_v59, %v4325_v40 }
 0x897   : > { %v11558_v33 = vadd.f32 %v9552_v45, %v7534_v46  ;;  %v9554_v13 = vpop.f32.mrb[138].mxu1  ;;  %10235 = vmatprep.subr.bf16.mxu0 %v10021_v21  ;;  %v16191_v45 = vld [vmem:[#allocation198_spill] sm:$0xff] }
 0x898   : > { %v11560_v9 = vadd.f32 %v9554_v13, %v7536_v22  ;;  %v9556_v31 = vpop.f32.mrb[139].mxu1  ;;  %10236 = vmatpush1.bf16.msra.mxu0 %v10020_v49  ;;  %v9871_v54 = vmax.f32 %v11556_v57, 0.0  ;;  %v7562_v58 = vadd.f32 %v16191_v45, %v4330_v34  ;;  %v16192_v13 = vld [vmem:[#allocation199_spill] sm:$0xff] }
 0x899   : > { %v11562_v10 = vadd.f32 %v9556_v31, %v7538_v52  ;;  %v9872_v36 = vmax.f32 %v11558_v33, 0.0  ;;  %v4335_v33 = vpop.permute.xlu1 %4334 }
 0x89a   : > { %v9873_v56 = vmax.f32 %v11560_v9, 0.0  ;;  %v7564_v9 = vadd.f32 %v16192_v13, %v4330_v34 }
 0x89b   : > { %v9874_v5 = vmax.f32 %v11562_v10, 0.0 }
 0x89c   : > { %v10022_v0 = vpack.c.bf16 %v9873_v56, %v9871_v54  ;;  %v16193_v54 = vld [vmem:[#allocation200_spill] sm:$0xff] }
 0x89d   : > { %v10023_v26 = vpack.c.bf16 %v9874_v5, %v9872_v36  ;;  %v9560_v30 = vpop.f32.mrb[140].mxu1  ;;  %v7566_v56 = vadd.f32 %v16193_v54, %v4335_v33  ;;  %v16194_v5 = vld [vmem:[#allocation201_spill] sm:$0xff]  ;;  %v4360_v54 = vpop.permute.xlu0 %4359 }
 0x89e   : > { %v11564_v17 = vadd.f32 %v9560_v30, %v7542_v7  ;;  %v9562_v6 = vpop.f32.mrb[141].mxu1  ;;  %v7568_v41 = vadd.f32 %v16194_v5, %v4335_v33 }
 0x89f   : > { %v11566_v53 = vadd.f32 %v9562_v6, %v7544_v27  ;;  %v9564_v51 = vpop.f32.mrb[142].mxu1  ;;  %10237 = vmatprep.subr.bf16.mxu0 %v10023_v26  ;;  %v16195_v6 = vld [vmem:[#allocation202_spill] sm:$0xff] }
 0x8a0   : > { %v11568_v23 = vadd.f32 %v9564_v51, %v7546_v3  ;;  %v9566_v16 = vpop.f32.mrb[143].mxu1  ;;  %10238 = vmatpush1.bf16.msra.mxu0 %v10022_v0  ;;  %v9875_v48 = vmax.f32 %v11564_v17, 0.0  ;;  %v7572_v1 = vadd.f32 %v16195_v6, %v4340_v25  ;;  %v16196_v51 = vld [vmem:[#allocation203_spill] sm:$0xff] }
 0x8a1   : > { %v11570_v28 = vadd.f32 %v9566_v16, %v7548_v61  ;;  %v9876_v18 = vmax.f32 %v11566_v53, 0.0  ;;  %v4345_v53 = vpop.permute.xlu1 %4344 }
 0x8a2   : > { %v9877_v60 = vmax.f32 %v11568_v23, 0.0  ;;  %v7574_v23 = vadd.f32 %v16196_v51, %v4340_v25 }
 0x8a3   : > { %v9878_v24 = vmax.f32 %v11570_v28, 0.0 }
 0x8a4   : > { %v10024_v11 = vpack.c.bf16 %v9877_v60, %v9875_v48  ;;  %v16197_v48 = vld [vmem:[#allocation204_spill] sm:$0xff] }
 0x8a5   : > { %v10025_v4 = vpack.c.bf16 %v9878_v24, %v9876_v18  ;;  %v9570_v29 = vpop.f32.mrb[144].mxu1  ;;  %v7576_v60 = vadd.f32 %v16197_v48, %v4345_v53  ;;  %v16198_v24 = vld [vmem:[#allocation205_spill] sm:$0xff]  ;;  %v4370_v48 = vpop.permute.xlu0 %4369 }
 0x8a6   : > { %v11572_v8 = vadd.f32 %v9570_v29, %v7552_v20  ;;  %v9572_v62 = vpop.f32.mrb[145].mxu1  ;;  %v7578_v55 = vadd.f32 %v16198_v24, %v4345_v53 }
 0x8a7   : > { %v11574_v2 = vadd.f32 %v9572_v62, %v7554_v50  ;;  %v9574_v49 = vpop.f32.mrb[146].mxu1  ;;  %10239 = vmatprep.subr.bf16.mxu0 %v10025_v4  ;;  %v16199_v62 = vld [vmem:[#allocation206_spill] sm:$0xff] }
 0x8a8   : > { %v11576_v37 = vadd.f32 %v9574_v49, %v7556_v14  ;;  %v9576_v47 = vpop.f32.mrb[147].mxu1  ;;  %10240 = vmatpush1.bf16.msra.mxu0 %v10024_v11  ;;  %v9879_v21 = vmax.f32 %v11572_v8, 0.0  ;;  %v7582_v59 = vadd.f32 %v16199_v62, %v4350_v35  ;;  %v16200_v49 = vld [vmem:[#allocation207_spill] sm:$0xff] }
 0x8a9   : > { %v11578_v46 = vadd.f32 %v9576_v47, %v7558_v32  ;;  %v9880_v22 = vmax.f32 %v11574_v2, 0.0  ;;  %v4355_v2 = vpop.permute.xlu1 %4354 }
 0x8aa   : > { %v9881_v39 = vmax.f32 %v11576_v37, 0.0  ;;  %v7584_v37 = vadd.f32 %v16200_v49, %v4350_v35 }
 0x8ab   : > { %v9882_v57 = vmax.f32 %v11578_v46, 0.0 }
 0x8ac   : > { %v10026_v52 = vpack.c.bf16 %v9881_v39, %v9879_v21  ;;  %v16201_v21 = vld [vmem:[#allocation208_spill] sm:$0xff] }
 0x8ad   : > { %v10027_v31 = vpack.c.bf16 %v9882_v57, %v9880_v22  ;;  %v9580_v10 = vpop.f32.mrb[148].mxu1  ;;  %v7586_v39 = vadd.f32 %v16201_v21, %v4355_v2  ;;  %v16202_v57 = vld [vmem:[#allocation209_spill] sm:$0xff]  ;;  %v4380_v21 = vpop.permute.xlu0 %4379 }
 0x8ae   : > { %v11580_v38 = vadd.f32 %v9580_v10, %v7562_v58  ;;  %v9582_v36 = vpop.f32.mrb[149].mxu1  ;;  %v7588_v45 = vadd.f32 %v16202_v57, %v4355_v2 }
 0x8af   : > { %v11582_v7 = vadd.f32 %v9582_v36, %v7564_v9  ;;  %v9584_v0 = vpop.f32.mrb[150].mxu1  ;;  %10241 = vmatprep.subr.bf16.mxu0 %v10027_v31  ;;  %v16203_v36 = vld [vmem:[#allocation210_spill] sm:$0xff] }
 0x8b0   : > { %v11584_v15 = vadd.f32 %v9584_v0, %v7566_v56  ;;  %v9586_v43 = vpop.f32.mrb[151].mxu1  ;;  %10242 = vmatpush1.bf16.msra.mxu0 %v10026_v52  ;;  %v9883_v26 = vmax.f32 %v11580_v38, 0.0  ;;  %v7592_v5 = vadd.f32 %v16203_v36, %v4360_v54  ;;  %v16204_v0 = vld [vmem:[#allocation211_spill] sm:$0xff] }
 0x8b1   : > { %v11586_v27 = vadd.f32 %v9586_v43, %v7568_v41  ;;  %v9884_v3 = vmax.f32 %v11582_v7, 0.0  ;;  %v4365_v7 = vpop.permute.xlu1 %4364 }
 0x8b2   : > { %v9885_v30 = vmax.f32 %v11584_v15, 0.0  ;;  %v7594_v15 = vadd.f32 %v16204_v0, %v4360_v54 }
 0x8b3   : > { %v9886_v17 = vmax.f32 %v11586_v27, 0.0 }
 0x8b4   : > { %v10028_v61 = vpack.c.bf16 %v9885_v30, %v9883_v26  ;;  %v16205_v26 = vld [vmem:[#allocation212_spill] sm:$0xff] }
 0x8b5   : > { %v10029_v16 = vpack.c.bf16 %v9886_v17, %v9884_v3  ;;  %v9590_v28 = vpop.f32.mrb[152].mxu1  ;;  %v7596_v30 = vadd.f32 %v16205_v26, %v4365_v7  ;;  %v16206_v17 = vld [vmem:[#allocation213_spill] sm:$0xff]  ;;  %v4390_v26 = vpop.permute.xlu0 %4389 }
 0x8b6   : > { %v11588_v63 = vadd.f32 %v9590_v28, %v7572_v1  ;;  %v9592_v18 = vpop.f32.mrb[153].mxu1  ;;  %v7598_v6 = vadd.f32 %v16206_v17, %v4365_v7 }
 0x8b7   : > { %v11590_v20 = vadd.f32 %v9592_v18, %v7574_v23  ;;  %v9594_v11 = vpop.f32.mrb[154].mxu1  ;;  %10243 = vmatprep.subr.bf16.mxu0 %v10029_v16  ;;  %v16207_v18 = vld [vmem:[#allocation214_spill] sm:$0xff] }
 0x8b8   : > { %v11592_v40 = vadd.f32 %v9594_v11, %v7576_v60  ;;  %v9596_v44 = vpop.f32.mrb[155].mxu1  ;;  %10244 = vmatpush1.bf16.msra.mxu0 %v10028_v61  ;;  %v9887_v4 = vmax.f32 %v11588_v63, 0.0  ;;  %v7602_v24 = vadd.f32 %v16207_v18, %v4370_v48  ;;  %v16208_v11 = vld [vmem:[#allocation215_spill] sm:$0xff] }
 0x8b9   : > { %v11594_v50 = vadd.f32 %v9596_v44, %v7578_v55  ;;  %v9888_v14 = vmax.f32 %v11590_v20, 0.0  ;;  %v4375_v20 = vpop.permute.xlu1 %4374 }
 0x8ba   : > { %v9889_v29 = vmax.f32 %v11592_v40, 0.0  ;;  %v7604_v40 = vadd.f32 %v16208_v11, %v4370_v48 }
 0x8bb   : > { %v9890_v8 = vmax.f32 %v11594_v50, 0.0 }
 0x8bc   : > { %v10030_v32 = vpack.c.bf16 %v9889_v29, %v9887_v4  ;;  %v16209_v4 = vld [vmem:[#allocation216_spill] sm:$0xff] }
 0x8bd   : > { %v10031_v47 = vpack.c.bf16 %v9890_v8, %v9888_v14  ;;  %v9600_v46 = vpop.f32.mrb[156].mxu1  ;;  %v7606_v29 = vadd.f32 %v16209_v4, %v4375_v20  ;;  %v16210_v8 = vld [vmem:[#allocation217_spill] sm:$0xff]  ;;  %v4400_v4 = vpop.permute.xlu0 %4399 }
 0x8be   : > { %v11596_v34 = vadd.f32 %v9600_v46, %v7582_v59  ;;  %v9602_v22 = vpop.f32.mrb[157].mxu1  ;;  %v7608_v62 = vadd.f32 %v16210_v8, %v4375_v20 }
 0x8bf   : > { %v11598_v58 = vadd.f32 %v9602_v22, %v7584_v37  ;;  %v9604_v52 = vpop.f32.mrb[158].mxu1  ;;  %10245 = vmatprep.subr.bf16.mxu0 %v10031_v47  ;;  %v16211_v22 = vld [vmem:[#allocation218_spill] sm:$0xff] }
 0x8c0   : > { %v11600_v33 = vadd.f32 %v9604_v52, %v7586_v39  ;;  %v9606_v13 = vpop.f32.mrb[159].mxu1  ;;  %10246 = vmatpush1.bf16.msra.mxu0 %v10030_v32  ;;  %v9891_v31 = vmax.f32 %v11596_v34, 0.0  ;;  %v7612_v57 = vadd.f32 %v16211_v22, %v4380_v21  ;;  %v16212_v52 = vld [vmem:[#allocation219_spill] sm:$0xff] }
 0x8c1   : > { %v11602_v9 = vadd.f32 %v9606_v13, %v7588_v45  ;;  %v9892_v56 = vmax.f32 %v11598_v58, 0.0  ;;  %v4385_v58 = vpop.permute.xlu1 %4384 }
 0x8c2   : > { %v9893_v10 = vmax.f32 %v11600_v33, 0.0  ;;  %v7614_v33 = vadd.f32 %v16212_v52, %v4380_v21 }
 0x8c3   : > { %v9894_v38 = vmax.f32 %v11602_v9, 0.0 }
 0x8c4   : > { %v10032_v41 = vpack.c.bf16 %v9893_v10, %v9891_v31  ;;  %v16213_v31 = vld [vmem:[#allocation220_spill] sm:$0xff] }
 0x8c5   : > { %v10033_v43 = vpack.c.bf16 %v9894_v38, %v9892_v56  ;;  %v9610_v27 = vpop.f32.mrb[160].mxu1  ;;  %v7616_v10 = vadd.f32 %v16213_v31, %v4385_v58  ;;  %v16214_v38 = vld [vmem:[#allocation221_spill] sm:$0xff] }
 0x8c6   : > { %v11604_v25 = vadd.f32 %v9610_v27, %v7592_v5  ;;  %v9612_v3 = vpop.f32.mrb[161].mxu1  ;;  %v7618_v36 = vadd.f32 %v16214_v38, %v4385_v58  ;;  %v10093_v38 = vcombine.high %v15339_v19, %v15339_v19 }
 0x8c7   : > { %v11606_v1 = vadd.f32 %v9612_v3, %v7594_v15  ;;  %v9614_v61 = vpop.f32.mrb[162].mxu1  ;;  %10247 = vmatprep.subr.bf16.mxu0 %v10033_v43  ;;  %v16215_v3 = vld [vmem:[#allocation222_spill] sm:$0xff] }
 0x8c8   : > { %v11608_v53 = vadd.f32 %v9614_v61, %v7596_v30  ;;  %v9616_v51 = vpop.f32.mrb[163].mxu1  ;;  %10248 = vmatpush1.bf16.msra.mxu0 %v10032_v41  ;;  %v9895_v16 = vmax.f32 %v11604_v25, 0.0  ;;  %v7622_v17 = vadd.f32 %v16215_v3, %v4390_v26  ;;  %v16216_v61 = vld [vmem:[#allocation223_spill] sm:$0xff] }
 0x8c9   : > { %v11610_v23 = vadd.f32 %v9616_v51, %v7598_v6  ;;  %v9896_v60 = vmax.f32 %v11606_v1, 0.0  ;;  %v4395_v1 = vpop.permute.xlu1 %4394 }
 0x8ca   : > { %v9897_v28 = vmax.f32 %v11608_v53, 0.0  ;;  %v7624_v53 = vadd.f32 %v16216_v61, %v4390_v26 }
 0x8cb   : > { %v9898_v63 = vmax.f32 %v11610_v23, 0.0 }
 0x8cc   : > { %v10034_v55 = vpack.c.bf16 %v9897_v28, %v9895_v16  ;;  %v16217_v16 = vld [vmem:[#allocation224_spill] sm:$0xff] }
 0x8cd   : > { %v10035_v44 = vpack.c.bf16 %v9898_v63, %v9896_v60  ;;  %v9620_v50 = vpop.f32.mrb[164].mxu1  ;;  %v7626_v28 = vadd.f32 %v16217_v16, %v4395_v1  ;;  %v16218_v63 = vld [vmem:[#allocation225_spill] sm:$0xff] }
 0x8ce   : > { %v11612_v35 = vadd.f32 %v9620_v50, %v7602_v24  ;;  %v9622_v14 = vpop.f32.mrb[165].mxu1  ;;  %v7628_v18 = vadd.f32 %v16218_v63, %v4395_v1 }
 0x8cf   : > { %v11614_v59 = vadd.f32 %v9622_v14, %v7604_v40  ;;  %v9624_v32 = vpop.f32.mrb[166].mxu1  ;;  %10249 = vmatprep.subr.bf16.mxu0 %v10035_v44  ;;  %v16219_v14 = vld [vmem:[#allocation226_spill] sm:$0xff] }
 0x8d0   : > { %v11616_v2 = vadd.f32 %v9624_v32, %v7606_v29  ;;  %v9626_v49 = vpop.f32.mrb[167].mxu1  ;;  %10250 = vmatpush1.bf16.msra.mxu0 %v10034_v55  ;;  %v9899_v47 = vmax.f32 %v11612_v35, 0.0  ;;  %v7632_v8 = vadd.f32 %v16219_v14, %v4400_v4  ;;  %v16220_v32 = vld [vmem:[#allocation227_spill] sm:$0xff] }
 0x8d1   : > { %v11618_v37 = vadd.f32 %v9626_v49, %v7608_v62  ;;  %v9900_v39 = vmax.f32 %v11614_v59, 0.0  ;;  %v4405_v59 = vpop.permute.xlu1 %4404 }
 0x8d2   : > { %v9901_v46 = vmax.f32 %v11616_v2, 0.0  ;;  %v7634_v2 = vadd.f32 %v16220_v32, %v4400_v4 }
 0x8d3   : > { %v9902_v34 = vmax.f32 %v11618_v37, 0.0 }
 0x8d4   : > { %v10036_v45 = vpack.c.bf16 %v9901_v46, %v9899_v47  ;;  %v16221_v47 = vld [vmem:[#allocation228_spill] sm:$0xff] }
 0x8d5   : > { %v10037_v13 = vpack.c.bf16 %v9902_v34, %v9900_v39  ;;  %v9630_v9 = vpop.f32.mrb[168].mxu1  ;;  %v7636_v46 = vadd.f32 %v16221_v47, %v4405_v59  ;;  %v16222_v34 = vld [vmem:[#allocation229_spill] sm:$0xff] }
 0x8d6   : > { %v11620_v54 = vadd.f32 %v9630_v9, %v7612_v57  ;;  %v9632_v56 = vpop.f32.mrb[169].mxu1  ;;  %v7638_v22 = vadd.f32 %v16222_v34, %v4405_v59 }
 0x8d7   : > { %v11622_v5 = vadd.f32 %v9632_v56, %v7614_v33  ;;  %v9634_v41 = vpop.f32.mrb[170].mxu1  ;;  %10251 = vmatprep.subr.bf16.mxu0 %v10037_v13 }
 0x8d8   : > { %v11624_v7 = vadd.f32 %v9634_v41, %v7616_v10  ;;  %v9636_v0 = vpop.f32.mrb[171].mxu1  ;;  %10252 = vmatpush1.bf16.msra.mxu0 %v10036_v45  ;;  %v9903_v43 = vmax.f32 %v11620_v54, 0.0 }
 0x8d9   : > { %v11626_v15 = vadd.f32 %v9636_v0, %v7618_v36  ;;  %v9904_v30 = vmax.f32 %v11622_v5, 0.0  ;;  %v10045_v36 = vstv %s10044_s30 }
 0x8da   : > { %v9905_v27 = vmax.f32 %v11624_v7, 0.0 }
 0x8db   : > { %v9906_v25 = vmax.f32 %v11626_v15, 0.0 }
 0x8dc   : > { %v10038_v6 = vpack.c.bf16 %v9905_v27, %v9903_v43 }
 0x8dd   : > { %v10039_v51 = vpack.c.bf16 %v9906_v25, %v9904_v30  ;;  %v9640_v23 = vpop.f32.mrb[172].mxu1 }
 0x8de   : > { %v11628_v48 = vadd.f32 %v9640_v23, %v7622_v17  ;;  %v9642_v60 = vpop.f32.mrb[173].mxu1 }
 0x8df   : > { %v11630_v24 = vadd.f32 %v9642_v60, %v7624_v53  ;;  %v9644_v55 = vpop.f32.mrb[174].mxu1  ;;  %10253 = vmatprep.subr.bf16.mxu0 %v10039_v51 }
 0x8e0   : > { %v11632_v20 = vadd.f32 %v9644_v55, %v7626_v28  ;;  %v9646_v11 = vpop.f32.mrb[175].mxu1  ;;  %10254 = vmatpush1.bf16.msra.mxu0 %v10038_v6  ;;  %v9907_v44 = vmax.f32 %v11628_v48, 0.0 }
 0x8e1   : > { %v11634_v40 = vadd.f32 %v9646_v11, %v7628_v18  ;;  %v9908_v29 = vmax.f32 %v11630_v24, 0.0 }
 0x8e2   : > { %v9909_v50 = vmax.f32 %v11632_v20, 0.0 }
 0x8e3   : > { %v9910_v35 = vmax.f32 %v11634_v40, 0.0 }
 0x8e4   : > { %v10040_v62 = vpack.c.bf16 %v9909_v50, %v9907_v44 }
 0x8e5   : > { %v10041_v49 = vpack.c.bf16 %v9910_v35, %v9908_v29  ;;  %v9650_v37 = vpop.f32.mrb[176].mxu1 }
 0x8e6   : > { %v11636_v21 = vadd.f32 %v9650_v37, %v7632_v8  ;;  %v9652_v39 = vpop.f32.mrb[177].mxu1 }
 0x8e7   : > { %v11638_v57 = vadd.f32 %v9652_v39, %v7634_v2  ;;  %v9654_v45 = vpop.f32.mrb[178].mxu1  ;;  %10255 = vmatprep.subr.bf16.mxu0 %v10041_v49 }
 0x8e8   : > { %v11640_v58 = vadd.f32 %v9654_v45, %v7636_v46  ;;  %v9656_v52 = vpop.f32.mrb[179].mxu1  ;;  %10256 = vmatpush1.bf16.msra.mxu0 %v10040_v62  ;;  %v9911_v13 = vmax.f32 %v11636_v21, 0.0 }
 0x8e9   : > { %v11642_v33 = vadd.f32 %v9656_v52, %v7638_v22  ;;  %v9912_v31 = vmax.f32 %v11638_v57, 0.0 }
 0x8ea   : > { %v9913_v9 = vmax.f32 %v11640_v58, 0.0 }
 0x8eb   : > { %v9914_v10 = vmax.f32 %v11642_v33, 0.0 }
 0x8ec   : > { %v10042_v54 = vpack.c.bf16 %v9913_v9, %v9911_v13 }
 0x8ed   : > { %v10043_v56 = vpack.c.bf16 %v9914_v10, %v9912_v31 }
 0x8ef   : > { %10257 = vmatprep.subr.bf16.mxu0 %v10043_v56 }
 0x8f0   : > { %10258 = vmatpush1.bf16.msra.mxu0 %v10042_v54 }
 0x8f3   : > { %10260 = vmatmul.mubr.bf16.vlgmr.msra.gmra.mrb[76].mxu0 %v10093_v38 }
 0x9c6   : > { %v10261_v5 = vpop.f32.mrb[76].mxu0 }
 0x9c7   : > { %v11643_v41 = vadd.f32 %v10261_v5, %v10045_v36  ;;  %v10263_v7 = vpop.f32.mrb[77].mxu0 }
 0x9c8   : > { %v11644_v0 = vadd.f32 %v10263_v7, %v10045_v36  ;;  %v10265_v15 = vpop.f32.mrb[78].mxu0 }
 0x9c9   : > { %v10266_v43 = vpop.f32.mrb[79].mxu0 }
 0x9ca   : > { %v10270_v27 = vcombine.low %v11643_v41, %v11644_v0 }
 0x9cc   : > { %v10277_v19 = vrot.slane %v10270_v27, %v15061_v42 }
 0x9ce   : > { %v10284_v26 = vrot.slane %v10277_v19, %v15061_v42 }
 0x9d0   : > { %10290 = vst.msk [vmem:[%s339_s25] sm:$0x3] %vm10288_vm0, %v10284_v26 }
 0x9d1   : > { %12625 = shalt.err (!%p12622_p12)
}
 0x9d2   : > { %s12626_s11 = scalar_lea.hbm %s15414_s24, 32  ;;  %s12630_s20 = scalar_lea.hbm %s15465_s7, 64 }
 0x9d3   : > { %p12627_p3 = scmp.ne.s32.totalorder %s15414_s24, %s12626_s11  ;;  %p12631_p13 = scmp.lt.u32.totalorder %s15414_s24, %s15465_s7 }
 0x9d4   : > { %p12632_p7 = scmp.lt.u32.totalorder %s12630_s20, %s12626_s11  ;;  %p12634_p10 = scmp.lt.u32.totalorder %s12626_s11, %s15414_s24 }
 0x9d5   : > { %p12628_p6 = pnand %p12627_p3, %p16223_p1 }
 0x9d6   : > { %p12633_p9 = por %p12632_p7, %p12631_p13 }
 0x9d7   : > { %p12629_p2 = pneg %p12628_p6 }
 0x9d8   : > { %p12635_p4 = por %p12634_p10, %p12633_p9 }
 0x9da   : > { %p12636_p0 = pnand %p12635_p4, %p12629_p2 }
 0x9dc   : > { %12639 = shalt.err (!%p12636_p0)
}
 0x9dd   : > { %12183 = dma.vmem_to_hbm [thread:$0]  (%p16223_p1), %s15416_s18, 32, %s15414_s24, %s10292_s6  }
 0x9de PF: > { %s16224_s13 = sld [smem:[#allocation16_spill]]  ;;  %s16225_s16 = sld [smem:[#allocation19_spill]] }
 0x9df   : > { %p16227_p5 = scmp.ge.s32.totalorder %s12686_s29, 2 }
 0x9e4   : > { %s10318_s30 = sand.u32 1, %s16224_s13   ;;  %p16226_p8 = scmp.ne.s32.totalorder %s16225_s16, 0 }
 0x9e5   : > { %s10319_s8 = scalar_lea.sflag [#allocation5], %s10318_s30 }
 0x9e6   : > { %p12200_p11 = pnand %p16227_p5, %p16226_p8 }
 0x9e8   : > { %12669 = dma.done.wait (!%p12200_p11), %s10319_s8, 32  }
 0x9e9   : > { %12671 = vsyncadd (!%p12200_p11), %s10319_s8, 4294967264  ;;  %s16228_s29 = sld [smem:[#allocation17_spill]]  ;;  %s16229_s19 = sld [smem:[#allocation18_spill]] }
 0x9ea   : > { %s16230_s26 = smov %s12678_s27  ;;  %s16231_s27 = smov %s12682_s28 }
 0x9ef   : > { %p23_p12 = scmp.ge.s32.totalorder %s16228_s29, 4   ;;  %s16232_s28 = smov %s16229_s19 }
 0x9f1   :  { %25 = sbr.rel (!%p23_p12) target bundleno = 10 (0xa), region = 105 }
 0x9f8   :  { %10324 = vsyncpa [#allocation4], 1 }
 0x9f9   :  { %10326 = vsyncpa [#allocation4 + $0x1], 1 }
 0x9fa   :  { %10327 = vsyncpa [#allocation7], 1 }
 0x9fb   :  { %10328 = vsyncpa [#allocation10], 1 }
 0x9fc   :  { %10329 = vsyncpa [#allocation5], 1 }
 0x9fd   :  { %10331 = vsyncpa [#allocation5 + $0x1], 1 }

</bundles_post_ra>
